<compile_context>
chip_gen: v6e
topology: v6e:2x2x1
jax: 0.10.0
libtpu: 0.0.40
codegen_flags: <defaults>
</compile_context>

<pallas_src>
import math

import jax
import jax.numpy as jnp
from jax.experimental import pallas as pl
from jax.experimental.pallas import tpu as pltpu


NUM_CLASSES = 5
NUM_ANCHORS = 3
ANCHOR_SIZES = (2.0, 4.0, 8.0)
TOPK_PROPOSALS = 8
FC_DIM = 64
LANE = 128                      # TPU lane width; big HBM outputs padded to this
BBOX_CLAMP = math.log(1000.0 / 16.0)


# ----------------------------------------------------------------------------
# Kernel A: fused backbone + RPN (one image per grid step, VMEM-resident)
# ----------------------------------------------------------------------------
def _make_backbone_rpn_kernel(H, W, c_in, c1, c2):
    HW = H * W
    WPAD = 8   # left/right spatial pad kept sublane-tile aligned (multiple of 8)

    def pad_spatial(feat):
        """(H, W, C) -> (H+2, W+2*WPAD, C), feature placed at [1:H+1, WPAD:WPAD+W]."""
        C = feat.shape[-1]
        zc = jnp.zeros((H, WPAD, C), jnp.float32)
        p = jnp.concatenate([zc, feat, zc], axis=1)          # aligned sublane concat
        zr = jnp.zeros((1, W + 2 * WPAD, C), jnp.float32)
        return jnp.concatenate([zr, p, zr], axis=0)          # leading-dim concat

    def conv3x3_relu(feat_hwc, w_ref, b_ref):
        """One im2col matmul per conv: patches (HW, 9C) @ weight (9C, Cout)."""
        C = feat_hwc.shape[-1]
        c_out = w_ref.shape[-1]
        padded = pad_spatial(feat_hwc)
        taps = []
        for kh in range(3):
            for kw in range(3):
                t = padded[kh:kh + H, WPAD - 1 + kw:WPAD - 1 + kw + W, :]
                taps.append(t.reshape(HW, C))
        patches = jnp.concatenate(taps, axis=-1)             # (HW, 9*C)
        y = jnp.dot(patches, w_ref[...],
                    preferred_element_type=jnp.float32) + b_ref[...]
        return jnp.maximum(y, 0.0).reshape(H, W, c_out)      # (H, W, Cout)

    def kernel(x_ref, w1_ref, b1_ref, w2_ref, b2_ref, wr_ref, br_ref,
               wh_ref, bh_ref, rpn_ref, pool_ref):
        x = x_ref[0].astype(jnp.float32)                     # (H, W, c_in)

        # -------- backbone: conv3x3+ReLU, conv3x3+ReLU (all in VMEM) --------
        f1 = conv3x3_relu(x, w1_ref, b1_ref)                 # (H, W, c1)
        feats = conv3x3_relu(f1, w2_ref, b2_ref)             # (H, W, c2)

        # -------- rpn: conv3x3+ReLU then fused 1x1 heads --------------------
        rpn_feat = conv3x3_relu(feats, wr_ref, br_ref)       # (H, W, c2)
        # fused heads: output lanes = [objectness(A) | box deltas(4A) | zero pad]
        rpn_ref[0] = (jnp.dot(rpn_feat.reshape(HW, c2), wh_ref[...],
                              preferred_element_type=jnp.float32)
                      + bh_ref[...]).astype(rpn_ref.dtype)   # (HW, 128) lane-dense

        # -------- global-average pooled backbone feature (ROI stand-in) -----
        # mean over HW via a 1xHW matmul (MXU); one tiny row per image, padded
        # to 128 lanes so the HBM store is unmasked (lane-dense).
        ones_row = jnp.full((1, HW), 1.0 / HW, jnp.float32)
        pool = jnp.dot(ones_row, feats.reshape(HW, c2),
                       preferred_element_type=jnp.float32)   # (1, c2)
        pool_ref[0] = jnp.concatenate(
            [pool, jnp.zeros((1, LANE - c2), jnp.float32)],
            axis=-1).astype(pool_ref.dtype)                  # (1, 128)

    return kernel


def backbone_rpn(x_nhwc, w1f, b1, w2f, b2, wrf, br, whf, bh):
    N, H, W, c_in = x_nhwc.shape
    c1 = w1f.shape[1]
    c2 = w2f.shape[1]
    kernel = _make_backbone_rpn_kernel(H, W, c_in, c1, c2)
    return pl.pallas_call(
        kernel,
        out_shape=(
            jax.ShapeDtypeStruct((N, H * W, LANE), jnp.float32),  # rpn head maps
            jax.ShapeDtypeStruct((N, 1, LANE), jnp.float32),      # pooled features
        ),
        grid=(N,),
        in_specs=[
            pl.BlockSpec((1, H, W, c_in), lambda n: (n, 0, 0, 0)),
            pl.BlockSpec(w1f.shape, lambda n: (0, 0)),
            pl.BlockSpec(b1.shape, lambda n: (0, 0)),
            pl.BlockSpec(w2f.shape, lambda n: (0, 0)),
            pl.BlockSpec(b2.shape, lambda n: (0, 0)),
            pl.BlockSpec(wrf.shape, lambda n: (0, 0)),
            pl.BlockSpec(br.shape, lambda n: (0, 0)),
            pl.BlockSpec(whf.shape, lambda n: (0, 0)),
            pl.BlockSpec(bh.shape, lambda n: (0, 0)),
        ],
        out_specs=(
            pl.BlockSpec((1, H * W, LANE), lambda n: (n, 0, 0)),
            pl.BlockSpec((1, 1, LANE), lambda n: (n, 0, 0)),
        ),
        compiler_params=pltpu.CompilerParams(
            dimension_semantics=("parallel",)),   # shard batch across v7x cores
    )(x_nhwc, w1f, b1, w2f, b2, wrf, br, whf, bh)


# ----------------------------------------------------------------------------
# Kernel B: fused ROI box head (FC1+ReLU -> FC2+ReLU -> [cls | box] heads)
# ----------------------------------------------------------------------------
def _roi_head_kernel(x_ref, w1_ref, b1_ref, w2_ref, b2_ref, wh_ref, bh_ref, o_ref):
    h = jnp.maximum(
        jnp.dot(x_ref[...], w1_ref[...], preferred_element_type=jnp.float32)
        + b1_ref[...], 0.0)
    h = jnp.maximum(
        jnp.dot(h, w2_ref[...], preferred_element_type=jnp.float32)
        + b2_ref[...], 0.0)
    o_ref[...] = (jnp.dot(h, wh_ref[...], preferred_element_type=jnp.float32)
                  + bh_ref[...]).astype(o_ref.dtype)          # (M, 128) lane-dense


def roi_box_head(roi_in, w1, b1, w2, b2, wh, bh):
    M, K = roi_in.shape
    return pl.pallas_call(
        _roi_head_kernel,
        out_shape=jax.ShapeDtypeStruct((M, LANE), jnp.float32),
        grid=(1,),
        in_specs=[
            pl.BlockSpec((M, K), lambda i: (0, 0)),
            pl.BlockSpec(w1.shape, lambda i: (0, 0)),
            pl.BlockSpec(b1.shape, lambda i: (0, 0)),
            pl.BlockSpec(w2.shape, lambda i: (0, 0)),
            pl.BlockSpec(b2.shape, lambda i: (0, 0)),
            pl.BlockSpec(wh.shape, lambda i: (0, 0)),
            pl.BlockSpec(bh.shape, lambda i: (0, 0)),
        ],
        out_specs=pl.BlockSpec((M, LANE), lambda i: (0, 0)),
        compiler_params=pltpu.CompilerParams(
            dimension_semantics=("arbitrary",)),
    )(roi_in, w1, b1, w2, b2, wh, bh)


# ----------------------------------------------------------------------------
# Parameter init (deterministic, synthetic)
# ----------------------------------------------------------------------------
def _wkey(key, shape, scale=0.05):
    return scale * jax.random.normal(key, shape, jnp.float32)


def init_params(key, in_channels=4, c1=16, c2=32):
    ks = jax.random.split(key, 16)
    p = {}
    # backbone
    p["bb_w1"] = _wkey(ks[0], (3, 3, in_channels, c1))
    p["bb_b1"] = jnp.zeros((1, 1, c1), jnp.float32)
    p["bb_w2"] = _wkey(ks[1], (3, 3, c1, c2))
    p["bb_b2"] = jnp.zeros((1, 1, c2), jnp.float32)
    # rpn
    p["rpn_w"] = _wkey(ks[2], (3, 3, c2, c2))
    p["rpn_b"] = jnp.zeros((1, 1, c2), jnp.float32)
    p["rpn_cls_w"] = _wkey(ks[3], (1, 1, c2, NUM_ANCHORS))
    p["rpn_cls_b"] = jnp.zeros((1, 1, NUM_ANCHORS), jnp.float32)
    p["rpn_box_w"] = _wkey(ks[4], (1, 1, c2, NUM_ANCHORS * 4))
    p["rpn_box_b"] = jnp.zeros((1, 1, NUM_ANCHORS * 4), jnp.float32)
    # roi heads
    roi_in = c2 + 4
    p["roi_w1"] = _wkey(ks[5], (roi_in, FC_DIM))
    p["roi_b1"] = jnp.zeros((1, FC_DIM), jnp.float32)
    p["roi_w2"] = _wkey(ks[6], (FC_DIM, FC_DIM))
    p["roi_b2"] = jnp.zeros((1, FC_DIM), jnp.float32)
    p["cls_w"] = _wkey(ks[7], (FC_DIM, NUM_CLASSES))
    p["cls_b"] = jnp.zeros((1, NUM_CLASSES), jnp.float32)
    p["box_w"] = _wkey(ks[8], (FC_DIM, NUM_CLASSES * 4))
    p["box_b"] = jnp.zeros((1, NUM_CLASSES * 4), jnp.float32)
    return p


# ----------------------------------------------------------------------------
# Glue: anchors, box decoding, proposal selection (tiny, control-flow heavy)
# ----------------------------------------------------------------------------
def make_anchors(H, W):
    ys = jnp.arange(H, dtype=jnp.float32) + 0.5
    xs = jnp.arange(W, dtype=jnp.float32) + 0.5
    yy, xx = jnp.meshgrid(ys, xs, indexing="ij")            # (H, W)
    sizes = jnp.asarray(ANCHOR_SIZES, jnp.float32)          # (A,)
    half = 0.5 * sizes[None, None, :]                       # (1,1,A)
    x1 = xx[..., None] - half
    y1 = yy[..., None] - half
    x2 = xx[..., None] + half
    y2 = yy[..., None] + half
    return jnp.stack([x1, y1, x2, y2], axis=-1).reshape(-1, 4)   # (H*W*A, 4)


def decode_boxes(boxes, deltas):
    """boxes: (..., 4) x1y1x2y2 ; deltas: (..., 4) dx,dy,dw,dh."""
    wa = boxes[..., 2] - boxes[..., 0]
    ha = boxes[..., 3] - boxes[..., 1]
    xa = boxes[..., 0] + 0.5 * wa
    ya = boxes[..., 1] + 0.5 * ha
    dx, dy = deltas[..., 0], deltas[..., 1]
    dw, dh = deltas[..., 2], deltas[..., 3]
    xc = dx * wa + xa
    yc = dy * ha + ya
    w = jnp.exp(jnp.minimum(dw, BBOX_CLAMP)) * wa
    h = jnp.exp(jnp.minimum(dh, BBOX_CLAMP)) * ha
    return jnp.stack(
        [xc - 0.5 * w, yc - 0.5 * h, xc + 0.5 * w, yc + 0.5 * h], axis=-1)


def clip_boxes(boxes, H, W):
    x1 = jnp.clip(boxes[..., 0], 0.0, W)
    y1 = jnp.clip(boxes[..., 1], 0.0, H)
    x2 = jnp.clip(boxes[..., 2], 0.0, W)
    y2 = jnp.clip(boxes[..., 3], 0.0, H)
    return jnp.stack([x1, y1, x2, y2], axis=-1)


# ----------------------------------------------------------------------------
# Forward pass (inference mode of GeneralizedRCNN)
# ----------------------------------------------------------------------------
@jax.jit
def generalized_rcnn_forward(params, images_nchw):
    # to_image_list + layout change (NCHW -> NHWC; channels on the lane axis)
    x = jnp.transpose(images_nchw, (0, 2, 3, 1)).astype(jnp.float32)
    N, H, W, c_in = x.shape
    c1 = params["bb_w1"].shape[-1]
    c2 = params["bb_w2"].shape[-1]
    A = NUM_ANCHORS

    # ---- reshape / fuse weights for the Pallas kernels (tiny, one-off) ----
    w1f = params["bb_w1"].reshape(9 * c_in, c1)      # rows ordered (kh, kw, cin)
    w2f = params["bb_w2"].reshape(9 * c1, c2)
    wrf = params["rpn_w"].reshape(9 * c2, c2)
    b1 = params["bb_b1"].reshape(1, c1)
    b2 = params["bb_b2"].reshape(1, c2)
    br = params["rpn_b"].reshape(1, c2)
    # fused rpn heads: [objectness(A) | box deltas(4A) | zero pad] -> 128 lanes
    whf = jnp.concatenate(
        [params["rpn_cls_w"][0, 0], params["rpn_box_w"][0, 0]], axis=-1)
    whf = jnp.pad(whf, ((0, 0), (0, LANE - whf.shape[-1])))
    bh = jnp.concatenate(
        [params["rpn_cls_b"].reshape(1, -1), params["rpn_box_b"].reshape(1, -1)],
        axis=-1)
    bh = jnp.pad(bh, ((0, 0), (0, LANE - bh.shape[-1])))

    # ---------------- backbone + rpn: ONE fused Pallas call ----------------
    rpn_out, pooled_out = backbone_rpn(x, w1f, b1, w2f, b2, wrf, br, whf, bh)

    objectness = rpn_out[..., :A].reshape(N, -1)                    # (N, H*W*A)
    deltas_flat = rpn_out[..., A:5 * A].reshape(N, H * W * A, 4)

    anchors = make_anchors(H, W)                                    # (H*W*A, 4)
    top_scores, top_idx = jax.lax.top_k(objectness, TOPK_PROPOSALS)
    top_anchors = anchors[top_idx]                                  # (N, K, 4)
    top_deltas = jnp.take_along_axis(deltas_flat, top_idx[..., None], axis=1)
    proposals = clip_boxes(decode_boxes(top_anchors, top_deltas), H, W)
    proposal_scores = jax.nn.sigmoid(top_scores)

    # ---------------- roi_heads: ONE fused Pallas call ----------------
    # TODO(synk): ROIAlign stand-in = global average pooled feature + box
    # coords; per-class NMS is skipped.
    pooled = pooled_out[:, 0, :c2]                                  # (N, c2)
    pooled_rep = jnp.broadcast_to(pooled[:, None, :], (N, TOPK_PROPOSALS, c2))
    norm = jnp.asarray([W, H, W, H], jnp.float32)
    roi_in = jnp.concatenate([pooled_rep, proposals / norm], axis=-1)
    roi_in = roi_in.reshape(N * TOPK_PROPOSALS, c2 + 4)

    # fused class/box heads: [cls(5) | box(20) | zero pad] -> 128 lanes
    whr = jnp.concatenate([params["cls_w"], params["box_w"]], axis=-1)
    whr = jnp.pad(whr, ((0, 0), (0, LANE - whr.shape[-1])))
    bhr = jnp.concatenate([params["cls_b"], params["box_b"]], axis=-1)
    bhr = jnp.pad(bhr, ((0, 0), (0, LANE - bhr.shape[-1])))

    head_out = roi_box_head(roi_in, params["roi_w1"], params["roi_b1"],
                            params["roi_w2"], params["roi_b2"], whr, bhr)
    cls_logits = head_out[:, :NUM_CLASSES]                          # (NK, 5)
    box_pred = head_out[:, NUM_CLASSES:NUM_CLASSES + 4 * NUM_CLASSES]  # (NK, 20)

    probs = jax.nn.softmax(cls_logits, axis=-1)
    fg = probs[:, 1:]                                               # drop bg
    labels = jnp.argmax(fg, axis=-1) + 1                            # (NK,)
    scores = jnp.max(fg, axis=-1)                                   # (NK,)

    box_pred = box_pred.reshape(-1, NUM_CLASSES, 4)
    per_label_deltas = jnp.take_along_axis(
        box_pred, labels[:, None, None], axis=1)[:, 0, :]           # (NK, 4)
    flat_props = proposals.reshape(-1, 4)
    final_boxes = clip_boxes(decode_boxes(flat_props, per_label_deltas), H, W)

    return {
        "boxes": final_boxes.reshape(N, TOPK_PROPOSALS, 4),
        "scores": scores.reshape(N, TOPK_PROPOSALS),
        "labels": labels.reshape(N, TOPK_PROPOSALS).astype(jnp.int32),
        "proposal_scores": proposal_scores,
        "proposals": proposals,
    }


# ----------------------------------------------------------------------------
if __name__ == "__main__":
    key = jax.random.PRNGKey(0)
    k_img, k_par = jax.random.split(key)
    images = jax.random.normal(k_img, (2, 4, 16, 16), jnp.float32)  # NCHW
    params = init_params(k_par, in_channels=4)

    out = generalized_rcnn_forward(params, images)
    jax.block_until_ready(out)

    assert out["boxes"].shape == (2, TOPK_PROPOSALS, 4)
    assert out["scores"].shape == (2, TOPK_PROPOSALS)
    assert out["labels"].shape == (2, TOPK_PROPOSALS)
    assert bool(jnp.isfinite(out["boxes"]).all())
    assert bool(jnp.isfinite(out["scores"]).all())
    print("KERNEL_OK")
</pallas_src>

<mosaic_0001>
module attributes {stable_mosaic.version = 11 : i64} {
  func.func @kernel(%arg0: i32, %arg1: memref<1x16x16x4xf32, #tpu.memory_space<vmem>>, %arg2: memref<36x16xf32, #tpu.memory_space<vmem>>, %arg3: memref<1x16xf32, #tpu.memory_space<vmem>>, %arg4: memref<144x32xf32, #tpu.memory_space<vmem>>, %arg5: memref<1x32xf32, #tpu.memory_space<vmem>>, %arg6: memref<288x32xf32, #tpu.memory_space<vmem>>, %arg7: memref<1x32xf32, #tpu.memory_space<vmem>>, %arg8: memref<32x128xf32, #tpu.memory_space<vmem>>, %arg9: memref<1x128xf32, #tpu.memory_space<vmem>>, %arg10: memref<1x256x128xf32, #tpu.memory_space<vmem>>, %arg11: memref<1x1x128xf32, #tpu.memory_space<vmem>>) attributes {dimension_semantics = [#tpu.dimension_semantics<parallel>], iteration_bounds = array<i64: 2>, scalar_prefetch = 0 : i64, scratch_operands = 0 : i64, tpu.core_type = #tpu.core_type<tc>, window_params = [{transform_indices = @transform_0, window_bounds = array<i64: 1, 16, 16, 4>}, {pipeline_mode = #tpu.pipeline_mode<synchronous>, transform_indices = @transform_1, window_bounds = array<i64: 36, 16>}, {pipeline_mode = #tpu.pipeline_mode<synchronous>, transform_indices = @transform_2, window_bounds = array<i64: 1, 16>}, {pipeline_mode = #tpu.pipeline_mode<synchronous>, transform_indices = @transform_3, window_bounds = array<i64: 144, 32>}, {pipeline_mode = #tpu.pipeline_mode<synchronous>, transform_indices = @transform_4, window_bounds = array<i64: 1, 32>}, {pipeline_mode = #tpu.pipeline_mode<synchronous>, transform_indices = @transform_5, window_bounds = array<i64: 288, 32>}, {pipeline_mode = #tpu.pipeline_mode<synchronous>, transform_indices = @transform_6, window_bounds = array<i64: 1, 32>}, {pipeline_mode = #tpu.pipeline_mode<synchronous>, transform_indices = @transform_7, window_bounds = array<i64: 32, 128>}, {pipeline_mode = #tpu.pipeline_mode<synchronous>, transform_indices = @transform_8, window_bounds = array<i64: 1, 128>}, {transform_indices = @transform_9, window_bounds = array<i64: 1, 256, 128>}, {transform_indices = @transform_10, window_bounds = array<i64: 1, 1, 128>}]} {
    %c0 = arith.constant 0 : index
    %c0_0 = arith.constant 0 : index
    %c0_1 = arith.constant 0 : index
    %c0_2 = arith.constant 0 : index
    %0 = vector.load %arg1[%c0, %c0_0, %c0_1, %c0_2] : memref<1x16x16x4xf32, #tpu.memory_space<vmem>>, vector<1x16x16x4xf32>
    %1 = vector.shape_cast %0 : vector<1x16x16x4xf32> to vector<16x16x4xf32>
    %cst = arith.constant 0.000000e+00 : f32
    %2 = vector.broadcast %cst : f32 to vector<16x8x4xf32>
    %3 = tpu.concatenate %2, %1, %2 in 1 : vector<16x8x4xf32>, vector<16x16x4xf32>, vector<16x8x4xf32> -> vector<16x32x4xf32>
    %cst_3 = arith.constant 0.000000e+00 : f32
    %4 = vector.broadcast %cst_3 : f32 to vector<1x32x4xf32>
    %5 = tpu.concatenate %4, %3, %4 in 0 : vector<1x32x4xf32>, vector<16x32x4xf32>, vector<1x32x4xf32> -> vector<18x32x4xf32>
    %6 = vector.extract_strided_slice %5 {offsets = [0, 7, 0], sizes = [16, 16, 4], strides = [1, 1, 1]} : vector<18x32x4xf32> to vector<16x16x4xf32>
    %7 = vector.shape_cast %6 : vector<16x16x4xf32> to vector<256x4xf32>
    %8 = vector.extract_strided_slice %5 {offsets = [0, 8, 0], sizes = [16, 16, 4], strides = [1, 1, 1]} : vector<18x32x4xf32> to vector<16x16x4xf32>
    %9 = vector.shape_cast %8 : vector<16x16x4xf32> to vector<256x4xf32>
    %10 = vector.extract_strided_slice %5 {offsets = [0, 9, 0], sizes = [16, 16, 4], strides = [1, 1, 1]} : vector<18x32x4xf32> to vector<16x16x4xf32>
    %11 = vector.shape_cast %10 : vector<16x16x4xf32> to vector<256x4xf32>
    %12 = vector.extract_strided_slice %5 {offsets = [1, 7, 0], sizes = [16, 16, 4], strides = [1, 1, 1]} : vector<18x32x4xf32> to vector<16x16x4xf32>
    %13 = vector.shape_cast %12 : vector<16x16x4xf32> to vector<256x4xf32>
    %14 = vector.extract_strided_slice %5 {offsets = [1, 8, 0], sizes = [16, 16, 4], strides = [1, 1, 1]} : vector<18x32x4xf32> to vector<16x16x4xf32>
    %15 = vector.shape_cast %14 : vector<16x16x4xf32> to vector<256x4xf32>
    %16 = vector.extract_strided_slice %5 {offsets = [1, 9, 0], sizes = [16, 16, 4], strides = [1, 1, 1]} : vector<18x32x4xf32> to vector<16x16x4xf32>
    %17 = vector.shape_cast %16 : vector<16x16x4xf32> to vector<256x4xf32>
    %18 = vector.extract_strided_slice %5 {offsets = [2, 7, 0], sizes = [16, 16, 4], strides = [1, 1, 1]} : vector<18x32x4xf32> to vector<16x16x4xf32>
    %19 = vector.shape_cast %18 : vector<16x16x4xf32> to vector<256x4xf32>
    %20 = vector.extract_strided_slice %5 {offsets = [2, 8, 0], sizes = [16, 16, 4], strides = [1, 1, 1]} : vector<18x32x4xf32> to vector<16x16x4xf32>
    %21 = vector.shape_cast %20 : vector<16x16x4xf32> to vector<256x4xf32>
    %22 = vector.extract_strided_slice %5 {offsets = [2, 9, 0], sizes = [16, 16, 4], strides = [1, 1, 1]} : vector<18x32x4xf32> to vector<16x16x4xf32>
    %23 = vector.shape_cast %22 : vector<16x16x4xf32> to vector<256x4xf32>
    %24 = tpu.concatenate %7, %9, %11, %13, %15, %17, %19, %21, %23 in 1 : vector<256x4xf32>, vector<256x4xf32>, vector<256x4xf32>, vector<256x4xf32>, vector<256x4xf32>, vector<256x4xf32>, vector<256x4xf32>, vector<256x4xf32>, vector<256x4xf32> -> vector<256x36xf32>
    %c0_4 = arith.constant 0 : index
    %c0_5 = arith.constant 0 : index
    %25 = vector.load %arg2[%c0_4, %c0_5] : memref<36x16xf32, #tpu.memory_space<vmem>>, vector<36x16xf32>
    %cst_6 = arith.constant dense<0.000000e+00> : vector<256x16xf32>
    %26 = tpu.matmul %24, %25, %cst_6 {dimension_numbers = #tpu.dot_dimension_numbers<[1], [0], [0], [1], [0, 0, 1, 1], [], []>} : vector<256x36xf32>, vector<36x16xf32>, vector<256x16xf32> -> vector<256x16xf32>
    %c0_7 = arith.constant 0 : index
    %c0_8 = arith.constant 0 : index
    %27 = vector.load %arg3[%c0_7, %c0_8] : memref<1x16xf32, #tpu.memory_space<vmem>>, vector<1x16xf32>
    %28 = vector.broadcast %27 : vector<1x16xf32> to vector<256x16xf32>
    %29 = arith.addf %26, %28 : vector<256x16xf32>
    %cst_9 = arith.constant 0.000000e+00 : f32
    %30 = vector.broadcast %cst_9 : f32 to vector<256x16xf32>
    %31 = arith.maximumf %29, %30 : vector<256x16xf32>
    %32 = vector.shape_cast %31 : vector<256x16xf32> to vector<16x16x16xf32>
    %cst_10 = arith.constant 0.000000e+00 : f32
    %33 = vector.broadcast %cst_10 : f32 to vector<16x8x16xf32>
    %34 = tpu.concatenate %33, %32, %33 in 1 : vector<16x8x16xf32>, vector<16x16x16xf32>, vector<16x8x16xf32> -> vector<16x32x16xf32>
    %cst_11 = arith.constant 0.000000e+00 : f32
    %35 = vector.broadcast %cst_11 : f32 to vector<1x32x16xf32>
    %36 = tpu.concatenate %35, %34, %35 in 0 : vector<1x32x16xf32>, vector<16x32x16xf32>, vector<1x32x16xf32> -> vector<18x32x16xf32>
    %37 = vector.extract_strided_slice %36 {offsets = [0, 7, 0], sizes = [16, 16, 16], strides = [1, 1, 1]} : vector<18x32x16xf32> to vector<16x16x16xf32>
    %38 = vector.shape_cast %37 : vector<16x16x16xf32> to vector<256x16xf32>
    %39 = vector.extract_strided_slice %36 {offsets = [0, 8, 0], sizes = [16, 16, 16], strides = [1, 1, 1]} : vector<18x32x16xf32> to vector<16x16x16xf32>
    %40 = vector.shape_cast %39 : vector<16x16x16xf32> to vector<256x16xf32>
    %41 = vector.extract_strided_slice %36 {offsets = [0, 9, 0], sizes = [16, 16, 16], strides = [1, 1, 1]} : vector<18x32x16xf32> to vector<16x16x16xf32>
    %42 = vector.shape_cast %41 : vector<16x16x16xf32> to vector<256x16xf32>
    %43 = vector.extract_strided_slice %36 {offsets = [1, 7, 0], sizes = [16, 16, 16], strides = [1, 1, 1]} : vector<18x32x16xf32> to vector<16x16x16xf32>
    %44 = vector.shape_cast %43 : vector<16x16x16xf32> to vector<256x16xf32>
    %45 = vector.extract_strided_slice %36 {offsets = [1, 8, 0], sizes = [16, 16, 16], strides = [1, 1, 1]} : vector<18x32x16xf32> to vector<16x16x16xf32>
    %46 = vector.shape_cast %45 : vector<16x16x16xf32> to vector<256x16xf32>
    %47 = vector.extract_strided_slice %36 {offsets = [1, 9, 0], sizes = [16, 16, 16], strides = [1, 1, 1]} : vector<18x32x16xf32> to vector<16x16x16xf32>
    %48 = vector.shape_cast %47 : vector<16x16x16xf32> to vector<256x16xf32>
    %49 = vector.extract_strided_slice %36 {offsets = [2, 7, 0], sizes = [16, 16, 16], strides = [1, 1, 1]} : vector<18x32x16xf32> to vector<16x16x16xf32>
    %50 = vector.shape_cast %49 : vector<16x16x16xf32> to vector<256x16xf32>
    %51 = vector.extract_strided_slice %36 {offsets = [2, 8, 0], sizes = [16, 16, 16], strides = [1, 1, 1]} : vector<18x32x16xf32> to vector<16x16x16xf32>
    %52 = vector.shape_cast %51 : vector<16x16x16xf32> to vector<256x16xf32>
    %53 = vector.extract_strided_slice %36 {offsets = [2, 9, 0], sizes = [16, 16, 16], strides = [1, 1, 1]} : vector<18x32x16xf32> to vector<16x16x16xf32>
    %54 = vector.shape_cast %53 : vector<16x16x16xf32> to vector<256x16xf32>
    %55 = tpu.concatenate %38, %40, %42, %44, %46, %48, %50, %52, %54 in 1 : vector<256x16xf32>, vector<256x16xf32>, vector<256x16xf32>, vector<256x16xf32>, vector<256x16xf32>, vector<256x16xf32>, vector<256x16xf32>, vector<256x16xf32>, vector<256x16xf32> -> vector<256x144xf32>
    %c0_12 = arith.constant 0 : index
    %c0_13 = arith.constant 0 : index
    %56 = vector.load %arg4[%c0_12, %c0_13] : memref<144x32xf32, #tpu.memory_space<vmem>>, vector<144x32xf32>
    %cst_14 = arith.constant dense<0.000000e+00> : vector<256x32xf32>
    %57 = tpu.matmul %55, %56, %cst_14 {dimension_numbers = #tpu.dot_dimension_numbers<[1], [0], [0], [1], [0, 0, 1, 1], [], []>} : vector<256x144xf32>, vector<144x32xf32>, vector<256x32xf32> -> vector<256x32xf32>
    %c0_15 = arith.constant 0 : index
    %c0_16 = arith.constant 0 : index
    %58 = vector.load %arg5[%c0_15, %c0_16] : memref<1x32xf32, #tpu.memory_space<vmem>>, vector<1x32xf32>
    %59 = vector.broadcast %58 : vector<1x32xf32> to vector<256x32xf32>
    %60 = arith.addf %57, %59 : vector<256x32xf32>
    %cst_17 = arith.constant 0.000000e+00 : f32
    %61 = vector.broadcast %cst_17 : f32 to vector<256x32xf32>
    %62 = arith.maximumf %60, %61 : vector<256x32xf32>
    %63 = vector.shape_cast %62 : vector<256x32xf32> to vector<16x16x32xf32>
    %cst_18 = arith.constant 0.000000e+00 : f32
    %64 = vector.broadcast %cst_18 : f32 to vector<16x8x32xf32>
    %65 = tpu.concatenate %64, %63, %64 in 1 : vector<16x8x32xf32>, vector<16x16x32xf32>, vector<16x8x32xf32> -> vector<16x32x32xf32>
    %cst_19 = arith.constant 0.000000e+00 : f32
    %66 = vector.broadcast %cst_19 : f32 to vector<1x32x32xf32>
    %67 = tpu.concatenate %66, %65, %66 in 0 : vector<1x32x32xf32>, vector<16x32x32xf32>, vector<1x32x32xf32> -> vector<18x32x32xf32>
    %68 = vector.extract_strided_slice %67 {offsets = [0, 7, 0], sizes = [16, 16, 32], strides = [1, 1, 1]} : vector<18x32x32xf32> to vector<16x16x32xf32>
    %69 = vector.shape_cast %68 : vector<16x16x32xf32> to vector<256x32xf32>
    %70 = vector.extract_strided_slice %67 {offsets = [0, 8, 0], sizes = [16, 16, 32], strides = [1, 1, 1]} : vector<18x32x32xf32> to vector<16x16x32xf32>
    %71 = vector.shape_cast %70 : vector<16x16x32xf32> to vector<256x32xf32>
    %72 = vector.extract_strided_slice %67 {offsets = [0, 9, 0], sizes = [16, 16, 32], strides = [1, 1, 1]} : vector<18x32x32xf32> to vector<16x16x32xf32>
    %73 = vector.shape_cast %72 : vector<16x16x32xf32> to vector<256x32xf32>
    %74 = vector.extract_strided_slice %67 {offsets = [1, 7, 0], sizes = [16, 16, 32], strides = [1, 1, 1]} : vector<18x32x32xf32> to vector<16x16x32xf32>
    %75 = vector.shape_cast %74 : vector<16x16x32xf32> to vector<256x32xf32>
    %76 = vector.extract_strided_slice %67 {offsets = [1, 8, 0], sizes = [16, 16, 32], strides = [1, 1, 1]} : vector<18x32x32xf32> to vector<16x16x32xf32>
    %77 = vector.shape_cast %76 : vector<16x16x32xf32> to vector<256x32xf32>
    %78 = vector.extract_strided_slice %67 {offsets = [1, 9, 0], sizes = [16, 16, 32], strides = [1, 1, 1]} : vector<18x32x32xf32> to vector<16x16x32xf32>
    %79 = vector.shape_cast %78 : vector<16x16x32xf32> to vector<256x32xf32>
    %80 = vector.extract_strided_slice %67 {offsets = [2, 7, 0], sizes = [16, 16, 32], strides = [1, 1, 1]} : vector<18x32x32xf32> to vector<16x16x32xf32>
    %81 = vector.shape_cast %80 : vector<16x16x32xf32> to vector<256x32xf32>
    %82 = vector.extract_strided_slice %67 {offsets = [2, 8, 0], sizes = [16, 16, 32], strides = [1, 1, 1]} : vector<18x32x32xf32> to vector<16x16x32xf32>
    %83 = vector.shape_cast %82 : vector<16x16x32xf32> to vector<256x32xf32>
    %84 = vector.extract_strided_slice %67 {offsets = [2, 9, 0], sizes = [16, 16, 32], strides = [1, 1, 1]} : vector<18x32x32xf32> to vector<16x16x32xf32>
    %85 = vector.shape_cast %84 : vector<16x16x32xf32> to vector<256x32xf32>
    %86 = tpu.concatenate %69, %71, %73, %75, %77, %79, %81, %83, %85 in 1 : vector<256x32xf32>, vector<256x32xf32>, vector<256x32xf32>, vector<256x32xf32>, vector<256x32xf32>, vector<256x32xf32>, vector<256x32xf32>, vector<256x32xf32>, vector<256x32xf32> -> vector<256x288xf32>
    %c0_20 = arith.constant 0 : index
    %c0_21 = arith.constant 0 : index
    %87 = vector.load %arg6[%c0_20, %c0_21] : memref<288x32xf32, #tpu.memory_space<vmem>>, vector<288x32xf32>
    %cst_22 = arith.constant dense<0.000000e+00> : vector<256x32xf32>
    %88 = tpu.matmul %86, %87, %cst_22 {dimension_numbers = #tpu.dot_dimension_numbers<[1], [0], [0], [1], [0, 0, 1, 1], [], []>} : vector<256x288xf32>, vector<288x32xf32>, vector<256x32xf32> -> vector<256x32xf32>
    %c0_23 = arith.constant 0 : index
    %c0_24 = arith.constant 0 : index
    %89 = vector.load %arg7[%c0_23, %c0_24] : memref<1x32xf32, #tpu.memory_space<vmem>>, vector<1x32xf32>
    %90 = vector.broadcast %89 : vector<1x32xf32> to vector<256x32xf32>
    %91 = arith.addf %88, %90 : vector<256x32xf32>
    %cst_25 = arith.constant 0.000000e+00 : f32
    %92 = vector.broadcast %cst_25 : f32 to vector<256x32xf32>
    %93 = arith.maximumf %91, %92 : vector<256x32xf32>
    %94 = vector.shape_cast %93 : vector<256x32xf32> to vector<16x16x32xf32>
    %95 = vector.shape_cast %94 : vector<16x16x32xf32> to vector<256x32xf32>
    %c0_26 = arith.constant 0 : index
    %c0_27 = arith.constant 0 : index
    %96 = vector.load %arg8[%c0_26, %c0_27] : memref<32x128xf32, #tpu.memory_space<vmem>>, vector<32x128xf32>
    %cst_28 = arith.constant dense<0.000000e+00> : vector<256x128xf32>
    %97 = tpu.matmul %95, %96, %cst_28 {dimension_numbers = #tpu.dot_dimension_numbers<[1], [0], [0], [1], [0, 0, 1, 1], [], []>} : vector<256x32xf32>, vector<32x128xf32>, vector<256x128xf32> -> vector<256x128xf32>
    %c0_29 = arith.constant 0 : index
    %c0_30 = arith.constant 0 : index
    %98 = vector.load %arg9[%c0_29, %c0_30] : memref<1x128xf32, #tpu.memory_space<vmem>>, vector<1x128xf32>
    %99 = vector.broadcast %98 : vector<1x128xf32> to vector<256x128xf32>
    %100 = arith.addf %97, %99 : vector<256x128xf32>
    %c0_31 = arith.constant 0 : index
    %c0_32 = arith.constant 0 : index
    %c0_33 = arith.constant 0 : index
    %101 = vector.load %arg10[%c0_31, %c0_32, %c0_33] : memref<1x256x128xf32, #tpu.memory_space<vmem>>, vector<1x256x128xf32>
    %102 = vector.shape_cast %101 : vector<1x256x128xf32> to vector<256x128xf32>
    %103 = vector.shape_cast %100 : vector<256x128xf32> to vector<1x256x128xf32>
    tpu.vector_store %arg10[%c0_31, %c0_32, %c0_33], %103 {strides = array<i32>} : memref<1x256x128xf32, #tpu.memory_space<vmem>>, vector<1x256x128xf32>,
    %cst_34 = arith.constant 3.906250e-03 : f32
    %104 = vector.broadcast %cst_34 : f32 to vector<1x256xf32>
    %105 = vector.shape_cast %63 : vector<16x16x32xf32> to vector<256x32xf32>
    %cst_35 = arith.constant dense<0.000000e+00> : vector<1x32xf32>
    %106 = tpu.matmul %104, %105, %cst_35 {dimension_numbers = #tpu.dot_dimension_numbers<[1], [0], [0], [1], [0, 0, 1, 1], [], []>} : vector<1x256xf32>, vector<256x32xf32>, vector<1x32xf32> -> vector<1x32xf32>
    %cst_36 = arith.constant 0.000000e+00 : f32
    %107 = vector.broadcast %cst_36 : f32 to vector<1x96xf32>
    %108 = tpu.concatenate %106, %107 in 1 : vector<1x32xf32>, vector<1x96xf32> -> vector<1x128xf32>
    %c0_37 = arith.constant 0 : index
    %c0_38 = arith.constant 0 : index
    %c0_39 = arith.constant 0 : index
    %109 = vector.load %arg11[%c0_37, %c0_38, %c0_39] : memref<1x1x128xf32, #tpu.memory_space<vmem>>, vector<1x1x128xf32>
    %110 = vector.shape_cast %109 : vector<1x1x128xf32> to vector<1x128xf32>
    %111 = vector.shape_cast %108 : vector<1x128xf32> to vector<1x1x128xf32>
    tpu.vector_store %arg11[%c0_37, %c0_38, %c0_39], %111 {strides = array<i32>} : memref<1x1x128xf32, #tpu.memory_space<vmem>>, vector<1x1x128xf32>,
    return
  }
  func.func @transform_0(%arg0: i32) -> (i32, i32, i32, i32) {
    %c0_i32 = arith.constant 0 : i32
    %c0_i32_0 = arith.constant 0 : i32
    %c0_i32_1 = arith.constant 0 : i32
    %c0_i32_2 = arith.constant 0 : i32
    return %arg0, %c0_i32, %c0_i32_0, %c0_i32_1 : i32, i32, i32, i32
  }
  func.func @transform_1(%arg0: i32) -> (i32, i32) {
    %c0_i32 = arith.constant 0 : i32
    %c0_i32_0 = arith.constant 0 : i32
    %c0_i32_1 = arith.constant 0 : i32
    return %c0_i32, %c0_i32_0 : i32, i32
  }
  func.func @transform_2(%arg0: i32) -> (i32, i32) {
    %c0_i32 = arith.constant 0 : i32
    %c0_i32_0 = arith.constant 0 : i32
    %c0_i32_1 = arith.constant 0 : i32
    return %c0_i32, %c0_i32_0 : i32, i32
  }
  func.func @transform_3(%arg0: i32) -> (i32, i32) {
    %c0_i32 = arith.constant 0 : i32
    %c0_i32_0 = arith.constant 0 : i32
    %c0_i32_1 = arith.constant 0 : i32
    return %c0_i32, %c0_i32_0 : i32, i32
  }
  func.func @transform_4(%arg0: i32) -> (i32, i32) {
    %c0_i32 = arith.constant 0 : i32
    %c0_i32_0 = arith.constant 0 : i32
    %c0_i32_1 = arith.constant 0 : i32
    return %c0_i32, %c0_i32_0 : i32, i32
  }
  func.func @transform_5(%arg0: i32) -> (i32, i32) {
    %c0_i32 = arith.constant 0 : i32
    %c0_i32_0 = arith.constant 0 : i32
    %c0_i32_1 = arith.constant 0 : i32
    return %c0_i32, %c0_i32_0 : i32, i32
  }
  func.func @transform_6(%arg0: i32) -> (i32, i32) {
    %c0_i32 = arith.constant 0 : i32
    %c0_i32_0 = arith.constant 0 : i32
    %c0_i32_1 = arith.constant 0 : i32
    return %c0_i32, %c0_i32_0 : i32, i32
  }
  func.func @transform_7(%arg0: i32) -> (i32, i32) {
    %c0_i32 = arith.constant 0 : i32
    %c0_i32_0 = arith.constant 0 : i32
    %c0_i32_1 = arith.constant 0 : i32
    return %c0_i32, %c0_i32_0 : i32, i32
  }
  func.func @transform_8(%arg0: i32) -> (i32, i32) {
    %c0_i32 = arith.constant 0 : i32
    %c0_i32_0 = arith.constant 0 : i32
    %c0_i32_1 = arith.constant 0 : i32
    return %c0_i32, %c0_i32_0 : i32, i32
  }
  func.func @transform_9(%arg0: i32) -> (i32, i32, i32) {
    %c0_i32 = arith.constant 0 : i32
    %c0_i32_0 = arith.constant 0 : i32
    %c0_i32_1 = arith.constant 0 : i32
    return %arg0, %c0_i32, %c0_i32_0 : i32, i32, i32
  }
  func.func @transform_10(%arg0: i32) -> (i32, i32, i32) {
    %c0_i32 = arith.constant 0 : i32
    %c0_i32_0 = arith.constant 0 : i32
    %c0_i32_1 = arith.constant 0 : i32
    return %arg0, %c0_i32, %c0_i32_0 : i32, i32, i32
  }
}

module attributes {stable_mosaic.version = 11 : i64} {
  func.func @_roi_head_kernel(%arg0: i32, %arg1: memref<16x36xf32, #tpu.memory_space<vmem>>, %arg2: memref<36x64xf32, #tpu.memory_space<vmem>>, %arg3: memref<1x64xf32, #tpu.memory_space<vmem>>, %arg4: memref<64x64xf32, #tpu.memory_space<vmem>>, %arg5: memref<1x64xf32, #tpu.memory_space<vmem>>, %arg6: memref<64x128xf32, #tpu.memory_space<vmem>>, %arg7: memref<1x128xf32, #tpu.memory_space<vmem>>, %arg8: memref<16x128xf32, #tpu.memory_space<vmem>>) attributes {dimension_semantics = [#tpu.dimension_semantics<arbitrary>], iteration_bounds = array<i64: 1>, scalar_prefetch = 0 : i64, scratch_operands = 0 : i64, tpu.core_type = #tpu.core_type<tc>, window_params = [{pipeline_mode = #tpu.pipeline_mode<synchronous>, transform_indices = @transform_0, window_bounds = array<i64: 16, 36>}, {pipeline_mode = #tpu.pipeline_mode<synchronous>, transform_indices = @transform_1, window_bounds = array<i64: 36, 64>}, {pipeline_mode = #tpu.pipeline_mode<synchronous>, transform_indices = @transform_2, window_bounds = array<i64: 1, 64>}, {pipeline_mode = #tpu.pipeline_mode<synchronous>, transform_indices = @transform_3, window_bounds = array<i64: 64, 64>}, {pipeline_mode = #tpu.pipeline_mode<synchronous>, transform_indices = @transform_4, window_bounds = array<i64: 1, 64>}, {pipeline_mode = #tpu.pipeline_mode<synchronous>, transform_indices = @transform_5, window_bounds = array<i64: 64, 128>}, {pipeline_mode = #tpu.pipeline_mode<synchronous>, transform_indices = @transform_6, window_bounds = array<i64: 1, 128>}, {pipeline_mode = #tpu.pipeline_mode<synchronous>, transform_indices = @transform_7, window_bounds = array<i64: 16, 128>}]} {
    %c0 = arith.constant 0 : index
    %c0_0 = arith.constant 0 : index
    %0 = vector.load %arg1[%c0, %c0_0] : memref<16x36xf32, #tpu.memory_space<vmem>>, vector<16x36xf32>
    %c0_1 = arith.constant 0 : index
    %c0_2 = arith.constant 0 : index
    %1 = vector.load %arg2[%c0_1, %c0_2] : memref<36x64xf32, #tpu.memory_space<vmem>>, vector<36x64xf32>
    %cst = arith.constant dense<0.000000e+00> : vector<16x64xf32>
    %2 = tpu.matmul %0, %1, %cst {dimension_numbers = #tpu.dot_dimension_numbers<[1], [0], [0], [1], [0, 0, 1, 1], [], []>} : vector<16x36xf32>, vector<36x64xf32>, vector<16x64xf32> -> vector<16x64xf32>
    %c0_3 = arith.constant 0 : index
    %c0_4 = arith.constant 0 : index
    %3 = vector.load %arg3[%c0_3, %c0_4] : memref<1x64xf32, #tpu.memory_space<vmem>>, vector<1x64xf32>
    %4 = vector.broadcast %3 : vector<1x64xf32> to vector<16x64xf32>
    %5 = arith.addf %2, %4 : vector<16x64xf32>
    %cst_5 = arith.constant 0.000000e+00 : f32
    %6 = vector.broadcast %cst_5 : f32 to vector<16x64xf32>
    %7 = arith.maximumf %5, %6 : vector<16x64xf32>
    %c0_6 = arith.constant 0 : index
    %c0_7 = arith.constant 0 : index
    %8 = vector.load %arg4[%c0_6, %c0_7] : memref<64x64xf32, #tpu.memory_space<vmem>>, vector<64x64xf32>
    %cst_8 = arith.constant dense<0.000000e+00> : vector<16x64xf32>
    %9 = tpu.matmul %7, %8, %cst_8 {dimension_numbers = #tpu.dot_dimension_numbers<[1], [0], [0], [1], [0, 0, 1, 1], [], []>} : vector<16x64xf32>, vector<64x64xf32>, vector<16x64xf32> -> vector<16x64xf32>
    %c0_9 = arith.constant 0 : index
    %c0_10 = arith.constant 0 : index
    %10 = vector.load %arg5[%c0_9, %c0_10] : memref<1x64xf32, #tpu.memory_space<vmem>>, vector<1x64xf32>
    %11 = vector.broadcast %10 : vector<1x64xf32> to vector<16x64xf32>
    %12 = arith.addf %9, %11 : vector<16x64xf32>
    %cst_11 = arith.constant 0.000000e+00 : f32
    %13 = vector.broadcast %cst_11 : f32 to vector<16x64xf32>
    %14 = arith.maximumf %12, %13 : vector<16x64xf32>
    %c0_12 = arith.constant 0 : index
    %c0_13 = arith.constant 0 : index
    %15 = vector.load %arg6[%c0_12, %c0_13] : memref<64x128xf32, #tpu.memory_space<vmem>>, vector<64x128xf32>
    %cst_14 = arith.constant dense<0.000000e+00> : vector<16x128xf32>
    %16 = tpu.matmul %14, %15, %cst_14 {dimension_numbers = #tpu.dot_dimension_numbers<[1], [0], [0], [1], [0, 0, 1, 1], [], []>} : vector<16x64xf32>, vector<64x128xf32>, vector<16x128xf32> -> vector<16x128xf32>
    %c0_15 = arith.constant 0 : index
    %c0_16 = arith.constant 0 : index
    %17 = vector.load %arg7[%c0_15, %c0_16] : memref<1x128xf32, #tpu.memory_space<vmem>>, vector<1x128xf32>
    %18 = vector.broadcast %17 : vector<1x128xf32> to vector<16x128xf32>
    %19 = arith.addf %16, %18 : vector<16x128xf32>
    %c0_17 = arith.constant 0 : index
    %c0_18 = arith.constant 0 : index
    %20 = vector.load %arg8[%c0_17, %c0_18] : memref<16x128xf32, #tpu.memory_space<vmem>>, vector<16x128xf32>
    tpu.vector_store %arg8[%c0_17, %c0_18], %19 {strides = array<i32>} : memref<16x128xf32, #tpu.memory_space<vmem>>, vector<16x128xf32>,
    return
  }
  func.func @transform_0(%arg0: i32) -> (i32, i32) {
    %c0_i32 = arith.constant 0 : i32
    %c0_i32_0 = arith.constant 0 : i32
    %c0_i32_1 = arith.constant 0 : i32
    return %c0_i32, %c0_i32_0 : i32, i32
  }
  func.func @transform_1(%arg0: i32) -> (i32, i32) {
    %c0_i32 = arith.constant 0 : i32
    %c0_i32_0 = arith.constant 0 : i32
    %c0_i32_1 = arith.constant 0 : i32
    return %c0_i32, %c0_i32_0 : i32, i32
  }
  func.func @transform_2(%arg0: i32) -> (i32, i32) {
    %c0_i32 = arith.constant 0 : i32
    %c0_i32_0 = arith.constant 0 : i32
    %c0_i32_1 = arith.constant 0 : i32
    return %c0_i32, %c0_i32_0 : i32, i32
  }
  func.func @transform_3(%arg0: i32) -> (i32, i32) {
    %c0_i32 = arith.constant 0 : i32
    %c0_i32_0 = arith.constant 0 : i32
    %c0_i32_1 = arith.constant 0 : i32
    return %c0_i32, %c0_i32_0 : i32, i32
  }
  func.func @transform_4(%arg0: i32) -> (i32, i32) {
    %c0_i32 = arith.constant 0 : i32
    %c0_i32_0 = arith.constant 0 : i32
    %c0_i32_1 = arith.constant 0 : i32
    return %c0_i32, %c0_i32_0 : i32, i32
  }
  func.func @transform_5(%arg0: i32) -> (i32, i32) {
    %c0_i32 = arith.constant 0 : i32
    %c0_i32_0 = arith.constant 0 : i32
    %c0_i32_1 = arith.constant 0 : i32
    return %c0_i32, %c0_i32_0 : i32, i32
  }
  func.func @transform_6(%arg0: i32) -> (i32, i32) {
    %c0_i32 = arith.constant 0 : i32
    %c0_i32_0 = arith.constant 0 : i32
    %c0_i32_1 = arith.constant 0 : i32
    return %c0_i32, %c0_i32_0 : i32, i32
  }
  func.func @transform_7(%arg0: i32) -> (i32, i32) {
    %c0_i32 = arith.constant 0 : i32
    %c0_i32_0 = arith.constant 0 : i32
    %c0_i32_1 = arith.constant 0 : i32
    return %c0_i32, %c0_i32_0 : i32, i32
  }
}

</mosaic_0001>

<bundles_post_ra>
// kernel: custom-call
= control target key start
LH: loop header
LB: loop body
LE: loop exit
PB: predicated region body
PF: predicated region fallthrough
CT: control target
= control target key end

     0   :  { %v1094_v0 = vmov 2147483648   ;;  %v1095_v1 = vmov 2147483647   ;;  %s1219_s0 = inlined_call_operand.vmem [shape: f32[2,768], index: 0, kind: input, shape index: {}]   ;;  %s1220_s1 = inlined_call_operand.vmem [shape: f32[2,8], index: 1, kind: output, shape index: {0}]   ;;  %s1221_s2 = inlined_call_operand.vmem [shape: s32[2,8], index: 2, kind: output, shape index: {1}]  }
   0x1   :  { %6 = vst [vmem:[#allocation11] sm:$0xff] %v1094_v0  ;;  %7 = vst [vmem:[#allocation13] sm:$0xff] %v1095_v1 }
   0x2   :  { %v1055_v2 = vld [vmem:[%s1219_s0 + $0x8] sm:$0xf]  ;;  %v43_v3 = vlaneseq  ;;  %v26_v4 = vld [vmem:[%s1219_s0] sm:$0xff]  ;;  %v1096_v5 = vmov 2147483648   ;;  %v1097_v6 = vmov 2147483647  }
   0x3   :  { %39 = vst [vmem:[#allocation15 + $0x8] sm:$0xf] %v1055_v2  ;;  %84 = vst [vmem:[#allocation12] sm:$0xff] %v1096_v5  ;;  %v54_v10 = vsub.s32 2147483647, %v26_v4  ;;  %vm53_vm0 = vcmp.lt.s32.totalorder %v26_v4, 0 }
   0x4   :  { %85 = vst [vmem:[#allocation14] sm:$0xff] %v1097_v6  ;;  %v1125_v7 = vshrl.u32 %v43_v3, 7  ;;  %v44_v8 = vand.u32 127, %v43_v3  ;;  %s1129_s0 = smov 0  }
   0x5   :  { %v55_v13 = vsel %vm53_vm0, %v54_v10, %v26_v4 }
   0x6   :  { %v47_v9 = vshrl.u32 %v1125_v7, 1 }
   0x8   :  { %v49_v11 = vmul.u32 128, %v47_v9 }
   0xa   :  { %v50_v12 = vadd.s32 %v49_v11, %v44_v8  ;;  %v61_v14 = vld [vmem:[#allocation15 + $0x8] sm:$0xff] }
   0xb   :  { %vm62_vm1 = vcmp.lt.s32.totalorder %v61_v14, 0  ;;  %v63_v15 = vsub.s32 2147483647, %v61_v14 }
   0xc   :  { %vm57_vm2 = vcmp.lt.s32.totalorder %v50_v12, 768  ;;  %v65_v16 = vadd.s32 512, %v50_v12  ;;  %79 = vst [vmem:[#allocation16] sm:$0xff] %v50_v12 }
   0xd   :  { %v58_v17 = vsel %vm57_vm2, %v55_v13, 2147483648  ;;  %v64_v18 = vsel %vm62_vm1, %v63_v15, %v61_v14 }
   0xe   :  { %59 = vst [vmem:[#allocation15] sm:$0xff] %v58_v17  ;;  %vm66_vm3 = vcmp.lt.s32.totalorder %v65_v16, 768  ;;  %82 = vst [vmem:[#allocation16 + $0x8] sm:$0xff] %v65_v16 }
   0xf   :  { %v67_v19 = vsel %vm66_vm3, %v64_v18, 2147483648 }
  0x10   :  { %68 = vst [vmem:[#allocation15 + $0x8] sm:$0xff] %v67_v19 }
  0x11 LB: > { %s419_s13 = scalar_lea.vmem [#allocation12], %s1092_s0  ;;  %s421_s14 = scalar_lea.vmem [#allocation14], %s1092_s0  ;;  %s1092_s0 = sphi %s1129_s0, %s92_s0  }
  0x12   : > { %s92_s0 = sadd.s32 1, %s1092_s0  }
  0x13   : > { %v94_v21 = vld [vmem:[#allocation16] sm:$0xff]  ;;  %p89_p2 = scmp.ge.s32.totalorder %s92_s0, 8  }
  0x15   : > { %v93_v20 = vld [vmem:[#allocation15] sm:$0xff]  ;;  %v99_v23 = vld [vmem:[#allocation16 + $0x8] sm:$0xff] }
  0x16   : > { %vm103_vm6 = vcmp.lt.s32.totalorder %v99_v23, %v94_v21 }
  0x17   : > { %v97_v22 = vld [vmem:[#allocation15 + $0x8] sm:$0xff] }
  0x18   : > { %vm101_vm4 = vcmp.gt.s32.totalorder %v97_v22, %v93_v20  ;;  %vm102_vm5 = vcmp.eq.s32.totalorder %v97_v22, %v93_v20 }
  0x19   : > { %vm104_vm7 = vmand %vm102_vm5, %vm103_vm6 }
  0x1a   : > { %vm105_vm8 = vmor %vm101_vm4, %vm104_vm7 }
  0x1b   : > { %v106_v24 = vsel %vm105_vm8, %v97_v22, %v93_v20  ;;  %v107_v25 = vsel %vm105_vm8, %v99_v23, %v94_v21 }
  0x1c   : > { %v109_v26 = vrot.slane %v106_v24, 2  ;;  %v110_v27 = vrot.slane %v107_v25, 2 }
  0x1e   : > { %vm112_vm9 = vcmp.gt.s32.totalorder %v109_v26, %v106_v24  ;;  %vm113_vm10 = vcmp.eq.s32.totalorder %v109_v26, %v106_v24  ;;  %vm114_vm11 = vcmp.lt.s32.totalorder %v110_v27, %v107_v25 }
  0x1f   : > { %vm115_vm12 = vmand %vm113_vm10, %vm114_vm11 }
  0x20   : > { %vm116_vm13 = vmor %vm112_vm9, %vm115_vm12 }
  0x21   : > { %v117_v28 = vsel %vm116_vm13, %v109_v26, %v106_v24  ;;  %v118_v29 = vsel %vm116_vm13, %v110_v27, %v107_v25 }
  0x22   : > { %v120_v30 = vrot.slane %v117_v28, 2  ;;  %v121_v31 = vrot.slane %v118_v29, 2 }
  0x24   : > { %vm123_vm14 = vcmp.gt.s32.totalorder %v120_v30, %v117_v28  ;;  %vm124_vm15 = vcmp.eq.s32.totalorder %v120_v30, %v117_v28  ;;  %vm125_vm0 = vcmp.lt.s32.totalorder %v121_v31, %v118_v29 }
  0x25   : > { %vm126_vm1 = vmand %vm124_vm15, %vm125_vm0 }
  0x26   : > { %vm127_vm2 = vmor %vm123_vm14, %vm126_vm1 }
  0x27   : > { %v128_v32 = vsel %vm127_vm2, %v120_v30, %v117_v28  ;;  %v129_v33 = vsel %vm127_vm2, %v121_v31, %v118_v29 }
  0x28   : > { %v131_v34 = vrot.slane %v128_v32, 2  ;;  %v132_v35 = vrot.slane %v129_v33, 2 }
  0x2a   : > { %vm134_vm3 = vcmp.gt.s32.totalorder %v131_v34, %v128_v32  ;;  %vm135_vm4 = vcmp.eq.s32.totalorder %v131_v34, %v128_v32  ;;  %vm136_vm5 = vcmp.lt.s32.totalorder %v132_v35, %v129_v33 }
  0x2b   : > { %vm137_vm6 = vmand %vm135_vm4, %vm136_vm5 }
  0x2c   : > { %vm138_vm7 = vmor %vm134_vm3, %vm137_vm6 }
  0x2d   : > { %v140_v36 = vsel %vm138_vm7, %v132_v35, %v129_v33  ;;  %v139_v37 = vsel %vm138_vm7, %v131_v34, %v128_v32 }
  0x2e   : > { %174 = vxpose.xlu1.b32.start [1/16] %v140_v36, 128  ;;  %142 = vxpose.xlu0.b32.start [1/16] %v139_v37, 128 }
  0x32   : > { %175 = vxpose.xlu1.b32.cont [2/16] %v140_v36, 128  ;;  %143 = vxpose.xlu0.b32.cont [2/16] %v139_v37, 128 }
  0x36   : > { %176 = vxpose.xlu1.b32.cont [3/16] %v140_v36, 128  ;;  %144 = vxpose.xlu0.b32.cont [3/16] %v139_v37, 128 }
  0x3a   : > { %177 = vxpose.xlu1.b32.cont [4/16] %v140_v36, 128  ;;  %145 = vxpose.xlu0.b32.cont [4/16] %v139_v37, 128 }
  0x3e   : > { %178 = vxpose.xlu1.b32.cont [5/16] %v140_v36, 128  ;;  %146 = vxpose.xlu0.b32.cont [5/16] %v139_v37, 128 }
  0x42   : > { %179 = vxpose.xlu1.b32.cont [6/16] %v140_v36, 128  ;;  %147 = vxpose.xlu0.b32.cont [6/16] %v139_v37, 128 }
  0x46   : > { %180 = vxpose.xlu1.b32.cont [7/16] %v140_v36, 128  ;;  %148 = vxpose.xlu0.b32.cont [7/16] %v139_v37, 128 }
  0x4a   : > { %181 = vxpose.xlu1.b32.cont [8/16] %v140_v36, 128  ;;  %149 = vxpose.xlu0.b32.cont [8/16] %v139_v37, 128 }
  0x4e   : > { %182 = vxpose.xlu1.b32.cont [9/16] %v140_v36, 128  ;;  %150 = vxpose.xlu0.b32.cont [9/16] %v139_v37, 128 }
  0x52   : > { %183 = vxpose.xlu1.b32.cont [10/16] %v140_v36, 128  ;;  %151 = vxpose.xlu0.b32.cont [10/16] %v139_v37, 128 }
  0x56   : > { %184 = vxpose.xlu1.b32.cont [11/16] %v140_v36, 128  ;;  %152 = vxpose.xlu0.b32.cont [11/16] %v139_v37, 128 }
  0x5a   : > { %185 = vxpose.xlu1.b32.cont [12/16] %v140_v36, 128  ;;  %153 = vxpose.xlu0.b32.cont [12/16] %v139_v37, 128 }
  0x5e   : > { %186 = vxpose.xlu1.b32.cont [13/16] %v140_v36, 128  ;;  %154 = vxpose.xlu0.b32.cont [13/16] %v139_v37, 128 }
  0x62   : > { %187 = vxpose.xlu1.b32.cont [14/16] %v140_v36, 128  ;;  %155 = vxpose.xlu0.b32.cont [14/16] %v139_v37, 128 }
  0x66   : > { %188 = vxpose.xlu1.b32.cont [15/16] %v140_v36, 128  ;;  %156 = vxpose.xlu0.b32.cont [15/16] %v139_v37, 128 }
  0x6a   : > { %189 = vxpose.xlu1.b32.end [16/16] %v140_v36, 128  ;;  %157 = vxpose.xlu0.b32.end [16/16] %v139_v37, 128 }
  0xaa   : > { %v190_v38 = vpop.trf.xlu1  ;;  %v158_v39 = vpop.trf.xlu0 }
  0xae   : > { %v191_v40 = vpop.trf.xlu1  ;;  %v159_v41 = vpop.trf.xlu0 }
  0xaf   : > { %vm210_vm8 = vcmp.lt.s32.totalorder %v191_v40, %v190_v38  ;;  %vm208_vm9 = vcmp.gt.s32.totalorder %v159_v41, %v158_v39  ;;  %vm209_vm10 = vcmp.eq.s32.totalorder %v159_v41, %v158_v39 }
  0xb0   : > { %vm211_vm11 = vmand %vm209_vm10, %vm210_vm8 }
  0xb1   : > { %vm212_vm12 = vmor %vm208_vm9, %vm211_vm11 }
  0xb2   : > { %v213_v42 = vsel %vm212_vm12, %v159_v41, %v158_v39  ;;  %v192_v43 = vpop.trf.xlu1  ;;  %v214_v44 = vsel %vm212_vm12, %v191_v40, %v190_v38  ;;  %v160_v45 = vpop.trf.xlu0 }
  0xb3   : > { %vm219_vm13 = vcmp.lt.s32.totalorder %v192_v43, %v214_v44  ;;  %vm217_vm14 = vcmp.gt.s32.totalorder %v160_v45, %v213_v42  ;;  %vm218_vm15 = vcmp.eq.s32.totalorder %v160_v45, %v213_v42 }
  0xb4   : > { %vm220_vm0 = vmand %vm218_vm15, %vm219_vm13 }
  0xb5   : > { %vm221_vm1 = vmor %vm217_vm14, %vm220_vm0 }
  0xb6   : > { %v222_v46 = vsel %vm221_vm1, %v160_v45, %v213_v42  ;;  %v193_v47 = vpop.trf.xlu1  ;;  %v223_v48 = vsel %vm221_vm1, %v192_v43, %v214_v44  ;;  %v161_v49 = vpop.trf.xlu0 }
  0xb7   : > { %vm228_vm2 = vcmp.lt.s32.totalorder %v193_v47, %v223_v48  ;;  %vm226_vm3 = vcmp.gt.s32.totalorder %v161_v49, %v222_v46  ;;  %vm227_vm4 = vcmp.eq.s32.totalorder %v161_v49, %v222_v46 }
  0xb8   : > { %vm229_vm5 = vmand %vm227_vm4, %vm228_vm2 }
  0xb9   : > { %vm230_vm6 = vmor %vm226_vm3, %vm229_vm5 }
  0xba   : > { %v231_v50 = vsel %vm230_vm6, %v161_v49, %v222_v46  ;;  %v194_v51 = vpop.trf.xlu1  ;;  %v232_v52 = vsel %vm230_vm6, %v193_v47, %v223_v48  ;;  %v162_v53 = vpop.trf.xlu0 }
  0xbb   : > { %vm237_vm7 = vcmp.lt.s32.totalorder %v194_v51, %v232_v52  ;;  %vm235_vm8 = vcmp.gt.s32.totalorder %v162_v53, %v231_v50  ;;  %vm236_vm9 = vcmp.eq.s32.totalorder %v162_v53, %v231_v50 }
  0xbc   : > { %vm238_vm10 = vmand %vm236_vm9, %vm237_vm7 }
  0xbd   : > { %vm239_vm11 = vmor %vm235_vm8, %vm238_vm10 }
  0xbe   : > { %v240_v54 = vsel %vm239_vm11, %v162_v53, %v231_v50  ;;  %v195_v55 = vpop.trf.xlu1  ;;  %v241_v56 = vsel %vm239_vm11, %v194_v51, %v232_v52  ;;  %v163_v57 = vpop.trf.xlu0 }
  0xbf   : > { %vm246_vm12 = vcmp.lt.s32.totalorder %v195_v55, %v241_v56  ;;  %vm244_vm13 = vcmp.gt.s32.totalorder %v163_v57, %v240_v54  ;;  %vm245_vm14 = vcmp.eq.s32.totalorder %v163_v57, %v240_v54 }
  0xc0   : > { %vm247_vm15 = vmand %vm245_vm14, %vm246_vm12 }
  0xc1   : > { %vm248_vm0 = vmor %vm244_vm13, %vm247_vm15 }
  0xc2   : > { %v249_v58 = vsel %vm248_vm0, %v163_v57, %v240_v54  ;;  %v196_v59 = vpop.trf.xlu1  ;;  %v250_v60 = vsel %vm248_vm0, %v195_v55, %v241_v56  ;;  %v164_v61 = vpop.trf.xlu0 }
  0xc3   : > { %vm255_vm1 = vcmp.lt.s32.totalorder %v196_v59, %v250_v60  ;;  %vm253_vm2 = vcmp.gt.s32.totalorder %v164_v61, %v249_v58  ;;  %vm254_vm3 = vcmp.eq.s32.totalorder %v164_v61, %v249_v58 }
  0xc4   : > { %vm256_vm4 = vmand %vm254_vm3, %vm255_vm1 }
  0xc5   : > { %vm257_vm5 = vmor %vm253_vm2, %vm256_vm4 }
  0xc6   : > { %v258_v62 = vsel %vm257_vm5, %v164_v61, %v249_v58  ;;  %v197_v63 = vpop.trf.xlu1  ;;  %v259_v0 = vsel %vm257_vm5, %v196_v59, %v250_v60  ;;  %v165_v1 = vpop.trf.xlu0 }
  0xc7   : > { %vm264_vm6 = vcmp.lt.s32.totalorder %v197_v63, %v259_v0  ;;  %vm262_vm7 = vcmp.gt.s32.totalorder %v165_v1, %v258_v62  ;;  %vm263_vm8 = vcmp.eq.s32.totalorder %v165_v1, %v258_v62 }
  0xc8   : > { %vm265_vm9 = vmand %vm263_vm8, %vm264_vm6 }
  0xc9   : > { %vm266_vm10 = vmor %vm262_vm7, %vm265_vm9 }
  0xca   : > { %v267_v2 = vsel %vm266_vm10, %v165_v1, %v258_v62  ;;  %v198_v4 = vpop.trf.xlu1  ;;  %v268_v5 = vsel %vm266_vm10, %v197_v63, %v259_v0  ;;  %v166_v6 = vpop.trf.xlu0 }
  0xcb   : > { %vm273_vm11 = vcmp.lt.s32.totalorder %v198_v4, %v268_v5  ;;  %vm271_vm12 = vcmp.gt.s32.totalorder %v166_v6, %v267_v2  ;;  %vm272_vm13 = vcmp.eq.s32.totalorder %v166_v6, %v267_v2 }
  0xcc   : > { %vm274_vm14 = vmand %vm272_vm13, %vm273_vm11 }
  0xcd   : > { %vm275_vm15 = vmor %vm271_vm12, %vm274_vm14 }
  0xce   : > { %v276_v8 = vsel %vm275_vm15, %v166_v6, %v267_v2  ;;  %v199_v9 = vpop.trf.xlu1  ;;  %v277_v10 = vsel %vm275_vm15, %v198_v4, %v268_v5  ;;  %v167_v11 = vpop.trf.xlu0  ;;  %v1098_v6 = vmov 2147483648  }
  0xcf   : > { %vm282_vm0 = vcmp.lt.s32.totalorder %v199_v9, %v277_v10  ;;  %vm280_vm1 = vcmp.gt.s32.totalorder %v167_v11, %v276_v8  ;;  %vm281_vm2 = vcmp.eq.s32.totalorder %v167_v11, %v276_v8 }
  0xd0   : > { %vm283_vm3 = vmand %vm281_vm2, %vm282_vm0 }
  0xd1   : > { %vm284_vm4 = vmor %vm280_vm1, %vm283_vm3 }
  0xd2   : > { %v285_v12 = vsel %vm284_vm4, %v167_v11, %v276_v8  ;;  %v200_v13 = vpop.trf.xlu1  ;;  %v286_v14 = vsel %vm284_vm4, %v199_v9, %v277_v10  ;;  %v168_v15 = vpop.trf.xlu0  ;;  %v1099_v8 = vmov 2147483647  }
  0xd3   : > { %vm291_vm5 = vcmp.lt.s32.totalorder %v200_v13, %v286_v14  ;;  %vm289_vm6 = vcmp.gt.s32.totalorder %v168_v15, %v285_v12  ;;  %vm290_vm7 = vcmp.eq.s32.totalorder %v168_v15, %v285_v12 }
  0xd4   : > { %vm292_vm8 = vmand %vm290_vm7, %vm291_vm5 }
  0xd5   : > { %vm293_vm9 = vmor %vm289_vm6, %vm292_vm8 }
  0xd6   : > { %v294_v16 = vsel %vm293_vm9, %v168_v15, %v285_v12  ;;  %v201_v17 = vpop.trf.xlu1  ;;  %v295_v18 = vsel %vm293_vm9, %v200_v13, %v286_v14  ;;  %v169_v19 = vpop.trf.xlu0  ;;  %v517_v13 = vld [vmem:[#allocation11] sm:$0xff] (%p89_p2)  ;;  %v518_v14 = vld [vmem:[#allocation13] sm:$0xff] (%p89_p2)  ;;  %v1100_v15 = vmov (%p89_p2), 839939668  }
  0xd7   : > { %vm300_vm10 = vcmp.lt.s32.totalorder %v201_v17, %v295_v18  ;;  %vm298_vm11 = vcmp.gt.s32.totalorder %v169_v19, %v294_v16  ;;  %vm299_vm12 = vcmp.eq.s32.totalorder %v169_v19, %v294_v16 }
  0xd8   : > { %vm301_vm13 = vmand %vm299_vm12, %vm300_vm10 }
  0xd9   : > { %vm302_vm14 = vmor %vm298_vm11, %vm301_vm13 }
  0xda   : > { %v303_v20 = vsel %vm302_vm14, %v169_v19, %v294_v16  ;;  %v202_v21 = vpop.trf.xlu1  ;;  %v304_v22 = vsel %vm302_vm14, %v201_v17, %v295_v18  ;;  %v170_v23 = vpop.trf.xlu0  ;;  %v542_v16 = vunpack.c.l.s4 (%p89_p2), %v1100_v15  ;;  %v1101_v17 = vmov (%p89_p2), 1417023538  }
  0xdb   : > { %vm309_vm15 = vcmp.lt.s32.totalorder %v202_v21, %v304_v22  ;;  %vm307_vm0 = vcmp.gt.s32.totalorder %v170_v23, %v303_v20  ;;  %vm308_vm1 = vcmp.eq.s32.totalorder %v170_v23, %v303_v20  ;;  %v570_v18 = vunpack.c.l.s4 (%p89_p2), %v1101_v17 }
  0xdc   : > { %vm310_vm2 = vmand %vm308_vm1, %vm309_vm15  ;;  %v543_v19 = vunpack.c.0.s8 (%p89_p2), %v542_v16 }
  0xdd   : > { %vm311_vm3 = vmor %vm307_vm0, %vm310_vm2 }
  0xde   : > { %v312_v24 = vsel %vm311_vm3, %v170_v23, %v303_v20  ;;  %v203_v25 = vpop.trf.xlu1  ;;  %v313_v26 = vsel %vm311_vm3, %v202_v21, %v304_v22  ;;  %v171_v27 = vpop.trf.xlu0  ;;  %v563_v23 = vand.u32 (%p89_p2), 4, %v1125_v7 }
  0xdf   : > { %vm318_vm4 = vcmp.lt.s32.totalorder %v203_v25, %v313_v26  ;;  %vm316_vm5 = vcmp.gt.s32.totalorder %v171_v27, %v312_v24  ;;  %vm317_vm6 = vcmp.eq.s32.totalorder %v171_v27, %v312_v24 }
  0xe0   : > { %vm319_vm7 = vmand %vm317_vm6, %vm318_vm4 }
  0xe1   : > { %vm320_vm8 = vmor %vm316_vm5, %vm319_vm7 }
  0xe2   : > { %v321_v28 = vsel %vm320_vm8, %v171_v27, %v312_v24  ;;  %v204_v29 = vpop.trf.xlu1  ;;  %v322_v30 = vsel %vm320_vm8, %v203_v25, %v313_v26  ;;  %v172_v31 = vpop.trf.xlu0  ;;  %v571_v25 = vunpack.c.0.s8 (%p89_p2), %v570_v18 }
  0xe3   : > { %vm327_vm9 = vcmp.lt.s32.totalorder %v204_v29, %v322_v30  ;;  %vm325_vm10 = vcmp.gt.s32.totalorder %v172_v31, %v321_v28  ;;  %vm326_vm11 = vcmp.eq.s32.totalorder %v172_v31, %v321_v28 }
  0xe4   : > { %vm328_vm12 = vmand %vm326_vm11, %vm327_vm9 }
  0xe5   : > { %vm329_vm13 = vmor %vm325_vm10, %vm328_vm12 }
  0xe6   : > { %v330_v32 = vsel %vm329_vm13, %v172_v31, %v321_v28  ;;  %v205_v33 = vpop.trf.xlu1  ;;  %v331_v34 = vsel %vm329_vm13, %v204_v29, %v322_v30  ;;  %v173_v35 = vpop.trf.xlu0  ;;  %v1102_v31 = vmov (%p89_p2), 1732584193  }
  0xe7   : > { %vm336_vm14 = vcmp.lt.s32.totalorder %v205_v33, %v331_v34  ;;  %vm334_vm15 = vcmp.gt.s32.totalorder %v173_v35, %v330_v32  ;;  %vm335_vm0 = vcmp.eq.s32.totalorder %v173_v35, %v330_v32 }
  0xe8   : > { %vm337_vm1 = vmand %vm335_vm0, %vm336_vm14 }
  0xe9   : > { %vm338_vm2 = vmor %vm334_vm15, %vm337_vm1 }
  0xea   : > { %v339_v36 = vsel %vm338_vm2, %v173_v35, %v330_v32  ;;  %v340_v37 = vsel %vm338_vm2, %v205_v33, %v331_v34  ;;  %v598_v32 = vunpack.c.l.s4 (%p89_p2), %v1102_v31  ;;  %v1154_v33 = vsub.s32 (%p89_p2), %v571_v25, %v1125_v7 }
  0xeb   : > { %v342_v38 = vrot.slane %v339_v36, 1  ;;  %v343_v39 = vrot.slane %v340_v37, 1  ;;  %v591_v34 = vand.u32 (%p89_p2), 2, %v1125_v7 }
  0xed   : > { %vm345_vm3 = vcmp.gt.s32.totalorder %v342_v38, %v339_v36  ;;  %vm346_vm4 = vcmp.eq.s32.totalorder %v342_v38, %v339_v36  ;;  %vm347_vm5 = vcmp.lt.s32.totalorder %v343_v39, %v340_v37 }
  0xee   : > { %vm348_vm6 = vmand %vm346_vm4, %vm347_vm5 }
  0xef   : > { %vm349_vm7 = vmor %vm345_vm3, %vm348_vm6 }
  0xf0   : > { %v350_v40 = vsel %vm349_vm7, %v342_v38, %v339_v36  ;;  %v351_v41 = vsel %vm349_vm7, %v343_v39, %v340_v37  ;;  %v599_v37 = vunpack.c.0.s8 (%p89_p2), %v598_v32 }
  0xf1   : > { %v353_v42 = vrot.slane %v350_v40, 1  ;;  %v354_v43 = vrot.slane %v351_v41, 1 }
  0xf3   : > { %vm356_vm8 = vcmp.gt.s32.totalorder %v353_v42, %v350_v40  ;;  %vm357_vm9 = vcmp.eq.s32.totalorder %v353_v42, %v350_v40  ;;  %vm358_vm10 = vcmp.lt.s32.totalorder %v354_v43, %v351_v41 }
  0xf4   : > { %vm359_vm11 = vmand %vm357_vm9, %vm358_vm10 }
  0xf5   : > { %vm360_vm12 = vmor %vm356_vm8, %vm359_vm11 }
  0xf6   : > { %v361_v44 = vsel %vm360_vm12, %v353_v42, %v350_v40  ;;  %v362_v45 = vsel %vm360_vm12, %v354_v43, %v351_v41  ;;  %v1168_v42 = vsub.s32 (%p89_p2), %v599_v37, %v1125_v7 }
  0xf7   : > { %v364_v46 = vrot.slane %v361_v44, 1  ;;  %v365_v47 = vrot.slane %v362_v45, 1 }
  0xf9   : > { %vm369_vm13 = vcmp.lt.s32.totalorder %v365_v47, %v362_v45  ;;  %vm367_vm14 = vcmp.gt.s32.totalorder %v364_v46, %v361_v44  ;;  %vm368_vm15 = vcmp.eq.s32.totalorder %v364_v46, %v361_v44 }
  0xfa   : > { %vm370_vm0 = vmand %vm368_vm15, %vm369_vm13 }
  0xfb   : > { %vm371_vm1 = vmor %vm367_vm14, %vm370_vm0 }
  0xfc   : > { %v372_v48 = vsel %vm371_vm1, %v364_v46, %v361_v44  ;;  %v373_v49 = vsel %vm371_vm1, %v365_v47, %v362_v45  ;;  %v619_v46 = vand.u32 (%p89_p2), 1, %v1125_v7 }
  0xfd   : > { %v375_v50 = vrot.slane %v372_v48, 1  ;;  %v376_v51 = vrot.slane %v373_v49, 1 }
  0xff   : > { %vm378_vm2 = vcmp.gt.s32.totalorder %v375_v50, %v372_v48  ;;  %vm379_vm3 = vcmp.eq.s32.totalorder %v375_v50, %v372_v48  ;;  %vm380_vm4 = vcmp.lt.s32.totalorder %v376_v51, %v373_v49 }
 0x100   : > { %vm381_vm5 = vmand %vm379_vm3, %vm380_vm4 }
 0x101   : > { %vm382_vm6 = vmor %vm378_vm2, %vm381_vm5 }
 0x102   : > { %v383_v52 = vsel %vm382_vm6, %v375_v50, %v372_v48  ;;  %v384_v53 = vsel %vm382_vm6, %v376_v51, %v373_v49 }
 0x103   : > { %v386_v54 = vrot.slane %v383_v52, 1  ;;  %v387_v55 = vrot.slane %v384_v53, 1 }
 0x105   : > { %vm389_vm7 = vcmp.gt.s32.totalorder %v386_v54, %v383_v52  ;;  %vm390_vm8 = vcmp.eq.s32.totalorder %v386_v54, %v383_v52  ;;  %vm391_vm9 = vcmp.lt.s32.totalorder %v387_v55, %v384_v53 }
 0x106   : > { %vm392_vm10 = vmand %vm390_vm8, %vm391_vm9 }
 0x107   : > { %vm393_vm11 = vmor %vm389_vm7, %vm392_vm10 }
 0x108   : > { %v394_v56 = vsel %vm393_vm11, %v386_v54, %v383_v52  ;;  %v395_v57 = vsel %vm393_vm11, %v387_v55, %v384_v53 }
 0x109   : > { %v397_v58 = vrot.slane %v394_v56, 1  ;;  %v398_v59 = vrot.slane %v395_v57, 1 }
 0x10b   : > { %vm400_vm12 = vcmp.gt.s32.totalorder %v397_v58, %v394_v56  ;;  %vm401_vm13 = vcmp.eq.s32.totalorder %v397_v58, %v394_v56  ;;  %vm402_vm14 = vcmp.lt.s32.totalorder %v398_v59, %v395_v57 }
 0x10c   : > { %vm403_vm15 = vmand %vm401_vm13, %vm402_vm14  ;;  %vm1148_vm13 = vcmp.ne.s32.totalorder (%p89_p2), %v563_v23, 0 }
 0x10d   : > { %vm404_vm0 = vmor %vm400_vm12, %vm403_vm15 }
 0x10e   : > { %v405_v60 = vsel %vm404_vm0, %v397_v58, %v394_v56  ;;  %v406_v61 = vsel %vm404_vm0, %v398_v59, %v395_v57 }
 0x10f   : > { %v408_v62 = vrot.slane %v405_v60, 1  ;;  %v409_v63 = vrot.slane %v406_v61, 1 }
 0x111   : > { %vm411_vm1 = vcmp.gt.s32.totalorder %v408_v62, %v405_v60  ;;  %vm412_vm2 = vcmp.eq.s32.totalorder %v408_v62, %v405_v60  ;;  %vm413_vm3 = vcmp.lt.s32.totalorder %v409_v63, %v406_v61 }
 0x112   : > { %vm414_vm4 = vmand %vm412_vm2, %vm413_vm3 }
 0x113   : > { %vm415_vm5 = vmor %vm411_vm1, %vm414_vm4 }
 0x114   : > { %v417_v0 = vsel %vm415_vm5, %v409_v63, %v406_v61  ;;  %v416_v1 = vsel %vm415_vm5, %v408_v62, %v405_v60 }
 0x115   : > { %424 = vxpose.xlu0.b32.start.end [1/1] (short) (narrow) %v417_v0, 8  ;;  %420 = vst [vmem:[%s419_s13] sm:$0x1] %v416_v1  ;;  %422 = vst [vmem:[%s421_s14] sm:$0x1] %v417_v0 }
 0x11c   :  { %v505_v11 = vld [vmem:[#allocation12 + $0x7] ss:$-1 sm:$0xff] (%p89_p2)  ;;  %v511_v12 = vld [vmem:[#allocation14 + $0x7] ss:$-1 sm:$0xff] (%p89_p2) }
 0x11d   :  { %vm523_vm8 = vcmp.gt.s32.totalorder (%p89_p2), %v517_v13, %v505_v11  ;;  %vm524_vm9 = vcmp.eq.s32.totalorder (%p89_p2), %v517_v13, %v505_v11  ;;  %vm525_vm10 = vcmp.lt.s32.totalorder (%p89_p2), %v518_v14, %v511_v12 }
 0x11e   :  { %vm526_vm11 = vmand (%p89_p2), %vm524_vm9, %vm525_vm10  ;;  %vm1161_vm9 = vcmp.ne.s32.totalorder (%p89_p2), %v591_v34, 0 }
 0x11f   :  { %vm527_vm12 = vmor (%p89_p2), %vm523_vm8, %vm526_vm11 }
 0x120   :  { %v528_v20 = vsel (%p89_p2), %vm527_vm12, %v517_v13, %v505_v11  ;;  %v530_v21 = vsel (%p89_p2), %vm527_vm12, %v505_v11, %v517_v13  ;;  %v532_v22 = vsel (%p89_p2), %vm527_vm12, %v518_v14, %v511_v12  ;;  %v534_v24 = vsel (%p89_p2), %vm527_vm12, %v511_v12, %v518_v14 }
 0x191   : > { %v440_v2 = vpop.trf.xlu0 }
 0x192   : > { %v479_v4 = vrot.slane %v440_v2, 1  ;;  %1064 = vpush %v440_v2 }
 0x194   : > { %1066 = vpush %v479_v4 }
 0x1c3   : > { %s1065_s15 = spop %1064 }
 0x1c4   : > { %s457_s16 = sshrl.u32 %s1065_s15, 9  ;;  %s459_s17 = ssub.s32 0, %s1065_s15 }
 0x1c5   : > { %p458_p0 = scmp.lt.s32.totalorder %s1065_s15, 0  ;;  %s1056_s18 = smin.u32 %s1065_s15, %s459_s17 }
 0x1c6   : > { %s461_s19 = sand.u32 511, %s1056_s18   ;;  %s1058_s20 = sshll.u32 %s457_s16, 3 }
 0x1c7   : > { %s462_s21 = ssub.s32 0, %s461_s19  ;;  %s1067_s22 = spop %1066 }
 0x1c8   : > { %s1229_s21 = smov (!%p458_p0, %s462_s21), %s461_s19  ;;  %s483_s26 = ssub.s32 0, %s1067_s22 }
 0x1c9   : > { %s464_s23 = sshrl.u32 %s1229_s21, 7  ;;  %s466_s24 = sand.u32 127, %s1229_s21  }
 0x1ca   : > { %s1057_s25 = sshll.u32 %s464_s23, 8  ;;  %s1060_s28 = smin.u32 %s1067_s22, %s483_s26 }
 0x1cb   : > { %s467_s27 = sadd.s32 %s1057_s25, %s466_s24  ;;  %p482_p1 = scmp.lt.s32.totalorder %s1067_s22, 0 }
 0x1cc   : > { %v469_v5 = vstv %s467_s27  ;;  %s485_s29 = sand.u32 511, %s1060_s28   ;;  %s473_s3 = scalar_lea.vmem [#allocation15], %s1058_s20 }
 0x1cd   : > { %vm471_vm6 = vcmp.eq.s32.totalorder %v43_v3, %v469_v5  ;;  %s486_s30 = ssub.s32 0, %s485_s29  ;;  %s476_s4 = scalar_lea.vmem [#allocation16], %s1058_s20 }
 0x1ce   : > { %474 = vst.msk [vmem:[%s473_s3] sm:$0xff] %vm471_vm6, %v1098_v6  ;;  %477 = vst.msk [vmem:[%s476_s4] sm:$0xff] %vm471_vm6, %v1099_v8  ;;  %s1231_s30 = smov (!%p482_p1, %s486_s30), %s485_s29  ;;  %s481_s5 = sshrl.u32 %s1067_s22, 9 }
 0x1cf   : > { %s488_s6 = sshrl.u32 %s1231_s30, 7  ;;  %s490_s7 = sand.u32 127, %s1231_s30  }
 0x1d0   : > { %s1061_s8 = sshll.u32 %s488_s6, 8  ;;  %s1062_s10 = sshll.u32 %s481_s5, 3 }
 0x1d1   : > { %s491_s9 = sadd.s32 %s1061_s8, %s490_s7  ;;  %s497_s11 = scalar_lea.vmem [#allocation15], %s1062_s10 }
 0x1d2   : > { %v493_v9 = vstv %s491_s9  ;;  %s500_s12 = scalar_lea.vmem [#allocation16], %s1062_s10  ;;  %91 = sbr.rel (!%p89_p2) target bundleno = 17 (0x11), region = 141 }
 0x1d3   : > { %v494_v10 = vadd.s32 128, %v493_v9 }
 0x1d5   : > { %vm495_vm7 = vcmp.eq.s32.totalorder %v43_v3, %v494_v10  ;;  %v1143_v3 = vsub.s32 (%p89_p2), %v543_v19, %v1125_v7 }
 0x1d6   : > { %498 = vst.msk [vmem:[%s497_s11] sm:$0xff] %vm495_vm7, %v1098_v6  ;;  %501 = vst.msk [vmem:[%s500_s12] sm:$0xff] %vm495_vm7, %v1099_v8 }
 0x1d7   :  { %v547_v26 = vrot.slane %v528_v20, %v1143_v3  ;;  %v554_v27 = vrot.slane %v532_v22, %v1143_v3  ;;  %v728_v28 = vrot.slane %v530_v21, %v1143_v3  ;;  %v735_v30 = vrot.slane %v534_v24, %v1143_v3 }
 0x1d9   :  { %vm556_vm14 = vcmp.gt.s32.totalorder %v528_v20, %v547_v26  ;;  %vm557_vm15 = vcmp.eq.s32.totalorder %v528_v20, %v547_v26  ;;  %vm558_vm0 = vcmp.lt.s32.totalorder %v532_v22, %v554_v27  ;;  %vm738_vm2 = vcmp.eq.s32.totalorder %v530_v21, %v728_v28 }
 0x1da   :  { %vm559_vm1 = vmand %vm557_vm15, %vm558_vm0  ;;  %vm739_vm3 = vcmp.lt.s32.totalorder %v534_v24, %v735_v30  ;;  %vm737_vm5 = vcmp.gt.s32.totalorder %v530_v21, %v728_v28 }
 0x1db   :  { %vm560_vm4 = vmor %vm556_vm14, %vm559_vm1 }
 0x1dc   :  { %vm565_vm6 = vmxor %vm560_vm4, %vm1148_vm13 }
 0x1dd   :  { %v566_v35 = vsel %vm565_vm6, %v528_v20, %v547_v26  ;;  %v567_v36 = vsel %vm565_vm6, %v532_v22, %v554_v27  ;;  %vm740_vm7 = vmand %vm738_vm2, %vm739_vm3 }
 0x1de   :  { %v575_v38 = vrot.slane %v566_v35, %v1154_v33  ;;  %v582_v39 = vrot.slane %v567_v36, %v1154_v33  ;;  %vm741_vm8 = vmor %vm737_vm5, %vm740_vm7 }
 0x1df   :  { %vm746_vm10 = vmxor %vm741_vm8, %vm1148_vm13 }
 0x1e0   :  { %vm584_vm11 = vcmp.gt.s32.totalorder %v566_v35, %v575_v38  ;;  %vm585_vm12 = vcmp.eq.s32.totalorder %v566_v35, %v575_v38  ;;  %vm586_vm14 = vcmp.lt.s32.totalorder %v567_v36, %v582_v39  ;;  %v747_v41 = vsel %vm746_vm10, %v530_v21, %v728_v28 }
 0x1e1   :  { %vm587_vm15 = vmand %vm585_vm12, %vm586_vm14  ;;  %v748_v43 = vsel %vm746_vm10, %v534_v24, %v735_v30  ;;  %v756_v44 = vrot.slane %v747_v41, %v1154_v33 }
 0x1e2   :  { %vm588_vm0 = vmor %vm584_vm11, %vm587_vm15  ;;  %v763_v45 = vrot.slane %v748_v43, %v1154_v33  ;;  %vm1177_vm11 = vcmp.ne.s32.totalorder %v619_v46, 0 }
 0x1e3   :  { %vm593_vm1 = vmxor %vm588_vm0, %vm1161_vm9  ;;  %vm765_vm2 = vcmp.gt.s32.totalorder %v747_v41, %v756_v44  ;;  %vm766_vm3 = vcmp.eq.s32.totalorder %v747_v41, %v756_v44 }
 0x1e4   :  { %v594_v47 = vsel %vm593_vm1, %v566_v35, %v575_v38  ;;  %v595_v48 = vsel %vm593_vm1, %v567_v36, %v582_v39  ;;  %vm767_vm4 = vcmp.lt.s32.totalorder %v748_v43, %v763_v45 }
 0x1e5   :  { %v603_v49 = vrot.slane %v594_v47, %v1168_v42  ;;  %v610_v50 = vrot.slane %v595_v48, %v1168_v42  ;;  %vm768_vm5 = vmand %vm766_vm3, %vm767_vm4 }
 0x1e6   :  { %vm769_vm6 = vmor %vm765_vm2, %vm768_vm5 }
 0x1e7   :  { %vm612_vm7 = vcmp.gt.s32.totalorder %v594_v47, %v603_v49  ;;  %vm613_vm8 = vcmp.eq.s32.totalorder %v594_v47, %v603_v49  ;;  %vm614_vm10 = vcmp.lt.s32.totalorder %v595_v48, %v610_v50  ;;  %vm774_vm12 = vmxor %vm769_vm6, %vm1161_vm9 }
 0x1e8   :  { %vm615_vm14 = vmand %vm613_vm8, %vm614_vm10  ;;  %v775_v7 = vsel %vm774_vm12, %v747_v41, %v756_v44  ;;  %v776_v52 = vsel %vm774_vm12, %v748_v43, %v763_v45 }
 0x1e9   :  { %vm616_vm15 = vmor %vm612_vm7, %vm615_vm14  ;;  %v784_v53 = vrot.slane %v775_v7, %v1168_v42  ;;  %v791_v54 = vrot.slane %v776_v52, %v1168_v42 }
 0x1ea   :  { %vm621_vm0 = vmxor %vm616_vm15, %vm1177_vm11 }
 0x1eb   :  { %v622_v55 = vsel %vm621_vm0, %v594_v47, %v603_v49  ;;  %v623_v56 = vsel %vm621_vm0, %v595_v48, %v610_v50  ;;  %vm793_vm1 = vcmp.gt.s32.totalorder %v775_v7, %v784_v53  ;;  %vm794_vm2 = vcmp.eq.s32.totalorder %v775_v7, %v784_v53 }
 0x1ec   :  { %v637_v57 = vrot.slane %v622_v55, %v1143_v3  ;;  %v644_v58 = vrot.slane %v623_v56, %v1143_v3  ;;  %vm795_vm3 = vcmp.lt.s32.totalorder %v776_v52, %v791_v54 }
 0x1ed   :  { %vm796_vm4 = vmand %vm794_vm2, %vm795_vm3 }
 0x1ee   :  { %vm646_vm5 = vcmp.gt.s32.totalorder %v622_v55, %v637_v57  ;;  %vm647_vm6 = vcmp.eq.s32.totalorder %v622_v55, %v637_v57  ;;  %vm648_vm7 = vcmp.lt.s32.totalorder %v623_v56, %v644_v58  ;;  %vm797_vm8 = vmor %vm793_vm1, %vm796_vm4 }
 0x1ef   :  { %vm649_vm10 = vmand %vm647_vm6, %vm648_vm7 }
 0x1f0   :  { %vm650_vm12 = vmor %vm646_vm5, %vm649_vm10 }
 0x1f1   :  { %vm655_vm14 = vmxor %vm650_vm12, %vm1148_vm13 }
 0x1f2   :  { %v656_v59 = vsel %vm655_vm14, %v622_v55, %v637_v57  ;;  %v657_v60 = vsel %vm655_vm14, %v623_v56, %v644_v58  ;;  %vm802_vm15 = vmxor %vm797_vm8, %vm1177_vm11 }
 0x1f3   :  { %v665_v61 = vrot.slane %v656_v59, %v1154_v33  ;;  %v672_v62 = vrot.slane %v657_v60, %v1154_v33  ;;  %v803_v63 = vsel %vm802_vm15, %v775_v7, %v784_v53  ;;  %v804_v0 = vsel %vm802_vm15, %v776_v52, %v791_v54 }
 0x1f4   :  { %v818_v1 = vrot.slane %v803_v63, %v1143_v3  ;;  %v825_v2 = vrot.slane %v804_v0, %v1143_v3 }
 0x1f5   :  { %vm674_vm0 = vcmp.gt.s32.totalorder %v656_v59, %v665_v61  ;;  %vm675_vm1 = vcmp.eq.s32.totalorder %v656_v59, %v665_v61  ;;  %vm676_vm2 = vcmp.lt.s32.totalorder %v657_v60, %v672_v62 }
 0x1f6   :  { %vm677_vm3 = vmand %vm675_vm1, %vm676_vm2  ;;  %vm828_vm4 = vcmp.eq.s32.totalorder %v803_v63, %v818_v1  ;;  %vm829_vm5 = vcmp.lt.s32.totalorder %v804_v0, %v825_v2  ;;  %vm827_vm7 = vcmp.gt.s32.totalorder %v803_v63, %v818_v1 }
 0x1f7   :  { %vm678_vm6 = vmor %vm674_vm0, %vm677_vm3 }
 0x1f8   :  { %vm683_vm8 = vmxor %vm678_vm6, %vm1161_vm9 }
 0x1f9   :  { %v684_v4 = vsel %vm683_vm8, %v656_v59, %v665_v61  ;;  %v685_v5 = vsel %vm683_vm8, %v657_v60, %v672_v62  ;;  %vm830_vm10 = vmand %vm828_vm4, %vm829_vm5 }
 0x1fa   :  { %v693_v6 = vrot.slane %v684_v4, %v1168_v42  ;;  %v700_v8 = vrot.slane %v685_v5, %v1168_v42  ;;  %vm831_vm12 = vmor %vm827_vm7, %vm830_vm10 }
 0x1fb   :  { %vm836_vm14 = vmxor %vm831_vm12, %vm1148_vm13 }
 0x1fc   :  { %vm702_vm15 = vcmp.gt.s32.totalorder %v684_v4, %v693_v6  ;;  %vm703_vm1 = vcmp.eq.s32.totalorder %v684_v4, %v693_v6  ;;  %vm704_vm2 = vcmp.lt.s32.totalorder %v685_v5, %v700_v8  ;;  %v837_v9 = vsel %vm836_vm14, %v803_v63, %v818_v1 }
 0x1fd   :  { %vm705_vm0 = vmand %vm703_vm1, %vm704_vm2  ;;  %v838_v10 = vsel %vm836_vm14, %v804_v0, %v825_v2  ;;  %v846_v11 = vrot.slane %v837_v9, %v1154_v33 }
 0x1fe   :  { %vm706_vm3 = vmor %vm702_vm15, %vm705_vm0  ;;  %v853_v12 = vrot.slane %v838_v10, %v1154_v33 }
 0x1ff   :  { %vm711_vm4 = vmxor %vm706_vm3, %vm1177_vm11  ;;  %vm855_vm5 = vcmp.gt.s32.totalorder %v837_v9, %v846_v11  ;;  %vm856_vm6 = vcmp.eq.s32.totalorder %v837_v9, %v846_v11 }
 0x200   :  { %v712_v13 = vsel %vm711_vm4, %v684_v4, %v693_v6  ;;  %v713_v14 = vsel %vm711_vm4, %v685_v5, %v700_v8  ;;  %vm857_vm7 = vcmp.lt.s32.totalorder %v838_v10, %v853_v12 }
 0x201   :  { %715 = vst [vmem:[#allocation11] sm:$0xff] %v712_v13  ;;  %716 = vst [vmem:[#allocation13] sm:$0xff] %v713_v14 }
 0x202   :  { %vm858_vm13 = vmand %vm856_vm6, %vm857_vm7 }
 0x203   :  { %vm859_vm8 = vmor %vm855_vm5, %vm858_vm13 }
 0x204   :  { %vm864_vm10 = vmxor %vm859_vm8, %vm1161_vm9 }
 0x205   :  { %v865_v15 = vsel %vm864_vm10, %v837_v9, %v846_v11  ;;  %v866_v16 = vsel %vm864_vm10, %v838_v10, %v853_v12 }
 0x206   :  { %v874_v17 = vrot.slane %v865_v15, %v1168_v42  ;;  %v881_v18 = vrot.slane %v866_v16, %v1168_v42 }
 0x208   :  { %vm883_vm12 = vcmp.gt.s32.totalorder %v865_v15, %v874_v17  ;;  %vm884_vm14 = vcmp.eq.s32.totalorder %v865_v15, %v874_v17  ;;  %vm885_vm15 = vcmp.lt.s32.totalorder %v866_v16, %v881_v18  ;;  %v899_v21 = vld [vmem:[#allocation11] sm:$0xff]  ;;  %v923_v24 = vld [vmem:[#allocation13] sm:$0xff] }
 0x209   :  { %vm886_vm1 = vmand %vm884_vm14, %vm885_vm15  ;;  %vm900_vm9 = vcmp.lt.s32.totalorder %v899_v21, 0  ;;  %v901_v22 = vsub.s32 2147483647, %v899_v21 }
 0x20a   :  { %vm887_vm2 = vmor %vm883_vm12, %vm886_vm1 }
 0x20b   :  { %vm892_vm0 = vmxor %vm887_vm2, %vm1177_vm11  ;;  %v902_v23 = vsel %vm900_vm9, %v901_v22, %v899_v21 }
 0x20c   :  { %v893_v19 = vsel %vm892_vm0, %v865_v15, %v874_v17  ;;  %v894_v20 = vsel %vm892_vm0, %v866_v16, %v881_v18  ;;  %903 = vst [vmem:[#allocation11] sm:$0xff] %v902_v23  ;;  %905 = vxpose.xlu0.b32.start.end [1/1] (short) (narrow) %v902_v23, 8 }
 0x20d   :  { %896 = vst [vmem:[#allocation12] sm:$0xff] %v893_v19  ;;  %897 = vst [vmem:[#allocation14] sm:$0xff] %v894_v20 }
 0x210   :  { %924 = vxpose.xlu0.b32.start.end [1/1] (short) (narrow) %v923_v24, 8 }
 0x288   :  { %v906_v3 = vpop.trf.xlu0 }
 0x289   :  { %922 = vst [vmem:[#allocation7] sm:$0xff] %v906_v3 }
 0x28c   :  { %v925_v25 = vpop.trf.xlu0 }
 0x28d   :  { %941 = vst [vmem:[#allocation9] sm:$0xff] %v925_v25 }
 0x290   :  { %v946_v26 = vld [vmem:[#allocation7] sm:$0x3] }
 0x291   :  { %949 = vst [vmem:[#allocation8] sm:$0x3] %v946_v26 }
 0x294   :  { %v954_v27 = vld [vmem:[#allocation9] sm:$0x3] }
 0x295   :  { %957 = vst [vmem:[#allocation10] sm:$0x3] %v954_v27 }
 0x298   :  { %v974_v28 = vld [vmem:[#allocation8] sm:$0x3] }
 0x299   :  { %975 = vst [vmem:[%s1220_s1] sm:$0x3] %v974_v28 }
 0x29c   :  { %v1007_v29 = vld [vmem:[#allocation10] sm:$0x3] }
 0x29d   :  { %1008 = vst [vmem:[%s1221_s2] sm:$0x3] %v1007_v29 }

// kernel: generalized_rcnn_forward.3
= control target key start
LH: loop header
LB: loop body
LE: loop exit
PB: predicated region body
PF: predicated region fallthrough
CT: control target
= control target key end

     0   :  { %vm47_vm0 = vcmask 1043456   ;;  %vm40_vm1 = vcmask 293888   ;;  %vm143_vm2 = vcmask 523264   ;;  %s547_s1 = inlined_call_operand.vmem [shape: f32[36,64], index: 1, kind: input, shape index: {}]   ;;  %s548_s0 = inlined_call_operand.vmem [shape: f32[16,36], index: 0, kind: input, shape index: {}]   ;;  %s549_s3 = inlined_call_operand.vmem [shape: f32[64,64], index: 3, kind: input, shape index: {}]   ;;  %s550_s5 = inlined_call_operand.vmem [shape: f32[64,128], index: 5, kind: input, shape index: {}]   ;;  %s551_s2 = inlined_call_operand.vmem [shape: f32[1,64], index: 2, kind: input, shape index: {}]   ;;  %s552_s4 = inlined_call_operand.vmem [shape: f32[1,64], index: 4, kind: input, shape index: {}]   ;;  %s553_s6 = inlined_call_operand.vmem [shape: f32[1,128], index: 6, kind: input, shape index: {}]   ;;  %s554_s7 = inlined_call_operand.vmem [shape: f32[16,128], index: 7, kind: output, shape index: {}]  }
   0x1   :  { %v32_v0 = vld [vmem:[%s547_s1 + $0x20] sm:$0xf]  ;;  %v31_v1 = vld [vmem:[%s547_s1 + $0x18] sm:$0xff]  ;;  %v30_v3 = vld [vmem:[%s547_s1 + $0x10] sm:$0xff] }
   0x2   :  { %366 = vmatprep.subr.msk.mxu0 %vm47_vm0, %v32_v0  ;;  %v26_v2 = vld [vmem:[%s548_s0] sm:$0xff]  ;;  %v135_v4 = vld [vmem:[%s549_s3 + $0x38] sm:$0xff]  ;;  %v134_v5 = vld [vmem:[%s549_s3 + $0x30] sm:$0xff] }
   0x3   :  { %367 = vmatpush3.msk.msra.mxu0 %vm47_vm0, %v32_v0  ;;  %376 = vmatprep.mubr.msk.f32.mxu0 %vm40_vm1, %v26_v2  ;;  %v29_v6 = vld [vmem:[%s547_s1 + $0x8] sm:$0xff]  ;;  %v28_v8 = vld [vmem:[%s547_s1] sm:$0xff]  ;;  %v131_v11 = vld [vmem:[%s549_s3 + $0x18] sm:$0xff] }
   0x4   :  { %368 = vmatprep.subr.mxu0 %v31_v1  ;;  %379 = vmatprep.subr.mxu1 %v135_v4  ;;  %v133_v7 = vld [vmem:[%s549_s3 + $0x28] sm:$0xff]  ;;  %v132_v9 = vld [vmem:[%s549_s3 + $0x20] sm:$0xff]  ;;  %v130_v12 = vld [vmem:[%s549_s3 + $0x10] sm:$0xff] }
   0x5   :  { %369 = vmatpush3.msra.mxu0 %v31_v1  ;;  %380 = vmatpush3.msra.mxu1 %v135_v4  ;;  %v27_v10 = vld [vmem:[%s548_s0 + $0x8] sm:$0xff]  ;;  %v128_v14 = vld [vmem:[%s549_s3] sm:$0xff]  ;;  %v234_v15 = vld [vmem:[%s550_s5 + $0x38] sm:$0xff] }
   0x6   :  { %370 = vmatprep.subr.mxu0 %v30_v3  ;;  %381 = vmatprep.subr.mxu1 %v134_v5  ;;  %v129_v13 = vld [vmem:[%s549_s3 + $0x8] sm:$0xff]  ;;  %v233_v16 = vld [vmem:[%s550_s5 + $0x30] sm:$0xff]  ;;  %v231_v18 = vld [vmem:[%s550_s5 + $0x20] sm:$0xff] }
   0x7   :  { %371 = vmatpush3.msra.mxu0 %v30_v3  ;;  %382 = vmatpush3.msra.mxu1 %v134_v5  ;;  %v232_v17 = vld [vmem:[%s550_s5 + $0x28] sm:$0xff]  ;;  %v329_v19 = vld [vmem:[%s551_s2] ss:$0 sm:$0xff]  ;;  %v230_v26 = vld [vmem:[%s550_s5 + $0x18] sm:$0xff] }
   0x8   :  { %372 = vmatprep.subr.mxu0 %v29_v6  ;;  %383 = vmatprep.subr.mxu1 %v133_v7  ;;  %v229_v27 = vld [vmem:[%s550_s5 + $0x10] sm:$0xff]  ;;  %v228_v28 = vld [vmem:[%s550_s5 + $0x8] sm:$0xff]  ;;  %v227_v29 = vld [vmem:[%s550_s5] sm:$0xff] }
   0x9   :  { %373 = vmatpush3.msra.mxu0 %v29_v6  ;;  %384 = vmatpush3.msra.mxu1 %v133_v7  ;;  %v333_v30 = vld [vmem:[%s552_s4] ss:$0 sm:$0xff] }
   0xa   :  { %374 = vmatprep.subr.mxu0 %v28_v8  ;;  %385 = vmatprep.subr.mxu1 %v132_v9  ;;  %v336_v37 = vld [vmem:[%s553_s6] ss:$0 sm:$0xff] }
   0xb   :  { %375 = vmatpush3.msra.mxu0 %v28_v8  ;;  %386 = vmatpush3.msra.mxu1 %v132_v9 }
   0xc   :  { %377 = vmatmul.mubr.msk.f32.vlgmr.msra.gmra.mxu0 %vm40_vm1, %v27_v10  ;;  %387 = vmatprep.subr.mxu1 %v131_v11 }
   0xd   :  { %388 = vmatpush3.msra.mxu1 %v131_v11  ;;  %398 = vmatprep.subr.mxu0 %v234_v15 }
   0xe   :  { %389 = vmatprep.subr.mxu1 %v130_v12  ;;  %399 = vmatpush3.msra.mxu0 %v234_v15 }
   0xf   :  { %390 = vmatpush3.msra.mxu1 %v130_v12  ;;  %400 = vmatprep.subr.mxu0 %v233_v16 }
  0x10   :  { %391 = vmatprep.subr.mxu1 %v129_v13  ;;  %401 = vmatpush3.msra.mxu0 %v233_v16 }
  0x11   :  { %392 = vmatpush3.msra.mxu1 %v129_v13  ;;  %402 = vmatprep.subr.mxu0 %v232_v17 }
  0x12   :  { %393 = vmatprep.subr.mxu1 %v128_v14  ;;  %403 = vmatpush3.msra.mxu0 %v232_v17 }
  0x13   :  { %394 = vmatpush3.msra.mxu1 %v128_v14  ;;  %404 = vmatprep.subr.mxu0 %v231_v18 }
  0x14   :  { %405 = vmatpush3.msra.mxu0 %v231_v18 }
  0x15   :  { %406 = vmatprep.subr.mxu0 %v230_v26 }
  0x16   :  { %407 = vmatpush3.msra.mxu0 %v230_v26 }
  0x17   :  { %408 = vmatprep.subr.mxu0 %v229_v27 }
  0x18   :  { %409 = vmatpush3.msra.mxu0 %v229_v27 }
  0x19   :  { %410 = vmatprep.subr.mxu0 %v228_v28 }
  0x1a   :  { %411 = vmatpush3.msra.mxu0 %v228_v28 }
  0x1b   :  { %412 = vmatprep.subr.mxu0 %v227_v29 }
  0x1c   :  { %413 = vmatpush3.msra.mxu0 %v227_v29 }
  0xcc   :  { %v378_v20 = vpop.f32.mrf.mxu0 }
  0xcd   :  { %v123_v21 = vadd.f32 %v378_v20, %v329_v19 }
  0xce   :  { %v117_v22 = vpop.f32.mrf.mxu0 }
  0xcf   :  { %v118_v23 = vadd.f32 %v329_v19, %v117_v22  ;;  %v127_v25 = vmax.f32 %v123_v21, 0.0 }
  0xd1   :  { %v126_v24 = vmax.f32 %v118_v23, 0.0 }
  0xd3   :  { %395 = vmatprep.mubr.msk.f32.mxu1 %vm143_vm2, %v126_v24 }
  0xd4   :  { %396 = vmatmul.mubr.msk.f32.vlgmr.msra.gmra.mxu1 %vm143_vm2, %v127_v25 }
 0x194   :  { %v397_v31 = vpop.f32.mrf.mxu1 }
 0x195   :  { %v222_v32 = vadd.f32 %v397_v31, %v333_v30 }
 0x196   :  { %v216_v33 = vpop.f32.mrf.mxu1 }
 0x197   :  { %v217_v34 = vadd.f32 %v333_v30, %v216_v33  ;;  %v226_v36 = vmax.f32 %v222_v32, 0.0 }
 0x199   :  { %v225_v35 = vmax.f32 %v217_v34, 0.0 }
 0x19b   :  { %414 = vmatprep.mubr.msk.f32.mxu0 %vm143_vm2, %v225_v35 }
 0x19c   :  { %415 = vmatmul.mubr.msk.f32.vlgmr.msra.gmra.mxu0 %vm143_vm2, %v226_v36 }
 0x25c   :  { %v416_v38 = vpop.f32.mrf.mxu0 }
 0x25d   :  { %v320_v39 = vadd.f32 %v416_v38, %v336_v37 }
 0x25e   :  { %v314_v40 = vpop.f32.mrf.mxu0 }
 0x25f   :  { %324 = vst [vmem:[%s554_s7 + $0x8] sm:$0xff] %v320_v39  ;;  %v315_v41 = vadd.f32 %v336_v37, %v314_v40 }
 0x261   :  { %323 = vst [vmem:[%s554_s7] sm:$0xff] %v315_v41 }

// kernel: generalized_rcnn_forward.2
= control target key start
LH: loop header
LB: loop body
LE: loop exit
PB: predicated region body
PF: predicated region fallthrough
CT: control target
= control target key end

     0   :  { %s7106_s13 = smov 0   ;;  %s11175_s0 = inlined_call_operand.vmem [shape: f32[2,16,16,4], index: 0, kind: input, shape index: {}]   ;;  %s11176_s1 = inlined_call_operand.vmem [shape: f32[36,16], index: 1, kind: input, shape index: {}]   ;;  %s11177_s2 = inlined_call_operand.vmem [shape: f32[1,16], index: 2, kind: input, shape index: {}]   ;;  %s11178_s3 = inlined_call_operand.vmem [shape: f32[144,32], index: 3, kind: input, shape index: {}]   ;;  %s11179_s4 = inlined_call_operand.vmem [shape: f32[1,32], index: 4, kind: input, shape index: {}]   ;;  %s11180_s5 = inlined_call_operand.vmem [shape: f32[288,32], index: 5, kind: input, shape index: {}]   ;;  %s11181_s6 = inlined_call_operand.vmem [shape: f32[1,32], index: 6, kind: input, shape index: {}]   ;;  %s11182_s7 = inlined_call_operand.vmem [shape: f32[32,128], index: 7, kind: input, shape index: {}]   ;;  %s11183_s8 = inlined_call_operand.vmem [shape: f32[1,128], index: 8, kind: input, shape index: {}]   ;;  %s11184_s9 = inlined_call_operand.vmem [shape: f32[2,256,128], index: 9, kind: output, shape index: {0}]   ;;  %s11185_s10 = inlined_call_operand.vmem [shape: f32[2,1,128], index: 10, kind: output, shape index: {1}]  }
   0x1 LB: > { %s5449_s14 = sadd.s32 4294967295, %s7034_s13   ;;  %p5453_p0 = scmp.ge.s32.totalorder %s7034_s13, 1  ;;  %s7034_s13 = sphi %s7106_s13, %s21_s13  }
   0x2   : > { %p315_p1 = scmp.lt.s32.totalorder %s7034_s13, 3 }
   0x4   : > { %p316_p2 = pnand %p5453_p0, %p315_p1 }
   0x6   : > { %319 = sbr.rel (%p316_p2) target bundleno = 1833 (0x729), region = 56 }
   0xb   : > { %p356_p3 = scmp.lt.s32.totalorder %s5449_s14, 1  ;;  %v11186_v0 = vmov 0.0   ;;  %s7037_s15 = smov 4   ;;  %vm526_vm0 = vcmask 1046528   ;;  %vm432_vm1 = vcmask 1040384   ;;  %vm1352_vm2 = vcmask 31744  }
   0xc   : > { %599 = vrot.lane.b32.xlu0 %v11186_v0, %s7037_s15  ;;  %3145 = vmatprep.subr.mxu1 %v11186_v0  ;;  %v7280_v33 = vrot.slane %v11186_v0, 1  ;;  %s7038_s20 = smov 8   ;;  %s7039_s21 = smov 12   ;;  %vm1723_vm3 = vcmask 1043456   ;;  %vm1384_vm4 = vcmask 64512   ;;  %vm1416_vm5 = vcmask 97280  }
   0xd   : > { %s11480_s14 = smov (!%p356_p3, %s5449_s14), 1  ;;  %s7040_s22 = smov 16   ;;  %vm1449_vm6 = vcmask 130048   ;;  %vm1482_vm7 = vcmask 162816   ;;  %vm1515_vm8 = vcmask 195584   ;;  %vm1548_vm9 = vcmask 228352  }
   0xe   : > { %s5593_s16 = sshll.u32 %s11480_s14, 8  ;;  %11281 = vst [vmem:[#allocation3_spill] sm:$0xff] %v7280_v33  ;;  %s7041_s27 = smov 20   ;;  %vm1581_vm10 = vcmask 261120   ;;  %vm1626_vm11 = vcmask 293888   ;;  %vm2893_vm12 = vcmask 392192  }
   0xf   : > { %s7125_s19 = scalar_lea.vmem %s11175_s0, %s5593_s16  ;;  %s7042_s12 = smov 24   ;;  %vm2926_vm13 = vcmask 523264   ;;  %vm2959_vm14 = vcmask 654336   ;;  %vm2992_vm15 = vcmask 785408  }
  0x10   : > { %v7128_v1 = vld [vmem:[%s7125_s19 + $0x8] sm:$0xff]  ;;  %v7131_v2 = vld [vmem:[%s7125_s19] sm:$0xff]  ;;  %v7138_v3 = vld [vmem:[%s7125_s19 + $0x10] sm:$0xff]  ;;  %s7043_s18 = smov 28   ;;  %s7047_s30 = smov 80  }
  0x11   : > { %603 = vrot.lane.b32.xlu1 %v7128_v1, %s7037_s15  ;;  %601 = vrot.lane.b32.xlu0 %v7131_v2, %s7037_s15  ;;  %v7141_v4 = vld [vmem:[%s7125_s19 + $0x18] sm:$0xff]  ;;  %v7148_v5 = vld [vmem:[%s7125_s19 + $0x20] sm:$0xff]  ;;  %v529_v31 = vrot.slane %v7131_v2, 1  ;;  %v530_v32 = vrot.slane %v7128_v1, 1  ;;  %v533_v35 = vrot.slane %v7138_v3, 1  ;;  %s7049_s24 = smov 96  }
  0x12   : > { %v7151_v6 = vld [vmem:[%s7125_s19 + $0x28] sm:$0xff]  ;;  %v7158_v7 = vld [vmem:[%s7125_s19 + $0x30] sm:$0xff]  ;;  %v7161_v8 = vld [vmem:[%s7125_s19 + $0x38] sm:$0xff]  ;;  %v534_v36 = vrot.slane %v7141_v4, 1  ;;  %v537_v39 = vrot.slane %v7148_v5, 1 }
  0x13   : > { %v7168_v9 = vld [vmem:[%s7125_s19 + $0x40] sm:$0xff]  ;;  %v7171_v10 = vld [vmem:[%s7125_s19 + $0x48] sm:$0xff]  ;;  %v7178_v11 = vld [vmem:[%s7125_s19 + $0x50] sm:$0xff]  ;;  %v7283_v34 = vsel %vm526_vm0, %v529_v31, %v530_v32  ;;  %v7293_v37 = vsel %vm526_vm0, %v530_v32, %v7280_v33  ;;  %v538_v40 = vrot.slane %v7151_v6, 1  ;;  %v541_v43 = vrot.slane %v7158_v7, 1 }
  0x14   : > { %11280 = vst [vmem:[#allocation2_spill] sm:$0xff] %v7178_v11  ;;  %v7181_v12 = vld [vmem:[%s7125_s19 + $0x58] sm:$0xff]  ;;  %v7188_v13 = vld [vmem:[%s7125_s19 + $0x60] sm:$0xff]  ;;  %v7191_v14 = vld [vmem:[%s7125_s19 + $0x68] sm:$0xff]  ;;  %v7296_v38 = vsel %vm526_vm0, %v533_v35, %v534_v36  ;;  %v7306_v41 = vsel %vm526_vm0, %v534_v36, %v7280_v33  ;;  %v542_v44 = vrot.slane %v7161_v8, 1  ;;  %v545_v47 = vrot.slane %v7168_v9, 1 }
  0x15   : > { %605 = vrot.lane.b32.xlu1 %v7138_v3, %s7037_s15  ;;  %607 = vrot.lane.b32.xlu0 %v7141_v4, %s7037_s15  ;;  %v7198_v15 = vld [vmem:[%s7125_s19 + $0x70] sm:$0xff]  ;;  %v7201_v16 = vld [vmem:[%s7125_s19 + $0x78] sm:$0xff]  ;;  %v7309_v42 = vsel %vm526_vm0, %v537_v39, %v538_v40  ;;  %v7319_v45 = vsel %vm526_vm0, %v538_v40, %v7280_v33  ;;  %v546_v48 = vrot.slane %v7171_v10, 1  ;;  %v549_v51 = vrot.slane %v7178_v11, 1 }
  0x16   : > { %v7208_v17 = vld [vmem:[%s7125_s19 + $0x80] sm:$0xff]  ;;  %v7211_v18 = vld [vmem:[%s7125_s19 + $0x88] sm:$0xff]  ;;  %v7218_v19 = vld [vmem:[%s7125_s19 + $0x90] sm:$0xff]  ;;  %v7322_v46 = vsel %vm526_vm0, %v541_v43, %v542_v44  ;;  %v7332_v49 = vsel %vm526_vm0, %v542_v44, %v7280_v33  ;;  %v550_v52 = vrot.slane %v7181_v12, 1  ;;  %v553_v55 = vrot.slane %v7188_v13, 1 }
  0x17   : > { %v7221_v20 = vld [vmem:[%s7125_s19 + $0x98] sm:$0xff]  ;;  %v7228_v21 = vld [vmem:[%s7125_s19 + $0xa0] sm:$0xff]  ;;  %v7231_v22 = vld [vmem:[%s7125_s19 + $0xa8] sm:$0xff]  ;;  %v7335_v50 = vsel %vm526_vm0, %v545_v47, %v546_v48  ;;  %v7345_v53 = vsel %vm526_vm0, %v546_v48, %v7280_v33  ;;  %v554_v56 = vrot.slane %v7191_v14, 1  ;;  %v557_v59 = vrot.slane %v7198_v15, 1 }
  0x18   : > { %v7238_v23 = vld [vmem:[%s7125_s19 + $0xb0] sm:$0xff]  ;;  %v7241_v24 = vld [vmem:[%s7125_s19 + $0xb8] sm:$0xff]  ;;  %v7248_v25 = vld [vmem:[%s7125_s19 + $0xc0] sm:$0xff]  ;;  %v7348_v54 = vsel %vm526_vm0, %v549_v51, %v550_v52  ;;  %v7358_v57 = vsel %vm526_vm0, %v550_v52, %v7280_v33  ;;  %v558_v60 = vrot.slane %v7201_v16, 1  ;;  %v561_v63 = vrot.slane %v7208_v17, 1 }
  0x19   : > { %609 = vrot.lane.b32.xlu1 %v7148_v5, %s7037_s15  ;;  %611 = vrot.lane.b32.xlu0 %v7151_v6, %s7037_s15  ;;  %v7251_v26 = vld [vmem:[%s7125_s19 + $0xc8] sm:$0xff]  ;;  %v7258_v27 = vld [vmem:[%s7125_s19 + $0xd0] sm:$0xff]  ;;  %11282 = vst [vmem:[#allocation4_spill] sm:$0xff] %v7348_v54  ;;  %11283 = vst [vmem:[#allocation5_spill] sm:$0xff] %v7358_v57  ;;  %v7361_v58 = vsel %vm526_vm0, %v553_v55, %v554_v56  ;;  %v7371_v61 = vsel %vm526_vm0, %v554_v56, %v7280_v33  ;;  %v562_v31 = vrot.slane %v7211_v18, 1 }
  0x1a   : > { %v7261_v28 = vld [vmem:[%s7125_s19 + $0xd8] sm:$0xff]  ;;  %v7268_v29 = vld [vmem:[%s7125_s19 + $0xe0] sm:$0xff]  ;;  %v7271_v30 = vld [vmem:[%s7125_s19 + $0xe8] sm:$0xff]  ;;  %11284 = vst [vmem:[#allocation6_spill] sm:$0xff] %v7361_v58  ;;  %v7374_v62 = vsel %vm526_vm0, %v557_v59, %v558_v60  ;;  %v7384_v32 = vsel %vm526_vm0, %v558_v60, %v7280_v33  ;;  %v565_v36 = vrot.slane %v7218_v19, 1  ;;  %v566_v39 = vrot.slane %v7221_v20, 1 }
  0x1b   : > { %11285 = vst [vmem:[#allocation7_spill] sm:$0xff] %v7371_v61  ;;  %11286 = vst [vmem:[#allocation8_spill] sm:$0xff] %v7374_v62  ;;  %v7387_v35 = vsel %vm526_vm0, %v561_v63, %v562_v31  ;;  %v7397_v40 = vsel %vm526_vm0, %v562_v31, %v7280_v33  ;;  %v569_v44 = vrot.slane %v7228_v21, 1  ;;  %v570_v47 = vrot.slane %v7231_v22, 1 }
  0x1c   : > { %11287 = vst [vmem:[#allocation9_spill] sm:$0xff] %v7384_v32  ;;  %11288 = vst [vmem:[#allocation10_spill] sm:$0xff] %v7387_v35  ;;  %v7400_v43 = vsel %vm526_vm0, %v565_v36, %v566_v39  ;;  %v7410_v48 = vsel %vm526_vm0, %v566_v39, %v7280_v33  ;;  %v573_v52 = vrot.slane %v7238_v23, 1  ;;  %v574_v55 = vrot.slane %v7241_v24, 1 }
  0x1d   : > { %613 = vrot.lane.b32.xlu1 %v7158_v7, %s7037_s15  ;;  %615 = vrot.lane.b32.xlu0 %v7161_v8, %s7037_s15  ;;  %11289 = vst [vmem:[#allocation11_spill] sm:$0xff] %v7397_v40  ;;  %11290 = vst [vmem:[#allocation12_spill] sm:$0xff] %v7400_v43  ;;  %v7413_v51 = vsel %vm526_vm0, %v569_v44, %v570_v47  ;;  %v7423_v56 = vsel %vm526_vm0, %v570_v47, %v7280_v33  ;;  %v577_v60 = vrot.slane %v7248_v25, 1 }
  0x1e   : > { %11291 = vst [vmem:[#allocation13_spill] sm:$0xff] %v7410_v48  ;;  %11292 = vst [vmem:[#allocation14_spill] sm:$0xff] %v7413_v51  ;;  %v7426_v59 = vsel %vm526_vm0, %v573_v52, %v574_v55  ;;  %v578_v63 = vrot.slane %v7251_v26, 1  ;;  %v7436_v31 = vsel %vm526_vm0, %v574_v55, %v7280_v33  ;;  %v581_v39 = vrot.slane %v7258_v27, 1 }
  0x1f   : > { %11293 = vst [vmem:[#allocation15_spill] sm:$0xff] %v7423_v56  ;;  %11294 = vst [vmem:[#allocation16_spill] sm:$0xff] %v7426_v59  ;;  %v582_v44 = vrot.slane %v7261_v28, 1  ;;  %v586_v0 = vrot.slane %v7271_v30, 1 }
  0x20   : > { %11295 = vst [vmem:[#allocation17_spill] sm:$0xff] %v7436_v31  ;;  %v7439_v36 = vsel %vm526_vm0, %v577_v60, %v578_v63  ;;  %v7451_v52 = vsel %vm526_vm0, %v578_v63, %v7280_v33  ;;  %v585_v60 = vrot.slane %v7268_v29, 1 }
  0x21   : > { %617 = vrot.lane.b32.xlu1 %v7168_v9, %s7037_s15  ;;  %619 = vrot.lane.b32.xlu0 %v7171_v10, %s7037_s15  ;;  %11296 = vst [vmem:[#allocation18_spill] sm:$0xff] %v7439_v36  ;;  %11298 = vst [vmem:[#allocation20_spill] sm:$0xff] %v7451_v52  ;;  %v7454_v55 = vsel %vm526_vm0, %v581_v39, %v582_v44 }
  0x22   : > { %11299 = vst [vmem:[#allocation21_spill] sm:$0xff] %v7454_v55  ;;  %v7467_v63 = vsel %vm526_vm0, %v585_v60, %v586_v0  ;;  %v7485_v60 = vsel %vm526_vm0, %v586_v0, %v7280_v33 }
  0x23   : > { %11301 = vst [vmem:[#allocation23_spill] sm:$0xff] %v7467_v63  ;;  %11305 = vst [vmem:[#allocation26_spill] sm:$0xff] %v7485_v60 }
  0x25   : > { %621 = vrot.lane.b32.xlu1 %v7178_v11, %s7037_s15  ;;  %623 = vrot.lane.b32.xlu0 %v7181_v12, %s7037_s15 }
  0x29   : > { %625 = vrot.lane.b32.xlu1 %v7188_v13, %s7037_s15  ;;  %627 = vrot.lane.b32.xlu0 %v7191_v14, %s7037_s15 }
  0x2d   : > { %629 = vrot.lane.b32.xlu1 %v7198_v15, %s7037_s15  ;;  %631 = vrot.lane.b32.xlu0 %v7201_v16, %s7037_s15 }
  0x31   : > { %633 = vrot.lane.b32.xlu1 %v7208_v17, %s7037_s15  ;;  %635 = vrot.lane.b32.xlu0 %v7211_v18, %s7037_s15 }
  0x35   : > { %637 = vrot.lane.b32.xlu1 %v7218_v19, %s7037_s15  ;;  %639 = vrot.lane.b32.xlu0 %v7221_v20, %s7037_s15 }
  0x39   : > { %641 = vrot.lane.b32.xlu1 %v7228_v21, %s7037_s15  ;;  %643 = vrot.lane.b32.xlu0 %v7231_v22, %s7037_s15 }
  0x3d   : > { %645 = vrot.lane.b32.xlu1 %v7238_v23, %s7037_s15  ;;  %647 = vrot.lane.b32.xlu0 %v7241_v24, %s7037_s15 }
  0x41   : > { %649 = vrot.lane.b32.xlu1 %v7248_v25, %s7037_s15  ;;  %651 = vrot.lane.b32.xlu0 %v7251_v26, %s7037_s15 }
  0x45   : > { %653 = vrot.lane.b32.xlu1 %v7258_v27, %s7037_s15  ;;  %655 = vrot.lane.b32.xlu0 %v7261_v28, %s7037_s15 }
  0x49   : > { %657 = vrot.lane.b32.xlu1 %v7268_v29, %s7037_s15  ;;  %659 = vrot.lane.b32.xlu0 %v7271_v30, %s7037_s15 }
  0x4d   : > { %692 = vrot.lane.b32.xlu1 %v7280_v33, %s7038_s20  ;;  %694 = vrot.lane.b32.xlu0 %v7283_v34, %s7038_s20 }
  0x51   : > { %696 = vrot.lane.b32.xlu1 %v7293_v37, %s7038_s20  ;;  %698 = vrot.lane.b32.xlu0 %v7296_v38, %s7038_s20 }
  0x55   : > { %700 = vrot.lane.b32.xlu1 %v7306_v41, %s7038_s20  ;;  %702 = vrot.lane.b32.xlu0 %v7309_v42, %s7038_s20 }
  0x59   : > { %704 = vrot.lane.b32.xlu1 %v7319_v45, %s7038_s20  ;;  %706 = vrot.lane.b32.xlu0 %v7322_v46, %s7038_s20 }
  0x5d   : > { %708 = vrot.lane.b32.xlu1 %v7332_v49, %s7038_s20  ;;  %710 = vrot.lane.b32.xlu0 %v7335_v50, %s7038_s20 }
  0x61   : > { %712 = vrot.lane.b32.xlu1 %v7345_v53, %s7038_s20  ;;  %714 = vrot.lane.b32.xlu0 %v7348_v54, %s7038_s20  ;;  %v447_v54 = vrot.slane %v7158_v7, 7 }
  0x65   : > { %716 = vrot.lane.b32.xlu1 %v7358_v57, %s7038_s20  ;;  %718 = vrot.lane.b32.xlu0 %v7361_v58, %s7038_s20 }
  0x69   : > { %720 = vrot.lane.b32.xlu1 %v7371_v61, %s7038_s20  ;;  %722 = vrot.lane.b32.xlu0 %v7374_v62, %s7038_s20 }
  0x6d   : > { %724 = vrot.lane.b32.xlu1 %v7384_v32, %s7038_s20  ;;  %726 = vrot.lane.b32.xlu0 %v7387_v35, %s7038_s20 }
  0x71   : > { %728 = vrot.lane.b32.xlu1 %v7397_v40, %s7038_s20  ;;  %730 = vrot.lane.b32.xlu0 %v7400_v43, %s7038_s20  ;;  %v439_v43 = vrot.slane %v7138_v3, 7 }
  0x75   : > { %732 = vrot.lane.b32.xlu1 %v7410_v48, %s7038_s20  ;;  %734 = vrot.lane.b32.xlu0 %v7413_v51, %s7038_s20  ;;  %v437_v51 = vrot.slane %v7128_v1, 7 }
  0x79   : > { %736 = vrot.lane.b32.xlu1 %v7423_v56, %s7038_s20  ;;  %738 = vrot.lane.b32.xlu0 %v7426_v59, %s7038_s20  ;;  %v11304_v59 = vmov 0.0  }
  0x7a   : > { %v7481_v56 = vrot.slane %v11304_v59, 7 }
  0x7d   : > { %740 = vrot.lane.b32.xlu1 %v7436_v31, %s7038_s20  ;;  %742 = vrot.lane.b32.xlu0 %v7439_v36, %s7038_s20  ;;  %v7464_v36 = vsel %vm526_vm0, %v582_v44, %v7280_v33  ;;  %v435_v44 = vrot.slane %v7131_v2, 7 }
  0x7e   : > { %v7447_v47 = vpop.permute.xlu0 %599  ;;  %11300 = vst [vmem:[#allocation22_spill] sm:$0xff] %v7464_v36 }
  0x7f   : > { %11297 = vst [vmem:[#allocation19_spill] sm:$0xff] %v7447_v47  ;;  %v7509_v40 = vsel %vm432_vm1, %v435_v44, %v437_v51 }
  0x80   : > { %11309 = vst [vmem:[#allocation30_spill] sm:$0xff] %v7509_v40 }
  0x81   : > { %744 = vrot.lane.b32.xlu1 %v7451_v52, %s7038_s20  ;;  %746 = vrot.lane.b32.xlu0 %v7454_v55, %s7038_s20  ;;  %v443_v52 = vrot.slane %v7148_v5, 7  ;;  %v445_v55 = vrot.slane %v7151_v6, 7 }
  0x83   : > { %v7469_v31 = vpop.permute.xlu1 %603  ;;  %v7471_v39 = vpop.permute.xlu0 %601  ;;  %v7503_v0 = vsel %vm432_vm1, %v7481_v56, %v443_v52  ;;  %v7506_v33 = vsel %vm432_vm1, %v443_v52, %v445_v55 }
  0x84   : > { %11302 = vst [vmem:[#allocation24_spill] sm:$0xff] %v7469_v31  ;;  %11303 = vst [vmem:[#allocation25_spill] sm:$0xff] %v7471_v39 }
  0x85   : > { %748 = vrot.lane.b32.xlu1 %v7464_v36, %s7038_s20  ;;  %750 = vrot.lane.b32.xlu0 %v7467_v63, %s7038_s20  ;;  %v7494_v63 = vsel %vm432_vm1, %v7481_v56, %v435_v44 }
  0x86   : > { %11308 = vst [vmem:[#allocation29_spill] sm:$0xff] %v7494_v63 }
  0x87   : > { %v7488_v36 = vpop.permute.xlu1 %605  ;;  %v7490_v48 = vpop.permute.xlu0 %607 }
  0x88   : > { %11306 = vst [vmem:[#allocation27_spill] sm:$0xff] %v7488_v36  ;;  %11307 = vst [vmem:[#allocation28_spill] sm:$0xff] %v7490_v48  ;;  %v441_v36 = vrot.slane %v7141_v4, 7 }
  0x89   : > { %752 = vrot.lane.b32.xlu1 %v7485_v60, %s7038_s20  ;;  %785 = vrot.lane.b32.xlu0 %v7494_v63, %s7039_s21  ;;  %v7513_v60 = vsel %vm432_vm1, %v7481_v56, %v439_v43  ;;  %s7044_s20 = smov 32  }
  0x8a   : > { %11310 = vst [vmem:[#allocation31_spill] sm:$0xff] %v7513_v60  ;;  %v7533_v44 = vsel %vm432_vm1, %v439_v43, %v441_v36  ;;  %v1617_v43 = vld [vmem:[%s11176_s1 + $0x18] sm:$0xff] }
  0x8b   : > { %v610_v35 = vpop.permute.xlu1 %609  ;;  %v612_v48 = vpop.permute.xlu0 %611  ;;  %11311 = vst [vmem:[#allocation32_spill] sm:$0xff] %v7533_v44 }
  0x8c   : > { %v7518_v32 = vsel %vm1352_vm2, %v7503_v0, %v610_v35  ;;  %v7522_v52 = vsel %vm1352_vm2, %v7506_v33, %v612_v48  ;;  %v1618_v35 = vld [vmem:[%s11176_s1 + $0x20] sm:$0xf] }
  0x8d   : > { %787 = vrot.lane.b32.xlu1 %v7509_v40, %s7039_s21  ;;  %789 = vrot.lane.b32.xlu0 %v7513_v60, %s7039_s21 }
  0x8e   : > { %5739 = vmatprep.subr.msk.mxu0 %vm1723_vm3, %v1618_v35 }
  0x8f   : > { %v7528_v51 = vpop.permute.xlu1 %613  ;;  %v7530_v55 = vpop.permute.xlu0 %615  ;;  %5740 = vmatpush3.msk.msra.mxu0 %vm1723_vm3, %v1618_v35  ;;  %v1615_v35 = vld [vmem:[%s11176_s1 + $0x8] sm:$0xff] }
  0x90   : > { %5741 = vmatprep.subr.mxu0 %v1617_v43 }
  0x91   : > { %791 = vrot.lane.b32.xlu1 %v7533_v44, %s7039_s21  ;;  %881 = vrot.lane.b32.xlu0 %v7131_v2, %s7040_s22  ;;  %v1616_v2 = vld [vmem:[%s11176_s1 + $0x10] sm:$0xff] }
  0x92   : > { %5742 = vmatpush3.msra.mxu0 %v1617_v43  ;;  %v1614_v43 = vld [vmem:[%s11176_s1] sm:$0xff] }
  0x93   : > { %v7542_v48 = vpop.permute.xlu1 %617  ;;  %v7544_v62 = vpop.permute.xlu0 %619  ;;  %5743 = vmatprep.subr.mxu0 %v1616_v2 }
  0x94   : > { %5744 = vmatpush3.msra.mxu0 %v1616_v2 }
  0x95   : > { %883 = vrot.lane.b32.xlu1 %v7128_v1, %s7040_s22  ;;  %977 = vrot.lane.b32.xlu0 %v7283_v34, %s7041_s27 }
  0x96   : > { %5745 = vmatprep.subr.mxu0 %v1615_v35 }
  0x97   : > { %v7556_v36 = vpop.permute.xlu1 %621  ;;  %v7558_v40 = vpop.permute.xlu0 %623  ;;  %5746 = vmatpush3.msra.mxu0 %v1615_v35 }
  0x98   : > { %5747 = vmatprep.subr.mxu0 %v1614_v43 }
  0x99   : > { %979 = vrot.lane.b32.xlu1 %v7293_v37, %s7041_s27  ;;  %1073 = vrot.lane.b32.xlu0 %v7513_v60, %s7042_s12 }
  0x9a   : > { %5748 = vmatpush3.msra.mxu0 %v1614_v43 }
  0x9b   : > { %v7567_v1 = vpop.permute.xlu1 %625  ;;  %v7569_v34 = vpop.permute.xlu0 %627  ;;  %4451 = vmatprep.subr.mxu0 %v11304_v59 }
  0x9d   : > { %1075 = vrot.lane.b32.xlu1 %v7533_v44, %s7042_s12  ;;  %1166 = vrot.lane.b32.xlu0 %v7138_v3, %s7043_s18 }
  0x9f   : > { %v7578_v37 = vpop.permute.xlu1 %629  ;;  %v7580_v2 = vpop.permute.xlu0 %631 }
  0xa1   : > { %885 = vrot.lane.b32.xlu1 %v7138_v3, %s7040_s22  ;;  %1168 = vrot.lane.b32.xlu0 %v7141_v4, %s7043_s18 }
  0xa3   : > { %v7587_v35 = vpop.permute.xlu1 %633  ;;  %v7589_v44 = vpop.permute.xlu0 %635 }
  0xa5   : > { %1259 = vrot.lane.b32.xlu1 %v7296_v38, %s7044_s20  ;;  %887 = vrot.lane.b32.xlu0 %v7141_v4, %s7040_s22 }
  0xa7   : > { %v7595_v43 = vpop.permute.xlu1 %637  ;;  %v7597_v59 = vpop.permute.xlu0 %639 }
  0xa9   : > { %981 = vrot.lane.b32.xlu1 %v7296_v38, %s7041_s27  ;;  %1261 = vrot.lane.b32.xlu0 %v7306_v41, %s7044_s20 }
  0xab   : > { %v7603_v3 = vpop.permute.xlu1 %641  ;;  %v7605_v60 = vpop.permute.xlu0 %643 }
  0xad   : > { %983 = vrot.lane.b32.xlu1 %v7306_v41, %s7041_s27  ;;  %1077 = vrot.lane.b32.xlu0 %v7503_v0, %s7042_s12 }
  0xaf   : > { %v7611_v4 = vpop.permute.xlu1 %645  ;;  %v7613_v31 = vpop.permute.xlu0 %647 }
  0xb1   : > { %1079 = vrot.lane.b32.xlu1 %v7506_v33, %s7042_s12  ;;  %1170 = vrot.lane.b32.xlu0 %v7148_v5, %s7043_s18 }
  0xb3   : > { %v7619_v38 = vpop.permute.xlu1 %649  ;;  %v7621_v63 = vpop.permute.xlu0 %651 }
  0xb5   : > { %1172 = vrot.lane.b32.xlu1 %v7151_v6, %s7043_s18  ;;  %1263 = vrot.lane.b32.xlu0 %v7309_v42, %s7044_s20 }
  0xb7   : > { %v7627_v41 = vpop.permute.xlu1 %653  ;;  %v7629_v39 = vpop.permute.xlu0 %655 }
  0xb9   : > { %1265 = vrot.lane.b32.xlu1 %v7319_v45, %s7044_s20  ;;  %793 = vrot.lane.b32.xlu0 %v7503_v0, %s7039_s21 }
  0xbb   : > { %v7635_v61 = vpop.permute.xlu1 %657  ;;  %v7637_v58 = vpop.permute.xlu0 %659 }
  0xbc   : > { %11312 = vst [vmem:[#allocation33_spill] sm:$0xff] %v7635_v61  ;;  %11313 = vst [vmem:[#allocation34_spill] sm:$0xff] %v7637_v58 }
  0xbd   : > { %795 = vrot.lane.b32.xlu1 %v7506_v33, %s7039_s21  ;;  %889 = vrot.lane.b32.xlu0 %v7148_v5, %s7040_s22  ;;  %v448_v33 = vsel %vm432_vm1, %v7481_v56, %v447_v54  ;;  %v449_v5 = vrot.slane %v7161_v8, 7 }
  0xbf   : > { %v7643_v47 = vpop.permute.xlu1 %692  ;;  %v7645_v57 = vpop.permute.xlu0 %694 }
  0xc0   : > { %11314 = vst [vmem:[#allocation35_spill] sm:$0xff] %v7643_v47  ;;  %11315 = vst [vmem:[#allocation36_spill] sm:$0xff] %v7645_v57  ;;  %v453_v47 = vrot.slane %v7171_v10, 7 }
  0xc1   : > { %891 = vrot.lane.b32.xlu1 %v7151_v6, %s7040_s22  ;;  %985 = vrot.lane.b32.xlu0 %v7309_v42, %s7041_s27  ;;  %v450_v42 = vsel %vm432_vm1, %v447_v54, %v449_v5  ;;  %v455_v5 = vrot.slane %v7178_v11, 7  ;;  %v457_v11 = vrot.slane %v7181_v12, 7 }
  0xc3   : > { %v7652_v0 = vpop.permute.xlu1 %696  ;;  %v7654_v58 = vpop.permute.xlu0 %698 }
  0xc4   : > { %11316 = vst [vmem:[#allocation37_spill] sm:$0xff] %v7652_v0  ;;  %11317 = vst [vmem:[#allocation38_spill] sm:$0xff] %v7654_v58  ;;  %v451_v0 = vrot.slane %v7168_v9, 7 }
  0xc5   : > { %987 = vrot.lane.b32.xlu1 %v7319_v45, %s7041_s27  ;;  %1081 = vrot.lane.b32.xlu0 %v448_v33, %s7042_s12  ;;  %v1360_v45 = vsel %vm1352_vm2, %v448_v33, %v7528_v51  ;;  %v1361_v51 = vsel %vm1352_vm2, %v450_v42, %v7530_v55 }
  0xc6   : > { %v7678_v54 = vsel %vm432_vm1, %v7481_v56, %v451_v0 }
  0xc7   : > { %v7662_v57 = vpop.permute.xlu1 %700  ;;  %v703_v6 = vpop.permute.xlu0 %702 }
  0xc8   : > { %11318 = vst [vmem:[#allocation39_spill] sm:$0xff] %v7662_v57  ;;  %v7668_v58 = vsel %vm1384_vm4, %v7518_v32, %v703_v6 }
  0xc9   : > { %11319 = vst [vmem:[#allocation40_spill] sm:$0xff] %v7668_v58  ;;  %1083 = vrot.lane.b32.xlu1 %v450_v42, %s7042_s12  ;;  %1174 = vrot.lane.b32.xlu0 %v7158_v7, %s7043_s18  ;;  %v1362_v58 = vsel %vm1352_vm2, %v7678_v54, %v7542_v48 }
  0xcb   : > { %v705_v57 = vpop.permute.xlu1 %704  ;;  %v707_v61 = vpop.permute.xlu0 %706 }
  0xcc   : > { %v7683_v32 = vsel %vm1384_vm4, %v7522_v52, %v705_v57  ;;  %v7686_v6 = vsel %vm1384_vm4, %v1360_v45, %v707_v61  ;;  %v459_v57 = vrot.slane %v7188_v13, 7  ;;  %v7700_v45 = vsel %vm432_vm1, %v451_v0, %v453_v47 }
  0xcd   : > { %11320 = vst [vmem:[#allocation41_spill] sm:$0xff] %v7683_v32  ;;  %11321 = vst [vmem:[#allocation42_spill] sm:$0xff] %v7686_v6  ;;  %1176 = vrot.lane.b32.xlu1 %v7161_v8, %s7043_s18  ;;  %1267 = vrot.lane.b32.xlu0 %v7322_v46, %s7044_s20  ;;  %v7704_v6 = vsel %vm432_vm1, %v7481_v56, %v455_v5  ;;  %v1363_v47 = vsel %vm1352_vm2, %v7700_v45, %v7544_v62  ;;  %v461_v0 = vrot.slane %v7191_v14, 7 }
  0xce   : > { %v1364_v48 = vsel %vm1352_vm2, %v7704_v6, %v7556_v36 }
  0xcf   : > { %v709_v52 = vpop.permute.xlu1 %708  ;;  %v711_v61 = vpop.permute.xlu0 %710 }
  0xd0   : > { %v7707_v32 = vsel %vm1384_vm4, %v1361_v51, %v709_v52  ;;  %v7710_v55 = vsel %vm1384_vm4, %v1362_v58, %v711_v61  ;;  %v463_v51 = vrot.slane %v7198_v15, 7  ;;  %v7724_v61 = vsel %vm432_vm1, %v455_v5, %v457_v11 }
  0xd1   : > { %11322 = vst [vmem:[#allocation43_spill] sm:$0xff] %v7710_v55  ;;  %1269 = vrot.lane.b32.xlu1 %v7332_v49, %s7044_s20  ;;  %797 = vrot.lane.b32.xlu0 %v448_v33, %s7039_s21  ;;  %v7728_v33 = vsel %vm432_vm1, %v7481_v56, %v459_v57  ;;  %v1365_v11 = vsel %vm1352_vm2, %v7724_v61, %v7558_v40 }
  0xd2   : > { %v1366_v36 = vsel %vm1352_vm2, %v7728_v33, %v7567_v1  ;;  %v7746_v5 = vsel %vm432_vm1, %v459_v57, %v461_v0 }
  0xd3   : > { %v713_v52 = vpop.permute.xlu1 %712  ;;  %v715_v58 = vpop.permute.xlu0 %714  ;;  %v1367_v1 = vsel %vm1352_vm2, %v7746_v5, %v7569_v34 }
  0xd4   : > { %v7731_v55 = vsel %vm1384_vm4, %v1363_v47, %v713_v52  ;;  %v7734_v62 = vsel %vm1384_vm4, %v1364_v48, %v715_v58  ;;  %v465_v47 = vrot.slane %v7201_v16, 7 }
  0xd5   : > { %799 = vrot.lane.b32.xlu1 %v450_v42, %s7039_s21  ;;  %893 = vrot.lane.b32.xlu0 %v7158_v7, %s7040_s22  ;;  %v7751_v42 = vsel %vm432_vm1, %v7481_v56, %v463_v51  ;;  %v467_v7 = vrot.slane %v7208_v17, 7 }
  0xd6   : > { %v1368_v57 = vsel %vm1352_vm2, %v7751_v42, %v7578_v37  ;;  %v7771_v0 = vsel %vm432_vm1, %v463_v51, %v465_v47  ;;  %v473_v51 = vrot.slane %v7221_v20, 7  ;;  %v475_v47 = vrot.slane %v7228_v21, 7 }
  0xd7   : > { %v717_v48 = vpop.permute.xlu1 %716  ;;  %v719_v52 = vpop.permute.xlu0 %718  ;;  %v1369_v37 = vsel %vm1352_vm2, %v7771_v0, %v7580_v2 }
  0xd8   : > { %v7755_v58 = vsel %vm1384_vm4, %v1365_v11, %v717_v48  ;;  %v7758_v40 = vsel %vm1384_vm4, %v1366_v36, %v719_v52  ;;  %v469_v11 = vrot.slane %v7211_v18, 7 }
  0xd9   : > { %895 = vrot.lane.b32.xlu1 %v7161_v8, %s7040_s22  ;;  %989 = vrot.lane.b32.xlu0 %v7322_v46, %s7041_s27  ;;  %v7776_v8 = vsel %vm432_vm1, %v7481_v56, %v467_v7  ;;  %v471_v46 = vrot.slane %v7218_v19, 7 }
  0xda   : > { %v1370_v19 = vsel %vm1352_vm2, %v7776_v8, %v7587_v35 }
  0xdb   : > { %v721_v36 = vpop.permute.xlu1 %720  ;;  %v723_v48 = vpop.permute.xlu0 %722  ;;  %v7821_v35 = vsel %vm432_vm1, %v471_v46, %v473_v51 }
  0xdc   : > { %v7780_v52 = vsel %vm1384_vm4, %v1367_v1, %v721_v36  ;;  %v7783_v34 = vsel %vm1384_vm4, %v1368_v57, %v723_v48  ;;  %v7798_v36 = vsel %vm432_vm1, %v467_v7, %v469_v11  ;;  %v477_v7 = vrot.slane %v7231_v22, 7 }
  0xdd   : > { %991 = vrot.lane.b32.xlu1 %v7332_v49, %s7041_s27  ;;  %1085 = vrot.lane.b32.xlu0 %v7678_v54, %s7042_s12  ;;  %v7802_v49 = vsel %vm432_vm1, %v7481_v56, %v471_v46  ;;  %v1371_v20 = vsel %vm1352_vm2, %v7798_v36, %v7589_v44  ;;  %v1373_v22 = vsel %vm1352_vm2, %v7821_v35, %v7597_v59  ;;  %v481_v46 = vrot.slane %v7241_v24, 7 }
  0xde   : > { %v1372_v21 = vsel %vm1352_vm2, %v7802_v49, %v7595_v43  ;;  %v7846_v43 = vsel %vm432_vm1, %v475_v47, %v477_v7 }
  0xdf   : > { %v725_v1 = vpop.permute.xlu1 %724  ;;  %v727_v57 = vpop.permute.xlu0 %726  ;;  %v1375_v24 = vsel %vm1352_vm2, %v7846_v43, %v7605_v60 }
  0xe0   : > { %v7805_v48 = vsel %vm1384_vm4, %v1369_v37, %v725_v1  ;;  %v7808_v2 = vsel %vm1384_vm4, %v1370_v19, %v727_v57  ;;  %v7826_v19 = vsel %vm432_vm1, %v7481_v56, %v475_v47  ;;  %v479_v1 = vrot.slane %v7238_v23, 7 }
  0xe1   : > { %1087 = vrot.lane.b32.xlu1 %v7700_v45, %s7042_s12  ;;  %1178 = vrot.lane.b32.xlu0 %v7168_v9, %s7043_s18  ;;  %v1374_v23 = vsel %vm1352_vm2, %v7826_v19, %v7603_v3  ;;  %v485_v47 = vrot.slane %v7251_v26, 7 }
  0xe2   : > { %v7871_v3 = vsel %vm432_vm1, %v479_v1, %v481_v46 }
  0xe3   : > { %v729_v11 = vpop.permute.xlu1 %728  ;;  %v731_v37 = vpop.permute.xlu0 %730  ;;  %v1377_v26 = vsel %vm1352_vm2, %v7871_v3, %v7613_v31 }
  0xe4   : > { %v7830_v57 = vsel %vm1384_vm4, %v1371_v20, %v729_v11  ;;  %v7833_v44 = vsel %vm1384_vm4, %v1372_v21, %v731_v37  ;;  %v7851_v21 = vsel %vm432_vm1, %v7481_v56, %v479_v1  ;;  %v483_v11 = vrot.slane %v7248_v25, 7 }
  0xe5   : > { %1180 = vrot.lane.b32.xlu1 %v7171_v10, %s7043_s18  ;;  %1271 = vrot.lane.b32.xlu0 %v7335_v50, %s7044_s20  ;;  %v1376_v25 = vsel %vm1352_vm2, %v7851_v21, %v7611_v4  ;;  %v489_v1 = vrot.slane %v7261_v28, 7 }
  0xe6   : > { %v7896_v4 = vsel %vm432_vm1, %v483_v11, %v485_v47 }
  0xe7   : > { %v733_v51 = vpop.permute.xlu1 %732  ;;  %v735_v20 = vpop.permute.xlu0 %734  ;;  %v1379_v28 = vsel %vm1352_vm2, %v7896_v4, %v7621_v63 }
  0xe8   : > { %v7855_v37 = vsel %vm1384_vm4, %v1373_v22, %v733_v51  ;;  %v7858_v59 = vsel %vm1384_vm4, %v1374_v23, %v735_v20  ;;  %v7876_v23 = vsel %vm432_vm1, %v7481_v56, %v483_v11 }
  0xe9   : > { %1273 = vrot.lane.b32.xlu1 %v7345_v53, %s7044_s20  ;;  %801 = vrot.lane.b32.xlu0 %v7678_v54, %s7039_s21  ;;  %v487_v54 = vrot.slane %v7258_v27, 7  ;;  %v1378_v27 = vsel %vm1352_vm2, %v7876_v23, %v7619_v38 }
  0xeb   : > { %v737_v7 = vpop.permute.xlu1 %736  ;;  %v739_v22 = vpop.permute.xlu0 %738  ;;  %v7921_v38 = vsel %vm432_vm1, %v487_v54, %v489_v1  ;;  %v11329_v1 = vld [vmem:[#allocation34_spill] sm:$0xff] }
  0xec   : > { %v7880_v51 = vsel %vm1384_vm4, %v1375_v24, %v737_v7  ;;  %v7883_v60 = vsel %vm1384_vm4, %v1376_v25, %v739_v22  ;;  %v11325_v7 = vld [vmem:[#allocation33_spill] sm:$0xff] }
  0xed   : > { %803 = vrot.lane.b32.xlu1 %v7700_v45, %s7039_s21  ;;  %897 = vrot.lane.b32.xlu0 %v7168_v9, %s7040_s22  ;;  %v7901_v45 = vsel %vm432_vm1, %v7481_v56, %v487_v54  ;;  %v491_v9 = vrot.slane %v7268_v29, 7 }
  0xee   : > { %v1380_v29 = vsel %vm1352_vm2, %v7901_v45, %v7627_v41  ;;  %v1381_v41 = vsel %vm1352_vm2, %v7921_v38, %v7629_v39  ;;  %v11328_v39 = vld [vmem:[#allocation2_spill] sm:$0xff] }
  0xef   : > { %v741_v46 = vpop.permute.xlu1 %740  ;;  %v743_v20 = vpop.permute.xlu0 %742  ;;  %v7925_v47 = vsel %vm432_vm1, %v7481_v56, %v491_v9 }
  0xf0   : > { %v7905_v24 = vsel %vm1384_vm4, %v1377_v26, %v741_v46  ;;  %v7908_v31 = vsel %vm1384_vm4, %v1378_v27, %v743_v20 }
  0xf1   : > { %899 = vrot.lane.b32.xlu1 %v7171_v10, %s7040_s22  ;;  %993 = vrot.lane.b32.xlu0 %v7335_v50, %s7041_s27  ;;  %v493_v10 = vrot.slane %v7271_v30, 7  ;;  %v1382_v30 = vsel %vm1352_vm2, %v7925_v47, %v11325_v7 }
  0xf3   : > { %v745_v11 = vpop.permute.xlu1 %744  ;;  %v747_v25 = vpop.permute.xlu0 %746  ;;  %v7945_v26 = vsel %vm432_vm1, %v491_v9, %v493_v10  ;;  %v11332_v10 = vld [vmem:[#allocation5_spill] sm:$0xff] }
  0xf4   : > { %v7929_v50 = vsel %vm1384_vm4, %v1379_v28, %v745_v11  ;;  %v7932_v63 = vsel %vm1384_vm4, %v1380_v29, %v747_v25  ;;  %v1383_v46 = vsel %vm1352_vm2, %v7945_v26, %v11329_v1  ;;  %v11331_v29 = vld [vmem:[#allocation4_spill] sm:$0xff] }
  0xf5   : > { %11323 = vst [vmem:[#allocation44_spill] sm:$0xff] %v7929_v50  ;;  %11324 = vst [vmem:[#allocation45_spill] sm:$0xff] %v7932_v63  ;;  %995 = vrot.lane.b32.xlu1 %v7345_v53, %s7041_s27  ;;  %1089 = vrot.lane.b32.xlu0 %v7704_v6, %s7042_s12 }
  0xf7   : > { %v749_v22 = vpop.permute.xlu1 %748  ;;  %v751_v54 = vpop.permute.xlu0 %750 }
  0xf8   : > { %v7948_v27 = vsel %vm1384_vm4, %v1381_v41, %v749_v22  ;;  %v7951_v53 = vsel %vm1384_vm4, %v1382_v30, %v751_v54 }
  0xf9   : > { %11326 = vst [vmem:[#allocation33_spill] sm:$0xff] %v7948_v27  ;;  %11327 = vst [vmem:[#allocation46_spill] sm:$0xff] %v7951_v53  ;;  %1091 = vrot.lane.b32.xlu1 %v7724_v61, %s7042_s12  ;;  %1182 = vrot.lane.b32.xlu0 %v11328_v39, %s7043_s18  ;;  %v11335_v27 = vld [vmem:[#allocation6_spill] sm:$0xff] }
  0xfb   : > { %v753_v20 = vpop.permute.xlu1 %752  ;;  %v786_v28 = vpop.permute.xlu0 %785 }
  0xfc   : > { %v7961_v9 = vsel %vm1384_vm4, %v1383_v46, %v753_v20 }
  0xfd   : > { %11330 = vst [vmem:[#allocation2_spill] sm:$0xff] %v7961_v9  ;;  %1184 = vrot.lane.b32.xlu1 %v7181_v12, %s7043_s18  ;;  %1275 = vrot.lane.b32.xlu0 %v11331_v29, %s7044_s20 }
  0xff   : > { %v788_v11 = vpop.permute.xlu1 %787  ;;  %v790_v25 = vpop.permute.xlu0 %789 }
 0x101   : > { %1277 = vrot.lane.b32.xlu1 %v11332_v10, %s7044_s20  ;;  %805 = vrot.lane.b32.xlu0 %v7704_v6, %s7039_s21 }
 0x103   : > { %v7971_v41 = vpop.permute.xlu1 %791  ;;  %v882_v7 = vpop.permute.xlu0 %881 }
 0x105   : > { %807 = vrot.lane.b32.xlu1 %v7724_v61, %s7039_s21  ;;  %901 = vrot.lane.b32.xlu0 %v11328_v39, %s7040_s22  ;;  %v11333_v39 = vld [vmem:[#allocation19_spill] sm:$0xff] }
 0x106   : > { %v1353_v46 = vsel %vm1352_vm2, %v7481_v56, %v11333_v39 }
 0x107   : > { %v884_v30 = vpop.permute.xlu1 %883  ;;  %v978_v22 = vpop.permute.xlu0 %977 }
 0x109   : > { %903 = vrot.lane.b32.xlu1 %v7181_v12, %s7040_s22  ;;  %997 = vrot.lane.b32.xlu0 %v11331_v29, %s7041_s27  ;;  %v11334_v12 = vld [vmem:[#allocation35_spill] sm:$0xff] }
 0x10a   : > { %v1385_v20 = vsel %vm1384_vm4, %v1353_v46, %v11334_v12 }
 0x10b   : > { %v980_v54 = vpop.permute.xlu1 %979  ;;  %v1074_v1 = vpop.permute.xlu0 %1073  ;;  %v1417_v29 = vsel %vm1416_vm5, %v1385_v20, %v786_v28  ;;  %v1418_v12 = vsel %vm1416_vm5, %v1385_v20, %v788_v11 }
 0x10c   : > { %v1450_v9 = vsel %vm1449_vm6, %v1417_v29, %v882_v7  ;;  %v1451_v7 = vsel %vm1449_vm6, %v1418_v12, %v884_v30  ;;  %v11336_v29 = vld [vmem:[#allocation7_spill] sm:$0xff] }
 0x10d   : > { %999 = vrot.lane.b32.xlu1 %v11332_v10, %s7041_s27  ;;  %1093 = vrot.lane.b32.xlu0 %v7728_v33, %s7042_s12  ;;  %v1483_v39 = vsel %vm1482_vm7, %v1450_v9, %v978_v22  ;;  %v1484_v22 = vsel %vm1482_vm7, %v1451_v7, %v980_v54  ;;  %v11337_v54 = vld [vmem:[#allocation25_spill] sm:$0xff]  ;;  %v11340_v7 = vld [vmem:[#allocation24_spill] sm:$0xff] }
 0x10e   : > { %v1516_v46 = vsel %vm1515_vm8, %v1483_v39, %v1074_v1 }
 0x10f   : > { %v1076_v6 = vpop.permute.xlu1 %1075  ;;  %v1167_v61 = vpop.permute.xlu0 %1166 }
 0x110   : > { %v1549_v28 = vsel %vm1548_vm9, %v1516_v46, %v1167_v61  ;;  %v1517_v1 = vsel %vm1515_vm8, %v1484_v22, %v1076_v6  ;;  %v11338_v6 = vld [vmem:[#allocation29_spill] sm:$0xff] }
 0x111   : > { %1095 = vrot.lane.b32.xlu1 %v7746_v5, %s7042_s12  ;;  %1186 = vrot.lane.b32.xlu0 %v7188_v13, %s7043_s18  ;;  %v1354_v39 = vsel %vm1352_vm2, %v11338_v6, %v11337_v54 }
 0x113   : > { %v886_v10 = vpop.permute.xlu1 %885  ;;  %v1169_v53 = vpop.permute.xlu0 %1168 }
 0x114   : > { %v1550_v11 = vsel %vm1548_vm9, %v1517_v1, %v1169_v53  ;;  %v11339_v53 = vld [vmem:[#allocation36_spill] sm:$0xff] }
 0x115   : > { %1188 = vrot.lane.b32.xlu1 %v7191_v14, %s7043_s18  ;;  %1279 = vrot.lane.b32.xlu0 %v11335_v27, %s7044_s20 }
 0x117   : > { %v1260_v63 = vpop.permute.xlu1 %1259  ;;  %v888_v50 = vpop.permute.xlu0 %887 }
 0x118   : > { %v1582_v9 = vsel %vm1581_vm10, %v1549_v28, %v1260_v63 }
 0x119   : > { %1281 = vrot.lane.b32.xlu1 %v11336_v29, %s7044_s20  ;;  %809 = vrot.lane.b32.xlu0 %v7728_v33, %s7039_s21 }
 0x11a   : > { %5749 = vmatprep.mubr.msk.f32.mxu0 %vm1626_vm11, %v1582_v9  ;;  %v11341_v9 = vld [vmem:[#allocation30_spill] sm:$0xff] }
 0x11b   : > { %v982_v61 = vpop.permute.xlu1 %981  ;;  %v1262_v20 = vpop.permute.xlu0 %1261  ;;  %v1355_v22 = vsel %vm1352_vm2, %v11341_v9, %v11340_v7  ;;  %v11345_v9 = vld [vmem:[#allocation27_spill] sm:$0xff] }
 0x11c   : > { %v1583_v30 = vsel %vm1581_vm10, %v1550_v11, %v1262_v20 }
 0x11d   : > { %811 = vrot.lane.b32.xlu1 %v7746_v5, %s7039_s21  ;;  %905 = vrot.lane.b32.xlu0 %v7188_v13, %s7040_s22  ;;  %v1386_v5 = vsel %vm1384_vm4, %v1354_v39, %v11339_v53 }
 0x11e   : > { %5750 = vmatmul.mubr.msk.f32.vlgmr.msra.gmra.mxu0 %vm1626_vm11, %v1583_v30  ;;  %v1419_v46 = vsel %vm1416_vm5, %v1386_v5, %v790_v25 }
 0x11f   : > { %v984_v63 = vpop.permute.xlu1 %983  ;;  %v1078_v33 = vpop.permute.xlu0 %1077  ;;  %v1452_v28 = vsel %vm1449_vm6, %v1419_v46, %v886_v10  ;;  %v11344_v46 = vld [vmem:[#allocation9_spill] sm:$0xff] }
 0x120   : > { %v1485_v1 = vsel %vm1482_vm7, %v1452_v28, %v982_v61 }
 0x121   : > { %907 = vrot.lane.b32.xlu1 %v7191_v14, %s7040_s22  ;;  %1001 = vrot.lane.b32.xlu0 %v11335_v27, %s7041_s27  ;;  %v11342_v14 = vld [vmem:[#allocation37_spill] sm:$0xff]  ;;  %v1518_v25 = vsel %vm1515_vm8, %v1485_v1, %v1078_v33 }
 0x122   : > { %v1387_v27 = vsel %vm1384_vm4, %v1355_v22, %v11342_v14  ;;  %v11346_v22 = vld [vmem:[#allocation31_spill] sm:$0xff] }
 0x123   : > { %v1080_v13 = vpop.permute.xlu1 %1079  ;;  %v1171_v12 = vpop.permute.xlu0 %1170  ;;  %v1420_v10 = vsel %vm1416_vm5, %v1387_v27, %v7971_v41  ;;  %v1356_v1 = vsel %vm1352_vm2, %v11346_v22, %v11345_v9  ;;  %v11352_v9 = vld [vmem:[#allocation11_spill] sm:$0xff] }
 0x124   : > { %v1551_v11 = vsel %vm1548_vm9, %v1518_v25, %v1171_v12  ;;  %v1453_v61 = vsel %vm1449_vm6, %v1420_v10, %v888_v50  ;;  %v11348_v10 = vld [vmem:[#allocation28_spill] sm:$0xff] }
 0x125   : > { %1003 = vrot.lane.b32.xlu1 %v11336_v29, %s7041_s27  ;;  %1097 = vrot.lane.b32.xlu0 %v7751_v42, %s7042_s12  ;;  %v1486_v29 = vsel %vm1482_vm7, %v1453_v61, %v984_v63  ;;  %v11343_v63 = vld [vmem:[#allocation8_spill] sm:$0xff] }
 0x126   : > { %v1519_v33 = vsel %vm1515_vm8, %v1486_v29, %v1080_v13 }
 0x127   : > { %v1173_v20 = vpop.permute.xlu1 %1172  ;;  %v1264_v30 = vpop.permute.xlu0 %1263 }
 0x128   : > { %v1584_v54 = vsel %vm1581_vm10, %v1551_v11, %v1264_v30  ;;  %v1552_v41 = vsel %vm1548_vm9, %v1519_v33, %v1173_v20  ;;  %v11349_v11 = vld [vmem:[#allocation32_spill] sm:$0xff] }
 0x129   : > { %1099 = vrot.lane.b32.xlu1 %v7771_v0, %s7042_s12  ;;  %1190 = vrot.lane.b32.xlu0 %v7198_v15, %s7043_s18  ;;  %v1357_v20 = vsel %vm1352_vm2, %v11349_v11, %v11348_v10  ;;  %vm3025_vm2 = vcmask 916480  }
 0x12a   : > { %5752 = vmatprep.mubr.msk.f32.mxu0 %vm1626_vm11, %v1584_v54 }
 0x12b   : > { %v1266_v6 = vpop.permute.xlu1 %1265  ;;  %v794_v39 = vpop.permute.xlu0 %793 }
 0x12c   : > { %v1585_v50 = vsel %vm1581_vm10, %v1552_v41, %v1266_v6 }
 0x12d   : > { %1192 = vrot.lane.b32.xlu1 %v7201_v16, %s7043_s18  ;;  %1283 = vrot.lane.b32.xlu0 %v11343_v63, %s7044_s20 }
 0x12e   : > { %5753 = vmatmul.mubr.msk.f32.gmra.mxu0 %vm1626_vm11, %v1585_v50 }
 0x12f   : > { %v796_v53 = vpop.permute.xlu1 %795  ;;  %v890_v5 = vpop.permute.xlu0 %889 }
 0x131   : > { %1285 = vrot.lane.b32.xlu1 %v11344_v46, %s7044_s20  ;;  %813 = vrot.lane.b32.xlu0 %v7751_v42, %s7039_s21  ;;  %v11347_v42 = vld [vmem:[#allocation38_spill] sm:$0xff] }
 0x132   : > { %v1388_v14 = vsel %vm1384_vm4, %v1356_v1, %v11347_v42  ;;  %v7011_v42 = vld [vmem:[%s7125_s19 + $0x80] sm:$0xff] }
 0x133   : > { %v892_v13 = vpop.permute.xlu1 %891  ;;  %v986_v12 = vpop.permute.xlu0 %985 }
 0x135   : > { %815 = vrot.lane.b32.xlu1 %v7771_v0, %s7039_s21  ;;  %909 = vrot.lane.b32.xlu0 %v7198_v15, %s7040_s22  ;;  %v1421_v0 = vsel %vm1416_vm5, %v1388_v14, %v794_v39 }
 0x136   : > { %v1454_v15 = vsel %vm1449_vm6, %v1421_v0, %v890_v5  ;;  %v7012_v0 = vld [vmem:[%s7125_s19 + $0x88] sm:$0xff] }
 0x137   : > { %v988_v28 = vpop.permute.xlu1 %987  ;;  %v1082_v7 = vpop.permute.xlu0 %1081  ;;  %v1487_v30 = vsel %vm1482_vm7, %v1454_v15, %v986_v12 }
 0x138   : > { %v1520_v54 = vsel %vm1515_vm8, %v1487_v30, %v1082_v7 }
 0x139   : > { %911 = vrot.lane.b32.xlu1 %v7201_v16, %s7040_s22  ;;  %1005 = vrot.lane.b32.xlu0 %v11343_v63, %s7041_s27  ;;  %v11350_v16 = vld [vmem:[#allocation39_spill] sm:$0xff] }
 0x13a   : > { %v1389_v61 = vsel %vm1384_vm4, %v1357_v20, %v11350_v16  ;;  %v11354_v20 = vld [vmem:[#allocation41_spill] sm:$0xff] }
 0x13b   : > { %v1084_v27 = vpop.permute.xlu1 %1083  ;;  %v1175_v25 = vpop.permute.xlu0 %1174  ;;  %v1422_v29 = vsel %vm1416_vm5, %v1389_v61, %v796_v53 }
 0x13c   : > { %v1553_v33 = vsel %vm1548_vm9, %v1520_v54, %v1175_v25  ;;  %v1455_v39 = vsel %vm1449_vm6, %v1422_v29, %v892_v13 }
 0x13d   : > { %1007 = vrot.lane.b32.xlu1 %v11344_v46, %s7041_s27  ;;  %1101 = vrot.lane.b32.xlu0 %v7776_v8, %s7042_s12  ;;  %v1488_v63 = vsel %vm1482_vm7, %v1455_v39, %v988_v28  ;;  %v11351_v28 = vld [vmem:[#allocation10_spill] sm:$0xff] }
 0x13e   : > { %v1521_v5 = vsel %vm1515_vm8, %v1488_v63, %v1084_v27  ;;  %v11353_v27 = vld [vmem:[#allocation40_spill] sm:$0xff] }
 0x13f   : > { %v1177_v41 = vpop.permute.xlu1 %1176  ;;  %v1268_v6 = vpop.permute.xlu0 %1267 }
 0x140   : > { %v1586_v50 = vsel %vm1581_vm10, %v1553_v33, %v1268_v6  ;;  %v1554_v53 = vsel %vm1548_vm9, %v1521_v5, %v1177_v41  ;;  %v7013_v6 = vld [vmem:[%s7125_s19 + $0x90] sm:$0xff] }
 0x141   : > { %1103 = vrot.lane.b32.xlu1 %v7798_v36, %s7042_s12  ;;  %1194 = vrot.lane.b32.xlu0 %v7208_v17, %s7043_s18 }
 0x142   : > { %5755 = vmatprep.mubr.msk.f32.mxu0 %vm1626_vm11, %v1586_v50 }
 0x143   : > { %v1270_v46 = vpop.permute.xlu1 %1269  ;;  %v798_v12 = vpop.permute.xlu0 %797 }
 0x144   : > { %v1587_v13 = vsel %vm1581_vm10, %v1554_v53, %v1270_v46  ;;  %v1423_v25 = vsel %vm1416_vm5, %v11353_v27, %v798_v12  ;;  %v7014_v46 = vld [vmem:[%s7125_s19 + $0x98] sm:$0xff]  ;;  %v11355_v12 = vld [vmem:[#allocation12_spill] sm:$0xff] }
 0x145   : > { %1196 = vrot.lane.b32.xlu1 %v7211_v18, %s7043_s18  ;;  %1287 = vrot.lane.b32.xlu0 %v11351_v28, %s7044_s20 }
 0x146   : > { %5756 = vmatmul.mubr.msk.f32.gmra.mxu0 %vm1626_vm11, %v1587_v13 }
 0x147   : > { %v800_v17 = vpop.permute.xlu1 %799  ;;  %v894_v7 = vpop.permute.xlu0 %893 }
 0x148   : > { %v1456_v10 = vsel %vm1449_vm6, %v1423_v25, %v894_v7  ;;  %v1424_v30 = vsel %vm1416_vm5, %v11354_v20, %v800_v17  ;;  %v11356_v17 = vld [vmem:[#allocation13_spill] sm:$0xff] }
 0x149   : > { %1289 = vrot.lane.b32.xlu1 %v11352_v9, %s7044_s20  ;;  %817 = vrot.lane.b32.xlu0 %v7776_v8, %s7039_s21 }
 0x14b   : > { %v896_v22 = vpop.permute.xlu1 %895  ;;  %v990_v1 = vpop.permute.xlu0 %989 }
 0x14c   : > { %v1457_v29 = vsel %vm1449_vm6, %v1424_v30, %v896_v22  ;;  %v7015_v30 = vld [vmem:[%s7125_s19 + $0xa0] sm:$0xff] }
 0x14d   : > { %819 = vrot.lane.b32.xlu1 %v7798_v36, %s7039_s21  ;;  %913 = vrot.lane.b32.xlu0 %v7011_v42, %s7040_s22  ;;  %v1489_v36 = vsel %vm1482_vm7, %v1456_v10, %v990_v1  ;;  %v11357_v42 = vld [vmem:[#allocation42_spill] sm:$0xff] }
 0x14f   : > { %v992_v18 = vpop.permute.xlu1 %991  ;;  %v1086_v14 = vpop.permute.xlu0 %1085 }
 0x150   : > { %v1522_v11 = vsel %vm1515_vm8, %v1489_v36, %v1086_v14  ;;  %v1490_v41 = vsel %vm1482_vm7, %v1457_v29, %v992_v18 }
 0x151   : > { %915 = vrot.lane.b32.xlu1 %v7012_v0, %s7040_s22  ;;  %1009 = vrot.lane.b32.xlu0 %v11351_v28, %s7041_s27 }
 0x153   : > { %v1088_v8 = vpop.permute.xlu1 %1087  ;;  %v1179_v15 = vpop.permute.xlu0 %1178 }
 0x154   : > { %v1555_v16 = vsel %vm1548_vm9, %v1522_v11, %v1179_v15  ;;  %v1523_v39 = vsel %vm1515_vm8, %v1490_v41, %v1088_v8  ;;  %v11358_v41 = vld [vmem:[#allocation14_spill] sm:$0xff] }
 0x155   : > { %1011 = vrot.lane.b32.xlu1 %v11352_v9, %s7041_s27  ;;  %1105 = vrot.lane.b32.xlu0 %v7802_v49, %s7042_s12 }
 0x157   : > { %v1181_v61 = vpop.permute.xlu1 %1180  ;;  %v1272_v54 = vpop.permute.xlu0 %1271 }
 0x158   : > { %v1588_v33 = vsel %vm1581_vm10, %v1555_v16, %v1272_v54  ;;  %v1556_v50 = vsel %vm1548_vm9, %v1523_v39, %v1181_v61 }
 0x159   : > { %1107 = vrot.lane.b32.xlu1 %v7821_v35, %s7042_s12  ;;  %1198 = vrot.lane.b32.xlu0 %v7013_v6, %s7043_s18 }
 0x15a   : > { %5758 = vmatprep.mubr.msk.f32.mxu0 %vm1626_vm11, %v1588_v33  ;;  %v7016_v33 = vld [vmem:[%s7125_s19 + $0xa8] sm:$0xff] }
 0x15b   : > { %v1274_v63 = vpop.permute.xlu1 %1273  ;;  %v802_v5 = vpop.permute.xlu0 %801 }
 0x15c   : > { %v1589_v53 = vsel %vm1581_vm10, %v1556_v50, %v1274_v63  ;;  %v1425_v18 = vsel %vm1416_vm5, %v11357_v42, %v802_v5  ;;  %v11359_v50 = vld [vmem:[#allocation15_spill] sm:$0xff] }
 0x15d   : > { %1200 = vrot.lane.b32.xlu1 %v7014_v46, %s7043_s18  ;;  %1291 = vrot.lane.b32.xlu0 %v11355_v12, %s7044_s20 }
 0x15e   : > { %5759 = vmatmul.mubr.msk.f32.gmra.mxu0 %vm1626_vm11, %v1589_v53 }
 0x15f   : > { %v804_v13 = vpop.permute.xlu1 %803  ;;  %v898_v28 = vpop.permute.xlu0 %897 }
 0x160   : > { %v1458_v0 = vsel %vm1449_vm6, %v1425_v18, %v898_v28  ;;  %v1426_v25 = vsel %vm1416_vm5, %v7707_v32, %v804_v13 }
 0x161   : > { %1293 = vrot.lane.b32.xlu1 %v11356_v17, %s7044_s20  ;;  %821 = vrot.lane.b32.xlu0 %v7802_v49, %s7039_s21 }
 0x163   : > { %v900_v7 = vpop.permute.xlu1 %899  ;;  %v994_v9 = vpop.permute.xlu0 %993 }
 0x164   : > { %v1491_v27 = vsel %vm1482_vm7, %v1458_v0, %v994_v9  ;;  %v1459_v36 = vsel %vm1449_vm6, %v1426_v25, %v900_v7  ;;  %v7017_v0 = vld [vmem:[%s7125_s19 + $0xb0] sm:$0xff] }
 0x165   : > { %823 = vrot.lane.b32.xlu1 %v7821_v35, %s7039_s21  ;;  %917 = vrot.lane.b32.xlu0 %v7013_v6, %s7040_s22 }
 0x167   : > { %v996_v22 = vpop.permute.xlu1 %995  ;;  %v1090_v1 = vpop.permute.xlu0 %1089 }
 0x168   : > { %v1524_v35 = vsel %vm1515_vm8, %v1491_v27, %v1090_v1  ;;  %v1492_v20 = vsel %vm1482_vm7, %v1459_v36, %v996_v22 }
 0x169   : > { %919 = vrot.lane.b32.xlu1 %v7014_v46, %s7040_s22  ;;  %1013 = vrot.lane.b32.xlu0 %v11355_v12, %s7041_s27  ;;  %v11360_v12 = vld [vmem:[#allocation43_spill] sm:$0xff] }
 0x16b   : > { %v1092_v14 = vpop.permute.xlu1 %1091  ;;  %v1183_v49 = vpop.permute.xlu0 %1182 }
 0x16c   : > { %v1557_v8 = vsel %vm1548_vm9, %v1524_v35, %v1183_v49  ;;  %v1525_v16 = vsel %vm1515_vm8, %v1492_v20, %v1092_v14  ;;  %v11362_v20 = vld [vmem:[#allocation17_spill] sm:$0xff] }
 0x16d   : > { %1015 = vrot.lane.b32.xlu1 %v11356_v17, %s7041_s27  ;;  %1109 = vrot.lane.b32.xlu0 %v7826_v19, %s7042_s12 }
 0x16f   : > { %v1185_v15 = vpop.permute.xlu1 %1184  ;;  %v1276_v10 = vpop.permute.xlu0 %1275 }
 0x170   : > { %v1590_v11 = vsel %vm1581_vm10, %v1557_v8, %v1276_v10  ;;  %v1558_v32 = vsel %vm1548_vm9, %v1525_v16, %v1185_v15  ;;  %v7018_v15 = vld [vmem:[%s7125_s19 + $0xb8] sm:$0xff]  ;;  %v11361_v10 = vld [vmem:[#allocation16_spill] sm:$0xff] }
 0x171   : > { %1111 = vrot.lane.b32.xlu1 %v7846_v43, %s7042_s12  ;;  %1202 = vrot.lane.b32.xlu0 %v7015_v30, %s7043_s18 }
 0x172   : > { %5761 = vmatprep.mubr.msk.f32.mxu0 %vm1626_vm11, %v1590_v11 }
 0x173   : > { %v1278_v61 = vpop.permute.xlu1 %1277  ;;  %v806_v54 = vpop.permute.xlu0 %805 }
 0x174   : > { %v1591_v29 = vsel %vm1581_vm10, %v1558_v32, %v1278_v61  ;;  %v1427_v13 = vsel %vm1416_vm5, %v11360_v12, %v806_v54 }
 0x175   : > { %1204 = vrot.lane.b32.xlu1 %v7016_v33, %s7043_s18  ;;  %1295 = vrot.lane.b32.xlu0 %v11358_v41, %s7044_s20 }
 0x176   : > { %5762 = vmatmul.mubr.msk.f32.gmra.mxu0 %vm1626_vm11, %v1591_v29 }
 0x177   : > { %v808_v6 = vpop.permute.xlu1 %807  ;;  %v902_v39 = vpop.permute.xlu0 %901 }
 0x178   : > { %v1460_v17 = vsel %vm1449_vm6, %v1427_v13, %v902_v39  ;;  %v1428_v9 = vsel %vm1416_vm5, %v7731_v55, %v808_v6 }
 0x179   : > { %1297 = vrot.lane.b32.xlu1 %v11359_v50, %s7044_s20  ;;  %825 = vrot.lane.b32.xlu0 %v7826_v19, %s7039_s21 }
 0x17b   : > { %v904_v63 = vpop.permute.xlu1 %903  ;;  %v998_v5 = vpop.permute.xlu0 %997 }
 0x17c   : > { %v1493_v7 = vsel %vm1482_vm7, %v1460_v17, %v998_v5  ;;  %v1461_v18 = vsel %vm1449_vm6, %v1428_v9, %v904_v63  ;;  %v7020_v17 = vld [vmem:[%s7125_s19 + $0xc8] sm:$0xff] }
 0x17d   : > { %827 = vrot.lane.b32.xlu1 %v7846_v43, %s7039_s21  ;;  %921 = vrot.lane.b32.xlu0 %v7015_v30, %s7040_s22 }
 0x17f   : > { %v1000_v53 = vpop.permute.xlu1 %999  ;;  %v1094_v46 = vpop.permute.xlu0 %1093 }
 0x180   : > { %v1526_v43 = vsel %vm1515_vm8, %v1493_v7, %v1094_v46  ;;  %v1494_v49 = vsel %vm1482_vm7, %v1461_v18, %v1000_v53  ;;  %v7019_v46 = vld [vmem:[%s7125_s19 + $0xc0] sm:$0xff] }
 0x181   : > { %923 = vrot.lane.b32.xlu1 %v7016_v33, %s7040_s22  ;;  %1017 = vrot.lane.b32.xlu0 %v11358_v41, %s7041_s27  ;;  %v11363_v7 = vld [vmem:[#allocation18_spill] sm:$0xff] }
 0x183   : > { %v1096_v28 = vpop.permute.xlu1 %1095  ;;  %v1187_v19 = vpop.permute.xlu0 %1186 }
 0x184   : > { %v1559_v22 = vsel %vm1548_vm9, %v1526_v43, %v1187_v19  ;;  %v1527_v27 = vsel %vm1515_vm8, %v1494_v49, %v1096_v28 }
 0x185   : > { %1019 = vrot.lane.b32.xlu1 %v11359_v50, %s7041_s27  ;;  %1113 = vrot.lane.b32.xlu0 %v7851_v21, %s7042_s12 }
 0x187   : > { %v1189_v1 = vpop.permute.xlu1 %1188  ;;  %v1280_v42 = vpop.permute.xlu0 %1279 }
 0x188   : > { %v1592_v14 = vsel %vm1581_vm10, %v1559_v22, %v1280_v42  ;;  %v1560_v55 = vsel %vm1548_vm9, %v1527_v27, %v1189_v1  ;;  %v11364_v22 = vld [vmem:[#allocation20_spill] sm:$0xff] }
 0x189   : > { %1115 = vrot.lane.b32.xlu1 %v7871_v3, %s7042_s12  ;;  %1206 = vrot.lane.b32.xlu0 %v7017_v0, %s7043_s18 }
 0x18a   : > { %5764 = vmatprep.mubr.msk.f32.mxu0 %vm1626_vm11, %v1592_v14 }
 0x18b   : > { %v1282_v35 = vpop.permute.xlu1 %1281  ;;  %v810_v25 = vpop.permute.xlu0 %809 }
 0x18c   : > { %v1593_v8 = vsel %vm1581_vm10, %v1560_v55, %v1282_v35  ;;  %v1429_v54 = vsel %vm1416_vm5, %v7734_v62, %v810_v25 }
 0x18d   : > { %1208 = vrot.lane.b32.xlu1 %v7018_v15, %s7043_s18  ;;  %1299 = vrot.lane.b32.xlu0 %v11361_v10, %s7044_s20 }
 0x18e   : > { %5765 = vmatmul.mubr.msk.f32.gmra.mxu0 %vm1626_vm11, %v1593_v8 }
 0x18f   : > { %v812_v36 = vpop.permute.xlu1 %811  ;;  %v906_v11 = vpop.permute.xlu0 %905 }
 0x190   : > { %v1462_v33 = vsel %vm1449_vm6, %v1429_v54, %v906_v11  ;;  %v1430_v6 = vsel %vm1416_vm5, %v7755_v58, %v812_v36  ;;  %v7021_v11 = vld [vmem:[%s7125_s19 + $0xd0] sm:$0xff]  ;;  %v11365_v54 = vld [vmem:[#allocation21_spill] sm:$0xff] }
 0x191   : > { %1301 = vrot.lane.b32.xlu1 %v11362_v20, %s7044_s20  ;;  %829 = vrot.lane.b32.xlu0 %v7851_v21, %s7039_s21 }
 0x193   : > { %v908_v30 = vpop.permute.xlu1 %907  ;;  %v1002_v16 = vpop.permute.xlu0 %1001 }
 0x194   : > { %v1495_v41 = vsel %vm1482_vm7, %v1462_v33, %v1002_v16  ;;  %v1463_v63 = vsel %vm1449_vm6, %v1430_v6, %v908_v30  ;;  %v11366_v33 = vld [vmem:[#allocation22_spill] sm:$0xff] }
 0x195   : > { %831 = vrot.lane.b32.xlu1 %v7871_v3, %s7039_s21  ;;  %925 = vrot.lane.b32.xlu0 %v7017_v0, %s7040_s22 }
 0x197   : > { %v1004_v32 = vpop.permute.xlu1 %1003  ;;  %v1098_v61 = vpop.permute.xlu0 %1097 }
 0x198   : > { %v1528_v3 = vsel %vm1515_vm8, %v1495_v41, %v1098_v61  ;;  %v1496_v53 = vsel %vm1482_vm7, %v1463_v63, %v1004_v32  ;;  %v7022_v61 = vld [vmem:[%s7125_s19 + $0xd8] sm:$0xff] }
 0x199   : > { %927 = vrot.lane.b32.xlu1 %v7018_v15, %s7040_s22  ;;  %1021 = vrot.lane.b32.xlu0 %v11361_v10, %s7041_s27 }
 0x19b   : > { %v1100_v29 = vpop.permute.xlu1 %1099  ;;  %v1191_v21 = vpop.permute.xlu0 %1190 }
 0x19c   : > { %v1561_v62 = vsel %vm1548_vm9, %v1528_v3, %v1191_v21  ;;  %v1529_v12 = vsel %vm1515_vm8, %v1496_v53, %v1100_v29 }
 0x19d   : > { %1023 = vrot.lane.b32.xlu1 %v11362_v20, %s7041_s27  ;;  %1117 = vrot.lane.b32.xlu0 %v7876_v23, %s7042_s12 }
 0x19f   : > { %v1193_v39 = vpop.permute.xlu1 %1192  ;;  %v1284_v50 = vpop.permute.xlu0 %1283 }
 0x1a0   : > { %v1594_v5 = vsel %vm1581_vm10, %v1561_v62, %v1284_v50  ;;  %v1562_v58 = vsel %vm1548_vm9, %v1529_v12, %v1193_v39 }
 0x1a1   : > { %1119 = vrot.lane.b32.xlu1 %v7896_v4, %s7042_s12  ;;  %1210 = vrot.lane.b32.xlu0 %v7019_v46, %s7043_s18 }
 0x1a2   : > { %5767 = vmatprep.mubr.msk.f32.mxu0 %vm1626_vm11, %v1594_v5 }
 0x1a3   : > { %v1286_v13 = vpop.permute.xlu1 %1285  ;;  %v814_v28 = vpop.permute.xlu0 %813 }
 0x1a4   : > { %v1595_v19 = vsel %vm1581_vm10, %v1562_v58, %v1286_v13  ;;  %v1431_v49 = vsel %vm1416_vm5, %v7758_v40, %v814_v28 }
 0x1a5   : > { %1212 = vrot.lane.b32.xlu1 %v7020_v17, %s7043_s18  ;;  %1303 = vrot.lane.b32.xlu0 %v11363_v7, %s7044_s20 }
 0x1a6   : > { %5768 = vmatmul.mubr.msk.f32.gmra.mxu0 %vm1626_vm11, %v1595_v19  ;;  %v7023_v19 = vld [vmem:[%s7125_s19 + $0xe0] sm:$0xff] }
 0x1a7   : > { %v816_v43 = vpop.permute.xlu1 %815  ;;  %v910_v9 = vpop.permute.xlu0 %909 }
 0x1a8   : > { %v1464_v27 = vsel %vm1449_vm6, %v1431_v49, %v910_v9  ;;  %v1432_v35 = vsel %vm1416_vm5, %v7780_v52, %v816_v43 }
 0x1a9   : > { %1305 = vrot.lane.b32.xlu1 %v11364_v22, %s7044_s20  ;;  %833 = vrot.lane.b32.xlu0 %v7876_v23, %s7039_s21 }
 0x1ab   : > { %v912_v1 = vpop.permute.xlu1 %911  ;;  %v1006_v42 = vpop.permute.xlu0 %1005 }
 0x1ac   : > { %v1497_v55 = vsel %vm1482_vm7, %v1464_v27, %v1006_v42  ;;  %v1465_v15 = vsel %vm1449_vm6, %v1432_v35, %v912_v1  ;;  %v11367_v1 = vld [vmem:[#allocation23_spill] sm:$0xff]  ;;  %v8351_v35 = vld [vmem:[%s7125_s19 + $0xf8] sm:$0xff] }
 0x1ad   : > { %835 = vrot.lane.b32.xlu1 %v7896_v4, %s7039_s21  ;;  %929 = vrot.lane.b32.xlu0 %v7019_v46, %s7040_s22 }
 0x1af   : > { %v1008_v18 = vpop.permute.xlu1 %1007  ;;  %v1102_v14 = vpop.permute.xlu0 %1101 }
 0x1b0   : > { %v1530_v4 = vsel %vm1515_vm8, %v1497_v55, %v1102_v14  ;;  %v1498_v36 = vsel %vm1482_vm7, %v1465_v15, %v1008_v18  ;;  %v11368_v14 = vld [vmem:[#allocation26_spill] sm:$0xff] }
 0x1b1   : > { %931 = vrot.lane.b32.xlu1 %v7020_v17, %s7040_s22  ;;  %1025 = vrot.lane.b32.xlu0 %v11363_v7, %s7041_s27 }
 0x1b3   : > { %v1104_v0 = vpop.permute.xlu1 %1103  ;;  %v1195_v23 = vpop.permute.xlu0 %1194 }
 0x1b4   : > { %v1563_v40 = vsel %vm1548_vm9, %v1530_v4, %v1195_v23  ;;  %v1531_v20 = vsel %vm1515_vm8, %v1498_v36, %v1104_v0  ;;  %v8344_v23 = vld [vmem:[%s7125_s19 + $0xf0] sm:$0xff]  ;;  %v11369_v36 = vmov 0.0  }
 0x1b5   : > { %1027 = vrot.lane.b32.xlu1 %v11364_v22, %s7041_s27  ;;  %1121 = vrot.lane.b32.xlu0 %v7901_v45, %s7042_s12  ;;  %v7024_v22 = vld [vmem:[%s7125_s19 + $0xe8] sm:$0xff]  ;;  %v591_v27 = vrot.slane %v8344_v23, 7  ;;  %s7045_s19 = smov 48  }
 0x1b7   : > { %v1197_v25 = vpop.permute.xlu1 %1196  ;;  %v1288_v8 = vpop.permute.xlu0 %1287 }
 0x1b8   : > { %v1596_v10 = vsel %vm1581_vm10, %v1563_v40, %v1288_v8  ;;  %v1564_v52 = vsel %vm1548_vm9, %v1531_v20, %v1197_v25  ;;  %v593_v40 = vrot.slane %v8351_v35, 7  ;;  %v3072_v25 = vld [vmem:[%s11178_s3 + $0x70] sm:$0xff] }
 0x1b9   : > { %1123 = vrot.lane.b32.xlu1 %v7921_v38, %s7042_s12  ;;  %1214 = vrot.lane.b32.xlu0 %v7021_v11, %s7043_s18 }
 0x1ba   : > { %5770 = vmatprep.mubr.msk.f32.mxu0 %vm1626_vm11, %v1596_v10 }
 0x1bb   : > { %v1290_v30 = vpop.permute.xlu1 %1289  ;;  %v818_v16 = vpop.permute.xlu0 %817 }
 0x1bc   : > { %v1597_v32 = vsel %vm1581_vm10, %v1564_v52, %v1290_v30  ;;  %v1433_v39 = vsel %vm1416_vm5, %v7783_v34, %v818_v16  ;;  %v594_v30 = vsel %vm432_vm1, %v591_v27, %v593_v40  ;;  %v596_v16 = vrot.slane %v8351_v35, 1 }
 0x1bd   : > { %1216 = vrot.lane.b32.xlu1 %v7022_v61, %s7043_s18  ;;  %1307 = vrot.lane.b32.xlu0 %v11365_v54, %s7044_s20 }
 0x1be   : > { %5771 = vmatmul.mubr.msk.f32.gmra.mxu0 %vm1626_vm11, %v1597_v32 }
 0x1bf   : > { %v820_v29 = vpop.permute.xlu1 %819  ;;  %v914_v21 = vpop.permute.xlu0 %913 }
 0x1c0   : > { %v1466_v63 = vsel %vm1449_vm6, %v1433_v39, %v914_v21  ;;  %v1434_v53 = vsel %vm1416_vm5, %v7805_v48, %v820_v29  ;;  %v3071_v21 = vld [vmem:[%s11178_s3 + $0x68] sm:$0xff] }
 0x1c1   : > { %1309 = vrot.lane.b32.xlu1 %v11366_v33, %s7044_s20  ;;  %837 = vrot.lane.b32.xlu0 %v7901_v45, %s7039_s21 }
 0x1c3   : > { %v916_v41 = vpop.permute.xlu1 %915  ;;  %v1010_v3 = vpop.permute.xlu0 %1009 }
 0x1c4   : > { %v1499_v5 = vsel %vm1482_vm7, %v1466_v63, %v1010_v3  ;;  %v1467_v58 = vsel %vm1449_vm6, %v1434_v53, %v916_v41 }
 0x1c5   : > { %839 = vrot.lane.b32.xlu1 %v7921_v38, %s7039_s21  ;;  %933 = vrot.lane.b32.xlu0 %v7021_v11, %s7040_s22 }
 0x1c7   : > { %v1012_v6 = vpop.permute.xlu1 %1011  ;;  %v1106_v62 = vpop.permute.xlu0 %1105 }
 0x1c8   : > { %v1532_v38 = vsel %vm1515_vm8, %v1499_v5, %v1106_v62  ;;  %v1500_v28 = vsel %vm1482_vm7, %v1467_v58, %v1012_v6  ;;  %v3069_v5 = vld [vmem:[%s11178_s3 + $0x58] sm:$0xff]  ;;  %v11370_v58 = vld [vmem:[#allocation3_spill] sm:$0xff] }
 0x1c9   : > { %935 = vrot.lane.b32.xlu1 %v7022_v61, %s7040_s22  ;;  %1029 = vrot.lane.b32.xlu0 %v11365_v54, %s7041_s27 }
 0x1cb   : > { %v1108_v50 = vpop.permute.xlu1 %1107  ;;  %v1199_v45 = vpop.permute.xlu0 %1198 }
 0x1cc   : > { %v1565_v34 = vsel %vm1548_vm9, %v1532_v38, %v1199_v45  ;;  %v1533_v17 = vsel %vm1515_vm8, %v1500_v28, %v1108_v50 }
 0x1cd   : > { %1031 = vrot.lane.b32.xlu1 %v11366_v33, %s7041_s27  ;;  %1125 = vrot.lane.b32.xlu0 %v7925_v47, %s7042_s12 }
 0x1cf   : > { %v1201_v46 = vpop.permute.xlu1 %1200  ;;  %v1292_v12 = vpop.permute.xlu0 %1291 }
 0x1d0   : > { %v1598_v13 = vsel %vm1581_vm10, %v1565_v34, %v1292_v12  ;;  %v1566_v48 = vsel %vm1548_vm9, %v1533_v17, %v1201_v46  ;;  %v3068_v34 = vld [vmem:[%s11178_s3 + $0x50] sm:$0xff]  ;;  %v8412_v46 = vld [vmem:[%s11177_s2] ss:$0 sm:$0xff] }
 0x1d1   : > { %1127 = vrot.lane.b32.xlu1 %v7945_v26, %s7042_s12  ;;  %1218 = vrot.lane.b32.xlu0 %v7023_v19, %s7043_s18 }
 0x1d2   : > { %5773 = vmatprep.mubr.msk.f32.mxu0 %vm1626_vm11, %v1598_v13  ;;  %v598_v13 = vsel %vm526_vm0, %v596_v16, %v11370_v58 }
 0x1d3   : > { %v1294_v7 = vpop.permute.xlu1 %1293  ;;  %v822_v43 = vpop.permute.xlu0 %821 }
 0x1d4   : > { %v1599_v9 = vsel %vm1581_vm10, %v1566_v48, %v1294_v7  ;;  %v1435_v8 = vsel %vm1416_vm5, %v7808_v2, %v822_v43  ;;  %v595_v2 = vrot.slane %v8344_v23, 1  ;;  %v3067_v43 = vld [vmem:[%s11178_s3 + $0x48] sm:$0xff] }
 0x1d5   : > { %1220 = vrot.lane.b32.xlu1 %v7024_v22, %s7043_s18  ;;  %1311 = vrot.lane.b32.xlu0 %v11367_v1, %s7044_s20 }
 0x1d6   : > { %5774 = vmatmul.mubr.msk.f32.gmra.mxu0 %vm1626_vm11, %v1599_v9  ;;  %v597_v39 = vsel %vm526_vm0, %v595_v2, %v596_v16  ;;  %v3063_v2 = vld [vmem:[%s11178_s3 + $0x28] sm:$0xff] }
 0x1d7   : > { %v824_v42 = vpop.permute.xlu1 %823  ;;  %v918_v18 = vpop.permute.xlu0 %917 }
 0x1d8   : > { %v1468_v11 = vsel %vm1449_vm6, %v1435_v8, %v918_v18  ;;  %v1436_v32 = vsel %vm1416_vm5, %v7830_v57, %v824_v42  ;;  %v3070_v57 = vld [vmem:[%s11178_s3 + $0x60] sm:$0xff]  ;;  %v3064_v8 = vld [vmem:[%s11178_s3 + $0x30] sm:$0xff] }
 0x1d9   : > { %1313 = vrot.lane.b32.xlu1 %v11368_v14, %s7044_s20  ;;  %841 = vrot.lane.b32.xlu0 %v7925_v47, %s7039_s21  ;;  %v3073_v47 = vld [vmem:[%s11178_s3 + $0x78] sm:$0xff] }
 0x1da   : > { %3146 = vmatpush1.msra.mxu1 %v3073_v47 }
 0x1db   : > { %v920_v49 = vpop.permute.xlu1 %919  ;;  %v1014_v0 = vpop.permute.xlu0 %1013  ;;  %3147 = vmatprep.subr.mxu1 %v11369_v36 }
 0x1dc   : > { %3148 = vmatpush1.msra.mxu1 %v3072_v25  ;;  %v1501_v20 = vsel %vm1482_vm7, %v1468_v11, %v1014_v0  ;;  %v1469_v33 = vsel %vm1449_vm6, %v1436_v32, %v920_v49  ;;  %v3066_v49 = vld [vmem:[%s11178_s3 + $0x40] sm:$0xff] }
 0x1dd   : > { %843 = vrot.lane.b32.xlu1 %v7945_v26, %s7039_s21  ;;  %937 = vrot.lane.b32.xlu0 %v7023_v19, %s7040_s22  ;;  %v592_v26 = vsel %vm432_vm1, %v7481_v56, %v591_v27 }
 0x1de   : > { %3149 = vmatprep.subr.mxu1 %v11369_v36  ;;  %v5751_v41 = vpop.f32.mrf.mxu0 }
 0x1df   : > { %v1016_v55 = vpop.permute.xlu1 %1015  ;;  %v1110_v4 = vpop.permute.xlu0 %1109  ;;  %3150 = vmatpush1.msra.mxu1 %v3071_v21 }
 0x1e0   : > { %v1534_v52 = vsel %vm1515_vm8, %v1501_v20, %v1110_v4  ;;  %v1502_v6 = vsel %vm1482_vm7, %v1469_v33, %v1016_v55  ;;  %3151 = vmatprep.subr.mxu1 %v11369_v36  ;;  %v1793_v38 = vpop.f32.mrf.mxu0 }
 0x1e1   : > { %939 = vrot.lane.b32.xlu1 %v7024_v22, %s7040_s22  ;;  %1033 = vrot.lane.b32.xlu0 %v11367_v1, %s7041_s27  ;;  %v1794_v48 = vadd.f32 %v8412_v46, %v1793_v38  ;;  %v1799_v1 = vadd.f32 %v5751_v41, %v8412_v46  ;;  %v3062_v41 = vld [vmem:[%s11178_s3 + $0x20] sm:$0xff] }
 0x1e2   : > { %3152 = vmatpush1.msra.mxu1 %v3070_v57 }
 0x1e3   : > { %v1112_v15 = vpop.permute.xlu1 %1111  ;;  %v1203_v10 = vpop.permute.xlu0 %1202  ;;  %3153 = vmatprep.subr.mxu1 %v11369_v36  ;;  %v8435_v0 = vmax.f32 %v1794_v48, 0.0  ;;  %v8443_v4 = vmax.f32 %v1799_v1, 0.0  ;;  %v3059_v1 = vld [vmem:[%s11178_s3 + $0x8] sm:$0xff] }
 0x1e4   : > { %v1567_v61 = vsel %vm1548_vm9, %v1534_v52, %v1203_v10  ;;  %v1535_v62 = vsel %vm1515_vm8, %v1502_v6, %v1112_v15  ;;  %3154 = vmatpush1.msra.mxu1 %v3069_v5 }
 0x1e5   : > { %1035 = vrot.lane.b32.xlu1 %v11368_v14, %s7041_s27  ;;  %1129 = vrot.lane.b32.xlu0 %v592_v26, %s7042_s12  ;;  %v2104_v25 = vrot.slane %v8435_v0, 1  ;;  %v2105_v15 = vrot.slane %v8443_v4, 1  ;;  %v2014_v52 = vrot.slane %v8435_v0, 7  ;;  %v6001_v38 = vpack.i.bf16 %v8435_v0, %v11369_v36 }
 0x1e6   : > { %3155 = vmatprep.subr.mxu1 %v11369_v36 }
 0x1e7   : > { %v1205_v54 = vpop.permute.xlu1 %1204  ;;  %v1296_v29 = vpop.permute.xlu0 %1295  ;;  %3156 = vmatpush1.msra.mxu1 %v3068_v34  ;;  %v8491_v57 = vsel %vm432_vm1, %v7481_v56, %v2014_v52 }
 0x1e8   : > { %v1600_v3 = vsel %vm1581_vm10, %v1567_v61, %v1296_v29  ;;  %v1568_v50 = vsel %vm1548_vm9, %v1535_v62, %v1205_v54  ;;  %3157 = vmatprep.subr.mxu1 %v11369_v36 }
 0x1e9   : > { %1131 = vrot.lane.b32.xlu1 %v594_v30, %s7042_s12  ;;  %1222 = vrot.lane.b32.xlu0 %v8344_v23, %s7043_s18 }
 0x1ea   : > { %5776 = vmatprep.mubr.msk.f32.mxu0 %vm1626_vm11, %v1600_v3  ;;  %3158 = vmatpush1.msra.mxu1 %v3067_v43 }
 0x1eb   : > { %v1298_v45 = vpop.permute.xlu1 %1297  ;;  %v826_v63 = vpop.permute.xlu0 %825  ;;  %3159 = vmatprep.subr.mxu1 %v11369_v36 }
 0x1ec   : > { %v1601_v53 = vsel %vm1581_vm10, %v1568_v50, %v1298_v45  ;;  %3160 = vmatpush1.msra.mxu1 %v3066_v49  ;;  %v1437_v10 = vsel %vm1416_vm5, %v7833_v44, %v826_v63  ;;  %v2016_v44 = vrot.slane %v8443_v4, 7 }
 0x1ed   : > { %1224 = vrot.lane.b32.xlu1 %v8351_v35, %s7043_s18  ;;  %1315 = vrot.lane.b32.xlu0 %v597_v39, %s7044_s20 }
 0x1ee   : > { %v5754_v12 = vpop.f32.mrf.mxu0  ;;  %5777 = vmatmul.mubr.msk.f32.gmra.mxu0 %vm1626_vm11, %v1601_v53  ;;  %3161 = vmatprep.subr.mxu1 %v11369_v36 }
 0x1ef   : > { %v1809_v28 = vadd.f32 %v5754_v12, %v8412_v46  ;;  %v828_v19 = vpop.permute.xlu1 %827  ;;  %v922_v17 = vpop.permute.xlu0 %921 }
 0x1f0   : > { %v1803_v7 = vpop.f32.mrf.mxu0  ;;  %v1438_v61 = vsel %vm1416_vm5, %v7855_v37, %v828_v19  ;;  %v8494_v37 = vsel %vm432_vm1, %v2014_v52, %v2016_v44  ;;  %v8522_v19 = vsel %vm526_vm0, %v2105_v15, %v11370_v58 }
 0x1f1   : > { %v8423_v9 = vmax.f32 %v1809_v28, 0.0  ;;  %v1804_v22 = vadd.f32 %v8412_v46, %v1803_v7  ;;  %1317 = vrot.lane.b32.xlu1 %v598_v13, %s7044_s20  ;;  %845 = vrot.lane.b32.xlu0 %v592_v26, %s7039_s21  ;;  %v6006_v53 = vpack.i.bf16 %v8494_v37, %v8491_v57 }
 0x1f3   : > { %v8430_v42 = vmax.f32 %v1804_v22, 0.0  ;;  %v924_v18 = vpop.permute.xlu1 %923  ;;  %v1018_v14 = vpop.permute.xlu0 %1017  ;;  %v2109_v55 = vrot.slane %v8423_v9, 1  ;;  %v2020_v28 = vrot.slane %v8423_v9, 7  ;;  %v6011_v22 = vpack.i.bf16 %v8443_v4, %v8435_v0  ;;  %v3058_v0 = vld [vmem:[%s11178_s3] sm:$0xff] }
 0x1f4   : > { %v1471_v3 = vsel %vm1449_vm6, %v1438_v61, %v924_v18 }
 0x1f5   : > { %847 = vrot.lane.b32.xlu1 %v594_v30, %s7039_s21  ;;  %941 = vrot.lane.b32.xlu0 %v8344_v23, %s7040_s22  ;;  %v2108_v27 = vrot.slane %v8430_v42, 1  ;;  %v3065_v23 = vld [vmem:[%s11178_s3 + $0x38] sm:$0xff]  ;;  %v2106_v30 = vsel %vm526_vm0, %v2104_v25, %v2105_v15  ;;  %v2018_v12 = vrot.slane %v8430_v42, 7  ;;  %s7046_s21 = smov 64   ;;  %v6026_v25 = vpack.i.bf16 %v8423_v9, %v8430_v42 }
 0x1f6   : > { %3162 = vmatpush1.msra.mxu1 %v3065_v23  ;;  %v5996_v33 = vpack.i.bf16 %v2106_v30, %v11370_v58  ;;  %v6016_v48 = vpack.i.bf16 %v8522_v19, %v2106_v30 }
 0x1f7   : > { %v1020_v47 = vpop.permute.xlu1 %1019  ;;  %v1114_v26 = vpop.permute.xlu0 %1113  ;;  %v8448_v40 = vsel %vm526_vm0, %v2108_v27, %v2109_v55  ;;  %3163 = vmatprep.subr.mxu1 %v11369_v36  ;;  %v8537_v49 = vsel %vm432_vm1, %v2018_v12, %v2020_v28 }
 0x1f8   : > { %5493 = vmatprep.mubr.msk.f32.mxu1 %vm1449_vm6, %v8448_v40  ;;  %3164 = vmatpush1.msra.mxu1 %v3064_v8  ;;  %v1504_v62 = vsel %vm1482_vm7, %v1471_v3, %v1020_v47 }
 0x1f9   : > { %943 = vrot.lane.b32.xlu1 %v8351_v35, %s7040_s22  ;;  %1037 = vrot.lane.b32.xlu0 %v597_v39, %s7041_s27  ;;  %v1470_v35 = vsel %vm1449_vm6, %v1437_v10, %v922_v17  ;;  %v3061_v39 = vld [vmem:[%s11178_s3 + $0x18] sm:$0xff]  ;;  %v3075_v10 = vld [vmem:[%s11178_s3 + $0x88] sm:$0xff] }
 0x1fa   : > { %v1503_v16 = vsel %vm1482_vm7, %v1470_v35, %v1018_v14  ;;  %3165 = vmatprep.subr.mxu1 %v11369_v36  ;;  %v8534_v14 = vsel %vm432_vm1, %v7481_v56, %v2018_v12  ;;  %v3074_v35 = vld [vmem:[%s11178_s3 + $0x80] sm:$0xff] }
 0x1fb   : > { %v1116_v11 = vpop.permute.xlu1 %1115  ;;  %v1207_v20 = vpop.permute.xlu0 %1206  ;;  %v1536_v32 = vsel %vm1515_vm8, %v1503_v16, %v1114_v26  ;;  %3166 = vmatpush1.msra.mxu1 %v3063_v2  ;;  %v6021_v8 = vpack.i.bf16 %v8537_v49, %v8534_v14  ;;  %v8573_v2 = vsel %vm526_vm0, %v2109_v55, %v11370_v58 }
 0x1fc   : > { %v1569_v54 = vsel %vm1548_vm9, %v1536_v32, %v1207_v20  ;;  %3167 = vmatprep.subr.mxu1 %v11369_v36  ;;  %v1537_v50 = vsel %vm1515_vm8, %v1504_v62, %v1116_v11  ;;  %v6046_v44 = vpack.i.bf16 %v8573_v2, %v8448_v40 }
 0x1fd   : > { %1039 = vrot.lane.b32.xlu1 %v598_v13, %s7041_s27  ;;  %1133 = vrot.lane.b32.xlu0 %v7481_v56, %s7042_s12  ;;  %v3060_v13 = vld [vmem:[%s11178_s3 + $0x10] sm:$0xff]  ;;  %s7048_s27 = smov 112  }
 0x1fe   : > { %3168 = vmatpush1.msra.mxu1 %v3062_v41 }
 0x1ff   : > { %v1209_v29 = vpop.permute.xlu1 %1208  ;;  %v1300_v21 = vpop.permute.xlu0 %1299  ;;  %3169 = vmatprep.subr.mxu1 %v11369_v36 }
 0x200   : > { %v1602_v6 = vsel %vm1581_vm10, %v1569_v54, %v1300_v21  ;;  %v1570_v45 = vsel %vm1548_vm9, %v1537_v50, %v1209_v29  ;;  %3170 = vmatpush1.msra.mxu1 %v3061_v39  ;;  %v6041_v29 = vpack.i.bf16 %v8430_v42, %v8443_v4  ;;  %v6051_v39 = vpack.i.bf16 %v8448_v40, %v8522_v19 }
 0x201   : > { %1226 = vrot.lane.b32.xlu1 %v11369_v36, %s7043_s18  ;;  %5997 = vrot.lane.b32.xlu0 %v5996_v33, %s7044_s20 }
 0x202   : > { %5779 = vmatprep.mubr.msk.f32.mxu0 %vm1626_vm11, %v1602_v6  ;;  %3171 = vmatprep.subr.mxu1 %v11369_v36 }
 0x203   : > { %v1302_v63 = vpop.permute.xlu1 %1301  ;;  %v830_v5 = vpop.permute.xlu0 %829  ;;  %3172 = vmatpush1.msra.mxu1 %v3060_v13 }
 0x204   : > { %v1603_v34 = vsel %vm1581_vm10, %v1570_v45, %v1302_v63  ;;  %3173 = vmatprep.subr.mxu1 %v11369_v36  ;;  %v1439_v32 = vsel %vm1416_vm5, %v7858_v59, %v830_v5 }
 0x205   : > { %6002 = vrot.lane.b32.xlu1 %v6001_v38, %s7040_s22  ;;  %6007 = vrot.lane.b32.xlu0 %v6006_v53, %s7045_s19 }
 0x206   : > { %v5757_v17 = vpop.f32.mrf.mxu0  ;;  %5780 = vmatmul.mubr.msk.f32.gmra.mxu0 %vm1626_vm11, %v1603_v34  ;;  %3174 = vmatpush1.msra.mxu1 %v3059_v1 }
 0x207   : > { %v832_v7 = vpop.permute.xlu1 %831  ;;  %v926_v43 = vpop.permute.xlu0 %925  ;;  %v1819_v47 = vadd.f32 %v5757_v17, %v8412_v46  ;;  %3175 = vmatprep.subr.mxu1 %v11369_v36 }
 0x208   : > { %v1813_v18 = vpop.f32.mrf.mxu0  ;;  %3176 = vmatpush1.msra.mxu1 %v3058_v0  ;;  %v1472_v21 = vsel %vm1449_vm6, %v1439_v32, %v926_v43  ;;  %v1440_v42 = vsel %vm1416_vm5, %v7880_v51, %v832_v7 }
 0x209   : > { %v1814_v27 = vadd.f32 %v8412_v46, %v1813_v18  ;;  %6012 = vrot.lane.b32.xlu1 %v6011_v22, %s7046_s21  ;;  %6017 = vrot.lane.b32.xlu0 %v6016_v48, %s7047_s30  ;;  %v8559_v11 = vmax.f32 %v1819_v47, 0.0 }
 0x20a   : > { %3205 = vmatprep.subr.mxu1 %v11369_v36 }
 0x20b   : > { %v928_v26 = vpop.permute.xlu1 %927  ;;  %v1022_v23 = vpop.permute.xlu0 %1021  ;;  %v8552_v15 = vmax.f32 %v1814_v27, 0.0  ;;  %3206 = vmatpush2.msra.mxu1 %v3075_v10  ;;  %v2024_v16 = vrot.slane %v8559_v11, 7  ;;  %v2113_v13 = vrot.slane %v8559_v11, 1 }
 0x20c   : > { %3207 = vmatprep.subr.mxu1 %v11369_v36  ;;  %v1505_v41 = vsel %vm1482_vm7, %v1472_v21, %v1022_v23  ;;  %v1473_v50 = vsel %vm1449_vm6, %v1440_v42, %v928_v26 }
 0x20d   : > { %6027 = vrot.lane.b32.xlu0 %v6026_v25, %s7048_s27  ;;  %6022 = vrot.lane.b32.xlu1 %v6021_v8, %s7049_s24  ;;  %v2022_v30 = vrot.slane %v8552_v15, 7  ;;  %v6061_v34 = vpack.i.bf16 %v8559_v11, %v8552_v15  ;;  %v2112_v12 = vrot.slane %v8552_v15, 1  ;;  %v6076_v7 = vpack.i.bf16 %v8552_v15, %v8423_v9 }
 0x20e   : > { %3208 = vmatpush2.msra.mxu1 %v3074_v35  ;;  %v8633_v9 = vsel %vm526_vm0, %v2113_v13, %v11370_v58 }
 0x20f   : > { %v1024_v20 = vpop.permute.xlu1 %1023  ;;  %v1118_v52 = vpop.permute.xlu0 %1117  ;;  %5909 = vmatprep.subr.mxu1 %v11369_v36  ;;  %v8586_v55 = vsel %vm432_vm1, %v7481_v56, %v2022_v30  ;;  %v8589_v33 = vsel %vm432_vm1, %v2022_v30, %v2024_v16  ;;  %v8622_v22 = vsel %vm526_vm0, %v2112_v12, %v2113_v13 }
 0x210   : > { %v1538_v59 = vsel %vm1515_vm8, %v1505_v41, %v1118_v52  ;;  %v6056_v62 = vpack.i.bf16 %v8589_v33, %v8586_v55  ;;  %v1506_v63 = vsel %vm1482_vm7, %v1473_v50, %v1024_v20  ;;  %v6086_v26 = vpack.i.bf16 %v8622_v22, %v8573_v2 }
 0x211   : > { %6037 = vrot.lane.b32.xlu0 %v6026_v25, %s7046_s21  ;;  %6032 = vrot.lane.b32.xlu1 %v6021_v8, %s7045_s19  ;;  %v6081_v23 = vpack.i.bf16 %v8633_v9, %v8622_v22 }
 0x213   : > { %v1120_v61 = vpop.permute.xlu1 %1119  ;;  %v1211_v54 = vpop.permute.xlu0 %1210 }
 0x214   : > { %v1571_v4 = vsel %vm1548_vm9, %v1538_v59, %v1211_v54  ;;  %v1539_v51 = vsel %vm1515_vm8, %v1506_v63, %v1120_v61 }
 0x215   : > { %6047 = vrot.lane.b32.xlu0 %v6046_v44, %s7047_s30  ;;  %6042 = vrot.lane.b32.xlu1 %v6041_v29, %s7040_s22 }
 0x217   : > { %v1213_v3 = vpop.permute.xlu1 %1212  ;;  %v1304_v6 = vpop.permute.xlu0 %1303 }
 0x218   : > { %v1604_v45 = vsel %vm1581_vm10, %v1571_v4, %v1304_v6  ;;  %v1572_v5 = vsel %vm1548_vm9, %v1539_v51, %v1213_v3 }
 0x219   : > { %5782 = vmatprep.mubr.msk.f32.mxu0 %vm1626_vm11, %v1604_v45  ;;  %6057 = vrot.lane.b32.xlu0 %v6056_v62, %s7049_s24 }
 0x21a   : > { %6052 = vrot.lane.b32.xlu1 %v6051_v39, %s7044_s20 }
 0x21b   : > { %v1306_v38 = vpop.permute.xlu1 %1305  ;;  %v834_v53 = vpop.permute.xlu0 %833 }
 0x21c   : > { %v1605_v40 = vsel %vm1581_vm10, %v1572_v5, %v1306_v38  ;;  %v1441_v32 = vsel %vm1416_vm5, %v7883_v60, %v834_v53 }
 0x21d   : > { %5783 = vmatmul.mubr.msk.f32.gmra.mxu0 %vm1626_vm11, %v1605_v40  ;;  %6067 = vrot.lane.b32.xlu0 %v6056_v62, %s7045_s19 }
 0x21e   : > { %v5760_v28 = vpop.f32.mrf.mxu0  ;;  %6062 = vrot.lane.b32.xlu1 %v6061_v34, %s7048_s27 }
 0x21f   : > { %v1829_v19 = vadd.f32 %v5760_v28, %v8412_v46  ;;  %v836_v17 = vpop.permute.xlu1 %835  ;;  %v930_v48 = vpop.permute.xlu0 %929 }
 0x220   : > { %v1823_v43 = vpop.f32.mrf.mxu0  ;;  %v1474_v29 = vsel %vm1449_vm6, %v1441_v32, %v930_v48  ;;  %v1442_v60 = vsel %vm1416_vm5, %v7905_v24, %v836_v17 }
 0x221   : > { %v8624_v1 = vmax.f32 %v1829_v19, 0.0  ;;  %v1824_v18 = vadd.f32 %v8412_v46, %v1823_v43  ;;  %6077 = vrot.lane.b32.xlu0 %v6076_v7, %s7040_s22 }
 0x222   : > { %6072 = vrot.lane.b32.xlu1 %v6061_v34, %s7046_s21 }
 0x223   : > { %v1958_v27 = vmax.f32 %v1824_v18, 0.0  ;;  %v932_v0 = vpop.permute.xlu1 %931  ;;  %v1026_v47 = vpop.permute.xlu0 %1025  ;;  %v2028_v25 = vrot.slane %v8624_v1, 7  ;;  %v2117_v44 = vrot.slane %v8624_v1, 1 }
 0x224   : > { %v1507_v41 = vsel %vm1482_vm7, %v1474_v29, %v1026_v47  ;;  %v1475_v39 = vsel %vm1449_vm6, %v1442_v60, %v932_v0 }
 0x225   : > { %6087 = vrot.lane.b32.xlu0 %v6086_v26, %s7044_s20  ;;  %v2026_v8 = vrot.slane %v1958_v27, 7  ;;  %v6096_v20 = vpack.i.bf16 %v8624_v1, %v1958_v27  ;;  %v2116_v16 = vrot.slane %v1958_v27, 1  ;;  %v8665_v42 = vsel %vm526_vm0, %v2117_v44, %v11370_v58 }
 0x226   : > { %6082 = vrot.lane.b32.xlu1 %v6081_v23, %s7047_s30  ;;  %v6111_v45 = vpack.i.bf16 %v1958_v27, %v8559_v11 }
 0x227   : > { %v1028_v15 = vpop.permute.xlu1 %1027  ;;  %v1122_v10 = vpop.permute.xlu0 %1121  ;;  %v8643_v52 = vsel %vm432_vm1, %v7481_v56, %v2026_v8  ;;  %v8646_v35 = vsel %vm432_vm1, %v2026_v8, %v2028_v25  ;;  %v8657_v21 = vsel %vm526_vm0, %v2116_v16, %v2117_v44 }
 0x228   : > { %v6091_v30 = vpack.i.bf16 %v8646_v35, %v8643_v52  ;;  %v1540_v59 = vsel %vm1515_vm8, %v1507_v41, %v1122_v10  ;;  %v6116_v62 = vpack.i.bf16 %v8665_v42, %v8657_v21  ;;  %v1508_v63 = vsel %vm1482_vm7, %v1475_v39, %v1028_v15 }
 0x229   : > { %6097 = vrot.lane.b32.xlu0 %v6096_v20, %s7048_s27  ;;  %v6121_v40 = vpack.i.bf16 %v8657_v21, %v8633_v9 }
 0x22a   : > { %6092 = vrot.lane.b32.xlu1 %v6091_v30, %s7049_s24 }
 0x22b   : > { %v1124_v61 = vpop.permute.xlu1 %1123  ;;  %v1215_v54 = vpop.permute.xlu0 %1214 }
 0x22c   : > { %v1573_v4 = vsel %vm1548_vm9, %v1540_v59, %v1215_v54  ;;  %v1541_v24 = vsel %vm1515_vm8, %v1508_v63, %v1124_v61 }
 0x22d   : > { %6107 = vrot.lane.b32.xlu0 %v6096_v20, %s7046_s21 }
 0x22e   : > { %6102 = vrot.lane.b32.xlu1 %v6091_v30, %s7045_s19 }
 0x22f   : > { %v1217_v3 = vpop.permute.xlu1 %1216  ;;  %v1308_v6 = vpop.permute.xlu0 %1307 }
 0x230   : > { %v1606_v50 = vsel %vm1581_vm10, %v1573_v4, %v1308_v6  ;;  %v1574_v51 = vsel %vm1548_vm9, %v1541_v24, %v1217_v3 }
 0x231   : > { %5785 = vmatprep.mubr.msk.f32.mxu0 %vm1626_vm11, %v1606_v50  ;;  %6117 = vrot.lane.b32.xlu0 %v6116_v62, %s7047_s30 }
 0x232   : > { %6112 = vrot.lane.b32.xlu1 %v6111_v45, %s7040_s22 }
 0x233   : > { %v1310_v5 = vpop.permute.xlu1 %1309  ;;  %v838_v38 = vpop.permute.xlu0 %837 }
 0x234   : > { %v1607_v53 = vsel %vm1581_vm10, %v1574_v51, %v1310_v5  ;;  %v1443_v30 = vsel %vm1416_vm5, %v7908_v31, %v838_v38  ;;  %v11371_v31 = vld [vmem:[#allocation44_spill] sm:$0xff] }
 0x235   : > { %5786 = vmatmul.mubr.msk.f32.gmra.mxu0 %vm1626_vm11, %v1607_v53 }
 0x236   : > { %v5763_v11 = vpop.f32.mrf.mxu0  ;;  %6122 = vrot.lane.b32.xlu1 %v6121_v40, %s7044_s20 }
 0x237   : > { %v1839_v34 = vadd.f32 %v5763_v11, %v8412_v46  ;;  %v840_v12 = vpop.permute.xlu1 %839  ;;  %v934_v13 = vpop.permute.xlu0 %933 }
 0x238   : > { %v1833_v28 = vpop.f32.mrf.mxu0  ;;  %v1476_v32 = vsel %vm1449_vm6, %v1443_v30, %v934_v13  ;;  %v1444_v59 = vsel %vm1416_vm5, %v11371_v31, %v840_v12 }
 0x239   : > { %v8687_v19 = vmax.f32 %v1839_v34, 0.0  ;;  %v1834_v17 = vadd.f32 %v8412_v46, %v1833_v28 }
 0x23b   : > { %v1960_v48 = vmax.f32 %v1834_v17, 0.0  ;;  %v936_v7 = vpop.permute.xlu1 %935  ;;  %v1030_v43 = vpop.permute.xlu0 %1029  ;;  %v2032_v18 = vrot.slane %v8687_v19, 7  ;;  %v2121_v15 = vrot.slane %v8687_v19, 1 }
 0x23c   : > { %v1509_v54 = vsel %vm1482_vm7, %v1476_v32, %v1030_v43  ;;  %v1477_v6 = vsel %vm1449_vm6, %v1444_v59, %v936_v7 }
 0x23d   : > { %v2030_v27 = vrot.slane %v1960_v48, 7  ;;  %v6131_v0 = vpack.i.bf16 %v8687_v19, %v1960_v48  ;;  %v2120_v47 = vrot.slane %v1960_v48, 1  ;;  %v8713_v61 = vsel %vm526_vm0, %v2121_v15, %v11370_v58 }
 0x23e   : > { %v6146_v39 = vpack.i.bf16 %v1960_v48, %v8624_v1 }
 0x23f   : > { %6132 = vrot.lane.b32.xlu1 %v6131_v0, %s7048_s27  ;;  %v1032_v26 = vpop.permute.xlu1 %1031  ;;  %v1126_v23 = vpop.permute.xlu0 %1125  ;;  %v8695_v25 = vsel %vm432_vm1, %v7481_v56, %v2030_v27  ;;  %v8698_v8 = vsel %vm432_vm1, %v2030_v27, %v2032_v18  ;;  %v8705_v20 = vsel %vm526_vm0, %v2120_v47, %v2121_v15 }
 0x240   : > { %v6126_v10 = vpack.i.bf16 %v8698_v8, %v8695_v25  ;;  %v6151_v29 = vpack.i.bf16 %v8713_v61, %v8705_v20  ;;  %v1542_v41 = vsel %vm1515_vm8, %v1509_v54, %v1126_v23  ;;  %v1510_v50 = vsel %vm1482_vm7, %v1477_v6, %v1032_v26 }
 0x241   : > { %v6156_v38 = vpack.i.bf16 %v8705_v20, %v8665_v42 }
 0x242   : > { %6127 = vrot.lane.b32.xlu0 %v6126_v10, %s7049_s24 }
 0x243   : > { %6142 = vrot.lane.b32.xlu1 %v6131_v0, %s7046_s21  ;;  %v1128_v16 = vpop.permute.xlu1 %1127  ;;  %v1219_v44 = vpop.permute.xlu0 %1218 }
 0x244   : > { %v1575_v60 = vsel %vm1548_vm9, %v1542_v41, %v1219_v44  ;;  %v1543_v45 = vsel %vm1515_vm8, %v1510_v50, %v1128_v16  ;;  %v11372_v16 = vld [vmem:[#allocation45_spill] sm:$0xff] }
 0x246   : > { %6137 = vrot.lane.b32.xlu0 %v6126_v10, %s7045_s19 }
 0x247   : > { %6152 = vrot.lane.b32.xlu1 %v6151_v29, %s7047_s30  ;;  %v1221_v4 = vpop.permute.xlu1 %1220  ;;  %v1312_v3 = vpop.permute.xlu0 %1311 }
 0x248   : > { %v1608_v62 = vsel %vm1581_vm10, %v1575_v60, %v1312_v3  ;;  %v1576_v63 = vsel %vm1548_vm9, %v1543_v45, %v1221_v4  ;;  %v11373_v4 = vld [vmem:[#allocation33_spill] sm:$0xff] }
 0x249   : > { %5788 = vmatprep.mubr.msk.f32.mxu0 %vm1626_vm11, %v1608_v62 }
 0x24a   : > { %6147 = vrot.lane.b32.xlu0 %v6146_v39, %s7040_s22 }
 0x24b   : > { %v1314_v24 = vpop.permute.xlu1 %1313  ;;  %v842_v51 = vpop.permute.xlu0 %841 }
 0x24c   : > { %v1609_v5 = vsel %vm1581_vm10, %v1576_v63, %v1314_v24  ;;  %v1445_v44 = vsel %vm1416_vm5, %v11372_v16, %v842_v51 }
 0x24d   : > { %5789 = vmatmul.mubr.msk.f32.gmra.mxu0 %vm1626_vm11, %v1609_v5 }
 0x24e   : > { %v5766_v1 = vpop.f32.mrf.mxu0  ;;  %6157 = vrot.lane.b32.xlu0 %v6156_v38, %s7044_s20 }
 0x24f   : > { %v1849_v53 = vadd.f32 %v5766_v1, %v8412_v46  ;;  %v844_v40 = vpop.permute.xlu1 %843  ;;  %v938_v11 = vpop.permute.xlu0 %937 }
 0x250   : > { %v1843_v34 = vpop.f32.mrf.mxu0  ;;  %v1478_v29 = vsel %vm1449_vm6, %v1445_v44, %v938_v11  ;;  %v1446_v3 = vsel %vm1416_vm5, %v11373_v4, %v844_v40 }
 0x251   : > { %v8738_v12 = vmax.f32 %v1849_v53, 0.0  ;;  %v1844_v13 = vadd.f32 %v8412_v46, %v1843_v34 }
 0x253   : > { %v1962_v28 = vmax.f32 %v1844_v13, 0.0  ;;  %v940_v17 = vpop.permute.xlu1 %939  ;;  %v1034_v48 = vpop.permute.xlu0 %1033  ;;  %v2036_v7 = vrot.slane %v8738_v12, 7  ;;  %v2125_v15 = vrot.slane %v8738_v12, 1 }
 0x254   : > { %v1511_v31 = vsel %vm1482_vm7, %v1478_v29, %v1034_v48  ;;  %v1479_v50 = vsel %vm1449_vm6, %v1446_v3, %v940_v17 }
 0x255   : > { %v2034_v43 = vrot.slane %v1962_v28, 7  ;;  %v6166_v18 = vpack.i.bf16 %v8738_v12, %v1962_v28  ;;  %v2124_v27 = vrot.slane %v1962_v28, 1  ;;  %v8764_v41 = vsel %vm526_vm0, %v2125_v15, %v11370_v58 }
 0x256   : > { %v6181_v63 = vpack.i.bf16 %v1962_v28, %v8687_v19 }
 0x257   : > { %6167 = vrot.lane.b32.xlu0 %v6166_v18, %s7048_s27  ;;  %v1036_v0 = vpop.permute.xlu1 %1035  ;;  %v1130_v47 = vpop.permute.xlu0 %1129  ;;  %v8746_v26 = vsel %vm432_vm1, %v7481_v56, %v2034_v43  ;;  %v8749_v23 = vsel %vm432_vm1, %v2034_v43, %v2036_v7  ;;  %v8756_v30 = vsel %vm526_vm0, %v2124_v27, %v2125_v15  ;;  %v11374_v15 = vld [vmem:[#allocation2_spill] sm:$0xff] }
 0x258   : > { %v6161_v10 = vpack.i.bf16 %v8749_v23, %v8746_v26  ;;  %v6186_v59 = vpack.i.bf16 %v8764_v41, %v8756_v30  ;;  %v1544_v60 = vsel %vm1515_vm8, %v1511_v31, %v1130_v47  ;;  %v1512_v24 = vsel %vm1482_vm7, %v1479_v50, %v1036_v0 }
 0x259   : > { %v6191_v40 = vpack.i.bf16 %v8756_v30, %v8713_v61 }
 0x25a   : > { %6162 = vrot.lane.b32.xlu1 %v6161_v10, %s7049_s24 }
 0x25b   : > { %6177 = vrot.lane.b32.xlu0 %v6166_v18, %s7046_s21  ;;  %v1132_v32 = vpop.permute.xlu1 %1131  ;;  %v1223_v54 = vpop.permute.xlu0 %1222 }
 0x25c   : > { %v1577_v6 = vsel %vm1548_vm9, %v1544_v60, %v1223_v54  ;;  %v1545_v51 = vsel %vm1515_vm8, %v1512_v24, %v1132_v32  ;;  %v11375_v60 = vld [vmem:[#allocation46_spill] sm:$0xff] }
 0x25e   : > { %6172 = vrot.lane.b32.xlu1 %v6161_v10, %s7045_s19 }
 0x25f   : > { %6187 = vrot.lane.b32.xlu0 %v6186_v59, %s7047_s30  ;;  %v1225_v62 = vpop.permute.xlu1 %1224  ;;  %v1316_v39 = vpop.permute.xlu0 %1315 }
 0x260   : > { %v1610_v45 = vsel %vm1581_vm10, %v1577_v6, %v1316_v39  ;;  %v1578_v5 = vsel %vm1548_vm9, %v1545_v51, %v1225_v62 }
 0x261   : > { %5791 = vmatprep.mubr.msk.f32.mxu0 %vm1626_vm11, %v1610_v45 }
 0x262   : > { %6182 = vrot.lane.b32.xlu1 %v6181_v63, %s7040_s22 }
 0x263   : > { %v1318_v38 = vpop.permute.xlu1 %1317  ;;  %v846_v1 = vpop.permute.xlu0 %845 }
 0x264   : > { %v1611_v53 = vsel %vm1581_vm10, %v1578_v5, %v1318_v38  ;;  %v1447_v4 = vsel %vm1416_vm5, %v11375_v60, %v846_v1 }
 0x265   : > { %5792 = vmatmul.mubr.msk.f32.gmra.mxu0 %vm1626_vm11, %v1611_v53 }
 0x266   : > { %v5769_v19 = vpop.f32.mrf.mxu0  ;;  %6192 = vrot.lane.b32.xlu1 %v6191_v40, %s7044_s20 }
 0x267   : > { %v1859_v11 = vadd.f32 %v5769_v19, %v8412_v46  ;;  %v848_v34 = vpop.permute.xlu1 %847  ;;  %v942_v13 = vpop.permute.xlu0 %941 }
 0x268   : > { %v1853_v28 = vpop.f32.mrf.mxu0  ;;  %v1448_v10 = vsel %vm1416_vm5, %v11374_v15, %v848_v34  ;;  %v1480_v62 = vsel %vm1449_vm6, %v1447_v4, %v942_v13 }
 0x269   : > { %v8789_v17 = vmax.f32 %v1859_v11, 0.0  ;;  %v1854_v48 = vadd.f32 %v8412_v46, %v1853_v28 }
 0x26b   : > { %v1964_v7 = vmax.f32 %v1854_v48, 0.0  ;;  %v944_v43 = vpop.permute.xlu1 %943  ;;  %v1038_v18 = vpop.permute.xlu0 %1037  ;;  %v2040_v27 = vrot.slane %v8789_v17, 7  ;;  %v2129_v44 = vrot.slane %v8789_v17, 1 }
 0x26c   : > { %v1481_v32 = vsel %vm1449_vm6, %v1448_v10, %v944_v43  ;;  %v1513_v39 = vsel %vm1482_vm7, %v1480_v62, %v1038_v18 }
 0x26d   : > { %v2038_v0 = vrot.slane %v1964_v7, 7  ;;  %v6201_v47 = vpack.i.bf16 %v8789_v17, %v1964_v7  ;;  %v2128_v16 = vrot.slane %v1964_v7, 1  ;;  %v8824_v5 = vsel %vm526_vm0, %v2129_v44, %v11370_v58 }
 0x26e   : > { %v6216_v48 = vpack.i.bf16 %v1964_v7, %v8738_v12 }
 0x26f   : > { %6202 = vrot.lane.b32.xlu1 %v6201_v47, %s7048_s27  ;;  %v1040_v54 = vpop.permute.xlu1 %1039  ;;  %v1134_v29 = vpop.permute.xlu0 %1133  ;;  %v8801_v31 = vsel %vm432_vm1, %v7481_v56, %v2038_v0  ;;  %v8804_v59 = vsel %vm432_vm1, %v2038_v0, %v2040_v27  ;;  %v8815_v50 = vsel %vm526_vm0, %v2128_v16, %v2129_v44 }
 0x270   : > { %v1514_v3 = vsel %vm1482_vm7, %v1481_v32, %v1040_v54  ;;  %v6196_v6 = vpack.i.bf16 %v8804_v59, %v8801_v31  ;;  %v1546_v45 = vsel %vm1515_vm8, %v1513_v39, %v1134_v29  ;;  %v6221_v40 = vpack.i.bf16 %v8824_v5, %v8815_v50 }
 0x271   : > { %v1547_v63 = vsel %vm1515_vm8, %v1514_v3, %v1134_v29  ;;  %v6226_v12 = vpack.i.bf16 %v8815_v50, %v8764_v41 }
 0x272   : > { %6197 = vrot.lane.b32.xlu0 %v6196_v6, %s7049_s24 }
 0x273   : > { %6212 = vrot.lane.b32.xlu1 %v6201_v47, %s7046_s21  ;;  %v1227_v24 = vpop.permute.xlu1 %1226  ;;  %v8820_v51 = vpop.permute.xlu0 %5997 }
 0x274   : > { %v1579_v38 = vsel %vm1548_vm9, %v1546_v45, %v1227_v24  ;;  %v1580_v1 = vsel %vm1548_vm9, %v1547_v63, %v1227_v24  ;;  %v5999_v53 = vunpack.i.l.bf16 %v8820_v51 }
 0x276   : > { %6207 = vrot.lane.b32.xlu0 %v6196_v6, %s7045_s19  ;;  %v1612_v19 = vsel %vm1581_vm10, %v1579_v38, %v5999_v53  ;;  %v1613_v11 = vsel %vm1581_vm10, %v1580_v1, %v5999_v53 }
 0x277   : > { %6222 = vrot.lane.b32.xlu1 %v6221_v40, %s7047_s30  ;;  %v6003_v34 = vpop.permute.xlu1 %6002  ;;  %v6008_v13 = vpop.permute.xlu0 %6007  ;;  %5794 = vmatprep.mubr.msk.f32.mxu0 %vm1626_vm11, %v1612_v19 }
 0x278   : > { %v6004_v28 = vunpack.i.l.bf16 %v6003_v34  ;;  %5795 = vmatmul.mubr.msk.f32.gmra.mxu0 %vm1626_vm11, %v1613_v11  ;;  %v6009_v18 = vunpack.i.l.bf16 %v6008_v13  ;;  %v6010_v27 = vunpack.i.h.bf16 %v6008_v13 }
 0x27a   : > { %v2831_v43 = vsel %vm1449_vm6, %v7481_v56, %v6004_v28  ;;  %6217 = vrot.lane.b32.xlu0 %v6216_v48, %s7040_s22 }
 0x27b   : > { %v2862_v0 = vsel %vm1581_vm10, %v2831_v43, %v5999_v53  ;;  %v6013_v47 = vpop.permute.xlu1 %6012  ;;  %v6018_v15 = vpop.permute.xlu0 %6017 }
 0x27c   : > { %v2894_v10 = vsel %vm2893_vm12, %v2862_v0, %v6009_v18  ;;  %v6015_v16 = vunpack.i.h.bf16 %v6013_v47  ;;  %v6014_v44 = vunpack.i.l.bf16 %v6013_v47  ;;  %v2895_v7 = vsel %vm2893_vm12, %v2862_v0, %v6010_v27 }
 0x27d   : > { %v6019_v32 = vunpack.i.l.bf16 %v6018_v15  ;;  %v6020_v60 = vunpack.i.h.bf16 %v6018_v15  ;;  %v6005_v18 = vunpack.i.h.bf16 %v6003_v34 }
 0x27e   : > { %v2927_v54 = vsel %vm2926_vm13, %v2894_v10, %v6014_v44  ;;  %v5772_v29 = vpop.f32.mrf.mxu0  ;;  %6227 = vrot.lane.b32.xlu0 %v6226_v12, %s7044_s20  ;;  %v2928_v62 = vsel %vm2926_vm13, %v2895_v7, %v6015_v16 }
 0x27f   : > { %v1869_v4 = vadd.f32 %v5772_v29, %v8412_v46  ;;  %v6028_v3 = vpop.permute.xlu0 %6027  ;;  %v6023_v6 = vpop.permute.xlu1 %6022  ;;  %v2960_v53 = vsel %vm2959_vm14, %v2927_v54, %v6019_v32  ;;  %v2961_v43 = vsel %vm2959_vm14, %v2928_v62, %v6020_v60  ;;  %v6000_v29 = vunpack.i.h.bf16 %v8820_v51 }
 0x280   : > { %v1863_v39 = vpop.f32.mrf.mxu0  ;;  %v6029_v45 = vunpack.i.l.bf16 %v6028_v3  ;;  %v6025_v63 = vunpack.i.h.bf16 %v6023_v6  ;;  %v6024_v24 = vunpack.i.l.bf16 %v6023_v6  ;;  %v6030_v11 = vunpack.i.h.bf16 %v6028_v3 }
 0x281   : > { %v8850_v38 = vmax.f32 %v1869_v4, 0.0  ;;  %v1864_v1 = vadd.f32 %v8412_v46, %v1863_v39 }
 0x282   : > { %v2993_v40 = vsel %vm2992_vm15, %v2960_v53, %v6024_v24  ;;  %v2994_v27 = vsel %vm2992_vm15, %v2961_v43, %v6025_v63 }
 0x283   : > { %v1966_v19 = vmax.f32 %v1864_v1, 0.0  ;;  %v6038_v13 = vpop.permute.xlu0 %6037  ;;  %v6033_v28 = vpop.permute.xlu1 %6032  ;;  %v3026_v48 = vsel %vm3025_vm2, %v2993_v40, %v6029_v45  ;;  %v2044_v0 = vrot.slane %v8850_v38, 7  ;;  %v3027_v12 = vsel %vm3025_vm2, %v2994_v27, %v6030_v11 }
 0x284   : > { %3210 = vmatmul.mubr.f32.vlgmr.msra.gmra.mxu1 %v3026_v48  ;;  %v2133_v32 = vrot.slane %v8850_v38, 1  ;;  %v6034_v54 = vunpack.i.l.bf16 %v6033_v28  ;;  %v6039_v62 = vunpack.i.l.bf16 %v6038_v13  ;;  %v6035_v1 = vunpack.i.h.bf16 %v6033_v28 }
 0x285   : > { %v2042_v47 = vrot.slane %v1966_v19, 7  ;;  %5494 = vmatprep.mubr.msk.f32.mxu1 %vm1449_vm6, %v8573_v2  ;;  %v6236_v15 = vpack.i.bf16 %v8850_v38, %v1966_v19  ;;  %v2132_v10 = vrot.slane %v1966_v19, 1  ;;  %v2832_v2 = vsel %vm1449_vm6, %v8491_v57, %v6005_v18 }
 0x286   : > { %v2863_v6 = vsel %vm1581_vm10, %v2832_v2, %v6000_v29  ;;  %v8891_v45 = vsel %vm526_vm0, %v2133_v32, %v11370_v58  ;;  %v6040_v11 = vunpack.i.h.bf16 %v6038_v13  ;;  %v6251_v28 = vpack.i.bf16 %v1966_v19, %v8789_v17 }
 0x287   : > { %6237 = vrot.lane.b32.xlu0 %v6236_v15, %s7048_s27  ;;  %v6048_v16 = vpop.permute.xlu0 %6047  ;;  %v8863_v44 = vpop.permute.xlu1 %6042  ;;  %v8868_v34 = vsel %vm432_vm1, %v7481_v56, %v2042_v47  ;;  %v8871_v7 = vsel %vm432_vm1, %v2042_v47, %v2044_v0  ;;  %v8883_v3 = vsel %vm526_vm0, %v2132_v10, %v2133_v32  ;;  %v2896_v51 = vsel %vm2893_vm12, %v2863_v6, %v6034_v54 }
 0x288   : > { %3215 = vmatmul.mubr.f32.gmra.mxu1 %v3027_v12  ;;  %v6231_v60 = vpack.i.bf16 %v8871_v7, %v8868_v34  ;;  %v6044_v4 = vunpack.i.l.bf16 %v8863_v44  ;;  %v6256_v24 = vpack.i.bf16 %v8891_v45, %v8883_v3  ;;  %v6050_v18 = vunpack.i.h.bf16 %v6048_v16 }
 0x289   : > { %5495 = vmatprep.mubr.msk.f32.mxu1 %vm1449_vm6, %v8622_v22  ;;  %v6049_v22 = vunpack.i.l.bf16 %v6048_v16  ;;  %v2929_v47 = vsel %vm2926_vm13, %v2896_v51, %v6039_v62  ;;  %v6045_v29 = vunpack.i.h.bf16 %v8863_v44 }
 0x28a   : > { %6232 = vrot.lane.b32.xlu1 %v6231_v60, %s7049_s24  ;;  %v2833_v53 = vsel %vm1449_vm6, %v8494_v37, %v6044_v4  ;;  %v6261_v4 = vpack.i.bf16 %v8883_v3, %v8824_v5 }
 0x28b   : > { %6247 = vrot.lane.b32.xlu0 %v6236_v15, %s7046_s21  ;;  %v6058_v57 = vpop.permute.xlu0 %6057  ;;  %v2962_v37 = vsel %vm2959_vm14, %v2929_v47, %v6049_v22 }
 0x28c   : > { %v6053_v39 = vpop.permute.xlu1 %6052  ;;  %v6059_v40 = vunpack.i.l.bf16 %v6058_v57  ;;  %v6060_v10 = vunpack.i.h.bf16 %v6058_v57 }
 0x28d   : > { %v6054_v63 = vunpack.i.l.bf16 %v6053_v39  ;;  %v6055_v6 = vunpack.i.h.bf16 %v6053_v39 }
 0x28e   : > { %6242 = vrot.lane.b32.xlu1 %v6231_v60, %s7045_s19  ;;  %v2995_v12 = vsel %vm2992_vm15, %v2962_v37, %v6059_v40 }
 0x28f   : > { %v2864_v48 = vsel %vm1581_vm10, %v2833_v53, %v6054_v63  ;;  %6257 = vrot.lane.b32.xlu0 %v6256_v24, %s7047_s30  ;;  %v6068_v43 = vpop.permute.xlu0 %6067  ;;  %v2834_v63 = vsel %vm1449_vm6, %v8534_v14, %v6045_v29 }
 0x290   : > { %v2897_v27 = vsel %vm2893_vm12, %v2864_v48, %v6035_v1  ;;  %v6063_v0 = vpop.permute.xlu1 %6062  ;;  %v6069_v62 = vunpack.i.l.bf16 %v6068_v43  ;;  %v6070_v39 = vunpack.i.h.bf16 %v6068_v43  ;;  %v2865_v14 = vsel %vm1581_vm10, %v2834_v63, %v6055_v6 }
 0x291   : > { %v6064_v15 = vunpack.i.l.bf16 %v6063_v0  ;;  %v2930_v13 = vsel %vm2926_vm13, %v2897_v27, %v6040_v11  ;;  %v6065_v32 = vunpack.i.h.bf16 %v6063_v0  ;;  %v8933_v11 = vld [vmem:[%s11177_s2] ss:$0 sm:$0xff] }
 0x292   : > { %v2963_v2 = vsel %vm2959_vm14, %v2930_v13, %v6050_v18  ;;  %6252 = vrot.lane.b32.xlu1 %v6251_v28, %s7040_s22 }
 0x293   : > { %v8908_v16 = vpop.permute.xlu0 %6077  ;;  %v3028_v54 = vsel %vm3025_vm2, %v2995_v12, %v6064_v15  ;;  %v2996_v17 = vsel %vm2992_vm15, %v2963_v2, %v6060_v10 }
 0x294   : > { %v6073_v60 = vpop.permute.xlu1 %6072  ;;  %3220 = vmatmul.mubr.f32.gmra.mxu1 %v3028_v54  ;;  %v6079_v19 = vunpack.i.l.bf16 %v8908_v16  ;;  %v3029_v22 = vsel %vm3025_vm2, %v2996_v17, %v6065_v32 }
 0x295   : > { %5496 = vmatprep.mubr.msk.f32.mxu1 %vm1449_vm6, %v8633_v9  ;;  %v6074_v24 = vunpack.i.l.bf16 %v6073_v60  ;;  %v6075_v18 = vunpack.i.h.bf16 %v6073_v60 }
 0x296   : > { %v5775_v57 = vpop.f32.mrf.mxu0  ;;  %6262 = vrot.lane.b32.xlu1 %v6261_v4, %s7044_s20  ;;  %v2835_v40 = vsel %vm1449_vm6, %v8537_v49, %v6079_v19  ;;  %v2898_v49 = vsel %vm2893_vm12, %v2865_v14, %v6069_v62 }
 0x297   : > { %v1879_v51 = vadd.f32 %v5775_v57, %v8412_v46  ;;  %v8920_v44 = vpop.permute.xlu0 %6087  ;;  %v2931_v28 = vsel %vm2926_vm13, %v2898_v49, %v6074_v24  ;;  %v6080_v49 = vunpack.i.h.bf16 %v8908_v16 }
 0x298   : > { %v1873_v1 = vpop.f32.mrf.mxu0  ;;  %v6089_v9 = vunpack.i.l.bf16 %v8920_v44  ;;  %v6083_v53 = vpop.permute.xlu1 %6082  ;;  %3225 = vmatmul.mubr.f32.gmra.mxu1 %v3029_v22 }
 0x299   : > { %v8928_v46 = vmax.f32 %v1879_v51, 0.0  ;;  %v1874_v48 = vadd.f32 %v8933_v11, %v1873_v1  ;;  %5497 = vmatprep.mubr.msk.f32.mxu1 %vm1449_vm6, %v8657_v21  ;;  %v6084_v27 = vunpack.i.l.bf16 %v6083_v53  ;;  %v6085_v37 = vunpack.i.h.bf16 %v6083_v53 }
 0x29a   : > { %v2866_v43 = vsel %vm1581_vm10, %v2835_v40, %v6089_v9 }
 0x29b   : > { %v1968_v0 = vmax.f32 %v1874_v48, 0.0  ;;  %v2899_v47 = vsel %vm2893_vm12, %v2866_v43, %v6070_v39  ;;  %v6098_v15 = vpop.permute.xlu0 %6097  ;;  %v2048_v21 = vrot.slane %v8928_v46, 7  ;;  %v2964_v60 = vsel %vm2959_vm14, %v2931_v28, %v6084_v27 }
 0x29c   : > { %v6099_v13 = vunpack.i.l.bf16 %v6098_v15  ;;  %v6093_v10 = vpop.permute.xlu1 %6092  ;;  %v2932_v12 = vsel %vm2926_vm13, %v2899_v47, %v6075_v18  ;;  %v6100_v62 = vunpack.i.h.bf16 %v6098_v15  ;;  %v2137_v24 = vrot.slane %v8928_v46, 1 }
 0x29d   : > { %v2046_v2 = vrot.slane %v1968_v0, 7  ;;  %v6095_v32 = vunpack.i.h.bf16 %v6093_v10  ;;  %v6094_v54 = vunpack.i.l.bf16 %v6093_v10  ;;  %v6271_v29 = vpack.i.bf16 %v8928_v46, %v1968_v0 }
 0x29e   : > { %v2965_v17 = vsel %vm2959_vm14, %v2932_v12, %v6085_v37  ;;  %v2136_v19 = vrot.slane %v1968_v0, 1  ;;  %v8974_v40 = vsel %vm526_vm0, %v2137_v24, %v11370_v58  ;;  %v6286_v14 = vpack.i.bf16 %v1968_v0, %v8850_v38 }
 0x29f   : > { %v2997_v4 = vsel %vm2992_vm15, %v2964_v60, %v6094_v54  ;;  %v8951_v6 = vsel %vm432_vm1, %v7481_v56, %v2046_v2  ;;  %v8954_v57 = vsel %vm432_vm1, %v2046_v2, %v2048_v21  ;;  %6272 = vrot.lane.b32.xlu1 %v6271_v29, %s7048_s27  ;;  %v2998_v1 = vsel %vm2992_vm15, %v2965_v17, %v6095_v32  ;;  %v6108_v18 = vpop.permute.xlu0 %6107 }
 0x2a0   : > { %v6103_v51 = vpop.permute.xlu1 %6102  ;;  %v3030_v22 = vsel %vm3025_vm2, %v2997_v4, %v6099_v13  ;;  %v6266_v63 = vpack.i.bf16 %v8954_v57, %v8951_v6  ;;  %v8966_v9 = vsel %vm526_vm0, %v2136_v19, %v2137_v24  ;;  %v3031_v39 = vsel %vm3025_vm2, %v2998_v1, %v6100_v62 }
 0x2a1   : > { %3230 = vmatmul.mubr.f32.gmra.mxu1 %v3030_v22  ;;  %v6296_v47 = vpack.i.bf16 %v8966_v9, %v8891_v45  ;;  %v6104_v15 = vunpack.i.l.bf16 %v6103_v51  ;;  %v2836_v37 = vsel %vm1449_vm6, %v8586_v55, %v6080_v49  ;;  %v6105_v13 = vunpack.i.h.bf16 %v6103_v51 }
 0x2a2   : > { %6267 = vrot.lane.b32.xlu0 %v6266_v63, %s7049_s24  ;;  %5498 = vmatprep.mubr.msk.f32.mxu1 %vm1449_vm6, %v8665_v42  ;;  %v6291_v42 = vpack.i.bf16 %v8974_v40, %v8966_v9  ;;  %v6109_v12 = vunpack.i.l.bf16 %v6108_v18 }
 0x2a3   : > { %6282 = vrot.lane.b32.xlu1 %v6271_v29, %s7046_s21  ;;  %v6118_v10 = vpop.permute.xlu0 %6117  ;;  %v6110_v29 = vunpack.i.h.bf16 %v6108_v18 }
 0x2a4   : > { %v8969_v53 = vpop.permute.xlu1 %6112  ;;  %v6119_v60 = vunpack.i.l.bf16 %v6118_v10  ;;  %v6120_v1 = vunpack.i.h.bf16 %v6118_v10 }
 0x2a5   : > { %3235 = vmatmul.mubr.f32.gmra.mxu1 %v3031_v39  ;;  %v6114_v43 = vunpack.i.l.bf16 %v8969_v53 }
 0x2a6   : > { %6277 = vrot.lane.b32.xlu0 %v6266_v63, %s7045_s19  ;;  %5499 = vmatprep.mubr.msk.f32.mxu1 %vm1449_vm6, %v8705_v20  ;;  %v6090_v20 = vunpack.i.h.bf16 %v8920_v44 }
 0x2a7   : > { %6292 = vrot.lane.b32.xlu1 %v6291_v42, %s7047_s30  ;;  %v2837_v28 = vsel %vm1449_vm6, %v8589_v33, %v6114_v43 }
 0x2a8   : > { %v8982_v48 = vpop.permute.xlu1 %6122  ;;  %v2867_v44 = vsel %vm1581_vm10, %v2836_v37, %v6090_v20 }
 0x2a9   : > { %v6124_v27 = vunpack.i.l.bf16 %v8982_v48  ;;  %v2900_v2 = vsel %vm2893_vm12, %v2867_v44, %v6104_v15 }
 0x2aa   : > { %6287 = vrot.lane.b32.xlu0 %v6286_v14, %s7040_s22  ;;  %v2933_v4 = vsel %vm2926_vm13, %v2900_v2, %v6109_v12 }
 0x2ab   : > { %v2868_v38 = vsel %vm1581_vm10, %v2837_v28, %v6124_v27  ;;  %v2966_v14 = vsel %vm2959_vm14, %v2933_v4, %v6119_v60 }
 0x2ac   : > { %v2901_v33 = vsel %vm2893_vm12, %v2868_v38, %v6105_v13 }
 0x2ad   : > { %v2934_v62 = vsel %vm2926_vm13, %v2901_v33, %v6110_v29 }
 0x2ae   : > { %v5778_v0 = vpop.f32.mrf.mxu0  ;;  %6297 = vrot.lane.b32.xlu0 %v6296_v47, %s7044_s20  ;;  %v2967_v28 = vsel %vm2959_vm14, %v2934_v62, %v6120_v1 }
 0x2af   : > { %v1889_v16 = vadd.f32 %v8933_v11, %v5778_v0 }
 0x2b0   : > { %v1883_v21 = vpop.f32.mrf.mxu0 }
 0x2b1   : > { %v9002_v32 = vmax.f32 %v1889_v16, 0.0  ;;  %v1884_v54 = vadd.f32 %v8933_v11, %v1883_v21  ;;  %v6133_v55 = vpop.permute.xlu1 %6132 }
 0x2b2   : > { %v6134_v39 = vunpack.i.l.bf16 %v6133_v55  ;;  %v6135_v37 = vunpack.i.h.bf16 %v6133_v55 }
 0x2b3   : > { %v1970_v17 = vmax.f32 %v1884_v54, 0.0  ;;  %v2052_v51 = vrot.slane %v9002_v32, 7  ;;  %v2141_v38 = vrot.slane %v9002_v32, 1  ;;  %v6115_v54 = vunpack.i.h.bf16 %v8969_v53 }
 0x2b4   : > { %v6128_v19 = vpop.permute.xlu0 %6127 }
 0x2b5   : > { %v2050_v22 = vrot.slane %v1970_v17, 7  ;;  %v6130_v63 = vunpack.i.h.bf16 %v6128_v19  ;;  %v6129_v24 = vunpack.i.l.bf16 %v6128_v19  ;;  %v6306_v42 = vpack.i.bf16 %v9002_v32, %v1970_v17  ;;  %v6143_v2 = vpop.permute.xlu1 %6142 }
 0x2b6   : > { %v2140_v18 = vrot.slane %v1970_v17, 1  ;;  %v9037_v44 = vsel %vm526_vm0, %v2141_v38, %v11370_v58  ;;  %v6321_v21 = vpack.i.bf16 %v1970_v17, %v8928_v46  ;;  %v2838_v46 = vsel %vm1449_vm6, %v8643_v52, %v6115_v54 }
 0x2b7   : > { %v2999_v43 = vsel %vm2992_vm15, %v2966_v14, %v6129_v24  ;;  %v9013_v27 = vsel %vm432_vm1, %v7481_v56, %v2050_v22  ;;  %v9016_v49 = vsel %vm432_vm1, %v2050_v22, %v2052_v51  ;;  %6307 = vrot.lane.b32.xlu0 %v6306_v42, %s7048_s27  ;;  %v3000_v0 = vsel %vm2992_vm15, %v2967_v28, %v6130_v63 }
 0x2b8   : > { %v6138_v20 = vpop.permute.xlu0 %6137  ;;  %v3032_v47 = vsel %vm3025_vm2, %v2999_v43, %v6134_v39  ;;  %v6301_v15 = vpack.i.bf16 %v9016_v49, %v9013_v27  ;;  %v9029_v13 = vsel %vm526_vm0, %v2140_v18, %v2141_v38  ;;  %v3033_v16 = vsel %vm3025_vm2, %v3000_v0, %v6135_v37 }
 0x2b9   : > { %3240 = vmatmul.mubr.f32.gmra.mxu1 %v3032_v47  ;;  %v6139_v60 = vunpack.i.l.bf16 %v6138_v20  ;;  %v6331_v55 = vpack.i.bf16 %v9029_v13, %v8974_v40  ;;  %v6140_v62 = vunpack.i.h.bf16 %v6138_v20  ;;  %v6153_v51 = vpop.permute.xlu1 %6152  ;;  %v6144_v24 = vunpack.i.l.bf16 %v6143_v2 }
 0x2ba   : > { %6302 = vrot.lane.b32.xlu1 %v6301_v15, %s7049_s24  ;;  %5500 = vmatprep.mubr.msk.f32.mxu1 %vm1449_vm6, %v8713_v61  ;;  %v6326_v61 = vpack.i.bf16 %v9037_v44, %v9029_v13  ;;  %v6145_v39 = vunpack.i.h.bf16 %v6143_v2  ;;  %v6155_v37 = vunpack.i.h.bf16 %v6153_v51 }
 0x2bb   : > { %6317 = vrot.lane.b32.xlu0 %v6306_v42, %s7046_s21  ;;  %v6154_v42 = vunpack.i.l.bf16 %v6153_v51 }
 0x2bc   : > { %v9032_v10 = vpop.permute.xlu0 %6147 }
 0x2bd   : > { %3245 = vmatmul.mubr.f32.gmra.mxu1 %v3033_v16  ;;  %v6149_v33 = vunpack.i.l.bf16 %v9032_v10 }
 0x2be   : > { %6312 = vrot.lane.b32.xlu1 %v6301_v15, %s7045_s19  ;;  %5501 = vmatprep.mubr.msk.f32.mxu1 %vm1449_vm6, %v8756_v30  ;;  %v6125_v30 = vunpack.i.h.bf16 %v8982_v48 }
 0x2bf   : > { %6327 = vrot.lane.b32.xlu0 %v6326_v61, %s7047_s30  ;;  %v2839_v19 = vsel %vm1449_vm6, %v8646_v35, %v6149_v33 }
 0x2c0   : > { %v9045_v12 = vpop.permute.xlu0 %6157  ;;  %v2869_v53 = vsel %vm1581_vm10, %v2838_v46, %v6125_v30 }
 0x2c1   : > { %v6159_v29 = vunpack.i.l.bf16 %v9045_v12  ;;  %v2902_v22 = vsel %vm2893_vm12, %v2869_v53, %v6139_v60 }
 0x2c2   : > { %6322 = vrot.lane.b32.xlu1 %v6321_v21, %s7040_s22  ;;  %v2935_v43 = vsel %vm2926_vm13, %v2902_v22, %v6144_v24 }
 0x2c3   : > { %v2870_v17 = vsel %vm1581_vm10, %v2839_v19, %v6159_v29  ;;  %v2968_v21 = vsel %vm2959_vm14, %v2935_v43, %v6154_v42 }
 0x2c4   : > { %v2903_v35 = vsel %vm2893_vm12, %v2870_v17, %v6140_v62 }
 0x2c5   : > { %v2936_v47 = vsel %vm2926_vm13, %v2903_v35, %v6145_v39  ;;  %v6150_v35 = vunpack.i.h.bf16 %v9032_v10  ;;  %v6160_v39 = vunpack.i.h.bf16 %v9045_v12 }
 0x2c6   : > { %v5781_v4 = vpop.f32.mrf.mxu0  ;;  %6332 = vrot.lane.b32.xlu1 %v6331_v55, %s7044_s20  ;;  %v2969_v19 = vsel %vm2959_vm14, %v2936_v47, %v6155_v37 }
 0x2c7   : > { %v1899_v48 = vadd.f32 %v8933_v11, %v5781_v4 }
 0x2c8   : > { %v1893_v63 = vpop.f32.mrf.mxu0 }
 0x2c9   : > { %v9065_v1 = vmax.f32 %v1899_v48, 0.0  ;;  %v1894_v52 = vadd.f32 %v8933_v11, %v1893_v63  ;;  %v6168_v18 = vpop.permute.xlu0 %6167 }
 0x2ca   : > { %v6169_v16 = vunpack.i.l.bf16 %v6168_v18  ;;  %v6170_v4 = vunpack.i.h.bf16 %v6168_v18 }
 0x2cb   : > { %v1972_v14 = vmax.f32 %v1894_v52, 0.0  ;;  %v2056_v15 = vrot.slane %v9065_v1, 7  ;;  %v2145_v46 = vrot.slane %v9065_v1, 1 }
 0x2cc   : > { %v6163_v20 = vpop.permute.xlu1 %6162 }
 0x2cd   : > { %v2054_v28 = vrot.slane %v1972_v14, 7  ;;  %v6165_v38 = vunpack.i.h.bf16 %v6163_v20  ;;  %v6164_v0 = vunpack.i.l.bf16 %v6163_v20  ;;  %v6341_v61 = vpack.i.bf16 %v9065_v1, %v1972_v14  ;;  %v6178_v24 = vpop.permute.xlu0 %6177 }
 0x2ce   : > { %v2144_v2 = vrot.slane %v1972_v14, 1  ;;  %v9100_v48 = vsel %vm526_vm0, %v2145_v46, %v11370_v58  ;;  %v6356_v63 = vpack.i.bf16 %v1972_v14, %v9002_v32  ;;  %v2840_v20 = vsel %vm1449_vm6, %v8695_v25, %v6150_v35 }
 0x2cf   : > { %v3001_v33 = vsel %vm2992_vm15, %v2968_v21, %v6164_v0  ;;  %v9076_v54 = vsel %vm432_vm1, %v7481_v56, %v2054_v28  ;;  %v9079_v29 = vsel %vm432_vm1, %v2054_v28, %v2056_v15  ;;  %6342 = vrot.lane.b32.xlu1 %v6341_v61, %s7048_s27  ;;  %v3002_v17 = vsel %vm2992_vm15, %v2969_v19, %v6165_v38 }
 0x2d0   : > { %v6173_v30 = vpop.permute.xlu1 %6172  ;;  %v3034_v60 = vsel %vm3025_vm2, %v3001_v33, %v6169_v16  ;;  %v6336_v55 = vpack.i.bf16 %v9079_v29, %v9076_v54  ;;  %v9092_v53 = vsel %vm526_vm0, %v2144_v2, %v2145_v46  ;;  %v3035_v51 = vsel %vm3025_vm2, %v3002_v17, %v6170_v4 }
 0x2d1   : > { %3250 = vmatmul.mubr.f32.gmra.mxu1 %v3034_v60  ;;  %v6174_v42 = vunpack.i.l.bf16 %v6173_v30  ;;  %v6366_v18 = vpack.i.bf16 %v9092_v53, %v9037_v44  ;;  %v2871_v14 = vsel %vm1581_vm10, %v2840_v20, %v6160_v39  ;;  %v6188_v12 = vpop.permute.xlu0 %6187  ;;  %v6175_v28 = vunpack.i.h.bf16 %v6173_v30 }
 0x2d2   : > { %6337 = vrot.lane.b32.xlu0 %v6336_v55, %s7049_s24  ;;  %5502 = vmatprep.mubr.msk.f32.mxu1 %vm1449_vm6, %v8764_v41  ;;  %v6361_v41 = vpack.i.bf16 %v9100_v48, %v9092_v53  ;;  %v6179_v37 = vunpack.i.l.bf16 %v6178_v24  ;;  %v6189_v16 = vunpack.i.l.bf16 %v6188_v12  ;;  %v6180_v21 = vunpack.i.h.bf16 %v6178_v24 }
 0x2d3   : > { %6352 = vrot.lane.b32.xlu1 %v6341_v61, %s7046_s21  ;;  %v2904_v38 = vsel %vm2893_vm12, %v2871_v14, %v6174_v42  ;;  %v6190_v60 = vunpack.i.h.bf16 %v6188_v12 }
 0x2d4   : > { %v9095_v62 = vpop.permute.xlu1 %6182  ;;  %v2937_v33 = vsel %vm2926_vm13, %v2904_v38, %v6179_v37 }
 0x2d5   : > { %3255 = vmatmul.mubr.f32.gmra.mxu1 %v3035_v51  ;;  %v6184_v52 = vunpack.i.l.bf16 %v9095_v62  ;;  %v2970_v24 = vsel %vm2959_vm14, %v2937_v33, %v6189_v16  ;;  %v6185_v37 = vunpack.i.h.bf16 %v9095_v62 }
 0x2d6   : > { %6347 = vrot.lane.b32.xlu0 %v6336_v55, %s7045_s19  ;;  %5503 = vmatprep.mubr.msk.f32.mxu1 %vm1449_vm6, %v8815_v50 }
 0x2d7   : > { %6362 = vrot.lane.b32.xlu1 %v6361_v41, %s7047_s30  ;;  %v2841_v32 = vsel %vm1449_vm6, %v8698_v8, %v6184_v52 }
 0x2d8   : > { %v9108_v22 = vpop.permute.xlu1 %6192 }
 0x2d9   : > { %v6194_v50 = vunpack.i.l.bf16 %v9108_v22 }
 0x2da   : > { %6357 = vrot.lane.b32.xlu0 %v6356_v63, %s7040_s22 }
 0x2db   : > { %v2872_v47 = vsel %vm1581_vm10, %v2841_v32, %v6194_v50 }
 0x2dc   : > { %v2905_v8 = vsel %vm2893_vm12, %v2872_v47, %v6175_v28 }
 0x2dd   : > { %v5784_v43 = vpop.f32.mrf.mxu0  ;;  %v2938_v41 = vsel %vm2926_vm13, %v2905_v8, %v6180_v21  ;;  %v6195_v21 = vunpack.i.h.bf16 %v9108_v22 }
 0x2de   : > { %v1909_v10 = vadd.f32 %v8933_v11, %v5784_v43  ;;  %6367 = vrot.lane.b32.xlu0 %v6366_v18, %s7044_s20  ;;  %v2971_v20 = vsel %vm2959_vm14, %v2938_v41, %v6190_v60 }
 0x2df   : > { %v1903_v15 = vpop.f32.mrf.mxu0 }
 0x2e0   : > { %v9127_v0 = vmax.f32 %v1909_v10, 0.0  ;;  %v1904_v25 = vadd.f32 %v8933_v11, %v1903_v15 }
 0x2e1   : > { %v6203_v2 = vpop.permute.xlu1 %6202 }
 0x2e2   : > { %v1974_v61 = vmax.f32 %v1904_v25, 0.0  ;;  %v2060_v55 = vrot.slane %v9127_v0, 7  ;;  %v6204_v63 = vunpack.i.l.bf16 %v6203_v2  ;;  %v2149_v39 = vrot.slane %v9127_v0, 1 }
 0x2e3   : > { %v6205_v14 = vunpack.i.h.bf16 %v6203_v2 }
 0x2e4   : > { %v2058_v19 = vrot.slane %v1974_v61, 7  ;;  %v6198_v30 = vpop.permute.xlu0 %6197  ;;  %v6376_v46 = vpack.i.bf16 %v9127_v0, %v1974_v61  ;;  %v2148_v17 = vrot.slane %v1974_v61, 1  ;;  %v9160_v12 = vsel %vm526_vm0, %v2149_v39, %v11370_v58 }
 0x2e5   : > { %v6200_v4 = vunpack.i.h.bf16 %v6198_v30  ;;  %v6199_v51 = vunpack.i.l.bf16 %v6198_v30  ;;  %v6213_v25 = vpop.permute.xlu1 %6212 }
 0x2e6   : > { %6377 = vrot.lane.b32.xlu0 %v6376_v46, %s7048_s27  ;;  %v9139_v35 = vsel %vm432_vm1, %v7481_v56, %v2058_v19  ;;  %v9142_v52 = vsel %vm432_vm1, %v2058_v19, %v2060_v55  ;;  %v9153_v10 = vsel %vm526_vm0, %v2148_v17, %v2149_v39 }
 0x2e7   : > { %v3003_v50 = vsel %vm2992_vm15, %v2970_v24, %v6199_v51  ;;  %v6371_v42 = vpack.i.bf16 %v9142_v52, %v9139_v35  ;;  %v3004_v32 = vsel %vm2992_vm15, %v2971_v20, %v6200_v4  ;;  %v6396_v28 = vpack.i.bf16 %v9160_v12, %v9153_v10 }
 0x2e8   : > { %v6208_v18 = vpop.permute.xlu0 %6207  ;;  %v3036_v43 = vsel %vm3025_vm2, %v3003_v50, %v6204_v63  ;;  %v3037_v15 = vsel %vm3025_vm2, %v3004_v32, %v6205_v14  ;;  %v6401_v8 = vpack.i.bf16 %v9153_v10, %v9100_v48  ;;  %v6214_v51 = vunpack.i.l.bf16 %v6213_v25 }
 0x2e9   : > { %3260 = vmatmul.mubr.f32.gmra.mxu1 %v3036_v43  ;;  %6372 = vrot.lane.b32.xlu1 %v6371_v42, %s7049_s24  ;;  %v6209_v2 = vunpack.i.l.bf16 %v6208_v18  ;;  %v6223_v19 = vpop.permute.xlu1 %6222  ;;  %v6215_v24 = vunpack.i.h.bf16 %v6213_v25 }
 0x2ea   : > { %5504 = vmatprep.mubr.msk.f32.mxu1 %vm1449_vm6, %v8824_v5  ;;  %6387 = vrot.lane.b32.xlu0 %v6376_v46, %s7046_s21  ;;  %v6391_v5 = vpack.i.bf16 %v1974_v61, %v9065_v1  ;;  %v2842_v61 = vsel %vm1449_vm6, %v8746_v26, %v6185_v37  ;;  %v6210_v46 = vunpack.i.h.bf16 %v6208_v18  ;;  %v6224_v63 = vunpack.i.l.bf16 %v6223_v19 }
 0x2eb   : > { %v2873_v55 = vsel %vm1581_vm10, %v2842_v61, %v6195_v21  ;;  %v6225_v43 = vunpack.i.h.bf16 %v6223_v19 }
 0x2ec   : > { %v9162_v47 = vpop.permute.xlu0 %6217  ;;  %v2906_v17 = vsel %vm2893_vm12, %v2873_v55, %v6209_v2 }
 0x2ed   : > { %3265 = vmatmul.mubr.f32.gmra.mxu1 %v3037_v15  ;;  %6382 = vrot.lane.b32.xlu1 %v6371_v42, %s7045_s19  ;;  %v6219_v16 = vunpack.i.l.bf16 %v9162_v47  ;;  %v2939_v42 = vsel %vm2926_vm13, %v2906_v17, %v6214_v51  ;;  %v6220_v51 = vunpack.i.h.bf16 %v9162_v47 }
 0x2ee   : > { %5505 = vmatprep.mubr.msk.f32.mxu1 %vm1449_vm6, %v8883_v3  ;;  %6397 = vrot.lane.b32.xlu0 %v6396_v28, %s7047_s30  ;;  %v2972_v25 = vsel %vm2959_vm14, %v2939_v42, %v6224_v63 }
 0x2ef   : > { %v2843_v62 = vsel %vm1449_vm6, %v8749_v23, %v6219_v16 }
 0x2f0   : > { %v9172_v38 = vpop.permute.xlu0 %6227 }
 0x2f1   : > { %6392 = vrot.lane.b32.xlu1 %v6391_v5, %s7040_s22  ;;  %v6229_v3 = vunpack.i.l.bf16 %v9172_v38 }
 0x2f3   : > { %v2874_v22 = vsel %vm1581_vm10, %v2843_v62, %v6229_v3 }
 0x2f4   : > { %v2907_v26 = vsel %vm2893_vm12, %v2874_v22, %v6210_v46 }
 0x2f5   : > { %v5787_v33 = vpop.f32.mrf.mxu0  ;;  %6402 = vrot.lane.b32.xlu1 %v6401_v8, %s7044_s20  ;;  %v2940_v28 = vsel %vm2926_vm13, %v2907_v26, %v6215_v24  ;;  %v6230_v26 = vunpack.i.h.bf16 %v9172_v38 }
 0x2f6   : > { %v1919_v1 = vadd.f32 %v8933_v11, %v5787_v33 }
 0x2f7   : > { %v1913_v60 = vpop.f32.mrf.mxu0 }
 0x2f8   : > { %v1914_v30 = vadd.f32 %v8933_v11, %v1913_v60  ;;  %v9191_v4 = vmax.f32 %v1919_v1, 0.0  ;;  %v2973_v1 = vsel %vm2959_vm14, %v2940_v28, %v6225_v43 }
 0x2f9   : > { %v6238_v39 = vpop.permute.xlu0 %6237 }
 0x2fa   : > { %v1976_v41 = vmax.f32 %v1914_v30, 0.0  ;;  %v2064_v20 = vrot.slane %v9191_v4, 7  ;;  %v6239_v5 = vunpack.i.l.bf16 %v6238_v39  ;;  %v2153_v8 = vrot.slane %v9191_v4, 1 }
 0x2fb   : > { %v6240_v60 = vunpack.i.h.bf16 %v6238_v39 }
 0x2fc   : > { %v2062_v23 = vrot.slane %v1976_v41, 7  ;;  %v6411_v50 = vpack.i.bf16 %v9191_v4, %v1976_v41  ;;  %v6233_v18 = vpop.permute.xlu1 %6232  ;;  %v2152_v32 = vrot.slane %v1976_v41, 1  ;;  %v9223_v55 = vsel %vm526_vm0, %v2153_v8, %v11370_v58 }
 0x2fd   : > { %v6235_v14 = vunpack.i.h.bf16 %v6233_v18  ;;  %v6234_v15 = vunpack.i.l.bf16 %v6233_v18  ;;  %v6248_v46 = vpop.permute.xlu0 %6247 }
 0x2fe   : > { %6412 = vrot.lane.b32.xlu1 %v6411_v50, %s7048_s27  ;;  %v9202_v37 = vsel %vm432_vm1, %v7481_v56, %v2062_v23  ;;  %v9205_v16 = vsel %vm432_vm1, %v2062_v23, %v2064_v20  ;;  %v9216_v62 = vsel %vm526_vm0, %v2152_v32, %v2153_v8 }
 0x2ff   : > { %v3005_v21 = vsel %vm2992_vm15, %v2972_v25, %v6234_v15  ;;  %v6406_v3 = vpack.i.bf16 %v9205_v16, %v9202_v37  ;;  %v3006_v61 = vsel %vm2992_vm15, %v2973_v1, %v6235_v14  ;;  %v6431_v30 = vpack.i.bf16 %v9223_v55, %v9216_v62 }
 0x300   : > { %v6243_v2 = vpop.permute.xlu1 %6242  ;;  %v3038_v33 = vsel %vm3025_vm2, %v3005_v21, %v6239_v5  ;;  %v3039_v22 = vsel %vm3025_vm2, %v3006_v61, %v6240_v60  ;;  %v6249_v14 = vunpack.i.l.bf16 %v6248_v46  ;;  %v6250_v5 = vunpack.i.h.bf16 %v6248_v46 }
 0x301   : > { %3270 = vmatmul.mubr.f32.gmra.mxu1 %v3038_v33  ;;  %6407 = vrot.lane.b32.xlu0 %v6406_v3, %s7049_s24  ;;  %v6244_v23 = vunpack.i.l.bf16 %v6243_v2  ;;  %v6258_v38 = vpop.permute.xlu0 %6257  ;;  %v6245_v20 = vunpack.i.h.bf16 %v6243_v2 }
 0x302   : > { %5506 = vmatprep.mubr.msk.f32.mxu1 %vm1449_vm6, %v8891_v45  ;;  %6422 = vrot.lane.b32.xlu1 %v6411_v50, %s7046_s21  ;;  %v6426_v45 = vpack.i.bf16 %v1976_v41, %v9127_v0  ;;  %v2844_v0 = vsel %vm1449_vm6, %v8801_v31, %v6220_v51  ;;  %v6259_v15 = vunpack.i.l.bf16 %v6258_v38  ;;  %v6260_v21 = vunpack.i.h.bf16 %v6258_v38 }
 0x303   : > { %v2875_v50 = vsel %vm1581_vm10, %v2844_v0, %v6230_v26 }
 0x304   : > { %v9225_v19 = vpop.permute.xlu1 %6252  ;;  %v2908_v18 = vsel %vm2893_vm12, %v2875_v50, %v6244_v23 }
 0x305   : > { %3275 = vmatmul.mubr.f32.gmra.mxu1 %v3039_v22  ;;  %6417 = vrot.lane.b32.xlu0 %v6406_v3, %s7045_s19  ;;  %v6254_v63 = vunpack.i.l.bf16 %v9225_v19  ;;  %v2941_v8 = vsel %vm2926_vm13, %v2908_v18, %v6249_v14  ;;  %v4359_v14 = vld [vmem:[%s11180_s5 + $0x68] sm:$0xff] }
 0x306   : > { %5507 = vmatprep.mubr.msk.f32.mxu1 %vm1449_vm6, %v8966_v9  ;;  %6432 = vrot.lane.b32.xlu1 %v6431_v30, %s7047_s30  ;;  %v6436_v9 = vpack.i.bf16 %v9216_v62, %v9160_v12  ;;  %v2974_v46 = vsel %vm2959_vm14, %v2941_v8, %v6259_v15 }
 0x307   : > { %v2845_v41 = vsel %vm1449_vm6, %v8804_v59, %v6254_v63 }
 0x308   : > { %v9235_v17 = vpop.permute.xlu1 %6262 }
 0x309   : > { %6427 = vrot.lane.b32.xlu0 %v6426_v45, %s7040_s22  ;;  %v6264_v24 = vunpack.i.l.bf16 %v9235_v17 }
 0x30b   : > { %v2876_v42 = vsel %vm1581_vm10, %v2845_v41, %v6264_v24 }
 0x30c   : > { %v2909_v59 = vsel %vm2893_vm12, %v2876_v42, %v6245_v20  ;;  %v4361_v42 = vld [vmem:[%s11180_s5 + $0x78] sm:$0xff] }
 0x30d   : > { %v5790_v39 = vpop.f32.mrf.mxu0  ;;  %6437 = vrot.lane.b32.xlu0 %v6436_v9, %s7044_s20  ;;  %v2942_v30 = vsel %vm2926_vm13, %v2909_v59, %v6250_v5  ;;  %4452 = vmatpush1.msra.mxu0 %v4361_v42  ;;  %v6265_v5 = vunpack.i.h.bf16 %v9235_v17  ;;  %v4356_v17 = vld [vmem:[%s11180_s5 + $0x50] sm:$0xff] }
 0x30e   : > { %v1929_v47 = vadd.f32 %v8933_v11, %v5790_v39  ;;  %v2975_v0 = vsel %vm2959_vm14, %v2942_v30, %v6260_v21  ;;  %5941 = vmatpush1.msra.mxu1 %v4361_v42  ;;  %4453 = vmatprep.subr.mxu0 %v11369_v36  ;;  %v4357_v21 = vld [vmem:[%s11180_s5 + $0x58] sm:$0xff] }
 0x30f   : > { %v1923_v43 = vpop.f32.mrf.mxu0  ;;  %5910 = vmatprep.subr.mxu1 %v11369_v36 }
 0x310   : > { %v9253_v32 = vmax.f32 %v1929_v47, 0.0  ;;  %v1924_v31 = vadd.f32 %v8933_v11, %v1923_v43 }
 0x311   : > { %v6273_v25 = vpop.permute.xlu1 %6272 }
 0x312   : > { %v1978_v28 = vmax.f32 %v1924_v31, 0.0  ;;  %v2068_v3 = vrot.slane %v9253_v32, 7  ;;  %v6274_v45 = vunpack.i.l.bf16 %v6273_v25  ;;  %v2157_v26 = vrot.slane %v9253_v32, 1 }
 0x313   : > { %v6275_v50 = vunpack.i.h.bf16 %v6273_v25 }
 0x314   : > { %v2066_v33 = vrot.slane %v1978_v28, 7  ;;  %v6268_v2 = vpop.permute.xlu0 %6267  ;;  %v6446_v1 = vpack.i.bf16 %v9253_v32, %v1978_v28  ;;  %v2156_v61 = vrot.slane %v1978_v28, 1  ;;  %v9288_v38 = vsel %vm526_vm0, %v2157_v26, %v11370_v58 }
 0x315   : > { %v6270_v60 = vunpack.i.h.bf16 %v6268_v2  ;;  %v6269_v22 = vunpack.i.l.bf16 %v6268_v2  ;;  %v6461_v31 = vpack.i.bf16 %v1978_v28, %v9191_v4  ;;  %v9313_v59 = vpop.permute.xlu1 %6282  ;;  %v6255_v4 = vunpack.i.h.bf16 %v9225_v19 }
 0x316   : > { %6447 = vrot.lane.b32.xlu0 %v6446_v1, %s7048_s27  ;;  %v9265_v51 = vsel %vm432_vm1, %v7481_v56, %v2066_v33  ;;  %v9268_v63 = vsel %vm432_vm1, %v2066_v33, %v2068_v3  ;;  %v9281_v47 = vsel %vm526_vm0, %v2156_v61, %v2157_v26 }
 0x317   : > { %v3007_v24 = vsel %vm2992_vm15, %v2974_v46, %v6269_v22  ;;  %v6441_v23 = vpack.i.bf16 %v9268_v63, %v9265_v51  ;;  %v3008_v41 = vsel %vm2992_vm15, %v2975_v0, %v6270_v60  ;;  %v6466_v18 = vpack.i.bf16 %v9288_v38, %v9281_v47 }
 0x318   : > { %v9274_v9 = vpop.permute.xlu0 %6277  ;;  %v3040_v39 = vsel %vm3025_vm2, %v3007_v24, %v6274_v45  ;;  %v3041_v20 = vsel %vm3025_vm2, %v3008_v41, %v6275_v50  ;;  %v6471_v8 = vpack.i.bf16 %v9281_v47, %v9223_v55  ;;  %v2846_v33 = vsel %vm1449_vm6, %v8868_v34, %v6255_v4  ;;  %v4355_v45 = vld [vmem:[%s11180_s5 + $0x48] sm:$0xff] }
 0x319   : > { %3280 = vmatmul.mubr.f32.gmra.mxu1 %v3040_v39  ;;  %6442 = vrot.lane.b32.xlu1 %v6441_v23, %s7049_s24  ;;  %v6279_v19 = vunpack.i.l.bf16 %v9274_v9  ;;  %v2877_v61 = vsel %vm1581_vm10, %v2846_v33, %v6265_v5  ;;  %v6293_v60 = vpop.permute.xlu1 %6292  ;;  %v6280_v34 = vunpack.i.h.bf16 %v9274_v9  ;;  %v6284_v24 = vunpack.i.l.bf16 %v9313_v59 }
 0x31a   : > { %5508 = vmatprep.mubr.msk.f32.mxu1 %vm1449_vm6, %v8974_v40  ;;  %6457 = vrot.lane.b32.xlu0 %v6446_v1, %s7046_s21  ;;  %v4360_v40 = vld [vmem:[%s11180_s5 + $0x70] sm:$0xff]  ;;  %v6294_v39 = vunpack.i.l.bf16 %v6293_v60  ;;  %v6285_v41 = vunpack.i.h.bf16 %v9313_v59  ;;  %v4353_v59 = vld [vmem:[%s11180_s5 + $0x38] sm:$0xff] }
 0x31b   : > { %4454 = vmatpush1.msra.mxu0 %v4360_v40  ;;  %5942 = vmatpush1.msra.mxu1 %v4360_v40 }
 0x31c   : > { %v9293_v43 = vpop.permute.xlu0 %6287  ;;  %4455 = vmatprep.subr.mxu0 %v11369_v36  ;;  %5911 = vmatprep.subr.mxu1 %v11369_v36 }
 0x31d   : > { %3285 = vmatmul.mubr.f32.gmra.mxu1 %v3041_v20  ;;  %6452 = vrot.lane.b32.xlu1 %v6441_v23, %s7045_s19  ;;  %v6289_v28 = vunpack.i.l.bf16 %v9293_v43  ;;  %v4354_v23 = vld [vmem:[%s11180_s5 + $0x40] sm:$0xff]  ;;  %v6295_v20 = vunpack.i.h.bf16 %v6293_v60 }
 0x31e   : > { %5509 = vmatprep.mubr.msk.f32.mxu1 %vm1449_vm6, %v9029_v13  ;;  %6467 = vrot.lane.b32.xlu0 %v6466_v18, %s7047_s30  ;;  %v4358_v13 = vld [vmem:[%s11180_s5 + $0x60] sm:$0xff] }
 0x31f   : > { %4456 = vmatpush1.msra.mxu0 %v4359_v14  ;;  %5943 = vmatpush1.msra.mxu1 %v4359_v14  ;;  %v2847_v2 = vsel %vm1449_vm6, %v8871_v7, %v6289_v28  ;;  %v2910_v7 = vsel %vm2893_vm12, %v2877_v61, %v6279_v19 }
 0x320   : > { %v9311_v15 = vpop.permute.xlu0 %6297  ;;  %4457 = vmatprep.subr.mxu0 %v11369_v36  ;;  %5912 = vmatprep.subr.mxu1 %v11369_v36  ;;  %v2943_v42 = vsel %vm2926_vm13, %v2910_v7, %v6284_v24 }
 0x321   : > { %6462 = vrot.lane.b32.xlu1 %v6461_v31, %s7040_s22  ;;  %v6299_v25 = vunpack.i.l.bf16 %v9311_v15  ;;  %4458 = vmatpush1.msra.mxu0 %v4358_v13 }
 0x322   : > { %4459 = vmatprep.subr.mxu0 %v11369_v36  ;;  %5944 = vmatpush1.msra.mxu1 %v4358_v13 }
 0x323   : > { %4460 = vmatpush1.msra.mxu0 %v4357_v21  ;;  %v2878_v22 = vsel %vm1581_vm10, %v2847_v2, %v6299_v25  ;;  %5913 = vmatprep.subr.mxu1 %v11369_v36  ;;  %v4352_v25 = vld [vmem:[%s11180_s5 + $0x30] sm:$0xff] }
 0x324   : > { %4461 = vmatprep.subr.mxu0 %v11369_v36  ;;  %5945 = vmatpush1.msra.mxu1 %v4357_v21  ;;  %v2911_v9 = vsel %vm2893_vm12, %v2878_v22, %v6280_v34  ;;  %v2976_v21 = vsel %vm2959_vm14, %v2943_v42, %v6294_v39 }
 0x325   : > { %v5793_v3 = vpop.f32.mrf.mxu0  ;;  %6472 = vrot.lane.b32.xlu1 %v6471_v8, %s7044_s20  ;;  %4462 = vmatpush1.msra.mxu0 %v4356_v17  ;;  %v2944_v5 = vsel %vm2926_vm13, %v2911_v9, %v6285_v41  ;;  %v4349_v9 = vld [vmem:[%s11180_s5 + $0x18] sm:$0xff] }
 0x326   : > { %v1939_v1 = vadd.f32 %v8933_v11, %v5793_v3  ;;  %4463 = vmatprep.subr.mxu0 %v11369_v36  ;;  %5914 = vmatprep.subr.mxu1 %v11369_v36  ;;  %v2977_v60 = vsel %vm2959_vm14, %v2944_v5, %v6295_v20  ;;  %v9473_v5 = vld [vmem:[%s11180_s5] sm:$0xff] }
 0x327   : > { %v1933_v30 = vpop.f32.mrf.mxu0  ;;  %4464 = vmatpush1.msra.mxu0 %v4355_v45  ;;  %5946 = vmatpush1.msra.mxu1 %v4356_v17 }
 0x328   : > { %v9352_v46 = vmax.f32 %v1939_v1, 0.0  ;;  %v1934_v26 = vadd.f32 %v8933_v11, %v1933_v30  ;;  %4465 = vmatprep.subr.mxu0 %v11369_v36  ;;  %5915 = vmatprep.subr.mxu1 %v11369_v36 }
 0x329   : > { %v6308_v50 = vpop.permute.xlu0 %6307  ;;  %4466 = vmatpush1.msra.mxu0 %v4354_v23  ;;  %5947 = vmatpush1.msra.mxu1 %v4355_v45  ;;  %v4351_v45 = vld [vmem:[%s11180_s5 + $0x28] sm:$0xff] }
 0x32a   : > { %v9362_v0 = vmax.f32 %v1934_v26, 0.0  ;;  %v2072_v18 = vrot.slane %v9352_v46, 7  ;;  %4467 = vmatprep.subr.mxu0 %v11369_v36  ;;  %5916 = vmatprep.subr.mxu1 %v11369_v36  ;;  %v6309_v8 = vunpack.i.l.bf16 %v6308_v50  ;;  %v2161_v17 = vrot.slane %v9352_v46, 1 }
 0x32b   : > { %4468 = vmatpush1.msra.mxu0 %v4353_v59  ;;  %5948 = vmatpush1.msra.mxu1 %v4354_v23  ;;  %v6310_v34 = vunpack.i.h.bf16 %v6308_v50 }
 0x32c   : > { %v2070_v40 = vrot.slane %v9362_v0, 7  ;;  %v6303_v31 = vpop.permute.xlu1 %6302  ;;  %v6481_v14 = vpack.i.bf16 %v9352_v46, %v9362_v0  ;;  %v2160_v13 = vrot.slane %v9362_v0, 1  ;;  %4469 = vmatprep.subr.mxu0 %v11369_v36  ;;  %v9413_v7 = vsel %vm526_vm0, %v2161_v17, %v11370_v58  ;;  %5917 = vmatprep.subr.mxu1 %v11369_v36 }
 0x32d   : > { %v6305_v4 = vunpack.i.h.bf16 %v6303_v31  ;;  %v6304_v28 = vunpack.i.l.bf16 %v6303_v31  ;;  %4470 = vmatpush1.msra.mxu0 %v4352_v25  ;;  %5949 = vmatpush1.msra.mxu1 %v4353_v59  ;;  %v6496_v39 = vpack.i.bf16 %v9362_v0, %v9253_v32  ;;  %v9439_v42 = vpop.permute.xlu0 %6317  ;;  %v4348_v32 = vld [vmem:[%s11180_s5 + $0x10] sm:$0xff]  ;;  %v6300_v0 = vunpack.i.h.bf16 %v9311_v15  ;;  %v9462_v15 = vld [vmem:[%s11180_s5 + $0x8] sm:$0xff] }
 0x32e   : > { %6482 = vrot.lane.b32.xlu1 %v6481_v14, %s7048_s27  ;;  %v9386_v19 = vsel %vm432_vm1, %v7481_v56, %v2070_v40  ;;  %v9389_v3 = vsel %vm432_vm1, %v2070_v40, %v2072_v18  ;;  %v9403_v30 = vsel %vm526_vm0, %v2160_v13, %v2161_v17  ;;  %4471 = vmatprep.subr.mxu0 %v11369_v36 }
 0x32f   : > { %v3009_v33 = vsel %vm2992_vm15, %v2976_v21, %v6304_v28  ;;  %v6476_v2 = vpack.i.bf16 %v9389_v3, %v9386_v19  ;;  %v3010_v22 = vsel %vm2992_vm15, %v2977_v60, %v6305_v4  ;;  %v6501_v23 = vpack.i.bf16 %v9413_v7, %v9403_v30  ;;  %4472 = vmatpush1.msra.mxu0 %v4351_v45 }
 0x330   : > { %v9396_v1 = vpop.permute.xlu1 %6312  ;;  %v3042_v61 = vsel %vm3025_vm2, %v3009_v33, %v6309_v8  ;;  %v3043_v24 = vsel %vm3025_vm2, %v3010_v22, %v6310_v34  ;;  %4473 = vmatprep.subr.mxu0 %v11369_v36  ;;  %5918 = vmatprep.subr.mxu1 %v11369_v36  ;;  %v6506_v59 = vpack.i.bf16 %v9403_v30, %v9288_v38 }
 0x331   : > { %3290 = vmatmul.mubr.f32.gmra.mxu1 %v3042_v61  ;;  %6477 = vrot.lane.b32.xlu0 %v6476_v2, %s7049_s24  ;;  %v6314_v13 = vunpack.i.l.bf16 %v9396_v1  ;;  %v6328_v21 = vpop.permute.xlu0 %6327  ;;  %v9486_v61 = vld [vmem:[%s11180_s5 + $0xf8] sm:$0xff] }
 0x332   : > { %5510 = vmatprep.mubr.msk.f32.mxu1 %vm1449_vm6, %v9037_v44  ;;  %6492 = vrot.lane.b32.xlu1 %v6481_v14, %s7046_s21  ;;  %v4350_v44 = vld [vmem:[%s11180_s5 + $0x20] sm:$0xff] }
 0x333   : > { %4474 = vmatpush1.msra.mxu0 %v4350_v44  ;;  %5950 = vmatpush1.msra.mxu1 %v4352_v25 }
 0x334   : > { %v9417_v26 = vpop.permute.xlu1 %6322  ;;  %4475 = vmatprep.subr.mxu0 %v11369_v36  ;;  %5919 = vmatprep.subr.mxu1 %v11369_v36 }
 0x335   : > { %3295 = vmatmul.mubr.f32.gmra.mxu1 %v3043_v24  ;;  %6487 = vrot.lane.b32.xlu0 %v6476_v2, %s7045_s19  ;;  %v6324_v18 = vunpack.i.l.bf16 %v9417_v26 }
 0x336   : > { %5511 = vmatprep.mubr.msk.f32.mxu1 %vm1449_vm6, %v9092_v53  ;;  %6502 = vrot.lane.b32.xlu1 %v6501_v23, %s7047_s30  ;;  %v6290_v53 = vunpack.i.h.bf16 %v9293_v43  ;;  %v6329_v23 = vunpack.i.l.bf16 %v6328_v21 }
 0x337   : > { %4476 = vmatpush1.msra.mxu0 %v4349_v9  ;;  %5951 = vmatpush1.msra.mxu1 %v4351_v45  ;;  %v2849_v8 = vsel %vm1449_vm6, %v8954_v57, %v6324_v18  ;;  %v6315_v57 = vunpack.i.h.bf16 %v9396_v1  ;;  %v6319_v45 = vunpack.i.l.bf16 %v9439_v42  ;;  %v9501_v1 = vld [vmem:[%s11180_s5 + $0xf0] sm:$0xff]  ;;  %v9518_v18 = vld [vmem:[%s11180_s5 + $0xe8] sm:$0xff] }
 0x338   : > { %v9436_v41 = vpop.permute.xlu1 %6332  ;;  %v5796_v50 = vpop.f32.mrf.mxu0  ;;  %4477 = vmatprep.subr.mxu0 %v11369_v36  ;;  %5920 = vmatprep.subr.mxu1 %v11369_v36  ;;  %v2848_v4 = vsel %vm1449_vm6, %v8951_v6, %v6290_v53  ;;  %v6320_v53 = vunpack.i.h.bf16 %v9439_v42 }
 0x339   : > { %v1949_v20 = vadd.f32 %v8933_v11, %v5796_v50  ;;  %6497 = vrot.lane.b32.xlu0 %v6496_v39, %s7040_s22  ;;  %v6334_v43 = vunpack.i.l.bf16 %v9436_v41  ;;  %v7026_v11 = vld [vmem:[%s11177_s2] ss:$0 sm:$0xff]  ;;  %4478 = vmatpush1.msra.mxu0 %v4348_v32  ;;  %v2879_v25 = vsel %vm1581_vm10, %v2848_v4, %v6300_v0 }
 0x33a   : > { %v1943_v40 = vpop.f32.mrf.mxu0  ;;  %4479 = vmatprep.subr.mxu0 %v11369_v36  ;;  %5952 = vmatpush1.msra.mxu1 %v4350_v44  ;;  %v2912_v60 = vsel %vm2893_vm12, %v2879_v25, %v6314_v13  ;;  %v9508_v50 = vld [vmem:[%s11179_s4] ss:$0 sm:$0xff] }
 0x33b   : > { %v9451_v31 = vmax.f32 %v1949_v20, 0.0  ;;  %v1944_v14 = vadd.f32 %v7026_v11, %v1943_v40  ;;  %4480 = vmatpush1.msra.mxu0 %v9462_v15  ;;  %v2880_v6 = vsel %vm1581_vm10, %v2849_v8, %v6334_v43  ;;  %5921 = vmatprep.subr.mxu1 %v11369_v36  ;;  %v2945_v0 = vsel %vm2926_vm13, %v2912_v60, %v6319_v45  ;;  %v9555_v60 = vld [vmem:[%s11180_s5 + $0xd8] sm:$0xff] }
 0x33c   : > { %4481 = vmatprep.subr.mxu0 %v11369_v36  ;;  %5953 = vmatpush1.msra.mxu1 %v4349_v9  ;;  %v2913_v44 = vsel %vm2893_vm12, %v2880_v6, %v6315_v57  ;;  %v6330_v40 = vunpack.i.h.bf16 %v6328_v21  ;;  %v2978_v25 = vsel %vm2959_vm14, %v2945_v0, %v6329_v23  ;;  %v9568_v23 = vld [vmem:[%s11180_s5 + $0xd0] sm:$0xff] }
 0x33d   : > { %v1982_v28 = vmax.f32 %v1944_v14, 0.0  ;;  %6507 = vrot.lane.b32.xlu0 %v6506_v59, %s7044_s20  ;;  %v2168_v17 = vrot.slane %v9451_v31, 7  ;;  %4482 = vmatpush1.msra.mxu0 %v9473_v5  ;;  %v2171_v39 = vrot.slane %v9451_v31, 1  ;;  %v2946_v13 = vsel %vm2926_vm13, %v2913_v44, %v6320_v53 }
 0x33e   : > { %4483 = vmatprep.subr.mxu0 %v11369_v36  ;;  %5922 = vmatprep.subr.mxu1 %v11369_v36  ;;  %v2979_v57 = vsel %vm2959_vm14, %v2946_v13, %v6330_v40  ;;  %v6325_v40 = vunpack.i.h.bf16 %v9417_v26  ;;  %v9614_v26 = vld [vmem:[%s11180_s5 + $0xb8] sm:$0xff]  ;;  %v9627_v13 = vld [vmem:[%s11180_s5 + $0xb0] sm:$0xff] }
 0x33f   : > { %v2166_v33 = vrot.slane %v1982_v28, 7  ;;  %v6516_v2 = vpack.i.bf16 %v9451_v31, %v1982_v28  ;;  %v2170_v22 = vrot.slane %v1982_v28, 1  ;;  %4484 = vmatpush2.msra.mxu0 %v9486_v61  ;;  %5954 = vmatpush1.msra.mxu1 %v4348_v32  ;;  %v9532_v32 = vld [vmem:[%s11180_s5 + $0xe0] sm:$0xff]  ;;  %v9537_v8 = vsel %vm526_vm0, %v2171_v39, %v11370_v58 }
 0x340   : > { %4485 = vmatprep.subr.mxu0 %v11369_v36  ;;  %5923 = vmatprep.subr.mxu1 %v11369_v36 }
 0x341   : > { %6517 = vrot.lane.b32.xlu0 %v6516_v2, %s7048_s27  ;;  %v2167_v34 = vsel %vm432_vm1, %v7481_v56, %v2166_v33  ;;  %v2169_v24 = vsel %vm432_vm1, %v2166_v33, %v2168_v17  ;;  %v6343_v20 = vpop.permute.xlu1 %6342  ;;  %v9522_v11 = vsel %vm526_vm0, %v2170_v22, %v2171_v39  ;;  %4486 = vmatpush2.msra.mxu0 %v9501_v1 }
 0x342   : > { %v6511_v9 = vpack.i.bf16 %v2169_v24, %v2167_v34  ;;  %4487 = vmatprep.subr.mxu0 %v11369_v36  ;;  %v6344_v4 = vunpack.i.l.bf16 %v6343_v20  ;;  %v6531_v6 = vpack.i.bf16 %v9537_v8, %v9522_v11  ;;  %5955 = vmatpush1.msra.mxu1 %v9462_v15  ;;  %v6345_v34 = vunpack.i.h.bf16 %v6343_v20 }
 0x343   : > { %4488 = vmatpush2.msra.mxu0 %v9518_v18  ;;  %5924 = vmatprep.subr.mxu1 %v11369_v36 }
 0x344   : > { %v6338_v43 = vpop.permute.xlu0 %6337  ;;  %6512 = vrot.lane.b32.xlu1 %v6511_v9, %s7049_s24  ;;  %v3211_v31 = vpop.f32.mrf.mxu1  ;;  %4489 = vmatprep.subr.mxu0 %v11369_v36 }
 0x345   : > { %v6340_v42 = vunpack.i.h.bf16 %v6338_v43  ;;  %v6339_v14 = vunpack.i.l.bf16 %v6338_v43  ;;  %v3212_v59 = vadd.f32 %v9508_v50, %v3211_v31  ;;  %6527 = vrot.lane.b32.xlu0 %v6516_v2, %s7046_s21  ;;  %4490 = vmatpush2.msra.mxu0 %v9532_v32  ;;  %v9588_v0 = vpop.permute.xlu1 %6352  ;;  %v6335_v31 = vunpack.i.h.bf16 %v9436_v41 }
 0x346   : > { %v3213_v28 = vpop.f32.mrf.mxu1  ;;  %4491 = vmatprep.subr.mxu0 %v11369_v36  ;;  %5956 = vmatpush1.msra.mxu1 %v9473_v5  ;;  %v2850_v5 = vsel %vm1449_vm6, %v9013_v27, %v6325_v40 }
 0x347   : > { %v3011_v21 = vsel %vm2992_vm15, %v2978_v25, %v6339_v14  ;;  %v9557_v22 = vmax.f32 %v3212_v59, 0.0  ;;  %v3012_v45 = vsel %vm2992_vm15, %v2979_v57, %v6340_v42  ;;  %4492 = vmatpush2.msra.mxu0 %v9555_v60  ;;  %5925 = vmatprep.subr.mxu1 %v11369_v36 }
 0x348   : > { %v9546_v17 = vpop.permute.xlu0 %6347  ;;  %6522 = vrot.lane.b32.xlu1 %v6511_v9, %s7045_s19  ;;  %v3216_v33 = vpop.f32.mrf.mxu1  ;;  %v3044_v2 = vsel %vm3025_vm2, %v3011_v21, %v6344_v4  ;;  %4493 = vmatprep.subr.mxu0 %v11369_v36  ;;  %v9583_v9 = vld [vmem:[%s11180_s5 + $0xc8] sm:$0xff]  ;;  %v2881_v4 = vsel %vm1581_vm10, %v2850_v5, %v6335_v31  ;;  %v6355_v31 = vunpack.i.h.bf16 %v9588_v0  ;;  %s368_s19 = scalar_lea.vmem %s11185_s10, %s11480_s14 }
 0x349   : > { %11376 = vst [vmem:[#allocation34_spill] sm:$0xff] %v9557_v22  ;;  %v3217_v15 = vadd.f32 %v9508_v50, %v3216_v33  ;;  %3300 = vmatmul.mubr.f32.gmra.mxu1 %v3044_v2  ;;  %6532 = vrot.lane.b32.xlu0 %v6531_v6, %s7047_s30  ;;  %v3522_v53 = vrot.slane %v9557_v22, 1  ;;  %v6349_v14 = vunpack.i.l.bf16 %v9546_v17  ;;  %v9634_v28 = vpop.permute.xlu1 %6362  ;;  %v9640_v21 = vld [vmem:[%s11180_s5 + $0xa8] sm:$0xff]  ;;  %v6354_v33 = vunpack.i.l.bf16 %v9588_v0 }
 0x34a   : > { %5512 = vmatprep.mubr.msk.f32.mxu1 %vm1449_vm6, %v9100_v48  ;;  %v3218_v24 = vpop.f32.mrf.mxu1  ;;  %v3045_v48 = vsel %vm3025_vm2, %v3012_v45, %v6345_v34  ;;  %4494 = vmatpush2.msra.mxu0 %v9568_v23  ;;  %v6364_v45 = vunpack.i.l.bf16 %v9634_v28  ;;  %v6365_v0 = vunpack.i.h.bf16 %v9634_v28 }
 0x34b   : > { %v9570_v44 = vmax.f32 %v3217_v15, 0.0  ;;  %4495 = vmatprep.subr.mxu0 %v11369_v36  ;;  %5957 = vmatpush2.msra.mxu1 %v9486_v61  ;;  %v2914_v27 = vsel %vm2893_vm12, %v2881_v4, %v6349_v14  ;;  %v6350_v15 = vunpack.i.h.bf16 %v9546_v17 }
 0x34c   : > { %v9574_v39 = vpop.permute.xlu0 %6357  ;;  %2234 = vrot.lane.b32.xlu1 %v9352_v46, %s7040_s22  ;;  %v9596_v46 = vld [vmem:[%s11180_s5 + $0xc0] sm:$0xff]  ;;  %4496 = vmatpush2.msra.mxu0 %v9583_v9  ;;  %v2947_v24 = vsel %vm2926_vm13, %v2914_v27, %v6354_v33 }
 0x34d   : > { %11377 = vst [vmem:[#allocation4_spill] sm:$0xff] %v9570_v44  ;;  %3305 = vmatmul.mubr.f32.gmra.mxu1 %v3045_v48  ;;  %v3523_v20 = vrot.slane %v9570_v44, 1  ;;  %4497 = vmatprep.subr.mxu0 %v11369_v36  ;;  %v6359_v59 = vunpack.i.l.bf16 %v9574_v39  ;;  %v9670_v48 = vld [vmem:[%s11180_s5 + $0x98] sm:$0xff]  ;;  %v2980_v4 = vsel %vm2959_vm14, %v2947_v24, %v6364_v45 }
 0x34e   : > { %5513 = vmatprep.mubr.msk.f32.mxu1 %vm1449_vm6, %v9153_v10  ;;  %4498 = vmatpush2.msra.mxu0 %v9596_v46 }
 0x34f   : > { %v9602_v43 = vsel %vm526_vm0, %v3522_v53, %v3523_v20  ;;  %4499 = vmatprep.subr.mxu0 %v11369_v36  ;;  %5926 = vmatprep.subr.mxu1 %v11369_v36  ;;  %v2851_v6 = vsel %vm1449_vm6, %v9016_v49, %v6359_v59  ;;  %v9657_v49 = vld [vmem:[%s11180_s5 + $0xa0] sm:$0xff] }
 0x350   : > { %v9606_v42 = vpop.permute.xlu0 %6367  ;;  %v6536_v10 = vpack.i.bf16 %v9602_v43, %v9413_v7  ;;  %4500 = vmatpush2.msra.mxu0 %v9614_v26  ;;  %5958 = vmatpush2.msra.mxu1 %v9501_v1 }
 0x351   : > { %v6369_v41 = vunpack.i.l.bf16 %v9606_v42  ;;  %4501 = vmatprep.subr.mxu0 %v11369_v36  ;;  %5927 = vmatprep.subr.mxu1 %v11369_v36 }
 0x352   : > { %6537 = vrot.lane.b32.xlu1 %v6536_v10, %s7044_s20  ;;  %4502 = vmatpush2.msra.mxu0 %v9627_v13 }
 0x353   : > { %v2882_v2 = vsel %vm1581_vm10, %v2851_v6, %v6369_v41  ;;  %4503 = vmatprep.subr.mxu0 %v11369_v36  ;;  %5959 = vmatpush2.msra.mxu1 %v9518_v18  ;;  %v9685_v18 = vsel %vm526_vm0, %v3523_v20, %v11370_v58  ;;  %v9691_v41 = vld [vmem:[%s11180_s5 + $0x90] sm:$0xff] }
 0x354   : > { %v3221_v25 = vpop.f32.mrf.mxu1  ;;  %4504 = vmatpush2.msra.mxu0 %v9640_v21  ;;  %v2915_v17 = vsel %vm2893_vm12, %v2882_v2, %v6350_v15  ;;  %5928 = vmatprep.subr.mxu1 %v11369_v36  ;;  %v6546_v2 = vpack.i.bf16 %v9685_v18, %v11369_v36 }
 0x355   : > { %v3222_v61 = vadd.f32 %v9508_v50, %v3221_v25  ;;  %4505 = vmatprep.subr.mxu0 %v11369_v36  ;;  %5960 = vmatpush2.msra.mxu1 %v9532_v32  ;;  %v3432_v25 = vrot.slane %v9557_v22, 7  ;;  %v2948_v32 = vsel %vm2926_vm13, %v2915_v17, %v6355_v31 }
 0x356   : > { %v3223_v57 = vpop.f32.mrf.mxu1  ;;  %2798 = vrot.lane.b32.xlu1 %v11369_v36, %s7048_s27  ;;  %4506 = vmatpush2.msra.mxu0 %v9657_v49  ;;  %v2981_v24 = vsel %vm2959_vm14, %v2948_v32, %v6365_v0  ;;  %v3434_v0 = vrot.slane %v9570_v44, 7 }
 0x357   : > { %v9661_v1 = vmax.f32 %v3222_v61, 0.0  ;;  %4507 = vmatprep.subr.mxu0 %v11369_v36  ;;  %5929 = vmatprep.subr.mxu1 %v11369_v36  ;;  %v9718_v57 = vld [vmem:[%s11180_s5 + $0x88] sm:$0xff]  ;;  %v9737_v17 = vsel %vm432_vm1, %v7481_v56, %v3432_v25 }
 0x358   : > { %v3226_v34 = vpop.f32.mrf.mxu1  ;;  %v6378_v10 = vpop.permute.xlu0 %6377  ;;  %4508 = vmatpush2.msra.mxu0 %v9670_v48  ;;  %5961 = vmatpush2.msra.mxu1 %v9555_v60  ;;  %v9733_v60 = vld [vmem:[%s11180_s5 + $0x80] sm:$0xff]  ;;  %v9760_v32 = vsel %vm432_vm1, %v3432_v25, %v3434_v0 }
 0x359   : > { %11378 = vst [vmem:[#allocation5_spill] sm:$0xff] %v9661_v1  ;;  %v3227_v53 = vadd.f32 %v9508_v50, %v3226_v34  ;;  %v6541_v40 = vpack.i.bf16 %v9661_v1, %v7481_v56  ;;  %v3436_v59 = vrot.slane %v9661_v1, 7  ;;  %4509 = vmatprep.subr.mxu0 %v11369_v36  ;;  %v6379_v61 = vunpack.i.l.bf16 %v6378_v10  ;;  %5930 = vmatprep.subr.mxu1 %v11369_v36 }
 0x35a   : > { %v3228_v14 = vpop.f32.mrf.mxu1  ;;  %4510 = vmatpush2.msra.mxu0 %v9691_v41  ;;  %5962 = vmatpush2.msra.mxu1 %v9568_v23 }
 0x35b   : > { %6542 = vrot.lane.b32.xlu0 %v6541_v40, %s7049_s24  ;;  %v6373_v5 = vpop.permute.xlu1 %6372  ;;  %v9703_v6 = vsel %vm432_vm1, %v7481_v56, %v3436_v59  ;;  %v9708_v28 = vmax.f32 %v3227_v53, 0.0  ;;  %4511 = vmatprep.subr.mxu0 %v11369_v36  ;;  %v6380_v40 = vunpack.i.h.bf16 %v6378_v10 }
 0x35c   : > { %v6375_v20 = vunpack.i.h.bf16 %v6373_v5  ;;  %v6374_v27 = vunpack.i.l.bf16 %v6373_v5  ;;  %v6551_v33 = vpack.i.bf16 %v11370_v58, %v9703_v6  ;;  %4512 = vmatpush2.msra.mxu0 %v9718_v57  ;;  %5931 = vmatprep.subr.mxu1 %v11369_v36 }
 0x35d   : > { %11379 = vst [vmem:[#allocation19_spill] sm:$0xff] %v9708_v28  ;;  %v6556_v14 = vpack.i.bf16 %v9708_v28, %v9737_v17  ;;  %4513 = vmatprep.subr.mxu0 %v11369_v36  ;;  %v3438_v23 = vrot.slane %v9708_v28, 7  ;;  %5963 = vmatpush2.msra.mxu1 %v9583_v9  ;;  %v6388_v9 = vpop.permute.xlu0 %6387 }
 0x35e   : > { %v3013_v15 = vsel %vm2992_vm15, %v2980_v4, %v6374_v27  ;;  %6552 = vrot.lane.b32.xlu1 %v6551_v33, %s7046_s21  ;;  %v3014_v53 = vsel %vm2992_vm15, %v2981_v24, %v6375_v20  ;;  %4514 = vmatpush2.msra.mxu0 %v9733_v60 }
 0x35f   : > { %6547 = vrot.lane.b32.xlu0 %v6546_v2, %s7044_s20  ;;  %v9726_v45 = vpop.permute.xlu1 %6382  ;;  %v3046_v34 = vsel %vm3025_vm2, %v3013_v15, %v6379_v61  ;;  %5932 = vmatprep.subr.mxu1 %v11369_v36  ;;  %v9780_v24 = vsel %vm432_vm1, %v3436_v59, %v3438_v23  ;;  %v6370_v59 = vunpack.i.h.bf16 %v9606_v42 }
 0x360   : > { %3310 = vmatmul.mubr.f32.gmra.mxu1 %v3046_v34  ;;  %v3527_v34 = vrot.slane %v9708_v28, 1 }
 0x361   : > { %v3231_v31 = vpop.f32.mrf.mxu1  ;;  %5514 = vmatprep.mubr.msk.f32.mxu1 %vm1449_vm6, %v9160_v12  ;;  %v3047_v12 = vsel %vm3025_vm2, %v3014_v53, %v6380_v40  ;;  %5964 = vmatpush2.msra.mxu1 %v9596_v46  ;;  %v3526_v46 = vrot.slane %v9661_v1, 1  ;;  %v6360_v40 = vunpack.i.h.bf16 %v9574_v39  ;;  %v6384_v39 = vunpack.i.l.bf16 %v9726_v45 }
 0x362   : > { %v3232_v5 = vadd.f32 %v9508_v50, %v3231_v31  ;;  %5933 = vmatprep.subr.mxu1 %v11369_v36  ;;  %v9817_v23 = vsel %vm526_vm0, %v3527_v34, %v11370_v58 }
 0x363   : > { %v3233_v4 = vpop.f32.mrf.mxu1  ;;  %6557 = vrot.lane.b32.xlu0 %v6556_v14, %s7049_s24  ;;  %v9751_v10 = vpop.permute.xlu1 %6392  ;;  %5965 = vmatpush2.msra.mxu1 %v9614_v26  ;;  %v2852_v42 = vsel %vm1449_vm6, %v9076_v54, %v6360_v40  ;;  %v6385_v54 = vunpack.i.h.bf16 %v9726_v45  ;;  %v6390_v45 = vunpack.i.h.bf16 %v6388_v9 }
 0x364   : > { %v9755_v20 = vmax.f32 %v3232_v5, 0.0  ;;  %3315 = vmatmul.mubr.f32.gmra.mxu1 %v3047_v12  ;;  %v6394_v31 = vunpack.i.l.bf16 %v9751_v10  ;;  %5934 = vmatprep.subr.mxu1 %v11369_v36  ;;  %v9797_v4 = vsel %vm526_vm0, %v3526_v46, %v3527_v34 }
 0x365   : > { %v3236_v27 = vpop.f32.mrf.mxu1  ;;  %5515 = vmatprep.mubr.msk.f32.mxu1 %vm1449_vm6, %v9216_v62  ;;  %5966 = vmatpush2.msra.mxu1 %v9627_v13 }
 0x366   : > { %11380 = vst [vmem:[#allocation35_spill] sm:$0xff] %v9755_v20  ;;  %v3237_v61 = vadd.f32 %v9508_v50, %v3236_v27  ;;  %v6566_v33 = vpack.i.bf16 %v9755_v20, %v9760_v32  ;;  %v3440_v15 = vrot.slane %v9755_v20, 7  ;;  %5935 = vmatprep.subr.mxu1 %v11369_v36  ;;  %v2853_v13 = vsel %vm1449_vm6, %v9079_v29, %v6394_v31 }
 0x367   : > { %v3238_v2 = vpop.f32.mrf.mxu1  ;;  %v9773_v25 = vpop.permute.xlu1 %6402  ;;  %5967 = vmatpush2.msra.mxu1 %v9640_v21  ;;  %v6571_v27 = vpack.i.bf16 %v9557_v22, %v9797_v4 }
 0x368   : > { %v9771_v62 = vmax.f32 %v3237_v61, 0.0  ;;  %6567 = vrot.lane.b32.xlu0 %v6566_v33, %s7049_s24  ;;  %v9784_v53 = vsel %vm432_vm1, %v7481_v56, %v3440_v15  ;;  %v6404_v5 = vunpack.i.l.bf16 %v9773_v25  ;;  %5936 = vmatprep.subr.mxu1 %v11369_v36  ;;  %v2883_v61 = vsel %vm1581_vm10, %v2852_v42, %v6370_v59 }
 0x369   : > { %v6561_v14 = vpack.i.bf16 %v9784_v53, %v9780_v24  ;;  %5968 = vmatpush2.msra.mxu1 %v9657_v49  ;;  %v2916_v29 = vsel %vm2893_vm12, %v2883_v61, %v6384_v39  ;;  %v6389_v33 = vunpack.i.l.bf16 %v6388_v9  ;;  %v6586_v2 = vpack.i.bf16 %v9570_v44, %v9817_v23 }
 0x36a   : > { %11381 = vst [vmem:[#allocation6_spill] sm:$0xff] %v9771_v62  ;;  %v3442_v0 = vrot.slane %v9771_v62, 7  ;;  %v2884_v21 = vsel %vm1581_vm10, %v2853_v13, %v6404_v5  ;;  %5937 = vmatprep.subr.mxu1 %v11369_v36  ;;  %v6581_v49 = vpack.i.bf16 %v9771_v62, %v9703_v6 }
 0x36b   : > { %6562 = vrot.lane.b32.xlu1 %v6561_v14, %s7046_s21  ;;  %5969 = vmatpush2.msra.mxu1 %v9670_v48  ;;  %v2917_v34 = vsel %vm2893_vm12, %v2884_v21, %v6385_v54  ;;  %v2949_v40 = vsel %vm2926_vm13, %v2916_v29, %v6389_v33 }
 0x36c   : > { %v9803_v26 = vsel %vm432_vm1, %v3440_v15, %v3442_v0  ;;  %5938 = vmatprep.subr.mxu1 %v11369_v36  ;;  %v2950_v0 = vsel %vm2926_vm13, %v2917_v34, %v6390_v45 }
 0x36d   : > { %v6576_v12 = vpack.i.bf16 %v9803_v26, %v9602_v43  ;;  %v6398_v43 = vpop.permute.xlu0 %6397  ;;  %5970 = vmatpush2.msra.mxu1 %v9691_v41 }
 0x36e   : > { %v6399_v15 = vunpack.i.l.bf16 %v6398_v43  ;;  %5939 = vmatprep.subr.mxu1 %v11369_v36  ;;  %v6400_v59 = vunpack.i.h.bf16 %v6398_v43 }
 0x36f   : > { %6577 = vrot.lane.b32.xlu0 %v6576_v12, %s7046_s21  ;;  %6572 = vrot.lane.b32.xlu1 %v6571_v27, %s7044_s20 }
 0x370   : > { %v6413_v46 = vpop.permute.xlu1 %6412  ;;  %5971 = vmatpush2.msra.mxu1 %v9718_v57  ;;  %v2982_v5 = vsel %vm2959_vm14, %v2949_v40, %v6399_v15  ;;  %v2983_v42 = vsel %vm2959_vm14, %v2950_v0, %v6400_v59  ;;  %v6405_v0 = vunpack.i.h.bf16 %v9773_v25 }
 0x371   : > { %v6414_v9 = vunpack.i.l.bf16 %v6413_v46  ;;  %5940 = vmatprep.subr.mxu1 %v11369_v36  ;;  %v6415_v57 = vunpack.i.h.bf16 %v6413_v46 }
 0x372   : > { %5972 = vmatpush2.msra.mxu1 %v9733_v60 }
 0x373   : > { %6587 = vrot.lane.b32.xlu0 %v6586_v2, %s7044_s20  ;;  %6582 = vrot.lane.b32.xlu1 %v6581_v49, %s7049_s24  ;;  %v6408_v31 = vpop.permute.xlu0 %6407 }
 0x374   : > { %v6410_v48 = vunpack.i.h.bf16 %v6408_v31  ;;  %v6409_v14 = vunpack.i.l.bf16 %v6408_v31  ;;  %v6423_v49 = vpop.permute.xlu1 %6422  ;;  %v6395_v31 = vunpack.i.h.bf16 %v9751_v10 }
 0x376   : > { %v3015_v39 = vsel %vm2992_vm15, %v2982_v5, %v6409_v14  ;;  %v3016_v27 = vsel %vm2992_vm15, %v2983_v42, %v6410_v48  ;;  %v2854_v10 = vsel %vm1449_vm6, %v9139_v35, %v6395_v31 }
 0x377   : > { %v6418_v41 = vpop.permute.xlu0 %6417  ;;  %v3048_v12 = vsel %vm3025_vm2, %v3015_v39, %v6414_v9  ;;  %v3049_v60 = vsel %vm3025_vm2, %v3016_v27, %v6415_v57 }
 0x378   : > { %3320 = vmatmul.mubr.f32.gmra.mxu1 %v3048_v12  ;;  %v6419_v39 = vunpack.i.l.bf16 %v6418_v41  ;;  %v6433_v27 = vpop.permute.xlu1 %6432 }
 0x379   : > { %v3241_v13 = vpop.f32.mrf.mxu1  ;;  %5516 = vmatprep.mubr.msk.f32.mxu1 %vm1449_vm6, %v9223_v55  ;;  %v3531_v55 = vrot.slane %v9771_v62, 1 }
 0x37a   : > { %v3242_v61 = vadd.f32 %v9508_v50, %v3241_v13  ;;  %v2885_v13 = vsel %vm1581_vm10, %v2854_v10, %v6405_v0 }
 0x37b   : > { %v3243_v43 = vpop.f32.mrf.mxu1  ;;  %v9854_v54 = vpop.permute.xlu0 %6427  ;;  %v2918_v35 = vsel %vm2893_vm12, %v2885_v13, %v6419_v39 }
 0x37c   : > { %v9852_v21 = vmax.f32 %v3242_v61, 0.0  ;;  %3325 = vmatmul.mubr.f32.gmra.mxu1 %v3049_v60  ;;  %v6429_v48 = vunpack.i.l.bf16 %v9854_v54  ;;  %v9900_v61 = vsel %vm526_vm0, %v3531_v55, %v11370_v58  ;;  %v6420_v43 = vunpack.i.h.bf16 %v6418_v41 }
 0x37d   : > { %v3246_v29 = vpop.f32.mrf.mxu1  ;;  %5517 = vmatprep.mubr.msk.f32.mxu1 %vm1449_vm6, %v9281_v47  ;;  %v3530_v47 = vrot.slane %v9755_v20, 1  ;;  %v6434_v60 = vunpack.i.l.bf16 %v6433_v27 }
 0x37e   : > { %11382 = vst [vmem:[#allocation7_spill] sm:$0xff] %v9852_v21  ;;  %v3247_v33 = vadd.f32 %v9508_v50, %v3246_v29  ;;  %v6596_v2 = vpack.i.bf16 %v9852_v21, %v9780_v24  ;;  %v3444_v15 = vrot.slane %v9852_v21, 7 }
 0x37f   : > { %v3248_v34 = vpop.f32.mrf.mxu1  ;;  %v9866_v46 = vpop.permute.xlu0 %6437  ;;  %v9881_v9 = vsel %vm526_vm0, %v3530_v47, %v3531_v55 }
 0x380   : > { %v9864_v45 = vmax.f32 %v3247_v33, 0.0  ;;  %6597 = vrot.lane.b32.xlu0 %v6596_v2, %s7049_s24  ;;  %v9871_v40 = vsel %vm432_vm1, %v7481_v56, %v3444_v15  ;;  %v6439_v59 = vunpack.i.l.bf16 %v9866_v46  ;;  %v6601_v25 = vpack.i.bf16 %v9661_v1, %v9881_v9 }
 0x381   : > { %v6591_v14 = vpack.i.bf16 %v9871_v40, %v9685_v18  ;;  %v2855_v18 = vsel %vm1449_vm6, %v9142_v52, %v6429_v48  ;;  %v6424_v52 = vunpack.i.l.bf16 %v6423_v49  ;;  %v6616_v2 = vpack.i.bf16 %v9708_v28, %v9900_v61 }
 0x382   : > { %11383 = vst [vmem:[#allocation25_spill] sm:$0xff] %v9864_v45  ;;  %v3446_v5 = vrot.slane %v9864_v45, 7  ;;  %v2886_v57 = vsel %vm1581_vm10, %v2855_v18, %v6439_v59  ;;  %v6611_v33 = vpack.i.bf16 %v9864_v45, %v9784_v53 }
 0x383   : > { %6592 = vrot.lane.b32.xlu1 %v6591_v14, %s7046_s21  ;;  %v2919_v29 = vsel %vm2893_vm12, %v2886_v57, %v6420_v43  ;;  %v2951_v41 = vsel %vm2926_vm13, %v2918_v35, %v6424_v52  ;;  %v6435_v14 = vunpack.i.h.bf16 %v6433_v27 }
 0x384   : > { %v9886_v12 = vsel %vm432_vm1, %v3444_v15, %v3446_v5  ;;  %v6425_v15 = vunpack.i.h.bf16 %v6423_v49  ;;  %v2984_v59 = vsel %vm2959_vm14, %v2951_v41, %v6434_v60 }
 0x385   : > { %v6606_v42 = vpack.i.bf16 %v9886_v12, %v9797_v4 }
 0x386   : > { %v2952_v48 = vsel %vm2926_vm13, %v2919_v29, %v6425_v15  ;;  %v3535_v15 = vrot.slane %v9864_v45, 1 }
 0x387   : > { %6602 = vrot.lane.b32.xlu1 %v6601_v25, %s7044_s20  ;;  %6607 = vrot.lane.b32.xlu0 %v6606_v42, %s7046_s21  ;;  %v2985_v10 = vsel %vm2959_vm14, %v2952_v48, %v6435_v14  ;;  %v6440_v48 = vunpack.i.h.bf16 %v9866_v46 }
 0x388   : > { %v6448_v55 = vpop.permute.xlu0 %6447 }
 0x389   : > { %v6449_v0 = vunpack.i.l.bf16 %v6448_v55  ;;  %v6450_v25 = vunpack.i.h.bf16 %v6448_v55 }
 0x38b   : > { %6612 = vrot.lane.b32.xlu1 %v6611_v33, %s7049_s24  ;;  %6617 = vrot.lane.b32.xlu0 %v6616_v2, %s7044_s20  ;;  %v6443_v34 = vpop.permute.xlu1 %6442 }
 0x38c   : > { %v6445_v47 = vunpack.i.h.bf16 %v6443_v34  ;;  %v6444_v31 = vunpack.i.l.bf16 %v6443_v34  ;;  %v6458_v55 = vpop.permute.xlu0 %6457  ;;  %v6430_v34 = vunpack.i.h.bf16 %v9854_v54 }
 0x38e   : > { %v3017_v5 = vsel %vm2992_vm15, %v2984_v59, %v6444_v31  ;;  %v3018_v18 = vsel %vm2992_vm15, %v2985_v10, %v6445_v47  ;;  %v3534_v31 = vrot.slane %v9852_v21, 1  ;;  %v2856_v10 = vsel %vm1449_vm6, %v9202_v37, %v6430_v34 }
 0x38f   : > { %v6453_v39 = vpop.permute.xlu1 %6452  ;;  %v3050_v49 = vsel %vm3025_vm2, %v3017_v5, %v6449_v0  ;;  %v3051_v43 = vsel %vm3025_vm2, %v3018_v18, %v6450_v25  ;;  %v2887_v25 = vsel %vm1581_vm10, %v2856_v10, %v6440_v48 }
 0x390   : > { %3330 = vmatmul.mubr.f32.gmra.mxu1 %v3050_v49  ;;  %v6454_v5 = vunpack.i.l.bf16 %v6453_v39  ;;  %v9952_v54 = vsel %vm526_vm0, %v3534_v31, %v3535_v15 }
 0x391   : > { %v3251_v42 = vpop.f32.mrf.mxu1  ;;  %5518 = vmatprep.mubr.msk.f32.mxu1 %vm1449_vm6, %v9288_v38 }
 0x392   : > { %v3252_v13 = vadd.f32 %v9508_v50, %v3251_v42  ;;  %v6468_v42 = vpop.permute.xlu0 %6467  ;;  %v2920_v37 = vsel %vm2893_vm12, %v2887_v25, %v6454_v5 }
 0x393   : > { %v3253_v27 = vpop.f32.mrf.mxu1  ;;  %v9922_v57 = vpop.permute.xlu1 %6462 }
 0x394   : > { %v9925_v35 = vmax.f32 %v3252_v13, 0.0  ;;  %3335 = vmatmul.mubr.f32.gmra.mxu1 %v3051_v43  ;;  %v6631_v27 = vpack.i.bf16 %v9755_v20, %v9952_v54  ;;  %v9970_v43 = vsel %vm526_vm0, %v3535_v15, %v11370_v58 }
 0x395   : > { %v3256_v52 = vpop.f32.mrf.mxu1  ;;  %5519 = vmatprep.mubr.msk.f32.mxu1 %vm1449_vm6, %v9403_v30  ;;  %v6464_v30 = vunpack.i.l.bf16 %v9922_v57 }
 0x396   : > { %11384 = vst [vmem:[#allocation29_spill] sm:$0xff] %v9925_v35  ;;  %v3257_v60 = vadd.f32 %v9508_v50, %v3256_v52  ;;  %v6626_v29 = vpack.i.bf16 %v9925_v35, %v9803_v26  ;;  %v3448_v2 = vrot.slane %v9925_v35, 7  ;;  %v6455_v52 = vunpack.i.h.bf16 %v6453_v39 }
 0x397   : > { %v3258_v38 = vpop.f32.mrf.mxu1  ;;  %v9932_v33 = vpop.permute.xlu1 %6472  ;;  %v2857_v46 = vsel %vm1449_vm6, %v9205_v16, %v6464_v30  ;;  %v6459_v16 = vunpack.i.l.bf16 %v6458_v55 }
 0x398   : > { %v9936_v41 = vmax.f32 %v3257_v60, 0.0  ;;  %6627 = vrot.lane.b32.xlu0 %v6626_v29, %s7049_s24  ;;  %v9943_v47 = vsel %vm432_vm1, %v7481_v56, %v3448_v2  ;;  %v6474_v14 = vunpack.i.l.bf16 %v9932_v33  ;;  %v6469_v60 = vunpack.i.l.bf16 %v6468_v42 }
 0x399   : > { %v6621_v0 = vpack.i.bf16 %v9943_v47, %v9817_v23  ;;  %v6646_v38 = vpack.i.bf16 %v9771_v62, %v9970_v43  ;;  %v2953_v39 = vsel %vm2926_vm13, %v2920_v37, %v6459_v16 }
 0x39a   : > { %11385 = vst [vmem:[#allocation36_spill] sm:$0xff] %v9936_v41  ;;  %v3450_v59 = vrot.slane %v9936_v41, 7  ;;  %v2888_v13 = vsel %vm1581_vm10, %v2857_v46, %v6474_v14  ;;  %v6641_v15 = vpack.i.bf16 %v9936_v41, %v9871_v40  ;;  %v2986_v5 = vsel %vm2959_vm14, %v2953_v39, %v6469_v60 }
 0x39b   : > { %6622 = vrot.lane.b32.xlu1 %v6621_v0, %s7046_s21  ;;  %v2921_v29 = vsel %vm2893_vm12, %v2888_v13, %v6455_v52  ;;  %v6470_v0 = vunpack.i.h.bf16 %v6468_v42 }
 0x39c   : > { %v9956_v49 = vsel %vm432_vm1, %v3448_v2, %v3450_v59  ;;  %v6460_v2 = vunpack.i.h.bf16 %v6458_v55 }
 0x39d   : > { %v6636_v18 = vpack.i.bf16 %v9956_v49, %v9881_v9 }
 0x39e   : > { %v2954_v14 = vsel %vm2926_vm13, %v2921_v29, %v6460_v2  ;;  %v6465_v29 = vunpack.i.h.bf16 %v9922_v57  ;;  %v6475_v2 = vunpack.i.h.bf16 %v9932_v33 }
 0x39f   : > { %6637 = vrot.lane.b32.xlu0 %v6636_v18, %s7046_s21  ;;  %6632 = vrot.lane.b32.xlu1 %v6631_v27, %s7044_s20  ;;  %v2987_v18 = vsel %vm2959_vm14, %v2954_v14, %v6470_v0  ;;  %v3539_v14 = vrot.slane %v9936_v41, 1 }
 0x3a0   : > { %v6483_v34 = vpop.permute.xlu1 %6482  ;;  %v2858_v33 = vsel %vm1449_vm6, %v9265_v51, %v6465_v29 }
 0x3a1   : > { %v6484_v59 = vunpack.i.l.bf16 %v6483_v34  ;;  %v6485_v13 = vunpack.i.h.bf16 %v6483_v34 }
 0x3a3   : > { %6647 = vrot.lane.b32.xlu0 %v6646_v38, %s7044_s20  ;;  %v6478_v30 = vpop.permute.xlu0 %6477  ;;  %6642 = vrot.lane.b32.xlu1 %v6641_v15, %s7049_s24 }
 0x3a4   : > { %v6480_v31 = vunpack.i.h.bf16 %v6478_v30  ;;  %v6479_v48 = vunpack.i.l.bf16 %v6478_v30  ;;  %v6493_v52 = vpop.permute.xlu1 %6492 }
 0x3a5   : > { %v6495_v29 = vunpack.i.h.bf16 %v6493_v52 }
 0x3a6   : > { %v3019_v55 = vsel %vm2992_vm15, %v2986_v5, %v6479_v48  ;;  %v3020_v25 = vsel %vm2992_vm15, %v2987_v18, %v6480_v31 }
 0x3a7   : > { %v6488_v10 = vpop.permute.xlu0 %6487  ;;  %v3052_v46 = vsel %vm3025_vm2, %v3019_v55, %v6484_v59  ;;  %v3053_v60 = vsel %vm3025_vm2, %v3020_v25, %v6485_v13  ;;  %v2889_v59 = vsel %vm1581_vm10, %v2858_v33, %v6475_v2 }
 0x3a8   : > { %3340 = vmatmul.mubr.f32.gmra.mxu1 %v3052_v46  ;;  %v6490_v5 = vunpack.i.h.bf16 %v6488_v10  ;;  %v6503_v55 = vpop.permute.xlu1 %6502 }
 0x3a9   : > { %v3261_v27 = vpop.f32.mrf.mxu1  ;;  %5520 = vmatprep.mubr.msk.f32.mxu1 %vm1449_vm6, %v9413_v7  ;;  %v6489_v7 = vunpack.i.l.bf16 %v6488_v10 }
 0x3aa   : > { %v3262_v42 = vadd.f32 %v9508_v50, %v3261_v27 }
 0x3ab   : > { %v3263_v37 = vpop.f32.mrf.mxu1  ;;  %v9992_v16 = vpop.permute.xlu0 %6497  ;;  %v2922_v51 = vsel %vm2893_vm12, %v2889_v59, %v6489_v7 }
 0x3ac   : > { %v9996_v38 = vmax.f32 %v3262_v42, 0.0  ;;  %3345 = vmatmul.mubr.f32.gmra.mxu1 %v3053_v60  ;;  %v6499_v34 = vunpack.i.l.bf16 %v9992_v16  ;;  %v6494_v42 = vunpack.i.l.bf16 %v6493_v52  ;;  %v6504_v37 = vunpack.i.l.bf16 %v6503_v55 }
 0x3ad   : > { %v3266_v15 = vpop.f32.mrf.mxu1  ;;  %5521 = vmatprep.mubr.msk.f32.mxu1 %vm1449_vm6, %v9522_v11 }
 0x3ae   : > { %v3267_v39 = vadd.f32 %v9508_v50, %v3266_v15  ;;  %v6656_v30 = vpack.i.bf16 %v9996_v38, %v9886_v12  ;;  %v3452_v57 = vrot.slane %v9996_v38, 7  ;;  %v3538_v50 = vrot.slane %v9925_v35, 1 }
 0x3af   : > { %v3268_v31 = vpop.f32.mrf.mxu1  ;;  %v10005_v48 = vpop.permute.xlu0 %6507  ;;  %v2859_v46 = vsel %vm1449_vm6, %v9268_v63, %v6499_v34  ;;  %v2955_v15 = vsel %vm2926_vm13, %v2922_v51, %v6494_v42 }
 0x3b0   : > { %v10011_v0 = vmax.f32 %v3267_v39, 0.0  ;;  %v6509_v11 = vunpack.i.l.bf16 %v10005_v48  ;;  %6657 = vrot.lane.b32.xlu0 %v6656_v30, %s7049_s24  ;;  %v10021_v18 = vsel %vm432_vm1, %v7481_v56, %v3452_v57  ;;  %v10029_v10 = vsel %vm526_vm0, %v3538_v50, %v3539_v14 }
 0x3b1   : > { %v6651_v13 = vpack.i.bf16 %v10021_v18, %v9900_v61  ;;  %v6661_v39 = vpack.i.bf16 %v9852_v21, %v10029_v10  ;;  %v10043_v30 = vsel %vm526_vm0, %v3539_v14, %v11370_v58  ;;  %v2988_v50 = vsel %vm2959_vm14, %v2955_v15, %v6504_v37 }
 0x3b2   : > { %v2890_v25 = vsel %vm1581_vm10, %v2859_v46, %v6509_v11  ;;  %v3454_v27 = vrot.slane %v10011_v0, 7  ;;  %v6676_v59 = vpack.i.bf16 %v9864_v45, %v10043_v30  ;;  %v6671_v14 = vpack.i.bf16 %v10011_v0, %v9943_v47 }
 0x3b3   : > { %v2923_v63 = vsel %vm2893_vm12, %v2890_v25, %v6490_v5  ;;  %6652 = vrot.lane.b32.xlu1 %v6651_v13, %s7046_s21  ;;  %v6518_v2 = vpop.permute.xlu0 %6517 }
 0x3b4   : > { %v10034_v60 = vsel %vm432_vm1, %v3452_v57, %v3454_v27  ;;  %v2956_v52 = vsel %vm2926_vm13, %v2923_v63, %v6495_v29  ;;  %v6505_v57 = vunpack.i.h.bf16 %v6503_v55  ;;  %v6519_v11 = vunpack.i.l.bf16 %v6518_v2 }
 0x3b5   : > { %v6666_v34 = vpack.i.bf16 %v10034_v60, %v9952_v54  ;;  %v6520_v13 = vunpack.i.h.bf16 %v6518_v2  ;;  %v6500_v29 = vunpack.i.h.bf16 %v9992_v16 }
 0x3b6   : > { %v6513_v7 = vpop.permute.xlu1 %6512  ;;  %v2989_v25 = vsel %vm2959_vm14, %v2956_v52, %v6505_v57 }
 0x3b7   : > { %v6515_v31 = vunpack.i.h.bf16 %v6513_v7  ;;  %v6514_v33 = vunpack.i.l.bf16 %v6513_v7  ;;  %6667 = vrot.lane.b32.xlu0 %v6666_v34, %s7046_s21  ;;  %6662 = vrot.lane.b32.xlu1 %v6661_v39, %s7044_s20  ;;  %v6528_v37 = vpop.permute.xlu0 %6527  ;;  %v6510_v34 = vunpack.i.h.bf16 %v10005_v48 }
 0x3b9   : > { %v3021_v5 = vsel %vm2992_vm15, %v2988_v50, %v6514_v33  ;;  %v3022_v55 = vsel %vm2992_vm15, %v2989_v25, %v6515_v31  ;;  %v6530_v25 = vunpack.i.h.bf16 %v6528_v37 }
 0x3ba   : > { %v6523_v46 = vpop.permute.xlu1 %6522  ;;  %v3054_v51 = vsel %vm3025_vm2, %v3021_v5, %v6519_v11  ;;  %v3055_v27 = vsel %vm3025_vm2, %v3022_v55, %v6520_v13 }
 0x3bb   : > { %6677 = vrot.lane.b32.xlu0 %v6676_v59, %s7044_s20  ;;  %3350 = vmatmul.mubr.f32.gmra.mxu1 %v3054_v51  ;;  %v6524_v7 = vunpack.i.l.bf16 %v6523_v46  ;;  %v6533_v57 = vpop.permute.xlu0 %6532  ;;  %v6525_v50 = vunpack.i.h.bf16 %v6523_v46  ;;  %v6529_v59 = vunpack.i.l.bf16 %v6528_v37 }
 0x3bc   : > { %6672 = vrot.lane.b32.xlu1 %v6671_v14, %s7049_s24  ;;  %5522 = vmatprep.mubr.msk.f32.mxu1 %vm1449_vm6, %v9537_v8  ;;  %v2860_v8 = vsel %vm1449_vm6, %v9386_v19, %v6500_v29  ;;  %v6534_v5 = vunpack.i.l.bf16 %v6533_v57 }
 0x3bd   : > { %v2891_v52 = vsel %vm1581_vm10, %v2860_v8, %v6510_v34 }
 0x3be   : > { %v2235_v42 = vpop.permute.xlu1 %2234  ;;  %v2924_v48 = vsel %vm2893_vm12, %v2891_v52, %v6524_v7 }
 0x3bf   : > { %3355 = vmatmul.mubr.f32.gmra.mxu1 %v3055_v27  ;;  %v2861_v33 = vsel %vm1449_vm6, %v9389_v3, %v2235_v42  ;;  %v2957_v19 = vsel %vm2926_vm13, %v2924_v48, %v6529_v59  ;;  %v6535_v27 = vunpack.i.h.bf16 %v6533_v57 }
 0x3c0   : > { %5523 = vmatprep.mubr.msk.f32.mxu1 %vm1449_vm6, %v11370_v58  ;;  %v2990_v29 = vsel %vm2959_vm14, %v2957_v19, %v6534_v5 }
 0x3c1   : > { %v10064_v63 = vpop.f32.mrf.mxu1 }
 0x3c3   : > { %v3273_v2 = vpop.f32.mrf.mxu1 }
 0x3c4   : > { %v6538_v15 = vpop.permute.xlu1 %6537 }
 0x3c5   : > { %v6539_v39 = vunpack.i.l.bf16 %v6538_v15  ;;  %v10068_v31 = vpop.f32.mrf.mxu1  ;;  %v6540_v42 = vunpack.i.h.bf16 %v6538_v15 }
 0x3c7   : > { %v2892_v11 = vsel %vm1581_vm10, %v2861_v33, %v6539_v39  ;;  %v3278_v16 = vpop.f32.mrf.mxu1  ;;  %v4250_v15 = vsel %vm1581_vm10, %v9557_v22, %v6540_v42 }
 0x3c8   : > { %v2925_v14 = vsel %vm2893_vm12, %v2892_v11, %v6525_v50  ;;  %v2799_v51 = vpop.permute.xlu1 %2798 }
 0x3c9   : > { %v2958_v3 = vsel %vm2926_vm13, %v2925_v14, %v6530_v25 }
 0x3ca   : > { %v2991_v39 = vsel %vm2959_vm14, %v2958_v3, %v6535_v27 }
 0x3cd   : > { %v6543_v55 = vpop.permute.xlu0 %6542 }
 0x3ce   : > { %v6544_v13 = vunpack.i.l.bf16 %v6543_v55  ;;  %v6545_v52 = vunpack.i.h.bf16 %v6543_v55 }
 0x3d0   : > { %v3023_v46 = vsel %vm2992_vm15, %v2990_v29, %v6544_v13  ;;  %v6553_v34 = vpop.permute.xlu1 %6552  ;;  %v3024_v33 = vsel %vm2992_vm15, %v2991_v39, %v6544_v13 }
 0x3d1   : > { %v6548_v2 = vpop.permute.xlu0 %6547  ;;  %v3056_v7 = vsel %vm3025_vm2, %v3023_v46, %v2799_v51  ;;  %v6554_v8 = vunpack.i.l.bf16 %v6553_v34  ;;  %v6555_v16 = vunpack.i.h.bf16 %v6553_v34  ;;  %v3057_v59 = vsel %vm3025_vm2, %v3024_v33, %v2799_v51 }
 0x3d2   : > { %v6549_v37 = vunpack.i.l.bf16 %v6548_v2  ;;  %3360 = vmatmul.mubr.f32.gmra.mxu1 %v3056_v7  ;;  %v6550_v13 = vunpack.i.h.bf16 %v6548_v2 }
 0x3d3   : > { %5524 = vmatprep.mubr.msk.f32.mxu1 %vm1449_vm6, %v11370_v58  ;;  %v4282_v11 = vsel %vm2926_vm13, %v4250_v15, %v6554_v8 }
 0x3d4   : > { %v4156_v57 = vsel %vm1581_vm10, %v7481_v56, %v6549_v37  ;;  %v4314_v50 = vsel %vm2992_vm15, %v4282_v11, %v6545_v52  ;;  %v4251_v7 = vsel %vm1581_vm10, %v9570_v44, %v6550_v13 }
 0x3d5   : > { %v6558_v48 = vpop.permute.xlu0 %6557  ;;  %4515 = vmatprep.mubr.f32.mxu0 %v4314_v50  ;;  %v4187_v14 = vsel %vm2926_vm13, %v4156_v57, %v6555_v16 }
 0x3d6   : > { %v6559_v5 = vunpack.i.l.bf16 %v6558_v48  ;;  %3365 = vmatmul.mubr.f32.gmra.mxu1 %v3057_v59  ;;  %v6560_v51 = vunpack.i.h.bf16 %v6558_v48 }
 0x3d8   : > { %v4218_v25 = vsel %vm2992_vm15, %v4187_v14, %v6559_v5 }
 0x3d9   : > { %v10096_v19 = vpop.f32.mrf.mxu1  ;;  %4516 = vmatmul.mubr.f32.vlgmr.msra.gmra.mxu0 %v4218_v25 }
 0x3da   : > { %v6568_v3 = vpop.permute.xlu0 %6567 }
 0x3db   : > { %v3283_v55 = vpop.f32.mrf.mxu1  ;;  %v6569_v29 = vunpack.i.l.bf16 %v6568_v3  ;;  %v6570_v16 = vunpack.i.h.bf16 %v6568_v3 }
 0x3dd   : > { %v10098_v27 = vpop.f32.mrf.mxu1  ;;  %v6563_v42 = vpop.permute.xlu1 %6562  ;;  %v4219_v2 = vsel %vm2992_vm15, %v4187_v14, %v6569_v29 }
 0x3de   : > { %v6564_v46 = vunpack.i.l.bf16 %v6563_v42  ;;  %v6565_v57 = vunpack.i.h.bf16 %v6563_v42 }
 0x3df   : > { %v3288_v34 = vpop.f32.mrf.mxu1 }
 0x3e0   : > { %v4283_v8 = vsel %vm2926_vm13, %v4251_v7, %v6564_v46 }
 0x3e1   : > { %v6578_v39 = vpop.permute.xlu0 %6577  ;;  %v6573_v37 = vpop.permute.xlu1 %6572  ;;  %v4315_v33 = vsel %vm2992_vm15, %v4283_v8, %v6560_v51 }
 0x3e2   : > { %v6575_v52 = vunpack.i.h.bf16 %v6573_v37  ;;  %v6574_v15 = vunpack.i.l.bf16 %v6573_v37  ;;  %4520 = vmatprep.mubr.f32.mxu0 %v4315_v33  ;;  %v6579_v11 = vunpack.i.l.bf16 %v6578_v39  ;;  %v6580_v13 = vunpack.i.h.bf16 %v6578_v39 }
 0x3e3   : > { %4521 = vmatmul.mubr.f32.gmra.mxu0 %v4219_v2 }
 0x3e4   : > { %v4252_v48 = vsel %vm1581_vm10, %v9661_v1, %v6574_v15  ;;  %v4157_v59 = vsel %vm1581_vm10, %v9737_v17, %v6575_v52 }
 0x3e5   : > { %v6588_v50 = vpop.permute.xlu0 %6587  ;;  %v6583_v5 = vpop.permute.xlu1 %6582  ;;  %v4284_v55 = vsel %vm2926_vm13, %v4252_v48, %v6565_v57  ;;  %v4188_v42 = vsel %vm2926_vm13, %v4157_v59, %v6579_v11 }
 0x3e6   : > { %v6589_v25 = vunpack.i.l.bf16 %v6588_v50  ;;  %v6584_v46 = vunpack.i.l.bf16 %v6583_v5  ;;  %v4316_v34 = vsel %vm2992_vm15, %v4284_v55, %v6570_v16  ;;  %v6585_v14 = vunpack.i.h.bf16 %v6583_v5 }
 0x3e7   : > { %4525 = vmatprep.mubr.f32.mxu0 %v4316_v34  ;;  %v6590_v39 = vunpack.i.h.bf16 %v6588_v50 }
 0x3e8   : > { %v4253_v3 = vsel %vm1581_vm10, %v9708_v28, %v6589_v25  ;;  %v4220_v29 = vsel %vm2992_vm15, %v4188_v42, %v6584_v46 }
 0x3e9   : > { %v4285_v51 = vsel %vm2926_vm13, %v4253_v3, %v6580_v13  ;;  %4526 = vmatmul.mubr.f32.gmra.mxu0 %v4220_v29  ;;  %v4158_v11 = vsel %vm1581_vm10, %v9760_v32, %v6590_v39 }
 0x3ea   : > { %v4317_v17 = vsel %vm2992_vm15, %v4285_v51, %v6585_v14 }
 0x3eb   : > { %4530 = vmatprep.mubr.f32.mxu0 %v4317_v17 }
 0x3f1   : > { %v10117_v7 = vpop.f32.mrf.mxu1 }
 0x3f2   : > { %v6598_v37 = vpop.permute.xlu0 %6597 }
 0x3f3   : > { %v3293_v8 = vpop.f32.mrf.mxu1  ;;  %v6599_v2 = vunpack.i.l.bf16 %v6598_v37  ;;  %v6600_v14 = vunpack.i.h.bf16 %v6598_v37 }
 0x3f5   : > { %v10119_v33 = vpop.f32.mrf.mxu1  ;;  %v6593_v52 = vpop.permute.xlu1 %6592 }
 0x3f6   : > { %v6594_v15 = vunpack.i.l.bf16 %v6593_v52  ;;  %v6595_v50 = vunpack.i.h.bf16 %v6593_v52 }
 0x3f7   : > { %v3298_v57 = vpop.f32.mrf.mxu1 }
 0x3f8   : > { %v4189_v16 = vsel %vm2926_vm13, %v4158_v11, %v6594_v15 }
 0x3f9   : > { %v6603_v48 = vpop.permute.xlu1 %6602  ;;  %v6608_v59 = vpop.permute.xlu0 %6607  ;;  %v4221_v5 = vsel %vm2992_vm15, %v4189_v16, %v6599_v2 }
 0x3fa   : > { %v6605_v25 = vunpack.i.h.bf16 %v6603_v48  ;;  %v6604_v55 = vunpack.i.l.bf16 %v6603_v48  ;;  %4531 = vmatmul.mubr.f32.gmra.mxu0 %v4221_v5  ;;  %v6609_v13 = vunpack.i.l.bf16 %v6608_v59  ;;  %v6610_v17 = vunpack.i.h.bf16 %v6608_v59 }
 0x3fc   : > { %v4254_v46 = vsel %vm1581_vm10, %v9755_v20, %v6604_v55  ;;  %v4159_v34 = vsel %vm1581_vm10, %v9703_v6, %v6605_v25 }
 0x3fd   : > { %v6613_v42 = vpop.permute.xlu1 %6612  ;;  %v6618_v32 = vpop.permute.xlu0 %6617  ;;  %v4286_v3 = vsel %vm2926_vm13, %v4254_v46, %v6595_v50  ;;  %v4190_v8 = vsel %vm2926_vm13, %v4159_v34, %v6609_v13 }
 0x3fe   : > { %v6614_v29 = vunpack.i.l.bf16 %v6613_v42  ;;  %v6619_v51 = vunpack.i.l.bf16 %v6618_v32  ;;  %v4318_v39 = vsel %vm2992_vm15, %v4286_v3, %v6600_v14  ;;  %v6615_v52 = vunpack.i.h.bf16 %v6613_v42 }
 0x3ff   : > { %4535 = vmatprep.mubr.f32.mxu0 %v4318_v39  ;;  %v6620_v16 = vunpack.i.h.bf16 %v6618_v32 }
 0x400   : > { %v4222_v15 = vsel %vm2992_vm15, %v4190_v8, %v6614_v29  ;;  %v4255_v2 = vsel %vm1581_vm10, %v9771_v62, %v6619_v51 }
 0x401   : > { %4536 = vmatmul.mubr.f32.gmra.mxu0 %v4222_v15  ;;  %v4287_v6 = vsel %vm2926_vm13, %v4255_v2, %v6610_v17  ;;  %v4160_v13 = vsel %vm1581_vm10, %v9780_v24, %v6620_v16 }
 0x402   : > { %v4319_v37 = vsel %vm2992_vm15, %v4287_v6, %v6615_v52 }
 0x403   : > { %4540 = vmatprep.mubr.f32.mxu0 %v4319_v37 }
 0x409   : > { %v10137_v57 = vpop.f32.mrf.mxu1 }
 0x40a   : > { %v6628_v48 = vpop.permute.xlu0 %6627 }
 0x40b   : > { %v3303_v11 = vpop.f32.mrf.mxu1  ;;  %v6629_v50 = vunpack.i.l.bf16 %v6628_v48  ;;  %v6630_v17 = vunpack.i.h.bf16 %v6628_v48 }
 0x40d   : > { %v10139_v59 = vpop.f32.mrf.mxu1  ;;  %v6623_v5 = vpop.permute.xlu1 %6622 }
 0x40e   : > { %v6624_v25 = vunpack.i.l.bf16 %v6623_v5  ;;  %v6625_v32 = vunpack.i.h.bf16 %v6623_v5 }
 0x40f   : > { %v3308_v55 = vpop.f32.mrf.mxu1 }
 0x410   : > { %v4191_v34 = vsel %vm2926_vm13, %v4160_v13, %v6624_v25 }
 0x411   : > { %v6638_v46 = vpop.permute.xlu0 %6637  ;;  %v6633_v14 = vpop.permute.xlu1 %6632  ;;  %v4223_v42 = vsel %vm2992_vm15, %v4191_v34, %v6629_v50 }
 0x412   : > { %v6635_v3 = vunpack.i.h.bf16 %v6633_v14  ;;  %v6634_v29 = vunpack.i.l.bf16 %v6633_v14  ;;  %4541 = vmatmul.mubr.f32.gmra.mxu0 %v4223_v42  ;;  %v6639_v51 = vunpack.i.l.bf16 %v6638_v46  ;;  %v6640_v6 = vunpack.i.h.bf16 %v6638_v46 }
 0x414   : > { %v4256_v8 = vsel %vm1581_vm10, %v9852_v21, %v6634_v29  ;;  %v4161_v52 = vsel %vm1581_vm10, %v9784_v53, %v6635_v3 }
 0x415   : > { %v6648_v39 = vpop.permute.xlu0 %6647  ;;  %v6643_v24 = vpop.permute.xlu1 %6642  ;;  %v4288_v2 = vsel %vm2926_vm13, %v4256_v8, %v6625_v32  ;;  %v4192_v5 = vsel %vm2926_vm13, %v4161_v52, %v6639_v51 }
 0x416   : > { %v6649_v15 = vunpack.i.l.bf16 %v6648_v39  ;;  %v6644_v37 = vunpack.i.l.bf16 %v6643_v24  ;;  %v4320_v11 = vsel %vm2992_vm15, %v4288_v2, %v6630_v17  ;;  %v6645_v16 = vunpack.i.h.bf16 %v6643_v24 }
 0x417   : > { %4545 = vmatprep.mubr.f32.mxu0 %v4320_v11  ;;  %v6650_v46 = vunpack.i.h.bf16 %v6648_v39 }
 0x418   : > { %v4257_v48 = vsel %vm1581_vm10, %v9864_v45, %v6649_v15  ;;  %v4224_v25 = vsel %vm2992_vm15, %v4192_v5, %v6644_v37 }
 0x419   : > { %v4289_v55 = vsel %vm2926_vm13, %v4257_v48, %v6640_v6  ;;  %4546 = vmatmul.mubr.f32.gmra.mxu0 %v4224_v25  ;;  %v4162_v51 = vsel %vm1581_vm10, %v9803_v26, %v6650_v46 }
 0x41a   : > { %v4321_v53 = vsel %vm2992_vm15, %v4289_v55, %v6645_v16 }
 0x41b   : > { %4550 = vmatprep.mubr.f32.mxu0 %v4321_v53 }
 0x420   : > { %v10157_v50 = vpop.f32.mrf.mxu1 }
 0x422   : > { %v3313_v13 = vpop.f32.mrf.mxu1  ;;  %v6658_v14 = vpop.permute.xlu0 %6657 }
 0x423   : > { %v6659_v32 = vunpack.i.l.bf16 %v6658_v14  ;;  %v6660_v37 = vunpack.i.h.bf16 %v6658_v14 }
 0x424   : > { %v10159_v34 = vpop.f32.mrf.mxu1 }
 0x425   : > { %v6653_v42 = vpop.permute.xlu1 %6652 }
 0x426   : > { %v3318_v3 = vpop.f32.mrf.mxu1  ;;  %v6654_v29 = vunpack.i.l.bf16 %v6653_v42  ;;  %v6655_v39 = vunpack.i.h.bf16 %v6653_v42 }
 0x428   : > { %v4193_v8 = vsel %vm2926_vm13, %v4162_v51, %v6654_v29 }
 0x429   : > { %v6668_v17 = vpop.permute.xlu0 %6667  ;;  %v6663_v52 = vpop.permute.xlu1 %6662  ;;  %v4225_v24 = vsel %vm2992_vm15, %v4193_v8, %v6659_v32 }
 0x42a   : > { %v6665_v15 = vunpack.i.h.bf16 %v6663_v52  ;;  %v6664_v2 = vunpack.i.l.bf16 %v6663_v52  ;;  %4551 = vmatmul.mubr.f32.gmra.mxu0 %v4225_v24  ;;  %v6669_v6 = vunpack.i.l.bf16 %v6668_v17  ;;  %v6670_v55 = vunpack.i.h.bf16 %v6668_v17 }
 0x42c   : > { %v4258_v16 = vsel %vm1581_vm10, %v9925_v35, %v6664_v2  ;;  %v4163_v26 = vsel %vm1581_vm10, %v9871_v40, %v6665_v15 }
 0x42d   : > { %v10165_v11 = vpop.permute.xlu0 %6677  ;;  %v4290_v25 = vsel %vm2926_vm13, %v4258_v16, %v6655_v39  ;;  %v4194_v14 = vsel %vm2926_vm13, %v4163_v26, %v6669_v6 }
 0x42e   : > { %v6673_v5 = vpop.permute.xlu1 %6672  ;;  %v6679_v48 = vunpack.i.l.bf16 %v10165_v11  ;;  %v4322_v13 = vsel %vm2992_vm15, %v4290_v25, %v6660_v37 }
 0x42f   : > { %v6674_v53 = vunpack.i.l.bf16 %v6673_v5  ;;  %v6675_v46 = vunpack.i.h.bf16 %v6673_v5  ;;  %4555 = vmatprep.mubr.f32.mxu0 %v4322_v13 }
 0x430   : > { %v4259_v42 = vsel %vm1581_vm10, %v9936_v41, %v6679_v48 }
 0x431   : > { %v4226_v3 = vsel %vm2992_vm15, %v4194_v14, %v6674_v53  ;;  %v4291_v40 = vsel %vm2926_vm13, %v4259_v42, %v6670_v55  ;;  %v10191_v55 = vld [vmem:[%s11179_s4] ss:$0 sm:$0xff] }
 0x432   : > { %4556 = vmatmul.mubr.f32.gmra.mxu0 %v4226_v3  ;;  %v4323_v29 = vsel %vm2992_vm15, %v4291_v40, %v6675_v46  ;;  %v3272_v40 = vadd.f32 %v10191_v55, %v10064_v63 }
 0x433   : > { %4560 = vmatprep.mubr.f32.mxu0 %v4323_v29 }
 0x438   : > { %v10180_v32 = vpop.f32.mrf.mxu1 }
 0x43a   : > { %v3323_v51 = vpop.f32.mrf.mxu1 }
 0x43b   : > { %v3543_v51 = vrot.slane %v10011_v0, 1 }
 0x43c   : > { %v10182_v17 = vpop.f32.mrf.mxu1 }
 0x43e   : > { %v3328_v8 = vpop.f32.mrf.mxu1 }
 0x450   : > { %v10184_v52 = vpop.f32.mrf.mxu1 }
 0x452   : > { %v3333_v24 = vpop.f32.mrf.mxu1 }
 0x454   : > { %v10186_v15 = vpop.f32.mrf.mxu1 }
 0x456   : > { %v3338_v2 = vpop.f32.mrf.mxu1 }
 0x468   : > { %v3341_v39 = vpop.f32.mrf.mxu1 }
 0x469   : > { %v3342_v8 = vadd.f32 %v10191_v55, %v3341_v39 }
 0x46a   : > { %v3343_v6 = vpop.f32.mrf.mxu1 }
 0x46c   : > { %v3346_v37 = vpop.f32.mrf.mxu1 }
 0x46d   : > { %v3347_v46 = vadd.f32 %v10191_v55, %v3346_v37 }
 0x46e   : > { %v3348_v16 = vpop.f32.mrf.mxu1 }
 0x46f   : > { %v10207_v6 = vmax.f32 %v3347_v46, 0.0  ;;  %v3542_v16 = vrot.slane %v9996_v38, 1 }
 0x47b   : > { %v3351_v26 = vpop.f32.mrf.mxu1 }
 0x47c   : > { %v3352_v13 = vadd.f32 %v10191_v55, %v3351_v26 }
 0x47d   : > { %v3353_v5 = vpop.f32.mrf.mxu1 }
 0x47e   : > { %v10203_v24 = vmax.f32 %v3352_v13, 0.0  ;;  %v10220_v13 = vmax.f32 %v3342_v8, 0.0 }
 0x47f   : > { %v3356_v48 = vpop.f32.mrf.mxu1 }
 0x480   : > { %v3357_v53 = vadd.f32 %v10191_v55, %v3356_v48 }
 0x481   : > { %v3358_v25 = vpop.f32.mrf.mxu1 }
 0x482   : > { %v10196_v42 = vmax.f32 %v3357_v53, 0.0  ;;  %v10215_v25 = vmax.f32 %v3272_v40, 0.0  ;;  %v10218_v53 = vsel %vm526_vm0, %v3542_v16, %v3543_v51 }
 0x483   : > { %11386 = vst [vmem:[#allocation24_spill] sm:$0xff] %v10218_v53  ;;  %v6696_v8 = vpack.i.bf16 %v9925_v35, %v10218_v53 }
 0x484   : > { %v3579_v48 = vrot.slane %v10196_v42, 1 }
 0x492   : > { %v3361_v14 = vpop.f32.mrf.mxu1 }
 0x493   : > { %v3362_v3 = vadd.f32 %v10191_v55, %v3361_v14 }
 0x494   : > { %v3363_v29 = vpop.f32.mrf.mxu1 }
 0x495   : > { %v10205_v2 = vmax.f32 %v3362_v3, 0.0  ;;  %v3578_v29 = vrot.slane %v10203_v24, 1 }
 0x496   : > { %v3366_v37 = vpop.f32.mrf.mxu1 }
 0x497   : > { %v3367_v26 = vadd.f32 %v10191_v55, %v3366_v37  ;;  %v6686_v5 = vpack.i.bf16 %v10205_v2, %v9956_v49  ;;  %v3584_v63 = vrot.slane %v10205_v2, 7  ;;  %v10237_v16 = vsel %vm526_vm0, %v3578_v29, %v3579_v48 }
 0x498   : > { %v3368_v39 = vpop.f32.mrf.mxu1  ;;  %11388 = vst [vmem:[#allocation37_spill] sm:$0xff] %v10237_v16  ;;  %v3574_v29 = vrot.slane %v10220_v13, 1  ;;  %v6691_v22 = vpack.i.bf16 %v10220_v13, %v10237_v16 }
 0x499   : > { %v10222_v46 = vmax.f32 %v3367_v26, 0.0  ;;  %6687 = vrot.lane.b32.xlu0 %v6686_v5, %s7049_s24  ;;  %v10225_v14 = vpop.f32.mrf.mxu0  ;;  %v10229_v3 = vsel %vm432_vm1, %v7481_v56, %v3584_v63  ;;  %v3575_v5 = vrot.slane %v10207_v6, 1  ;;  %v10245_v39 = vld [vmem:[%s11180_s5 + $0x118] sm:$0xff] }
 0x49a   : > { %11387 = vst [vmem:[#allocation30_spill] sm:$0xff] %v10225_v14  ;;  %v6681_v40 = vpack.i.bf16 %v10229_v3, %v9970_v43  ;;  %v3456_v14 = vrot.slane %v10215_v25, 7  ;;  %5797 = vmatprep.subr.mxu1 %v10245_v39 }
 0x49b   : > { %v4519_v37 = vpop.f32.mrf.mxu0  ;;  %v3586_v26 = vrot.slane %v10222_v46, 7  ;;  %v10259_v44 = vsel %vm526_vm0, %v3574_v29, %v3575_v5  ;;  %v6716_v29 = vpack.i.bf16 %v10222_v46, %v10021_v18 }
 0x49c   : > { %6682 = vrot.lane.b32.xlu1 %v6681_v40, %s7046_s21  ;;  %11389 = vst [vmem:[#allocation8_spill] sm:$0xff] %v10259_v44 }
 0x49d   : > { %6697 = vrot.lane.b32.xlu0 %v6696_v8, %s7044_s20  ;;  %v10249_v37 = vsel %vm432_vm1, %v3584_v63, %v3586_v26  ;;  %v3488_v8 = vrot.slane %v10203_v24, 7  ;;  %v3277_v63 = vadd.f32 %v10191_v55, %v10068_v31  ;;  %v10268_v26 = vsel %vm432_vm1, %v7481_v56, %v3456_v14 }
 0x49e   : > { %v6706_v40 = vpack.i.bf16 %v10249_v37, %v10029_v10  ;;  %v6701_v1 = vpack.i.bf16 %v10268_v26, %v10259_v44  ;;  %v10283_v31 = vsel %vm526_vm0, %v3543_v51, %v11370_v58 }
 0x49f   : > { %v10276_v28 = vsel %vm432_vm1, %v7481_v56, %v3488_v8  ;;  %11391 = vst [vmem:[#allocation27_spill] sm:$0xff] %v10283_v31  ;;  %v6726_v21 = vpack.i.bf16 %v9936_v41, %v10283_v31  ;;  %v3589_v41 = vrot.slane %v10222_v46, 1 }
 0x4a0   : > { %6692 = vrot.lane.b32.xlu1 %v6691_v22, %s7044_s20  ;;  %v6711_v62 = vpack.i.bf16 %v10215_v25, %v10276_v28 }
 0x4a1   : > { %6707 = vrot.lane.b32.xlu0 %v6706_v40, %s7046_s21  ;;  %v10285_v40 = vmax.f32 %v3277_v63, 0.0  ;;  %v6736_v63 = vpack.i.bf16 %v7481_v56, %v10043_v30 }
 0x4a3   : > { %v10278_v22 = vpop.f32.mrf.mxu0 }
 0x4a4   : > { %11390 = vst [vmem:[#allocation9_spill] sm:$0xff] %v10278_v22  ;;  %6702 = vrot.lane.b32.xlu1 %v6701_v1, %s7046_s21  ;;  %v10294_v22 = vsel %vm526_vm0, %v3579_v48, %v11370_v58  ;;  %v3458_v1 = vrot.slane %v10285_v40, 7  ;;  %v3490_v48 = vrot.slane %v10196_v42, 7 }
 0x4a5   : > { %6717 = vrot.lane.b32.xlu0 %v6716_v29, %s7049_s24  ;;  %v4524_v20 = vpop.f32.mrf.mxu0  ;;  %11392 = vst [vmem:[#allocation31_spill] sm:$0xff] %v10294_v22  ;;  %v10307_v29 = vsel %vm526_vm0, %v3575_v5, %v11370_v58  ;;  %v3546_v5 = vrot.slane %v10215_v25, 1 }
 0x4a6   : > { %v6721_v20 = vpack.i.bf16 %v10207_v6, %v10294_v22  ;;  %11394 = vst [vmem:[#allocation28_spill] sm:$0xff] %v10307_v29 }
 0x4a8   : > { %6712 = vrot.lane.b32.xlu1 %v6711_v62, %s7049_s24  ;;  %v3547_v62 = vrot.slane %v10285_v40, 1 }
 0x4a9   : > { %6727 = vrot.lane.b32.xlu0 %v6726_v21, %s7044_s20  ;;  %v10299_v51 = vpop.f32.mrf.mxu0  ;;  %v3282_v21 = vadd.f32 %v10191_v55, %v10096_v19 }
 0x4aa   : > { %11393 = vst [vmem:[#allocation38_spill] sm:$0xff] %v10299_v51  ;;  %v10316_v51 = vsel %vm432_vm1, %v3456_v14, %v3458_v1  ;;  %v10329_v19 = vsel %vm526_vm0, %v3546_v5, %v3547_v62  ;;  %v3588_v1 = vrot.slane %v10205_v2, 1  ;;  %v6766_v5 = vpack.i.bf16 %v10294_v22, %v10218_v53 }
 0x4ab   : > { %v4529_v45 = vpop.f32.mrf.mxu0  ;;  %v6731_v35 = vpack.i.bf16 %v10316_v51, %v10307_v29  ;;  %11395 = vst [vmem:[#allocation32_spill] sm:$0xff] %v10329_v19  ;;  %v10331_v14 = vmax.f32 %v3282_v21, 0.0  ;;  %v3287_v21 = vadd.f32 %v10191_v55, %v10098_v27 }
 0x4ac   : > { %6722 = vrot.lane.b32.xlu1 %v6721_v20, %s7044_s20  ;;  %v6746_v45 = vpack.i.bf16 %v11369_v36, %v10034_v60  ;;  %v10324_v20 = vsel %vm432_vm1, %v3488_v8, %v3490_v48  ;;  %v6756_v36 = vpack.i.bf16 %v9996_v38, %v10329_v19  ;;  %v10340_v8 = vsel %vm526_vm0, %v3588_v1, %v3589_v41 }
 0x4ad   : > { %6737 = vrot.lane.b32.xlu0 %v6736_v63, %s7046_s21  ;;  %v6741_v63 = vpack.i.bf16 %v10285_v40, %v10324_v20  ;;  %11396 = vst [vmem:[#allocation39_spill] sm:$0xff] %v10340_v8  ;;  %v6751_v48 = vpack.i.bf16 %v10203_v24, %v10340_v8  ;;  %v10363_v27 = vmax.f32 %v3287_v21, 0.0  ;;  %v6776_v8 = vpack.i.bf16 %v10249_v37, %v10268_v26 }
 0x4ae   : > { %v10381_v37 = vsel %vm526_vm0, %v3589_v41, %v11370_v58 }
 0x4af   : > { %11399 = vst [vmem:[#allocation40_spill] sm:$0xff] %v10381_v37  ;;  %v6796_v41 = vpack.i.bf16 %v10316_v51, %v10363_v27 }
 0x4b0   : > { %6732 = vrot.lane.b32.xlu1 %v6731_v35, %s7046_s21  ;;  %v3460_v35 = vrot.slane %v10331_v14, 7 }
 0x4b1   : > { %6747 = vrot.lane.b32.xlu0 %v6746_v45, %s7049_s24  ;;  %v3292_v45 = vadd.f32 %v10191_v55, %v10117_v7 }
 0x4b2   : > { %v10357_v1 = vsel %vm432_vm1, %v7481_v56, %v3460_v35 }
 0x4b3   : > { %v10367_v22 = vmax.f32 %v3292_v45, 0.0  ;;  %v3462_v45 = vrot.slane %v10363_v27, 7 }
 0x4b4   : > { %6742 = vrot.lane.b32.xlu1 %v6741_v63, %s7049_s24 }
 0x4b5   : > { %6757 = vrot.lane.b32.xlu0 %v6756_v36, %s7044_s20  ;;  %v6761_v36 = vpack.i.bf16 %v10357_v1, %v10237_v16 }
 0x4b8   : > { %6752 = vrot.lane.b32.xlu1 %v6751_v48, %s7044_s20  ;;  %v10372_v48 = vsel %vm526_vm0, %v3547_v62, %v11370_v58 }
 0x4b9   : > { %6767 = vrot.lane.b32.xlu0 %v6766_v5, %s7046_s21  ;;  %11398 = vst [vmem:[#allocation11_spill] sm:$0xff] %v10372_v48  ;;  %v6771_v5 = vpack.i.bf16 %v10331_v14, %v10229_v3  ;;  %v6786_v21 = vpack.i.bf16 %v10011_v0, %v10372_v48  ;;  %v6781_v3 = vpack.i.bf16 %v10196_v42, %v10381_v37 }
 0x4ba   : > { %v10359_v63 = vpop.f32.mrf.mxu0 }
 0x4bb   : > { %11397 = vst [vmem:[#allocation10_spill] sm:$0xff] %v10359_v63  ;;  %v10396_v63 = vsel %vm432_vm1, %v3460_v35, %v3462_v45 }
 0x4bc   : > { %6762 = vrot.lane.b32.xlu1 %v6761_v36, %s7046_s21  ;;  %v4534_v7 = vpop.f32.mrf.mxu0  ;;  %v3464_v36 = vrot.slane %v10367_v22, 7  ;;  %11401 = vst [vmem:[#allocation12_spill] sm:$0xff] %v10396_v63 }
 0x4bd   : > { %6777 = vrot.lane.b32.xlu0 %v6776_v8, %s7049_s24  ;;  %v3297_v8 = vadd.f32 %v10191_v55, %v10119_v33  ;;  %v3550_v33 = vrot.slane %v10331_v14, 1 }
 0x4bf   : > { %v10410_v35 = vmax.f32 %v3297_v8, 0.0 }
 0x4c0   : > { %6772 = vrot.lane.b32.xlu1 %v6771_v5, %s7049_s24  ;;  %v3551_v5 = vrot.slane %v10363_v27, 1 }
 0x4c1   : > { %6787 = vrot.lane.b32.xlu0 %v6786_v21, %s7044_s20  ;;  %v10387_v62 = vpop.f32.mrf.mxu0  ;;  %v3302_v21 = vadd.f32 %v10191_v55, %v10137_v57  ;;  %v3466_v16 = vrot.slane %v10410_v35, 7 }
 0x4c2   : > { %11400 = vst [vmem:[#allocation41_spill] sm:$0xff] %v10387_v62  ;;  %v10404_v62 = vsel %vm432_vm1, %v7481_v56, %v3464_v36  ;;  %v10415_v57 = vsel %vm526_vm0, %v3550_v33, %v3551_v5  ;;  %v3307_v33 = vadd.f32 %v10191_v55, %v10139_v59  ;;  %v3554_v59 = vrot.slane %v10367_v22, 1 }
 0x4c3   : > { %v4539_v7 = vpop.f32.mrf.mxu0  ;;  %11402 = vst [vmem:[#allocation13_spill] sm:$0xff] %v10404_v62  ;;  %v6806_v45 = vpack.i.bf16 %v10329_v19, %v10404_v62  ;;  %11403 = vst [vmem:[#allocation42_spill] sm:$0xff] %v10415_v57  ;;  %v6801_v8 = vpack.i.bf16 %v10215_v25, %v10415_v57  ;;  %v3555_v19 = vrot.slane %v10410_v35, 1 }
 0x4c4   : > { %6782 = vrot.lane.b32.xlu1 %v6781_v3, %s7044_s20  ;;  %v6791_v7 = vpack.i.bf16 %v10283_v31, %v10396_v63  ;;  %v10417_v3 = vmax.f32 %v3302_v21, 0.0 }
 0x4c5   : > { %6797 = vrot.lane.b32.xlu0 %v6796_v41, %s7049_s24  ;;  %v10422_v41 = vsel %vm526_vm0, %v3551_v5, %v11370_v58  ;;  %v6811_v5 = vpack.i.bf16 %v10357_v1, %v10367_v22 }
 0x4c6   : > { %11404 = vst [vmem:[#allocation14_spill] sm:$0xff] %v10422_v41  ;;  %v6816_v37 = vpack.i.bf16 %v10285_v40, %v10422_v41  ;;  %v3468_v21 = vrot.slane %v10417_v3, 7 }
 0x4c8   : > { %6792 = vrot.lane.b32.xlu1 %v6791_v7, %s7046_s21  ;;  %v6826_v7 = vpack.i.bf16 %v10396_v63, %v10410_v35 }
 0x4c9   : > { %6807 = vrot.lane.b32.xlu0 %v6806_v45, %s7046_s21  ;;  %v10440_v45 = vsel %vm432_vm1, %v3464_v36, %v3466_v16  ;;  %v10454_v16 = vmax.f32 %v3307_v33, 0.0 }
 0x4ca   : > { %11405 = vst [vmem:[#allocation15_spill] sm:$0xff] %v10440_v45  ;;  %v6821_v63 = vpack.i.bf16 %v10372_v48, %v10440_v45  ;;  %v3322_v48 = vadd.f32 %v10191_v55, %v10180_v32 }
 0x4cc   : > { %6802 = vrot.lane.b32.xlu1 %v6801_v8, %s7044_s20  ;;  %v3312_v8 = vadd.f32 %v10191_v55, %v10157_v50 }
 0x4cd   : > { %6817 = vrot.lane.b32.xlu0 %v6816_v37, %s7044_s20  ;;  %v10448_v37 = vsel %vm432_vm1, %v7481_v56, %v3468_v21 }
 0x4ce   : > { %11406 = vst [vmem:[#allocation43_spill] sm:$0xff] %v10448_v37  ;;  %v6836_v50 = vpack.i.bf16 %v10415_v57, %v10448_v37  ;;  %v10463_v31 = vmax.f32 %v3312_v8, 0.0 }
 0x4d0   : > { %6812 = vrot.lane.b32.xlu1 %v6811_v5, %s7049_s24  ;;  %v10461_v5 = vsel %vm526_vm0, %v3554_v59, %v3555_v19  ;;  %v3470_v59 = vrot.slane %v10454_v16, 7  ;;  %v3472_v8 = vrot.slane %v10463_v31, 7 }
 0x4d1   : > { %6827 = vrot.lane.b32.xlu0 %v6826_v7, %s7049_s24  ;;  %11408 = vst [vmem:[#allocation17_spill] sm:$0xff] %v10461_v5  ;;  %v10468_v7 = vsel %vm526_vm0, %v3555_v19, %v11370_v58  ;;  %v6831_v33 = vpack.i.bf16 %v10331_v14, %v10461_v5  ;;  %v3317_v19 = vadd.f32 %v10191_v55, %v10159_v34  ;;  %v3558_v34 = vrot.slane %v10417_v3, 1 }
 0x4d2   : > { %v10456_v36 = vpop.f32.mrf.mxu0  ;;  %11409 = vst [vmem:[#allocation18_spill] sm:$0xff] %v10468_v7  ;;  %v10488_v57 = vsel %vm432_vm1, %v3468_v21, %v3470_v59 }
 0x4d3   : > { %11407 = vst [vmem:[#allocation16_spill] sm:$0xff] %v10456_v36  ;;  %v6846_v36 = vpack.i.bf16 %v10363_v27, %v10468_v7  ;;  %11411 = vst [vmem:[#allocation21_spill] sm:$0xff] %v10488_v57  ;;  %v6851_v21 = vpack.i.bf16 %v10422_v41, %v10488_v57  ;;  %v10502_v59 = vmax.f32 %v3317_v19, 0.0 }
 0x4d4   : > { %6822 = vrot.lane.b32.xlu1 %v6821_v63, %s7046_s21  ;;  %v4544_v53 = vpop.f32.mrf.mxu0 }
 0x4d5   : > { %6837 = vrot.lane.b32.xlu0 %v6836_v50, %s7046_s21  ;;  %v6841_v53 = vpack.i.bf16 %v10404_v62, %v10417_v3  ;;  %v6856_v50 = vpack.i.bf16 %v10440_v45, %v10454_v16  ;;  %v3563_v62 = vrot.slane %v10502_v59, 1 }
 0x4d8   : > { %6832 = vrot.lane.b32.xlu1 %v6831_v33, %s7044_s20  ;;  %v3559_v33 = vrot.slane %v10454_v16, 1 }
 0x4d9   : > { %6847 = vrot.lane.b32.xlu0 %v6846_v36, %s7044_s20  ;;  %v10479_v63 = vpop.f32.mrf.mxu0 }
 0x4da   : > { %11410 = vst [vmem:[#allocation20_spill] sm:$0xff] %v10479_v63  ;;  %v10496_v63 = vsel %vm432_vm1, %v7481_v56, %v3472_v8  ;;  %v10507_v32 = vsel %vm526_vm0, %v3558_v34, %v3559_v33  ;;  %v6886_v34 = vpack.i.bf16 %v10488_v57, %v10502_v59 }
 0x4db   : > { %v4549_v36 = vpop.f32.mrf.mxu0  ;;  %11412 = vst [vmem:[#allocation22_spill] sm:$0xff] %v10496_v63  ;;  %v6866_v45 = vpack.i.bf16 %v10461_v5, %v10496_v63  ;;  %11413 = vst [vmem:[#allocation23_spill] sm:$0xff] %v10507_v32  ;;  %v6861_v19 = vpack.i.bf16 %v10367_v22, %v10507_v32  ;;  %v3474_v5 = vrot.slane %v10502_v59, 7 }
 0x4dc   : > { %6842 = vrot.lane.b32.xlu1 %v6841_v53, %s7049_s24  ;;  %v10509_v53 = vmax.f32 %v3322_v48, 0.0 }
 0x4dd   : > { %6857 = vrot.lane.b32.xlu0 %v6856_v50, %s7049_s24  ;;  %v10514_v50 = vsel %vm526_vm0, %v3559_v33, %v11370_v58  ;;  %v6871_v33 = vpack.i.bf16 %v10448_v37, %v10463_v31 }
 0x4de   : > { %v6876_v36 = vpack.i.bf16 %v10410_v35, %v10514_v50  ;;  %v3476_v48 = vrot.slane %v10509_v53, 7 }
 0x4e0   : > { %6852 = vrot.lane.b32.xlu1 %v6851_v21, %s7046_s21  ;;  %v10532_v21 = vsel %vm432_vm1, %v3472_v8, %v3474_v5 }
 0x4e1   : > { %6867 = vrot.lane.b32.xlu0 %v6866_v45, %s7046_s21  ;;  %v3327_v45 = vadd.f32 %v10191_v55, %v10182_v17  ;;  %11414 = vst [vmem:[#allocation26_spill] sm:$0xff] %v10532_v21  ;;  %v3562_v17 = vrot.slane %v10463_v31, 1  ;;  %v6881_v57 = vpack.i.bf16 %v10468_v7, %v10532_v21 }
 0x4e3   : > { %v10546_v5 = vmax.f32 %v3327_v45, 0.0 }
 0x4e4   : > { %6862 = vrot.lane.b32.xlu1 %v6861_v19, %s7044_s20  ;;  %v3332_v19 = vadd.f32 %v10191_v55, %v10184_v52 }
 0x4e5   : > { %6877 = vrot.lane.b32.xlu0 %v6876_v36, %s7044_s20  ;;  %v10540_v36 = vsel %vm432_vm1, %v7481_v56, %v3476_v48 }
 0x4e6   : > { %11415 = vst [vmem:[#allocation44_spill] sm:$0xff] %v10540_v36  ;;  %v6896_v52 = vpack.i.bf16 %v10507_v32, %v10540_v36  ;;  %v10555_v37 = vmax.f32 %v3332_v19, 0.0 }
 0x4e8   : > { %6872 = vrot.lane.b32.xlu1 %v6871_v33, %s7049_s24  ;;  %v10553_v33 = vsel %vm526_vm0, %v3562_v17, %v3563_v62  ;;  %v3478_v17 = vrot.slane %v10546_v5, 7  ;;  %v3480_v19 = vrot.slane %v10555_v37, 7 }
 0x4e9   : > { %6887 = vrot.lane.b32.xlu0 %v6886_v34, %s7049_s24  ;;  %11417 = vst [vmem:[#allocation33_spill] sm:$0xff] %v10553_v33  ;;  %v10560_v34 = vsel %vm526_vm0, %v3563_v62, %v11370_v58  ;;  %v6891_v45 = vpack.i.bf16 %v10417_v3, %v10553_v33  ;;  %v6901_v62 = vpack.i.bf16 %v10496_v63, %v10509_v53 }
 0x4ea   : > { %v10548_v8 = vpop.f32.mrf.mxu0  ;;  %11418 = vst [vmem:[#allocation2_spill] sm:$0xff] %v10560_v34  ;;  %v10580_v32 = vsel %vm432_vm1, %v3476_v48, %v3478_v17 }
 0x4eb   : > { %11416 = vst [vmem:[#allocation45_spill] sm:$0xff] %v10548_v8  ;;  %v6906_v8 = vpack.i.bf16 %v10454_v16, %v10560_v34  ;;  %11420 = vst [vmem:[#allocation47_spill] sm:$0xff] %v10580_v32 }
 0x4ec   : > { %6882 = vrot.lane.b32.xlu1 %v6881_v57, %s7046_s21  ;;  %v4554_v41 = vpop.f32.mrf.mxu0 }
 0x4ed   : > { %6897 = vrot.lane.b32.xlu0 %v6896_v52, %s7046_s21  ;;  %v3337_v41 = vadd.f32 %v10191_v55, %v10186_v15  ;;  %v6916_v52 = vpack.i.bf16 %v10532_v21, %v10546_v5  ;;  %v6911_v15 = vpack.i.bf16 %v10514_v50, %v10580_v32 }
 0x4ef   : > { %v10592_v55 = vmax.f32 %v3337_v41, 0.0 }
 0x4f0   : > { %6892 = vrot.lane.b32.xlu1 %v6891_v45, %s7044_s20  ;;  %v3567_v45 = vrot.slane %v10546_v5, 1 }
 0x4f1   : > { %6907 = vrot.lane.b32.xlu0 %v6906_v8, %s7044_s20  ;;  %v10586_v8 = vsel %vm432_vm1, %v7481_v56, %v3480_v19  ;;  %v3571_v21 = vrot.slane %v10592_v55, 1 }
 0x4f2   : > { %v10571_v57 = vpop.f32.mrf.mxu0  ;;  %11421 = vst [vmem:[#allocation48_spill] sm:$0xff] %v10586_v8  ;;  %v6926_v48 = vpack.i.bf16 %v10553_v33, %v10586_v8  ;;  %v10602_v17 = vsel %vm526_vm0, %v3567_v45, %v11370_v58 }
 0x4f3   : > { %11419 = vst [vmem:[#allocation46_spill] sm:$0xff] %v10571_v57  ;;  %v3566_v57 = vrot.slane %v10509_v53, 1  ;;  %11423 = vst [vmem:[#allocation50_spill] sm:$0xff] %v10602_v17  ;;  %v6936_v41 = vpack.i.bf16 %v10502_v59, %v10602_v17 }
 0x4f4   : > { %v4559_v7 = vpop.f32.mrf.mxu0  ;;  %6902 = vrot.lane.b32.xlu1 %v6901_v62, %s7049_s24 }
 0x4f5   : > { %6917 = vrot.lane.b32.xlu0 %v6916_v52, %s7049_s24  ;;  %v10597_v7 = vsel %vm526_vm0, %v3566_v57, %v3567_v45  ;;  %v3482_v52 = vrot.slane %v10592_v55, 7  ;;  %v3484_v57 = vrot.slane %v10220_v13, 7  ;;  %v6931_v45 = vpack.i.bf16 %v10540_v36, %v10555_v37 }
 0x4f6   : > { %11422 = vst [vmem:[#allocation49_spill] sm:$0xff] %v10597_v7  ;;  %v6921_v62 = vpack.i.bf16 %v10463_v31, %v10597_v7 }
 0x4f8   : > { %6912 = vrot.lane.b32.xlu1 %v6911_v15, %s7046_s21  ;;  %v6946_v15 = vpack.i.bf16 %v10580_v32, %v10592_v55 }
 0x4f9   : > { %6927 = vrot.lane.b32.xlu0 %v6926_v48, %s7046_s21  ;;  %v10618_v48 = vsel %vm432_vm1, %v3480_v19, %v3482_v52  ;;  %v10638_v52 = vsel %vm526_vm0, %v3571_v21, %v11370_v58  ;;  %v6680_v58 = vunpack.i.h.bf16 %v10165_v11 }
 0x4fa   : > { %11424 = vst [vmem:[#allocation51_spill] sm:$0xff] %v10618_v48  ;;  %v6941_v36 = vpack.i.bf16 %v10560_v34, %v10618_v48  ;;  %11426 = vst [vmem:[#allocation53_spill] sm:$0xff] %v10638_v52 }
 0x4fc   : > { %6922 = vrot.lane.b32.xlu1 %v6921_v62, %s7044_s20  ;;  %v10624_v62 = vsel %vm432_vm1, %v7481_v56, %v3484_v57 }
 0x4fd   : > { %6937 = vrot.lane.b32.xlu0 %v6936_v41, %s7044_s20  ;;  %v3570_v41 = vrot.slane %v10555_v37, 1  ;;  %v6956_v32 = vpack.i.bf16 %v10597_v7, %v10624_v62 }
 0x4ff   : > { %v10633_v19 = vsel %vm526_vm0, %v3570_v41, %v3571_v21  ;;  %v6976_v21 = vpack.i.bf16 %v10618_v48, %v10207_v6 }
 0x500   : > { %6932 = vrot.lane.b32.xlu1 %v6931_v45, %s7049_s24  ;;  %11425 = vst [vmem:[#allocation52_spill] sm:$0xff] %v10633_v19  ;;  %v6951_v56 = vpack.i.bf16 %v10509_v53, %v10633_v19  ;;  %v6966_v45 = vpack.i.bf16 %v10546_v5, %v10638_v52 }
 0x501   : > { %6947 = vrot.lane.b32.xlu0 %v6946_v15, %s7049_s24  ;;  %v3486_v15 = vrot.slane %v10207_v6, 7 }
 0x504   : > { %6942 = vrot.lane.b32.xlu1 %v6941_v36, %s7046_s21  ;;  %v6961_v36 = vpack.i.bf16 %v10586_v8, %v10220_v13  ;;  %v6986_v8 = vpack.i.bf16 %v10633_v19, %v10276_v28 }
 0x505   : > { %6957 = vrot.lane.b32.xlu0 %v6956_v32, %s7046_s21  ;;  %v10653_v32 = vsel %vm432_vm1, %v3484_v57, %v3486_v15  ;;  %v4164_v57 = vsel %vm1581_vm10, %v9886_v12, %v6680_v58  ;;  %v4936_v58 = vld [vmem:[%s11182_s7 + $0x18] sm:$0xff]  ;;  %v4935_v12 = vld [vmem:[%s11182_s7 + $0x10] sm:$0xff] }
 0x506   : > { %5853 = vmatprep.subr.mxu0 %v4936_v58 }
 0x507   : > { %5854 = vmatpush3.msra.mxu0 %v4936_v58  ;;  %v7001_v58 = vpack.i.bf16 %v10638_v52, %v10324_v20 }
 0x508   : > { %6952 = vrot.lane.b32.xlu1 %v6951_v56, %s7044_s20  ;;  %v6971_v56 = vpack.i.bf16 %v10602_v17, %v10653_v32  ;;  %5855 = vmatprep.subr.mxu0 %v4935_v12 }
 0x509   : > { %6967 = vrot.lane.b32.xlu0 %v6966_v45, %s7044_s20  ;;  %5856 = vmatpush3.msra.mxu0 %v4935_v12 }
 0x50b   : > { %v6688_v41 = vpop.permute.xlu0 %6687 }
 0x50c   : > { %6962 = vrot.lane.b32.xlu1 %v6961_v36, %s7049_s24  ;;  %v6689_v34 = vunpack.i.l.bf16 %v6688_v41 }
 0x50d   : > { %6977 = vrot.lane.b32.xlu0 %v6976_v21, %s7049_s24  ;;  %v6981_v21 = vpack.i.bf16 %v10555_v37, %v10259_v44 }
 0x50e   : > { %v6683_v63 = vpop.permute.xlu1 %6682 }
 0x50f   : > { %v6684_v45 = vunpack.i.l.bf16 %v6683_v63  ;;  %v6698_v7 = vpop.permute.xlu0 %6697  ;;  %v6685_v19 = vunpack.i.h.bf16 %v6683_v63  ;;  %v6991_v63 = vpack.i.bf16 %v10624_v62, %v10203_v24 }
 0x510   : > { %6972 = vrot.lane.b32.xlu1 %v6971_v56, %s7046_s21  ;;  %v6996_v56 = vpack.i.bf16 %v10592_v55, %v10307_v29 }
 0x511   : > { %6987 = vrot.lane.b32.xlu0 %v6986_v8, %s7046_s21  ;;  %v4195_v11 = vsel %vm2926_vm13, %v4164_v57, %v6684_v45 }
 0x512   : > { %v6693_v15 = vpop.permute.xlu1 %6692  ;;  %v4227_v36 = vsel %vm2992_vm15, %v4195_v11, %v6689_v34  ;;  %v6690_v34 = vunpack.i.h.bf16 %v6688_v41  ;;  %v6699_v11 = vunpack.i.l.bf16 %v6698_v7  ;;  %v7006_v41 = vpack.i.bf16 %v10653_v32, %v10196_v42 }
 0x513   : > { %v6694_v48 = vunpack.i.l.bf16 %v6693_v15  ;;  %v10670_v17 = vpop.permute.xlu0 %6707  ;;  %4561 = vmatmul.mubr.f32.gmra.mxu0 %v4227_v36  ;;  %v6695_v36 = vunpack.i.h.bf16 %v6693_v15 }
 0x514   : > { %6982 = vrot.lane.b32.xlu1 %v6981_v21, %s7044_s20  ;;  %v6709_v33 = vunpack.i.l.bf16 %v10670_v17 }
 0x515   : > { %6997 = vrot.lane.b32.xlu0 %v6996_v56, %s7044_s20  ;;  %v4278_v8 = vsel %vm1581_vm10, %v10203_v24, %v6694_v48  ;;  %v6700_v56 = vunpack.i.h.bf16 %v6698_v7 }
 0x516   : > { %v6703_v45 = vpop.permute.xlu1 %6702  ;;  %v4310_v57 = vsel %vm2926_vm13, %v4278_v8, %v6685_v19 }
 0x517   : > { %v6718_v21 = vpop.permute.xlu0 %6717  ;;  %v4342_v29 = vsel %vm2992_vm15, %v4310_v57, %v6690_v34  ;;  %v6705_v44 = vunpack.i.h.bf16 %v6703_v45  ;;  %v6704_v48 = vunpack.i.l.bf16 %v6703_v45  ;;  %v4183_v34 = vsel %vm1581_vm10, %v10624_v62, %v6695_v36  ;;  %v4380_v36 = vld [vmem:[%s11180_s5 + $0x110] sm:$0xff] }
 0x518   : > { %6992 = vrot.lane.b32.xlu1 %v6991_v63, %s7049_s24  ;;  %4655 = vmatprep.mubr.f32.mxu1 %v4342_v29  ;;  %v6719_v19 = vunpack.i.l.bf16 %v6718_v21  ;;  %v4260_v45 = vsel %vm1581_vm10, %v9996_v38, %v6699_v11  ;;  %v4165_v63 = vsel %vm1581_vm10, %v9943_v47, %v6700_v56  ;;  %v4379_v47 = vld [vmem:[%s11180_s5 + $0x108] sm:$0xff]  ;;  %v6720_v56 = vunpack.i.h.bf16 %v6718_v21 }
 0x519   : > { %7007 = vrot.lane.b32.xlu0 %v7006_v41, %s7049_s24  ;;  %v4214_v29 = vsel %vm2926_vm13, %v4183_v34, %v6704_v48  ;;  %v4292_v12 = vsel %vm2926_vm13, %v4260_v45, %v6705_v44  ;;  %v4196_v62 = vsel %vm2926_vm13, %v4165_v63, %v6709_v33  ;;  %v6710_v33 = vunpack.i.h.bf16 %v10670_v17 }
 0x51a   : > { %v6713_v15 = vpop.permute.xlu1 %6712  ;;  %v4228_v48 = vsel %vm2992_vm15, %v4196_v62, %v6719_v19 }
 0x51b   : > { %v6715_v8 = vunpack.i.h.bf16 %v6713_v15  ;;  %v6714_v7 = vunpack.i.l.bf16 %v6713_v15  ;;  %v6728_v57 = vpop.permute.xlu0 %6727 }
 0x51c   : > { %7002 = vrot.lane.b32.xlu1 %v7001_v58, %s7046_s21  ;;  %v6729_v34 = vunpack.i.l.bf16 %v6728_v57  ;;  %v6730_v21 = vunpack.i.h.bf16 %v6728_v57  ;;  %s11106_s21 = scalar_lea.vmem %s11184_s9, %s5593_s16 }
 0x51d   : > { %v4324_v41 = vsel %vm2992_vm15, %v4292_v12, %v6715_v8  ;;  %v4246_v52 = vsel %vm2992_vm15, %v4214_v29, %v6714_v7 }
 0x51e   : > { %v6723_v11 = vpop.permute.xlu1 %6722  ;;  %4565 = vmatprep.mubr.f32.mxu0 %v4324_v41  ;;  %4656 = vmatmul.mubr.f32.vlgmr.msra.gmra.mxu1 %v4246_v52  ;;  %v4378_v52 = vld [vmem:[%s11180_s5 + $0x100] sm:$0xff] }
 0x51f   : > { %v6724_v15 = vunpack.i.l.bf16 %v6723_v11  ;;  %5798 = vmatpush3.msra.mxu1 %v10245_v39  ;;  %v10712_v44 = vpop.permute.xlu0 %6737  ;;  %4566 = vmatmul.mubr.f32.gmra.mxu0 %v4228_v48  ;;  %v6725_v8 = vunpack.i.h.bf16 %v6723_v11  ;;  %v4261_v48 = vsel %vm1581_vm10, %v10011_v0, %v6729_v34 }
 0x520   : > { %5799 = vmatprep.subr.mxu1 %v4380_v36  ;;  %v6739_v12 = vunpack.i.l.bf16 %v10712_v44 }
 0x521   : > { %5800 = vmatpush3.msra.mxu1 %v4380_v36  ;;  %v4279_v19 = vsel %vm1581_vm10, %v10196_v42, %v6724_v15  ;;  %v4184_v57 = vsel %vm1581_vm10, %v10653_v32, %v6725_v8  ;;  %v6740_v8 = vunpack.i.h.bf16 %v10712_v44 }
 0x522   : > { %5801 = vmatprep.subr.mxu1 %v4379_v47  ;;  %v6733_v39 = vpop.permute.xlu1 %6732  ;;  %v4311_v58 = vsel %vm2926_vm13, %v4279_v19, %v6710_v33  ;;  %v4166_v33 = vsel %vm1581_vm10, %v9956_v49, %v6730_v21 }
 0x523   : > { %5802 = vmatpush3.msra.mxu1 %v4379_v47  ;;  %v10724_v7 = vpop.permute.xlu0 %6747  ;;  %v4343_v17 = vsel %vm2992_vm15, %v4311_v58, %v6720_v56  ;;  %v6735_v45 = vunpack.i.h.bf16 %v6733_v39  ;;  %v6734_v29 = vunpack.i.l.bf16 %v6733_v39  ;;  %v4197_v19 = vsel %vm2926_vm13, %v4166_v33, %v6739_v12 }
 0x524   : > { %5803 = vmatprep.subr.mxu1 %v4378_v52  ;;  %4660 = vmatprep.mubr.f32.mxu1 %v4343_v17  ;;  %v6749_v63 = vunpack.i.l.bf16 %v10724_v7  ;;  %v6750_v17 = vunpack.i.h.bf16 %v10724_v7 }
 0x525   : > { %5804 = vmatpush3.msra.mxu1 %v4378_v52  ;;  %v4293_v15 = vsel %vm2926_vm13, %v4261_v48, %v6735_v45  ;;  %v4215_v47 = vsel %vm2926_vm13, %v4184_v57, %v6734_v29 }
 0x526   : > { %5704 = vmatprep.subr.mxu1 %v10222_v46  ;;  %v6743_v41 = vpop.permute.xlu1 %6742  ;;  %v4229_v58 = vsel %vm2992_vm15, %v4197_v19, %v6749_v63 }
 0x527   : > { %v6745_v62 = vunpack.i.h.bf16 %v6743_v41  ;;  %v6744_v36 = vunpack.i.l.bf16 %v6743_v41  ;;  %v6758_v11 = vpop.permute.xlu0 %6757 }
 0x528   : > { %v6759_v29 = vunpack.i.l.bf16 %v6758_v11 }
 0x529   : > { %v4325_v56 = vsel %vm2992_vm15, %v4293_v15, %v6745_v62  ;;  %v4247_v52 = vsel %vm2992_vm15, %v4215_v47, %v6744_v36  ;;  %v6760_v36 = vunpack.i.h.bf16 %v6758_v11 }
 0x52a   : > { %v6753_v39 = vpop.permute.xlu1 %6752  ;;  %4570 = vmatprep.mubr.f32.mxu0 %v4325_v56  ;;  %4661 = vmatmul.mubr.f32.gmra.mxu1 %v4247_v52  ;;  %v4262_v56 = vsel %vm1581_vm10, %v10215_v25, %v6759_v29 }
 0x52b   : > { %v6754_v34 = vunpack.i.l.bf16 %v6753_v39  ;;  %v6768_v32 = vpop.permute.xlu0 %6767  ;;  %4571 = vmatmul.mubr.f32.gmra.mxu0 %v4229_v58  ;;  %v6755_v12 = vunpack.i.h.bf16 %v6753_v39  ;;  %v4167_v11 = vsel %vm1581_vm10, %v10021_v18, %v6760_v36 }
 0x52c   : > { %v6769_v57 = vunpack.i.l.bf16 %v6768_v32 }
 0x52d   : > { %v4280_v49 = vsel %vm1581_vm10, %v10205_v2, %v6754_v34  ;;  %v4185_v52 = vsel %vm1581_vm10, %v10276_v28, %v6755_v12 }
 0x52e   : > { %v6763_v21 = vpop.permute.xlu1 %6762  ;;  %v4312_v45 = vsel %vm2926_vm13, %v4280_v49, %v6740_v8  ;;  %v4198_v49 = vsel %vm2926_vm13, %v4167_v11, %v6769_v57 }
 0x52f   : > { %v6778_v41 = vpop.permute.xlu0 %6777  ;;  %v4344_v62 = vsel %vm2992_vm15, %v4312_v45, %v6750_v17  ;;  %v6765_v63 = vunpack.i.h.bf16 %v6763_v21  ;;  %v6764_v48 = vunpack.i.l.bf16 %v6763_v21 }
 0x530   : > { %4665 = vmatprep.mubr.f32.mxu1 %v4344_v62  ;;  %v6779_v15 = vunpack.i.l.bf16 %v6778_v41  ;;  %v6770_v62 = vunpack.i.h.bf16 %v6768_v32 }
 0x531   : > { %v4294_v19 = vsel %vm2926_vm13, %v4262_v56, %v6765_v63  ;;  %v4216_v39 = vsel %vm2926_vm13, %v4185_v52, %v6764_v48 }
 0x532   : > { %v6773_v44 = vpop.permute.xlu1 %6772  ;;  %v4230_v45 = vsel %vm2992_vm15, %v4198_v49, %v6779_v15 }
 0x533   : > { %v6775_v47 = vunpack.i.h.bf16 %v6773_v44  ;;  %v6774_v7 = vunpack.i.l.bf16 %v6773_v44  ;;  %v6788_v33 = vpop.permute.xlu0 %6787  ;;  %v6780_v44 = vunpack.i.h.bf16 %v6778_v41 }
 0x534   : > { %v6790_v63 = vunpack.i.h.bf16 %v6788_v33  ;;  %v6789_v48 = vunpack.i.l.bf16 %v6788_v33 }
 0x535   : > { %v4326_v58 = vsel %vm2992_vm15, %v4294_v19, %v6775_v47  ;;  %v4248_v34 = vsel %vm2992_vm15, %v4216_v39, %v6774_v7 }
 0x536   : > { %v6783_v21 = vpop.permute.xlu1 %6782  ;;  %4575 = vmatprep.mubr.f32.mxu0 %v4326_v58  ;;  %4666 = vmatmul.mubr.f32.gmra.mxu1 %v4248_v34 }
 0x537   : > { %v6785_v29 = vunpack.i.h.bf16 %v6783_v21  ;;  %v6784_v28 = vunpack.i.l.bf16 %v6783_v21  ;;  %v6798_v12 = vpop.permute.xlu0 %6797  ;;  %4576 = vmatmul.mubr.f32.gmra.mxu0 %v4230_v45 }
 0x538   : > { %v6800_v33 = vunpack.i.h.bf16 %v6798_v12  ;;  %v6799_v41 = vunpack.i.l.bf16 %v6798_v12 }
 0x539   : > { %v4281_v18 = vsel %vm1581_vm10, %v10222_v46, %v6784_v28  ;;  %v4186_v36 = vsel %vm1581_vm10, %v10324_v20, %v6785_v29  ;;  %v4263_v46 = vsel %vm1581_vm10, %v10285_v40, %v6789_v48  ;;  %v4168_v20 = vsel %vm1581_vm10, %v10034_v60, %v6790_v63 }
 0x53a   : > { %v6793_v57 = vpop.permute.xlu1 %6792  ;;  %v4313_v47 = vsel %vm2926_vm13, %v4281_v18, %v6740_v8  ;;  %v4217_v7 = vsel %vm2926_vm13, %v4186_v36, %v6770_v62 }
 0x53b   : > { %v6795_v15 = vunpack.i.h.bf16 %v6793_v57  ;;  %v6794_v56 = vunpack.i.l.bf16 %v6793_v57  ;;  %v6808_v52 = vpop.permute.xlu0 %6807  ;;  %v4345_v19 = vsel %vm2992_vm15, %v4313_v47, %v6750_v17  ;;  %v4249_v32 = vsel %vm2992_vm15, %v4217_v7, %v6780_v44 }
 0x53c   : > { %4670 = vmatprep.mubr.f32.mxu1 %v4345_v19  ;;  %v6810_v29 = vunpack.i.h.bf16 %v6808_v52  ;;  %v11427_v19 = vld [vmem:[#allocation36_spill] sm:$0xff] }
 0x53d   : > { %4671 = vmatmul.mubr.f32.gmra.mxu1 %v4249_v32  ;;  %v4295_v8 = vsel %vm2926_vm13, %v4263_v46, %v6794_v56  ;;  %v4199_v39 = vsel %vm2926_vm13, %v4168_v20, %v6795_v15 }
 0x53e   : > { %v6803_v11 = vpop.permute.xlu1 %6802  ;;  %5805 = vmatprep.mubr.msk.f32.mxu1 %vm1581_vm10, %v9797_v4  ;;  %v4327_v17 = vsel %vm2992_vm15, %v4295_v8, %v6799_v41  ;;  %v4231_v58 = vsel %vm2992_vm15, %v4199_v39, %v6800_v33  ;;  %v6809_v4 = vunpack.i.l.bf16 %v6808_v52  ;;  %v11428_v33 = vld [vmem:[#allocation24_spill] sm:$0xff]  ;;  %v11429_v8 = vld [vmem:[#allocation29_spill] sm:$0xff] }
 0x53f   : > { %v6805_v34 = vunpack.i.h.bf16 %v6803_v11  ;;  %v6804_v49 = vunpack.i.l.bf16 %v6803_v11  ;;  %v6818_v21 = vpop.permute.xlu0 %6817  ;;  %4580 = vmatprep.mubr.f32.mxu0 %v4327_v17  ;;  %v11430_v11 = vld [vmem:[#allocation27_spill] sm:$0xff] }
 0x540   : > { %4581 = vmatmul.mubr.f32.gmra.mxu0 %v4231_v58  ;;  %v6819_v48 = vunpack.i.l.bf16 %v6818_v21 }
 0x541   : > { %5806 = vmatmul.mubr.msk.f32.vlgmr.msra.gmra.mxu1 %vm1581_vm10, %v9817_v23  ;;  %v4264_v60 = vsel %vm1581_vm10, %v10331_v14, %v6804_v49  ;;  %v4169_v45 = vsel %vm1581_vm10, %v10268_v26, %v6805_v34  ;;  %v6820_v23 = vunpack.i.h.bf16 %v6818_v21  ;;  %v11431_v34 = vld [vmem:[#allocation25_spill] sm:$0xff] }
 0x542   : > { %5705 = vmatpush3.msra.mxu1 %v10363_v27  ;;  %v6813_v28 = vpop.permute.xlu1 %6812  ;;  %5808 = vmatprep.mubr.msk.f32.mxu1 %vm1581_vm10, %v9881_v9  ;;  %v4296_v44 = vsel %vm2926_vm13, %v4264_v60, %v6809_v4  ;;  %v4200_v26 = vsel %vm2926_vm13, %v4169_v45, %v6810_v29  ;;  %v11432_v45 = vld [vmem:[#allocation32_spill] sm:$0xff] }
 0x543   : > { %v6815_v12 = vunpack.i.h.bf16 %v6813_v28  ;;  %v6814_v62 = vunpack.i.l.bf16 %v6813_v28  ;;  %5706 = vmatprep.subr.mxu1 %v10205_v2  ;;  %v6828_v63 = vpop.permute.xlu0 %6827 }
 0x544   : > { %5707 = vmatpush3.msra.mxu1 %v10331_v14  ;;  %v6829_v47 = vunpack.i.l.bf16 %v6828_v63 }
 0x545   : > { %5708 = vmatprep.subr.mxu1 %v10196_v42  ;;  %5809 = vmatmul.mubr.msk.f32.gmra.mxu1 %vm1581_vm10, %v9900_v61  ;;  %v4328_v9 = vsel %vm2992_vm15, %v4296_v44, %v6814_v62  ;;  %v4232_v18 = vsel %vm2992_vm15, %v4200_v26, %v6815_v12  ;;  %v6830_v42 = vunpack.i.h.bf16 %v6828_v63  ;;  %v4265_v61 = vsel %vm1581_vm10, %v10363_v27, %v6819_v48  ;;  %v11433_v12 = vld [vmem:[#allocation7_spill] sm:$0xff]  ;;  %v11434_v63 = vld [vmem:[#allocation12_spill] sm:$0xff] }
 0x546   : > { %5709 = vmatpush3.msra.mxu1 %v10285_v40  ;;  %v6823_v2 = vpop.permute.xlu1 %6822  ;;  %4585 = vmatprep.mubr.f32.mxu0 %v4328_v9  ;;  %v4170_v40 = vsel %vm1581_vm10, %v10316_v51, %v6820_v23  ;;  %v11435_v48 = vld [vmem:[#allocation11_spill] sm:$0xff]  ;;  %v11436_v9 = vld [vmem:[#allocation6_spill] sm:$0xff] }
 0x547   : > { %v6825_v36 = vunpack.i.h.bf16 %v6823_v2  ;;  %v6824_v57 = vunpack.i.l.bf16 %v6823_v2  ;;  %5811 = vmatprep.mubr.msk.f32.mxu1 %vm1581_vm10, %v9952_v54  ;;  %5710 = vmatprep.subr.mxu1 %v10203_v24  ;;  %v6838_v14 = vpop.permute.xlu0 %6837  ;;  %v11437_v2 = vld [vmem:[#allocation42_spill] sm:$0xff] }
 0x548   : > { %4586 = vmatmul.mubr.f32.gmra.mxu0 %v4232_v18  ;;  %5711 = vmatpush3.msra.mxu1 %v10215_v25  ;;  %v6839_v52 = vunpack.i.l.bf16 %v6838_v14 }
 0x549   : > { %5712 = vmatprep.subr.mxu1 %v10207_v6  ;;  %5812 = vmatmul.mubr.msk.f32.gmra.mxu1 %vm1581_vm10, %v9970_v43  ;;  %v4297_v54 = vsel %vm2926_vm13, %v4265_v61, %v6824_v57  ;;  %v4201_v24 = vsel %vm2926_vm13, %v4170_v40, %v6825_v36  ;;  %v11438_v61 = vld [vmem:[#allocation35_spill] sm:$0xff]  ;;  %v11439_v40 = vld [vmem:[#allocation14_spill] sm:$0xff] }
 0x54a   : > { %5713 = vmatpush3.msra.mxu1 %v10011_v0  ;;  %v6833_v7 = vpop.permute.xlu1 %6832  ;;  %5814 = vmatprep.mubr.msk.f32.mxu1 %vm1581_vm10, %v10029_v10  ;;  %v4329_v25 = vsel %vm2992_vm15, %v4297_v54, %v6829_v47  ;;  %v4233_v27 = vsel %vm2992_vm15, %v4201_v24, %v6830_v42  ;;  %v6840_v10 = vunpack.i.h.bf16 %v6838_v14  ;;  %v11440_v24 = vld [vmem:[#allocation13_spill] sm:$0xff] }
 0x54b   : > { %v6835_v51 = vunpack.i.h.bf16 %v6833_v7  ;;  %v6834_v15 = vunpack.i.l.bf16 %v6833_v7  ;;  %5714 = vmatprep.subr.mxu1 %v10220_v13  ;;  %v6848_v56 = vpop.permute.xlu0 %6847  ;;  %4590 = vmatprep.mubr.f32.mxu0 %v4329_v25 }
 0x54c   : > { %5715 = vmatpush3.msra.mxu1 %v9996_v38  ;;  %4591 = vmatmul.mubr.f32.gmra.mxu0 %v4233_v27  ;;  %v6849_v20 = vunpack.i.l.bf16 %v6848_v56 }
 0x54d   : > { %5716 = vmatprep.subr.mxu1 %v10592_v55  ;;  %5815 = vmatmul.mubr.msk.f32.gmra.mxu1 %vm1581_vm10, %v10043_v30  ;;  %v4266_v43 = vsel %vm1581_vm10, %v10367_v22, %v6834_v15  ;;  %v4171_v0 = vsel %vm1581_vm10, %v10357_v1, %v6835_v51  ;;  %v6850_v30 = vunpack.i.h.bf16 %v6848_v56  ;;  %v11441_v51 = vld [vmem:[#allocation19_spill] sm:$0xff]  ;;  %v11442_v56 = vld [vmem:[#allocation17_spill] sm:$0xff] }
 0x54e   : > { %5717 = vmatpush3.msra.mxu1 %v11427_v19  ;;  %v6843_v32 = vpop.permute.xlu1 %6842  ;;  %5817 = vmatprep.mubr.msk.f32.mxu1 %vm1581_vm10, %v11428_v33  ;;  %v4298_v39 = vsel %vm2926_vm13, %v4266_v43, %v6839_v52  ;;  %v4202_v1 = vsel %vm2926_vm13, %v4171_v0, %v6840_v10  ;;  %v4267_v62 = vsel %vm1581_vm10, %v10410_v35, %v6849_v20  ;;  %v11445_v20 = vld [vmem:[#allocation4_spill] sm:$0xff] }
 0x54f   : > { %v6845_v38 = vunpack.i.h.bf16 %v6843_v32  ;;  %v6844_v41 = vunpack.i.l.bf16 %v6843_v32  ;;  %5718 = vmatprep.subr.mxu1 %v10555_v37  ;;  %v6858_v46 = vpop.permute.xlu0 %6857  ;;  %v4172_v23 = vsel %vm1581_vm10, %v11434_v63, %v6850_v30  ;;  %v11443_v32 = vld [vmem:[#allocation5_spill] sm:$0xff]  ;;  %v11450_v63 = vld [vmem:[#allocation2_spill] sm:$0xff] }
 0x550   : > { %5719 = vmatpush3.msra.mxu1 %v11429_v8  ;;  %v6860_v4 = vunpack.i.h.bf16 %v6858_v46  ;;  %v6859_v28 = vunpack.i.l.bf16 %v6858_v46 }
 0x551   : > { %5720 = vmatprep.subr.mxu1 %v10546_v5  ;;  %5818 = vmatmul.mubr.msk.f32.gmra.mxu1 %vm1581_vm10, %v11430_v11  ;;  %v4330_v17 = vsel %vm2992_vm15, %v4298_v39, %v6844_v41  ;;  %v4234_v58 = vsel %vm2992_vm15, %v4202_v1, %v6845_v38  ;;  %v11444_v41 = vld [vmem:[#allocation18_spill] sm:$0xff]  ;;  %v11446_v1 = vld [vmem:[#allocation23_spill] sm:$0xff] }
 0x552   : > { %5721 = vmatpush3.msra.mxu1 %v11431_v34  ;;  %v6853_v49 = vpop.permute.xlu1 %6852  ;;  %4595 = vmatprep.mubr.f32.mxu0 %v4330_v17 }
 0x553   : > { %v6855_v21 = vunpack.i.h.bf16 %v6853_v49  ;;  %v6854_v60 = vunpack.i.l.bf16 %v6853_v49  ;;  %5820 = vmatprep.mubr.msk.f32.mxu1 %vm1581_vm10, %v11432_v45  ;;  %5722 = vmatprep.subr.mxu1 %v10509_v53  ;;  %v6868_v29 = vpop.permute.xlu0 %6867  ;;  %v11448_v49 = vld [vmem:[#allocation15_spill] sm:$0xff] }
 0x554   : > { %4596 = vmatmul.mubr.f32.gmra.mxu0 %v4234_v58  ;;  %5723 = vmatpush3.msra.mxu1 %v11433_v12  ;;  %v6870_v25 = vunpack.i.h.bf16 %v6868_v29  ;;  %v6869_v27 = vunpack.i.l.bf16 %v6868_v29  ;;  %v11447_v58 = vld [vmem:[#allocation34_spill] sm:$0xff]  ;;  %v11449_v29 = vld [vmem:[#allocation33_spill] sm:$0xff] }
 0x555   : > { %5724 = vmatprep.subr.mxu1 %v10502_v59  ;;  %5821 = vmatmul.mubr.msk.f32.gmra.mxu1 %vm1581_vm10, %v11435_v48  ;;  %v4299_v44 = vsel %vm2926_vm13, %v4267_v62, %v6854_v60  ;;  %v4203_v26 = vsel %vm2926_vm13, %v4172_v23, %v6855_v21  ;;  %v11451_v23 = vld [vmem:[#allocation43_spill] sm:$0xff] }
 0x556   : > { %5725 = vmatpush3.msra.mxu1 %v11436_v9  ;;  %v6863_v18 = vpop.permute.xlu1 %6862  ;;  %5823 = vmatprep.mubr.msk.f32.mxu1 %vm1581_vm10, %v11437_v2  ;;  %v4331_v36 = vsel %vm2992_vm15, %v4299_v44, %v6859_v28  ;;  %v4235_v57 = vsel %vm2992_vm15, %v4203_v26, %v6860_v4 }
 0x557   : > { %v6865_v14 = vunpack.i.h.bf16 %v6863_v18  ;;  %v6864_v42 = vunpack.i.l.bf16 %v6863_v18  ;;  %5726 = vmatprep.subr.mxu1 %v10463_v31  ;;  %v6878_v47 = vpop.permute.xlu0 %6877  ;;  %4600 = vmatprep.mubr.f32.mxu0 %v4331_v36  ;;  %v11452_v18 = vld [vmem:[#allocation49_spill] sm:$0xff] }
 0x558   : > { %5727 = vmatpush3.msra.mxu1 %v11438_v61  ;;  %4601 = vmatmul.mubr.f32.gmra.mxu0 %v4235_v57  ;;  %v6880_v52 = vunpack.i.h.bf16 %v6878_v47  ;;  %v6879_v19 = vunpack.i.l.bf16 %v6878_v47 }
 0x559   : > { %5728 = vmatprep.subr.mxu1 %v10454_v16  ;;  %5824 = vmatmul.mubr.msk.f32.gmra.mxu1 %vm1581_vm10, %v11439_v40  ;;  %v4268_v54 = vsel %vm1581_vm10, %v10417_v3, %v6864_v42  ;;  %v4173_v7 = vsel %vm1581_vm10, %v11440_v24, %v6865_v14  ;;  %v11453_v40 = vld [vmem:[#allocation50_spill] sm:$0xff] }
 0x55a   : > { %5729 = vmatpush3.msra.mxu1 %v11441_v51  ;;  %v6873_v15 = vpop.permute.xlu1 %6872  ;;  %5826 = vmatprep.mubr.msk.f32.mxu1 %vm1581_vm10, %v11442_v56  ;;  %v4300_v33 = vsel %vm2926_vm13, %v4268_v54, %v6869_v27  ;;  %v4204_v38 = vsel %vm2926_vm13, %v4173_v7, %v6870_v25  ;;  %v4269_v34 = vsel %vm1581_vm10, %v10454_v16, %v6879_v19  ;;  %v11454_v7 = vld [vmem:[#allocation52_spill] sm:$0xff] }
 0x55b   : > { %v6875_v43 = vunpack.i.h.bf16 %v6873_v15  ;;  %v6874_v0 = vunpack.i.l.bf16 %v6873_v15  ;;  %5730 = vmatprep.subr.mxu1 %v10417_v3  ;;  %v6888_v10 = vpop.permute.xlu0 %6887  ;;  %v4174_v21 = vsel %vm1581_vm10, %v11448_v49, %v6880_v52  ;;  %v11456_v52 = vld [vmem:[#allocation53_spill] sm:$0xff] }
 0x55c   : > { %5731 = vmatpush3.msra.mxu1 %v11443_v32  ;;  %v6889_v17 = vunpack.i.l.bf16 %v6888_v10 }
 0x55d   : > { %5732 = vmatprep.subr.mxu1 %v10410_v35  ;;  %5827 = vmatmul.mubr.msk.f32.gmra.mxu1 %vm1581_vm10, %v11444_v41  ;;  %v4332_v46 = vsel %vm2992_vm15, %v4300_v33, %v6874_v0  ;;  %v4236_v30 = vsel %vm2992_vm15, %v4204_v38, %v6875_v43  ;;  %v6890_v35 = vunpack.i.h.bf16 %v6888_v10  ;;  %v11455_v0 = vld [vmem:[#allocation21_spill] sm:$0xff]  ;;  %v4934_v33 = vld [vmem:[%s11182_s7 + $0x8] sm:$0xff]  ;;  %v11457_v41 = vld [vmem:[#allocation8_spill] sm:$0xff] }
 0x55e   : > { %5733 = vmatpush3.msra.mxu1 %v11445_v20  ;;  %v6883_v3 = vpop.permute.xlu1 %6882  ;;  %4605 = vmatprep.mubr.f32.mxu0 %v4332_v46 }
 0x55f   : > { %v6885_v8 = vunpack.i.h.bf16 %v6883_v3  ;;  %v6884_v39 = vunpack.i.l.bf16 %v6883_v3  ;;  %5829 = vmatprep.mubr.msk.f32.mxu1 %vm1581_vm10, %v11446_v1  ;;  %5734 = vmatprep.subr.mxu1 %v10367_v22  ;;  %v6898_v11 = vpop.permute.xlu0 %6897  ;;  %v11459_v1 = vld [vmem:[#allocation22_spill] sm:$0xff] }
 0x560   : > { %4606 = vmatmul.mubr.f32.gmra.mxu0 %v4236_v30  ;;  %5735 = vmatpush3.msra.mxu1 %v11447_v58  ;;  %v6900_v44 = vunpack.i.h.bf16 %v6898_v11  ;;  %v6899_v26 = vunpack.i.l.bf16 %v6898_v11 }
 0x561   : > { %5830 = vmatmul.mubr.msk.f32.gmra.mxu1 %vm1581_vm10, %v10514_v50  ;;  %v4301_v60 = vsel %vm2926_vm13, %v4269_v34, %v6884_v39  ;;  %v4205_v45 = vsel %vm2926_vm13, %v4174_v21, %v6885_v8  ;;  %5857 = vmatprep.subr.mxu0 %v4934_v33  ;;  %v11458_v8 = vld [vmem:[#allocation28_spill] sm:$0xff]  ;;  %v11460_v34 = vld [vmem:[#allocation37_spill] sm:$0xff] }
 0x562   : > { %v6893_v22 = vpop.permute.xlu1 %6892  ;;  %5832 = vmatprep.mubr.msk.f32.mxu1 %vm1581_vm10, %v11449_v29  ;;  %v4333_v4 = vsel %vm2992_vm15, %v4301_v60, %v6889_v17  ;;  %v4237_v28 = vsel %vm2992_vm15, %v4205_v45, %v6890_v35  ;;  %5858 = vmatpush3.msra.mxu0 %v4934_v33 }
 0x563   : > { %v6895_v12 = vunpack.i.h.bf16 %v6893_v22  ;;  %v6894_v16 = vunpack.i.l.bf16 %v6893_v22  ;;  %v6908_v62 = vpop.permute.xlu0 %6907  ;;  %4610 = vmatprep.mubr.f32.mxu0 %v4333_v4 }
 0x564   : > { %4611 = vmatmul.mubr.f32.gmra.mxu0 %v4237_v28  ;;  %v6910_v14 = vunpack.i.h.bf16 %v6908_v62  ;;  %v6909_v42 = vunpack.i.l.bf16 %v6908_v62  ;;  %v11461_v28 = vld [vmem:[#allocation31_spill] sm:$0xff] }
 0x565   : > { %5833 = vmatmul.mubr.msk.f32.gmra.mxu1 %vm1581_vm10, %v11450_v63  ;;  %v4270_v50 = vsel %vm1581_vm10, %v10463_v31, %v6894_v16  ;;  %v4175_v48 = vsel %vm1581_vm10, %v11451_v23, %v6895_v12  ;;  %v11462_v62 = vld [vmem:[#allocation39_spill] sm:$0xff] }
 0x566   : > { %v6903_v9 = vpop.permute.xlu1 %6902  ;;  %5835 = vmatprep.mubr.msk.f32.mxu1 %vm1581_vm10, %v11452_v18  ;;  %v4302_v47 = vsel %vm2926_vm13, %v4270_v50, %v6899_v26  ;;  %v4206_v61 = vsel %vm2926_vm13, %v4175_v48, %v6900_v44  ;;  %v4271_v43 = vsel %vm1581_vm10, %v10502_v59, %v6909_v42  ;;  %v4176_v10 = vsel %vm1581_vm10, %v11455_v0, %v6910_v14 }
 0x567   : > { %v6905_v2 = vunpack.i.h.bf16 %v6903_v9  ;;  %v6904_v36 = vunpack.i.l.bf16 %v6903_v9  ;;  %v6918_v57 = vpop.permute.xlu0 %6917  ;;  %v11463_v9 = vld [vmem:[#allocation26_spill] sm:$0xff] }
 0x568   : > { %v6920_v15 = vunpack.i.h.bf16 %v6918_v57  ;;  %v6919_v56 = vunpack.i.l.bf16 %v6918_v57 }
 0x569   : > { %5836 = vmatmul.mubr.msk.f32.gmra.mxu1 %vm1581_vm10, %v11453_v40  ;;  %v4334_v31 = vsel %vm2992_vm15, %v4302_v47, %v6904_v36  ;;  %v4238_v54 = vsel %vm2992_vm15, %v4206_v61, %v6905_v2  ;;  %v11464_v2 = vld [vmem:[#allocation40_spill] sm:$0xff]  ;;  %v11465_v61 = vld [vmem:[#allocation3_spill] sm:$0xff] }
 0x56a   : > { %v6913_v24 = vpop.permute.xlu1 %6912  ;;  %4615 = vmatprep.mubr.f32.mxu0 %v4334_v31  ;;  %5838 = vmatprep.mubr.msk.f32.mxu1 %vm1581_vm10, %v11454_v7 }
 0x56b   : > { %v6915_v25 = vunpack.i.h.bf16 %v6913_v24  ;;  %v6914_v27 = vunpack.i.l.bf16 %v6913_v24  ;;  %v6928_v51 = vpop.permute.xlu0 %6927  ;;  %4616 = vmatmul.mubr.f32.gmra.mxu0 %v4238_v54  ;;  %v11466_v24 = vld [vmem:[#allocation44_spill] sm:$0xff] }
 0x56c   : > { %v6930_v35 = vunpack.i.h.bf16 %v6928_v51  ;;  %v6929_v17 = vunpack.i.l.bf16 %v6928_v51 }
 0x56d   : > { %5839 = vmatmul.mubr.msk.f32.gmra.mxu1 %vm1581_vm10, %v11456_v52  ;;  %v4303_v19 = vsel %vm2926_vm13, %v4271_v43, %v6914_v27  ;;  %v4207_v32 = vsel %vm2926_vm13, %v4176_v10, %v6915_v25 }
 0x56e   : > { %v6923_v38 = vpop.permute.xlu1 %6922  ;;  %5841 = vmatprep.mubr.msk.f32.mxu1 %vm1581_vm10, %v11457_v41  ;;  %v4335_v59 = vsel %vm2992_vm15, %v4303_v19, %v6919_v56  ;;  %v4239_v46 = vsel %vm2992_vm15, %v4207_v32, %v6920_v15 }
 0x56f   : > { %v6925_v30 = vunpack.i.h.bf16 %v6923_v38  ;;  %v6924_v20 = vunpack.i.l.bf16 %v6923_v38  ;;  %v6938_v3 = vpop.permute.xlu0 %6937  ;;  %4620 = vmatprep.mubr.f32.mxu0 %v4335_v59 }
 0x570   : > { %4621 = vmatmul.mubr.f32.gmra.mxu0 %v4239_v46  ;;  %v6940_v45 = vunpack.i.h.bf16 %v6938_v3  ;;  %v6939_v22 = vunpack.i.l.bf16 %v6938_v3  ;;  %v11467_v3 = vld [vmem:[#allocation47_spill] sm:$0xff] }
 0x571   : > { %5842 = vmatmul.mubr.msk.f32.gmra.mxu1 %vm1581_vm10, %v11458_v8  ;;  %v4272_v39 = vsel %vm1581_vm10, %v10509_v53, %v6924_v20  ;;  %v4177_v11 = vsel %vm1581_vm10, %v11459_v1, %v6925_v30 }
 0x572   : > { %v6933_v58 = vpop.permute.xlu1 %6932  ;;  %5844 = vmatprep.mubr.msk.f32.mxu1 %vm1581_vm10, %v11460_v34  ;;  %v4304_v29 = vsel %vm2926_vm13, %v4272_v39, %v6929_v17  ;;  %v4208_v4 = vsel %vm2926_vm13, %v4177_v11, %v6930_v35  ;;  %v4273_v26 = vsel %vm1581_vm10, %v10546_v5, %v6939_v22  ;;  %v4178_v18 = vsel %vm1581_vm10, %v11463_v9, %v6940_v45 }
 0x573   : > { %v6935_v49 = vunpack.i.h.bf16 %v6933_v58  ;;  %v6934_v21 = vunpack.i.l.bf16 %v6933_v58  ;;  %v6948_v60 = vpop.permute.xlu0 %6947 }
 0x574   : > { %v6950_v48 = vunpack.i.h.bf16 %v6948_v60  ;;  %v6949_v44 = vunpack.i.l.bf16 %v6948_v60 }
 0x575   : > { %5845 = vmatmul.mubr.msk.f32.gmra.mxu1 %vm1581_vm10, %v11461_v28  ;;  %v4336_v53 = vsel %vm2992_vm15, %v4304_v29, %v6934_v21  ;;  %v4240_v12 = vsel %vm2992_vm15, %v4208_v4, %v6935_v49  ;;  %v11468_v21 = vld [vmem:[#allocation48_spill] sm:$0xff]  ;;  %v4933_v4 = vld [vmem:[%s11182_s7] sm:$0xff] }
 0x576   : > { %v6943_v16 = vpop.permute.xlu1 %6942  ;;  %4625 = vmatprep.mubr.f32.mxu0 %v4336_v53  ;;  %5847 = vmatprep.mubr.msk.f32.mxu1 %vm1581_vm10, %v11462_v62 }
 0x577   : > { %v6945_v63 = vunpack.i.h.bf16 %v6943_v16  ;;  %v6944_v50 = vunpack.i.l.bf16 %v6943_v16  ;;  %v6958_v23 = vpop.permute.xlu0 %6957  ;;  %4626 = vmatmul.mubr.f32.gmra.mxu0 %v4240_v12  ;;  %5859 = vmatprep.subr.mxu0 %v4933_v4 }
 0x578   : > { %v6960_v25 = vunpack.i.h.bf16 %v6958_v23  ;;  %v6959_v27 = vunpack.i.l.bf16 %v6958_v23  ;;  %5860 = vmatpush3.msra.mxu0 %v4933_v4  ;;  %v11475_v4 = vld [vmem:[#allocation41_spill] sm:$0xff] }
 0x579   : > { %5848 = vmatmul.mubr.msk.f32.gmra.mxu1 %vm1581_vm10, %v11464_v2  ;;  %v4305_v36 = vsel %vm2926_vm13, %v4273_v26, %v6944_v50  ;;  %v4209_v57 = vsel %vm2926_vm13, %v4178_v18, %v6945_v63 }
 0x57a   : > { %v6953_v14 = vpop.permute.xlu1 %6952  ;;  %v4337_v42 = vsel %vm2992_vm15, %v4305_v36, %v6949_v44  ;;  %v4241_v47 = vsel %vm2992_vm15, %v4209_v57, %v6950_v48  ;;  %5850 = vmatprep.mubr.msk.f32.mxu1 %vm1581_vm10, %v11465_v61  ;;  %v11469_v36 = vld [vmem:[#allocation51_spill] sm:$0xff] }
 0x57b   : > { %v6955_v40 = vunpack.i.h.bf16 %v6953_v14  ;;  %v6954_v5 = vunpack.i.l.bf16 %v6953_v14  ;;  %v6968_v31 = vpop.permute.xlu0 %6967  ;;  %4630 = vmatprep.mubr.f32.mxu0 %v4337_v42 }
 0x57c   : > { %4631 = vmatmul.mubr.f32.gmra.mxu0 %v4241_v47  ;;  %v6970_v0 = vunpack.i.h.bf16 %v6968_v31  ;;  %v6969_v10 = vunpack.i.l.bf16 %v6968_v31 }
 0x57d   : > { %5851 = vmatmul.mubr.msk.f32.gmra.mxu1 %vm1581_vm10, %v11465_v61  ;;  %v4274_v54 = vsel %vm1581_vm10, %v10555_v37, %v6954_v5  ;;  %v4179_v7 = vsel %vm1581_vm10, %v11466_v24, %v6955_v40  ;;  %v7050_v24 = vmov 0.00390625  }
 0x57e   : > { %v6963_v51 = vpop.permute.xlu1 %6962  ;;  %v4306_v52 = vsel %vm2926_vm13, %v4274_v54, %v6959_v27  ;;  %v4210_v19 = vsel %vm2926_vm13, %v4179_v7, %v6960_v25  ;;  %v4275_v20 = vsel %vm1581_vm10, %v10592_v55, %v6969_v10  ;;  %v4180_v8 = vsel %vm1581_vm10, %v11467_v3, %v6970_v0  ;;  %5361 = vmatprep.mubr.f32.mxu1 %v7050_v24 }
 0x57f   : > { %v6965_v15 = vunpack.i.h.bf16 %v6963_v51  ;;  %v6964_v56 = vunpack.i.l.bf16 %v6963_v51  ;;  %v6978_v43 = vpop.permute.xlu0 %6977 }
 0x580   : > { %v6980_v46 = vunpack.i.h.bf16 %v6978_v43  ;;  %v6979_v30 = vunpack.i.l.bf16 %v6978_v43 }
 0x581   : > { %v4338_v32 = vsel %vm2992_vm15, %v4306_v52, %v6964_v56  ;;  %v4242_v33 = vsel %vm2992_vm15, %v4210_v19, %v6965_v15  ;;  %5362 = vmatmul.mubr.f32.vlgmr.msra.gmra.mxu1 %v7050_v24  ;;  %v11004_v19 = vld [vmem:[%s11181_s6] ss:$0 sm:$0xff] }
 0x582   : > { %v6973_v37 = vpop.permute.xlu1 %6972  ;;  %4635 = vmatprep.mubr.f32.mxu0 %v4338_v32 }
 0x583   : > { %v6975_v38 = vunpack.i.h.bf16 %v6973_v37  ;;  %v6974_v41 = vunpack.i.l.bf16 %v6973_v37  ;;  %v6988_v59 = vpop.permute.xlu0 %6987  ;;  %4636 = vmatmul.mubr.f32.gmra.mxu0 %v4242_v33  ;;  %v11470_v37 = vld [vmem:[#allocation9_spill] sm:$0xff] }
 0x584   : > { %v6990_v45 = vunpack.i.h.bf16 %v6988_v59  ;;  %v6989_v22 = vunpack.i.l.bf16 %v6988_v59  ;;  %v11471_v59 = vld [vmem:[#allocation30_spill] sm:$0xff] }
 0x585   : > { %v4307_v39 = vsel %vm2926_vm13, %v4275_v20, %v6974_v41  ;;  %v4211_v1 = vsel %vm2926_vm13, %v4180_v8, %v6975_v38  ;;  %v4523_v38 = vadd.f32 %v11004_v19, %v11470_v37 }
 0x586   : > { %v6983_v11 = vpop.permute.xlu1 %6982  ;;  %v4339_v35 = vsel %vm2992_vm15, %v4307_v39, %v6979_v30  ;;  %v4243_v17 = vsel %vm2992_vm15, %v4211_v1, %v6980_v46  ;;  %v4518_v46 = vadd.f32 %v11004_v19, %v11471_v59  ;;  %v11472_v39 = vld [vmem:[#allocation10_spill] sm:$0xff] }
 0x587   : > { %v6985_v58 = vunpack.i.h.bf16 %v6983_v11  ;;  %v6984_v34 = vunpack.i.l.bf16 %v6983_v11  ;;  %v6998_v49 = vpop.permute.xlu0 %6997  ;;  %4640 = vmatprep.mubr.f32.mxu0 %v4339_v35  ;;  %v4533_v1 = vadd.f32 %v11004_v19, %v11472_v39  ;;  %v11473_v35 = vld [vmem:[#allocation38_spill] sm:$0xff] }
 0x588   : > { %4641 = vmatmul.mubr.f32.gmra.mxu0 %v4243_v17  ;;  %v7000_v12 = vunpack.i.h.bf16 %v6998_v49  ;;  %v6999_v16 = vunpack.i.l.bf16 %v6998_v49  ;;  %v4528_v17 = vadd.f32 %v11004_v19, %v11473_v35 }
 0x589   : > { %v4276_v55 = vsel %vm1581_vm10, %v10220_v13, %v6984_v34  ;;  %v4181_v60 = vsel %vm1581_vm10, %v11468_v21, %v6985_v58 }
 0x58a   : > { %v6993_v29 = vpop.permute.xlu1 %6992  ;;  %v4308_v62 = vsel %vm2926_vm13, %v4276_v55, %v6989_v22  ;;  %v4212_v63 = vsel %vm2926_vm13, %v4181_v60, %v6990_v45  ;;  %v4277_v2 = vsel %vm1581_vm10, %v10207_v6, %v6999_v16  ;;  %v4182_v57 = vsel %vm1581_vm10, %v11469_v36, %v7000_v12  ;;  %v11474_v45 = vld [vmem:[#allocation16_spill] sm:$0xff] }
 0x58b   : > { %v6995_v28 = vunpack.i.h.bf16 %v6993_v29  ;;  %v6994_v53 = vunpack.i.l.bf16 %v6993_v29  ;;  %v7008_v13 = vpop.permute.xlu0 %7007  ;;  %v4543_v22 = vadd.f32 %v11004_v19, %v11474_v45 }
 0x58c   : > { %v7010_v9 = vunpack.i.h.bf16 %v7008_v13  ;;  %v7009_v18 = vunpack.i.l.bf16 %v7008_v13 }
 0x58d   : > { %v4340_v50 = vsel %vm2992_vm15, %v4308_v62, %v6994_v53  ;;  %v4244_v23 = vsel %vm2992_vm15, %v4212_v63, %v6995_v28  ;;  %v4538_v28 = vadd.f32 %v11004_v19, %v11475_v4 }
 0x58e   : > { %v7003_v48 = vpop.permute.xlu1 %7002  ;;  %4645 = vmatprep.mubr.f32.mxu0 %v4340_v50 }
 0x58f   : > { %v7005_v44 = vunpack.i.h.bf16 %v7003_v48  ;;  %v7004_v26 = vunpack.i.l.bf16 %v7003_v48  ;;  %4646 = vmatmul.mubr.f32.gmra.mxu0 %v4244_v23  ;;  %v11476_v23 = vld [vmem:[#allocation45_spill] sm:$0xff] }
 0x590   : > { %v4553_v48 = vadd.f32 %v11004_v19, %v11476_v23 }
 0x591   : > { %v4309_v14 = vsel %vm2926_vm13, %v4277_v2, %v7004_v26  ;;  %v4213_v42 = vsel %vm2926_vm13, %v4182_v57, %v7005_v44  ;;  %v11477_v26 = vld [vmem:[#allocation20_spill] sm:$0xff] }
 0x592   : > { %v4341_v47 = vsel %vm2992_vm15, %v4309_v14, %v7009_v18  ;;  %v4245_v61 = vsel %vm2992_vm15, %v4213_v42, %v7010_v9  ;;  %v4548_v9 = vadd.f32 %v11004_v19, %v11477_v26 }
 0x593   : > { %4650 = vmatprep.mubr.f32.mxu0 %v4341_v47 }
 0x594   : > { %4651 = vmatmul.mubr.f32.gmra.mxu0 %v4245_v61 }
 0x5d3   : > { %v4562_v40 = vpop.f32.mrf.mxu0 }
 0x5d4   : > { %v4563_v47 = vadd.f32 %v11004_v19, %v4562_v40 }
 0x5d5   : > { %v4564_v5 = vpop.f32.mrf.mxu0 }
 0x5d6   : > { %v11478_v5 = vld [vmem:[#allocation46_spill] sm:$0xff] }
 0x5de   : > { %v10989_v31 = vpop.f32.mrf.mxu1 }
 0x5df   : > { %v10991_v54 = vpop.f32.mrf.mxu0 }
 0x5e0   : > { %v4659_v6 = vpop.f32.mrf.mxu1  ;;  %v4568_v40 = vadd.f32 %v11004_v19, %v10991_v54 }
 0x5e1   : > { %v4569_v7 = vpop.f32.mrf.mxu0  ;;  %v4558_v6 = vadd.f32 %v11004_v19, %v11478_v5 }
 0x5ea   : > { %v10993_v25 = vpop.f32.mrf.mxu1 }
 0x5eb   : > { %v4572_v27 = vpop.f32.mrf.mxu0 }
 0x5ec   : > { %v4664_v51 = vpop.f32.mrf.mxu1 }
 0x5ed   : > { %v4574_v15 = vpop.f32.mrf.mxu0 }
 0x5f6   : > { %v10995_v56 = vpop.f32.mrf.mxu1 }
 0x5f7   : > { %v10997_v43 = vpop.f32.mrf.mxu0 }
 0x5f8   : > { %v4669_v0 = vpop.f32.mrf.mxu1 }
 0x5f9   : > { %v4579_v10 = vpop.f32.mrf.mxu0 }
 0x5fd   : > { %v10999_v52 = vpop.f32.mrf.mxu1 }
 0x5ff   : > { %v4674_v32 = vpop.f32.mrf.mxu1 }
 0x600   : > { %v11006_v33 = vpop.f32.mrf.mxu0  ;;  %v4573_v32 = vadd.f32 %v11004_v19, %v4572_v27  ;;  %v4578_v27 = vadd.f32 %v11004_v19, %v10997_v43 }
 0x601   : > { %v5807_v41 = vpop.f32.mrf.mxu1 }
 0x602   : > { %v4584_v30 = vpop.f32.mrf.mxu0  ;;  %v4748_v20 = vadd.f32 %v5807_v41, %v4523_v38 }
 0x603   : > { %v4742_v3 = vpop.f32.mrf.mxu1 }
 0x604   : > { %v4743_v8 = vadd.f32 %v4742_v3, %v4518_v46  ;;  %v4902_v34 = vmax.f32 %v4748_v20, 0.0 }
 0x605   : > { %v5810_v11 = vpop.f32.mrf.mxu1 }
 0x606   : > { %v4901_v58 = vmax.f32 %v4743_v8, 0.0  ;;  %v4758_v49 = vadd.f32 %v5810_v11, %v4533_v1  ;;  %v4583_v8 = vadd.f32 %v11004_v19, %v11006_v33 }
 0x607   : > { %v4752_v55 = vpop.f32.mrf.mxu1 }
 0x608   : > { %v11016_v21 = vpop.f32.mrf.mxu0  ;;  %v4753_v60 = vadd.f32 %v4752_v55, %v4528_v17  ;;  %5861 = vmatprep.mubr.msk.f32.mxu0 %vm1581_vm10, %v4901_v58  ;;  %v4904_v16 = vmax.f32 %v4758_v49, 0.0 }
 0x609   : > { %v5813_v29 = vpop.f32.mrf.mxu1  ;;  %5862 = vmatmul.mubr.msk.f32.vlgmr.msra.gmra.mxu0 %vm1581_vm10, %v4902_v34  ;;  %v4588_v33 = vadd.f32 %v11004_v19, %v11016_v21 }
 0x60a   : > { %v4903_v53 = vmax.f32 %v4753_v60, 0.0  ;;  %v4589_v12 = vpop.f32.mrf.mxu0  ;;  %v4768_v62 = vadd.f32 %v5813_v29, %v4543_v22 }
 0x60b   : > { %v4762_v63 = vpop.f32.mrf.mxu1 }
 0x60c   : > { %v4763_v13 = vadd.f32 %v4762_v63, %v4538_v28  ;;  %v4592_v50 = vpop.f32.mrf.mxu0  ;;  %5864 = vmatprep.mubr.msk.f32.mxu0 %vm1581_vm10, %v4903_v53  ;;  %v4906_v36 = vmax.f32 %v4768_v62, 0.0 }
 0x60d   : > { %v5816_v44 = vpop.f32.mrf.mxu1  ;;  %5865 = vmatmul.mubr.msk.f32.gmra.mxu0 %vm1581_vm10, %v4904_v16  ;;  %v4593_v34 = vadd.f32 %v11004_v19, %v4592_v50 }
 0x60e   : > { %v4905_v18 = vmax.f32 %v4763_v13, 0.0  ;;  %v4594_v2 = vpop.f32.mrf.mxu0  ;;  %v4778_v57 = vadd.f32 %v5816_v44, %v4553_v48 }
 0x60f   : > { %v4772_v14 = vpop.f32.mrf.mxu1 }
 0x610   : > { %v4773_v42 = vadd.f32 %v4772_v14, %v4548_v9  ;;  %5867 = vmatprep.mubr.msk.f32.mxu0 %vm1581_vm10, %v4905_v18  ;;  %v4908_v7 = vmax.f32 %v4778_v57, 0.0 }
 0x611   : > { %v5819_v61 = vpop.f32.mrf.mxu1  ;;  %5868 = vmatmul.mubr.msk.f32.gmra.mxu0 %vm1581_vm10, %v4906_v36 }
 0x612   : > { %v4907_v24 = vmax.f32 %v4773_v42, 0.0  ;;  %v4788_v51 = vadd.f32 %v5819_v61, %v4563_v47 }
 0x613   : > { %v4782_v15 = vpop.f32.mrf.mxu1 }
 0x614   : > { %v4597_v0 = vpop.f32.mrf.mxu0  ;;  %v4783_v10 = vadd.f32 %v4782_v15, %v4558_v6  ;;  %5870 = vmatprep.mubr.msk.f32.mxu0 %vm1581_vm10, %v4907_v24  ;;  %v4910_v59 = vmax.f32 %v4788_v51, 0.0 }
 0x615   : > { %v5822_v37 = vpop.f32.mrf.mxu1  ;;  %5871 = vmatmul.mubr.msk.f32.gmra.mxu0 %vm1581_vm10, %v4908_v7  ;;  %v4598_v53 = vadd.f32 %v11004_v19, %v4597_v0 }
 0x616   : > { %v4909_v38 = vmax.f32 %v4783_v10, 0.0  ;;  %v4599_v41 = vpop.f32.mrf.mxu0  ;;  %v4798_v46 = vadd.f32 %v5822_v37, %v4573_v32 }
 0x617   : > { %v4792_v30 = vpop.f32.mrf.mxu1 }
 0x618   : > { %v4793_v20 = vadd.f32 %v4792_v30, %v4568_v40  ;;  %v4602_v3 = vpop.f32.mrf.mxu0  ;;  %5873 = vmatprep.mubr.msk.f32.mxu0 %vm1581_vm10, %v4909_v38  ;;  %v4912_v11 = vmax.f32 %v4798_v46, 0.0 }
 0x619   : > { %v5825_v39 = vpop.f32.mrf.mxu1  ;;  %5874 = vmatmul.mubr.msk.f32.gmra.mxu0 %vm1581_vm10, %v4910_v59  ;;  %v4603_v4 = vadd.f32 %v11004_v19, %v4602_v3 }
 0x61a   : > { %v4911_v1 = vmax.f32 %v4793_v20, 0.0  ;;  %v4604_v54 = vpop.f32.mrf.mxu0  ;;  %v4808_v35 = vadd.f32 %v5825_v39, %v4583_v8 }
 0x61b   : > { %v4802_v17 = vpop.f32.mrf.mxu1 }
 0x61c   : > { %v4803_v58 = vadd.f32 %v4802_v17, %v4578_v27  ;;  %5876 = vmatprep.mubr.msk.f32.mxu0 %vm1581_vm10, %v4911_v1  ;;  %v4914_v60 = vmax.f32 %v4808_v35, 0.0 }
 0x61d   : > { %v5828_v49 = vpop.f32.mrf.mxu1  ;;  %5877 = vmatmul.mubr.msk.f32.gmra.mxu0 %vm1581_vm10, %v4912_v11 }
 0x61e   : > { %v4913_v55 = vmax.f32 %v4803_v58, 0.0  ;;  %v4818_v45 = vadd.f32 %v5828_v49, %v4593_v34 }
 0x61f   : > { %v4812_v43 = vpop.f32.mrf.mxu1 }
 0x620   : > { %v4607_v22 = vpop.f32.mrf.mxu0  ;;  %v4813_v29 = vadd.f32 %v4812_v43, %v4588_v33  ;;  %5879 = vmatprep.mubr.msk.f32.mxu0 %vm1581_vm10, %v4913_v55  ;;  %v4916_v62 = vmax.f32 %v4818_v45, 0.0 }
 0x621   : > { %v5831_v28 = vpop.f32.mrf.mxu1  ;;  %5880 = vmatmul.mubr.msk.f32.gmra.mxu0 %vm1581_vm10, %v4914_v60  ;;  %v4608_v44 = vadd.f32 %v11004_v19, %v4607_v22 }
 0x622   : > { %v4915_v12 = vmax.f32 %v4813_v29, 0.0  ;;  %v4609_v16 = vpop.f32.mrf.mxu0  ;;  %v4828_v63 = vadd.f32 %v5831_v28, %v4603_v4 }
 0x623   : > { %v4822_v21 = vpop.f32.mrf.mxu1 }
 0x624   : > { %v4823_v13 = vadd.f32 %v4822_v21, %v4598_v53  ;;  %v4612_v50 = vpop.f32.mrf.mxu0  ;;  %5882 = vmatprep.mubr.msk.f32.mxu0 %vm1581_vm10, %v4915_v12  ;;  %v4918_v18 = vmax.f32 %v4828_v63, 0.0  ;;  %v4658_v21 = vadd.f32 %v11004_v19, %v10989_v31 }
 0x625   : > { %v4613_v23 = vadd.f32 %v11004_v19, %v4612_v50  ;;  %v5834_v48 = vpop.f32.mrf.mxu1  ;;  %5883 = vmatmul.mubr.msk.f32.gmra.mxu0 %vm1581_vm10, %v4916_v62 }
 0x626   : > { %v4917_v26 = vmax.f32 %v4823_v13, 0.0  ;;  %v4614_v9 = vpop.f32.mrf.mxu0 }
 0x627   : > { %v4838_v2 = vadd.f32 %v5834_v48, %v4613_v23  ;;  %v4832_v36 = vpop.f32.mrf.mxu1 }
 0x628   : > { %v4833_v57 = vadd.f32 %v4832_v36, %v4608_v44  ;;  %5885 = vmatprep.mubr.msk.f32.mxu0 %vm1581_vm10, %v4917_v26  ;;  %v4663_v26 = vadd.f32 %v11004_v19, %v10993_v25 }
 0x629   : > { %v5837_v14 = vpop.f32.mrf.mxu1  ;;  %5886 = vmatmul.mubr.msk.f32.gmra.mxu0 %vm1581_vm10, %v4918_v18  ;;  %v4920_v47 = vmax.f32 %v4838_v2, 0.0  ;;  %v4668_v2 = vadd.f32 %v11004_v19, %v10995_v56 }
 0x62a   : > { %v4919_v42 = vmax.f32 %v4833_v57, 0.0 }
 0x62b   : > { %v4617_v61 = vpop.f32.mrf.mxu0  ;;  %v4842_v6 = vpop.f32.mrf.mxu1 }
 0x62c   : > { %v4618_v5 = vadd.f32 %v11004_v19, %v4617_v61  ;;  %5888 = vmatprep.mubr.msk.f32.mxu0 %vm1581_vm10, %v4919_v42  ;;  %v4673_v42 = vadd.f32 %v11004_v19, %v10999_v52 }
 0x62d   : > { %v4619_v24 = vpop.f32.mrf.mxu0  ;;  %5889 = vmatmul.mubr.msk.f32.gmra.mxu0 %vm1581_vm10, %v4920_v47  ;;  %v5840_v32 = vpop.f32.mrf.mxu1 }
 0x62e   : > { %v4843_v7 = vadd.f32 %v4842_v6, %v4618_v5  ;;  %v11099_v24 = vld [vmem:[%s11183_s8] ss:$0 sm:$0xff] }
 0x62f   : > { %v4852_v38 = vpop.f32.mrf.mxu1 }
 0x630   : > { %v4921_v51 = vmax.f32 %v4843_v7, 0.0  ;;  %v4622_v15 = vpop.f32.mrf.mxu0 }
 0x631   : > { %v4623_v0 = vadd.f32 %v11004_v19, %v4622_v15  ;;  %v5843_v20 = vpop.f32.mrf.mxu1 }
 0x632   : > { %v4624_v10 = vpop.f32.mrf.mxu0  ;;  %5891 = vmatprep.mubr.msk.f32.mxu0 %vm1581_vm10, %v4921_v51 }
 0x633   : > { %v4848_v37 = vadd.f32 %v5837_v14, %v4623_v0  ;;  %v4862_v1 = vpop.f32.mrf.mxu1 }
 0x635   : > { %v4922_v40 = vmax.f32 %v4848_v37, 0.0  ;;  %v5846_v35 = vpop.f32.mrf.mxu1 }
 0x637   : > { %v4627_v41 = vpop.f32.mrf.mxu0  ;;  %5892 = vmatmul.mubr.msk.f32.gmra.mxu0 %vm1581_vm10, %v4922_v40  ;;  %v4872_v33 = vpop.f32.mrf.mxu1 }
 0x638   : > { %v4628_v59 = vadd.f32 %v11004_v19, %v4627_v41 }
 0x639   : > { %v4629_v46 = vpop.f32.mrf.mxu0  ;;  %v5849_v22 = vpop.f32.mrf.mxu1 }
 0x63a   : > { %v4853_v30 = vadd.f32 %v4852_v38, %v4628_v59  ;;  %v4888_v36 = vadd.f32 %v5849_v22, %v4663_v26 }
 0x63b   : > { %v4882_v28 = vpop.f32.mrf.mxu1 }
 0x63c   : > { %v4923_v3 = vmax.f32 %v4853_v30, 0.0  ;;  %v4632_v8 = vpop.f32.mrf.mxu0  ;;  %v4883_v48 = vadd.f32 %v4882_v28, %v4658_v21  ;;  %v4930_v47 = vmax.f32 %v4888_v36, 0.0 }
 0x63d   : > { %v4633_v39 = vadd.f32 %v11004_v19, %v4632_v8  ;;  %v5852_v63 = vpop.f32.mrf.mxu1 }
 0x63e   : > { %v4634_v27 = vpop.f32.mrf.mxu0  ;;  %5894 = vmatprep.mubr.msk.f32.mxu0 %vm1581_vm10, %v4923_v3  ;;  %v4929_v31 = vmax.f32 %v4883_v48, 0.0  ;;  %v4898_v25 = vadd.f32 %v5852_v63, %v4673_v42 }
 0x63f   : > { %v4858_v54 = vadd.f32 %v5840_v32, %v4633_v39  ;;  %v4892_v9 = vpop.f32.mrf.mxu1 }
 0x640   : > { %v4893_v14 = vadd.f32 %v4892_v9, %v4668_v2  ;;  %v4932_v56 = vmax.f32 %v4898_v25, 0.0 }
 0x641   : > { %v4924_v11 = vmax.f32 %v4858_v54, 0.0  ;;  %v5736_v5 = vpop.f32.mrf.mxu1 }
 0x642   : > { %v4931_v61 = vmax.f32 %v4893_v14, 0.0 }
 0x643   : > { %v4637_v17 = vpop.f32.mrf.mxu0  ;;  %5895 = vmatmul.mubr.msk.f32.gmra.mxu0 %vm1581_vm10, %v4924_v11  ;;  %v5737_v6 = vpop.f32.mrf.mxu1 }
 0x644   : > { %v4638_v58 = vadd.f32 %v11004_v19, %v4637_v17  ;;  %v5738_v52 = vadd.f32 %v5737_v6, %v5736_v5 }
 0x645   : > { %v4639_v34 = vpop.f32.mrf.mxu0 }
 0x646   : > { %v4863_v49 = vadd.f32 %v4862_v1, %v4638_v58 }
 0x648   : > { %v4925_v55 = vmax.f32 %v4863_v49, 0.0  ;;  %v4642_v60 = vpop.f32.mrf.mxu0 }
 0x649   : > { %v4643_v45 = vadd.f32 %v11004_v19, %v4642_v60 }
 0x64a   : > { %v4644_v43 = vpop.f32.mrf.mxu0  ;;  %5897 = vmatprep.mubr.msk.f32.mxu0 %vm1581_vm10, %v4925_v55 }
 0x64b   : > { %v4868_v29 = vadd.f32 %v5843_v20, %v4643_v45 }
 0x64d   : > { %v4926_v4 = vmax.f32 %v4868_v29, 0.0 }
 0x64f   : > { %v4647_v53 = vpop.f32.mrf.mxu0  ;;  %5898 = vmatmul.mubr.msk.f32.gmra.mxu0 %vm1581_vm10, %v4926_v4 }
 0x650   : > { %v4648_v12 = vadd.f32 %v11004_v19, %v4647_v53 }
 0x651   : > { %v4649_v16 = vpop.f32.mrf.mxu0 }
 0x652   : > { %v4873_v62 = vadd.f32 %v4872_v33, %v4648_v12 }
 0x654   : > { %v4927_v13 = vmax.f32 %v4873_v62, 0.0  ;;  %v4652_v50 = vpop.f32.mrf.mxu0 }
 0x655   : > { %v4653_v23 = vadd.f32 %v11004_v19, %v4652_v50  ;;  %v5367_v19 = vsel %vm1581_vm10, %v5738_v52, 0.0 }
 0x656   : > { %v4654_v44 = vpop.f32.mrf.mxu0  ;;  %5900 = vmatprep.mubr.msk.f32.mxu0 %vm1581_vm10, %v4927_v13  ;;  %5368 = vst [vmem:[%s368_s19] sm:$0x1] %v5367_v19 }
 0x657   : > { %v4878_v18 = vadd.f32 %v5846_v35, %v4653_v23 }
 0x659   : > { %v4928_v57 = vmax.f32 %v4878_v18, 0.0 }
 0x65b   : > { %5901 = vmatmul.mubr.msk.f32.gmra.mxu0 %vm1581_vm10, %v4928_v57 }
 0x65c   : > { %5903 = vmatprep.mubr.msk.f32.mxu0 %vm1581_vm10, %v4929_v31 }
 0x65f   : > { %5904 = vmatmul.mubr.msk.f32.gmra.mxu0 %vm1581_vm10, %v4930_v47 }
 0x660   : > { %5906 = vmatprep.mubr.msk.f32.mxu0 %vm1581_vm10, %v4931_v61 }
 0x663   : > { %5907 = vmatmul.mubr.msk.f32.gmra.mxu0 %vm1581_vm10, %v4932_v56 }
 0x6c9   : > { %v5863_v7 = vpop.f32.mrf.mxu0 }
 0x6ca   : > { %v5112_v51 = vadd.f32 %v5863_v7, %v11099_v24 }
 0x6cb   : > { %v5106_v15 = vpop.f32.mrf.mxu0 }
 0x6cc   : > { %5266 = vst [vmem:[%s11106_s21 + $0x8] sm:$0xff] %v5112_v51  ;;  %v5107_v0 = vadd.f32 %v11099_v24, %v5106_v15 }
 0x6cd   : > { %v5866_v10 = vpop.f32.mrf.mxu0 }
 0x6ce   : > { %5265 = vst [vmem:[%s11106_s21] sm:$0xff] %v5107_v0  ;;  %v5122_v32 = vadd.f32 %v5866_v10, %v11099_v24 }
 0x6cf   : > { %v5116_v37 = vpop.f32.mrf.mxu0 }
 0x6d0   : > { %5268 = vst [vmem:[%s11106_s21 + $0x18] sm:$0xff] %v5122_v32  ;;  %v5117_v40 = vadd.f32 %v11099_v24, %v5116_v37 }
 0x6d1   : > { %v5869_v38 = vpop.f32.mrf.mxu0 }
 0x6d2   : > { %5267 = vst [vmem:[%s11106_s21 + $0x10] sm:$0xff] %v5117_v40  ;;  %v5132_v41 = vadd.f32 %v5869_v38, %v11099_v24 }
 0x6d3   : > { %v5126_v59 = vpop.f32.mrf.mxu0 }
 0x6d4   : > { %5270 = vst [vmem:[%s11106_s21 + $0x28] sm:$0xff] %v5132_v41  ;;  %v5127_v46 = vadd.f32 %v11099_v24, %v5126_v59 }
 0x6d5   : > { %v5872_v30 = vpop.f32.mrf.mxu0 }
 0x6d6   : > { %5269 = vst [vmem:[%s11106_s21 + $0x20] sm:$0xff] %v5127_v46  ;;  %v5142_v20 = vadd.f32 %v5872_v30, %v11099_v24 }
 0x6d7   : > { %v5136_v3 = vpop.f32.mrf.mxu0 }
 0x6d8   : > { %5272 = vst [vmem:[%s11106_s21 + $0x38] sm:$0xff] %v5142_v20  ;;  %v5137_v8 = vadd.f32 %v11099_v24, %v5136_v3 }
 0x6d9   : > { %v5875_v39 = vpop.f32.mrf.mxu0 }
 0x6da   : > { %5271 = vst [vmem:[%s11106_s21 + $0x30] sm:$0xff] %v5137_v8  ;;  %v5152_v27 = vadd.f32 %v5875_v39, %v11099_v24 }
 0x6db   : > { %v5146_v1 = vpop.f32.mrf.mxu0 }
 0x6dc   : > { %5274 = vst [vmem:[%s11106_s21 + $0x48] sm:$0xff] %v5152_v27  ;;  %v5147_v54 = vadd.f32 %v11099_v24, %v5146_v1 }
 0x6dd   : > { %v5878_v11 = vpop.f32.mrf.mxu0 }
 0x6de   : > { %5273 = vst [vmem:[%s11106_s21 + $0x40] sm:$0xff] %v5147_v54  ;;  %v5162_v35 = vadd.f32 %v5878_v11, %v11099_v24 }
 0x6df   : > { %v5156_v17 = vpop.f32.mrf.mxu0 }
 0x6e0   : > { %5276 = vst [vmem:[%s11106_s21 + $0x58] sm:$0xff] %v5162_v35  ;;  %v5157_v58 = vadd.f32 %v11099_v24, %v5156_v17 }
 0x6e1   : > { %v5881_v34 = vpop.f32.mrf.mxu0 }
 0x6e2   : > { %5275 = vst [vmem:[%s11106_s21 + $0x50] sm:$0xff] %v5157_v58  ;;  %v5172_v49 = vadd.f32 %v5881_v34, %v11099_v24 }
 0x6e3   : > { %v5166_v33 = vpop.f32.mrf.mxu0 }
 0x6e4   : > { %5278 = vst [vmem:[%s11106_s21 + $0x68] sm:$0xff] %v5172_v49  ;;  %v5167_v55 = vadd.f32 %v11099_v24, %v5166_v33 }
 0x6e5   : > { %v5884_v60 = vpop.f32.mrf.mxu0 }
 0x6e6   : > { %5277 = vst [vmem:[%s11106_s21 + $0x60] sm:$0xff] %v5167_v55  ;;  %v5182_v45 = vadd.f32 %v5884_v60, %v11099_v24 }
 0x6e7   : > { %v5176_v43 = vpop.f32.mrf.mxu0 }
 0x6e8   : > { %5280 = vst [vmem:[%s11106_s21 + $0x78] sm:$0xff] %v5182_v45  ;;  %v5177_v22 = vadd.f32 %v11099_v24, %v5176_v43 }
 0x6e9   : > { %v5887_v29 = vpop.f32.mrf.mxu0 }
 0x6ea   : > { %5279 = vst [vmem:[%s11106_s21 + $0x70] sm:$0xff] %v5177_v22  ;;  %v5192_v4 = vadd.f32 %v5887_v29, %v11099_v24 }
 0x6eb   : > { %v5186_v28 = vpop.f32.mrf.mxu0 }
 0x6ec   : > { %5282 = vst [vmem:[%s11106_s21 + $0x88] sm:$0xff] %v5192_v4  ;;  %v5187_v53 = vadd.f32 %v11099_v24, %v5186_v28 }
 0x6ed   : > { %v5890_v12 = vpop.f32.mrf.mxu0 }
 0x6ee   : > { %5281 = vst [vmem:[%s11106_s21 + $0x80] sm:$0xff] %v5187_v53  ;;  %v5202_v16 = vadd.f32 %v5890_v12, %v11099_v24 }
 0x6ef   : > { %v5196_v62 = vpop.f32.mrf.mxu0 }
 0x6f0   : > { %5284 = vst [vmem:[%s11106_s21 + $0x98] sm:$0xff] %v5202_v16  ;;  %v5197_v63 = vadd.f32 %v11099_v24, %v5196_v62 }
 0x6f2   : > { %5283 = vst [vmem:[%s11106_s21 + $0x90] sm:$0xff] %v5197_v63 }
 0x6f7   : > { %v5893_v21 = vpop.f32.mrf.mxu0 }
 0x6f8   : > { %v5212_v13 = vadd.f32 %v5893_v21, %v11099_v24 }
 0x6f9   : > { %v5206_v50 = vpop.f32.mrf.mxu0 }
 0x6fa   : > { %5286 = vst [vmem:[%s11106_s21 + $0xa8] sm:$0xff] %v5212_v13  ;;  %v5207_v23 = vadd.f32 %v11099_v24, %v5206_v50 }
 0x6fc   : > { %5285 = vst [vmem:[%s11106_s21 + $0xa0] sm:$0xff] %v5207_v23 }
 0x703   : > { %v5896_v48 = vpop.f32.mrf.mxu0 }
 0x704   : > { %v5222_v44 = vadd.f32 %v5896_v48, %v11099_v24 }
 0x705   : > { %v5216_v26 = vpop.f32.mrf.mxu0 }
 0x706   : > { %5288 = vst [vmem:[%s11106_s21 + $0xb8] sm:$0xff] %v5222_v44  ;;  %v5217_v9 = vadd.f32 %v11099_v24, %v5216_v26 }
 0x708   : > { %5287 = vst [vmem:[%s11106_s21 + $0xb0] sm:$0xff] %v5217_v9 }
 0x70f   : > { %v5899_v18 = vpop.f32.mrf.mxu0 }
 0x710   : > { %v5232_v2 = vadd.f32 %v5899_v18, %v11099_v24 }
 0x711   : > { %v5226_v36 = vpop.f32.mrf.mxu0 }
 0x712   : > { %5290 = vst [vmem:[%s11106_s21 + $0xc8] sm:$0xff] %v5232_v2  ;;  %v5227_v57 = vadd.f32 %v11099_v24, %v5226_v36 }
 0x714   : > { %5289 = vst [vmem:[%s11106_s21 + $0xc0] sm:$0xff] %v5227_v57 }
 0x71b   : > { %v5902_v31 = vpop.f32.mrf.mxu0 }
 0x71c   : > { %v5242_v14 = vadd.f32 %v5902_v31, %v11099_v24 }
 0x71d   : > { %v5236_v42 = vpop.f32.mrf.mxu0 }
 0x71e   : > { %5292 = vst [vmem:[%s11106_s21 + $0xd8] sm:$0xff] %v5242_v14  ;;  %v5237_v47 = vadd.f32 %v11099_v24, %v5236_v42 }
 0x71f   : > { %v5905_v25 = vpop.f32.mrf.mxu0 }
 0x720   : > { %5291 = vst [vmem:[%s11106_s21 + $0xd0] sm:$0xff] %v5237_v47  ;;  %v5252_v61 = vadd.f32 %v5905_v25, %v11099_v24 }
 0x721   : > { %v5246_v56 = vpop.f32.mrf.mxu0 }
 0x722   : > { %5294 = vst [vmem:[%s11106_s21 + $0xe8] sm:$0xff] %v5252_v61  ;;  %v5247_v5 = vadd.f32 %v11099_v24, %v5246_v56 }
 0x723   : > { %v5908_v6 = vpop.f32.mrf.mxu0 }
 0x724   : > { %5293 = vst [vmem:[%s11106_s21 + $0xe0] sm:$0xff] %v5247_v5  ;;  %v5262_v52 = vadd.f32 %v5908_v6, %v11099_v24 }
 0x725   : > { %v5256_v19 = vpop.f32.mrf.mxu0 }
 0x726   : > { %5296 = vst [vmem:[%s11106_s21 + $0xf8] sm:$0xff] %v5262_v52  ;;  %v5257_v7 = vadd.f32 %v11099_v24, %v5256_v19 }
 0x728   : > { %5295 = vst [vmem:[%s11106_s21 + $0xf0] sm:$0xff] %v5257_v7 }
 0x729 PF: > { %s21_s13 = sadd.s32 1, %s7034_s13  }
 0x72a   : > { %p18_p4 = scmp.ge.s32.totalorder %s21_s13, 4  }
 0x72c   :  { %20 = sbr.rel (!%p18_p4) target bundleno = 1 (0x1), region = 98 }

</bundles_post_ra>
